<compile_context>
chip_gen: v7x
topology: tpu7x:2x2x1
jax: 0.10.0
libtpu: 0.0.40
codegen_flags: <defaults>
</compile_context>

<pallas_src>
import functools

import jax
import jax.numpy as jnp
from jax.experimental import pallas as pl
from jax.experimental.pallas import tpu as pltpu


VMEM_LIMIT = 32 << 20  # safe on v5e/v6e (128 MiB) and v7x (64 MiB physical)


def _round_up(x, m):
    return ((x + m - 1) // m) * m


@functools.lru_cache(maxsize=1)
def _num_tensorcores():
    """TensorCores addressable by one pallas_call via megacore 'parallel'."""
    try:
        kind = jax.devices()[0].device_kind.lower()
    except Exception:
        return 1
    return 2 if any(t in kind for t in ("v4", "v5p", "v7", "7x")) else 1


# ----------------------------------------------------------------------------
# Pallas kernel 1: fused GEMM + per-channel shift + leaky_relu   (conv1, conv2)
#   out = leaky_relu(a @ w + shift)        (BN scale already folded into w)
# ----------------------------------------------------------------------------
def _gemm_act_kernel(a_ref, w_ref, shift_ref, o_ref, *, slope):
    acc = jnp.dot(a_ref[...], w_ref[...], preferred_element_type=jnp.float32)
    y = acc + shift_ref[...]
    o_ref[...] = jnp.maximum(y, slope * y).astype(o_ref.dtype)


def fused_gemm_act(a, w, shift, *, slope):
    """a: (M, K) bf16/f32, w: (K, N) bf16 pre-packed, shift: (1, N) f32.

    Emits bf16.  Splits M across two grid steps only on multi-TensorCore
    chips; single step on v5e/v6e.  N tiles kept lane-dense (>=128).
    """
    M, K = a.shape
    K2, N = w.shape
    assert K == K2 and N % 128 == 0
    if a.dtype != jnp.bfloat16:
        a = a.astype(jnp.bfloat16)

    tn = min(N, 512)
    if _num_tensorcores() > 1 and M >= 32:
        tm = _round_up(-(-M // 2), 16)   # ceil(M/2), rounded up to mult. of 16
        grid_m = 2
    else:
        tm = _round_up(max(M, 16), 16)
        grid_m = 1
    Mp = tm * grid_m
    if Mp != M:
        a = jnp.pad(a, ((0, Mp - M), (0, 0)))

    out = pl.pallas_call(
        functools.partial(_gemm_act_kernel, slope=float(slope)),
        out_shape=jax.ShapeDtypeStruct((Mp, N), jnp.bfloat16),
        grid_spec=pltpu.PrefetchScalarGridSpec(
            num_scalar_prefetch=0,
            grid=(grid_m, N // tn),
            in_specs=[
                pl.BlockSpec((tm, K), lambda i, j: (i, 0)),
                pl.BlockSpec((K, tn), lambda i, j: (0, j)),
                pl.BlockSpec((1, tn), lambda i, j: (0, j)),
            ],
            out_specs=pl.BlockSpec((tm, tn), lambda i, j: (i, j)),
        ),
        compiler_params=pltpu.CompilerParams(
            dimension_semantics=("parallel", "parallel"),
            vmem_limit_bytes=VMEM_LIMIT,
        ),
    )(a, w, shift)
    return out[:M] if Mp != M else out


# ----------------------------------------------------------------------------
# Pallas kernel 2: fused conv3-GEMM (int8 weight) + BN + leaky_relu + fc matmul
#   hidden_j = leaky_relu((a @ w3q[:, tile]) * scale3[tile] + shift3[tile])
#   acc     += hidden_j @ wf[tile, :]        (accumulated over the inner axis)
#   partial slab written on the last inner step; fc bias + ReLU finish in XLA.
# ----------------------------------------------------------------------------
def _conv3_fc_kernel(a_ref, w3_ref, scl3_ref, s3_ref, wf_ref, o_ref, acc_ref,
                     *, slope):
    j = pl.program_id(1)

    @pl.when(j == 0)
    def _():
        acc_ref[...] = jnp.zeros_like(acc_ref)

    w3 = w3_ref[...].astype(jnp.bfloat16)        # int8 -> bf16 dequant (VPU)
    h = jnp.dot(a_ref[...], w3, preferred_element_type=jnp.float32)
    h = h * scl3_ref[...] + s3_ref[...]          # per-channel scale + BN shift
    h = jnp.maximum(h, slope * h)                # leaky_relu
    acc_ref[...] += jnp.dot(h.astype(wf_ref.dtype), wf_ref[...],
                            preferred_element_type=jnp.float32)

    @pl.when(j == pl.num_programs(1) - 1)
    def _():
        o_ref[...] = acc_ref[...]


def conv3_fc_fused(a, w3_q, scale3, shift3, wf, shiftf, *, slope, tn=256):
    """a: (N, 6272), w3_q: (6272, 1024) int8, wf: (1024, 256) bf16."""
    M, K = a.shape
    _, H = w3_q.shape
    _, O = wf.shape
    if a.dtype != jnp.bfloat16:
        a = a.astype(jnp.bfloat16)

    grid_c = 2 if (_num_tensorcores() > 1 and H % (2 * tn) == 0) else 1
    jsteps = H // (grid_c * tn)
    assert grid_c * jsteps * tn == H

    Mp = _round_up(max(M, 16), 16)
    if Mp != M:
        a = jnp.pad(a, ((0, Mp - M), (0, 0)))

    col = lambda c, j: (0, c * jsteps + j)       # column-tile index into H

    partials = pl.pallas_call(
        functools.partial(_conv3_fc_kernel, slope=float(slope)),
        out_shape=jax.ShapeDtypeStruct((grid_c, Mp, O), jnp.float32),
        grid_spec=pltpu.PrefetchScalarGridSpec(
            num_scalar_prefetch=0,
            grid=(grid_c, jsteps),
            in_specs=[
                pl.BlockSpec((Mp, K), lambda c, j: (0, 0)),
                pl.BlockSpec((K, tn), col),
                pl.BlockSpec((1, tn), col),
                pl.BlockSpec((1, tn), col),
                pl.BlockSpec((tn, O), lambda c, j: (c * jsteps + j, 0)),
            ],
            out_specs=pl.BlockSpec((None, Mp, O), lambda c, j: (c, 0, 0)),
            scratch_shapes=[pltpu.VMEM((Mp, O), jnp.float32)],
        ),
        compiler_params=pltpu.CompilerParams(
            dimension_semantics=("parallel", "arbitrary"),
            vmem_limit_bytes=VMEM_LIMIT,
        ),
    )(a, w3_q, scale3, shift3, wf)

    total = partials.sum(axis=0)                 # combine per-core partials
    out = jnp.maximum(total + shiftf, 0.0)       # fc bias + final ReLU
    return out[:M] if Mp != M else out


# ----------------------------------------------------------------------------
# Glue: channels-last im2col (no transposes on the activation path)
# ----------------------------------------------------------------------------
def im2col_nhwc(x, kh, kw, stride, pad):
    """x: (N, H, W, C) -> patches (N*OH*OW, KH*KW*C), row order (kh, kw, c)."""
    n, h, w, c = x.shape
    xp = jnp.pad(x, ((0, 0), (pad, pad), (pad, pad), (0, 0)))
    oh = (h + 2 * pad - kh) // stride + 1
    ow = (w + 2 * pad - kw) // stride + 1
    slabs = []
    for i in range(kh):
        for j in range(kw):
            slabs.append(xp[:, i:i + stride * oh:stride,
                            j:j + stride * ow:stride, :])
    patches = jnp.stack(slabs, axis=3)          # (N, OH, OW, KH*KW, C)
    return patches.reshape(n * oh * ow, kh * kw * c), oh, ow


# ----------------------------------------------------------------------------
# Parameter construction (deterministic, synthetic, PyTorch layouts)
# ----------------------------------------------------------------------------
def make_params(key):
    ks = jax.random.split(key, 12)

    def rnd(k, shape, s=0.05):
        return (s * jax.random.normal(k, shape)).astype(jnp.float32)

    return {
        # conv1: Conv2d(1, 64, 4, 2, 1) with bias
        "w1": rnd(ks[0], (64, 1, 4, 4)),
        "b1": rnd(ks[1], (64,)),
        # conv2: Conv2d(64, 128, 4, 2, 1, bias=False) + BatchNorm2d(128)
        "w2": rnd(ks[2], (128, 64, 4, 4)),
        "bn2_gamma": 1.0 + rnd(ks[3], (128,), 0.01),
        "bn2_beta": rnd(ks[4], (128,), 0.01),
        "bn2_mean": rnd(ks[5], (128,), 0.01),
        "bn2_var": 1.0 + jnp.abs(rnd(ks[5], (128,), 0.01)),
        # conv3: Conv2d(128, 1024, 7, bias=False) + BatchNorm2d(1024)
        "w3": rnd(ks[6], (1024, 128, 7, 7), 0.02),
        "bn3_gamma": 1.0 + rnd(ks[7], (1024,), 0.01),
        "bn3_beta": rnd(ks[8], (1024,), 0.01),
        "bn3_mean": rnd(ks[9], (1024,), 0.01),
        "bn3_var": 1.0 + jnp.abs(rnd(ks[9], (1024,), 0.01)),
        # fc1: Linear(1024, 256)
        "wf": rnd(ks[10], (256, 1024), 0.03),   # PyTorch (out, in)
        "bf": rnd(ks[11], (256,)),
    }


def pack_params(p, eps=1e-5):
    """One-time offline packing: (KH*KW*IC, OC) GEMM weights, BN/bias folded
    in f32; conv1/conv2 -> bf16, conv3 -> per-channel int8.  Outside jit."""
    def bn_fold(gamma, beta, mean, var):
        s = gamma / jnp.sqrt(var + eps)
        return s, beta - mean * s

    # conv1: bias only; pad OC 64 -> 128 for lane-dense outputs.
    w1 = p["w1"].transpose(2, 3, 1, 0).reshape(1 * 4 * 4, 64)
    w1 = jnp.pad(w1, ((0, 0), (0, 64)))
    shift1 = jnp.pad(p["b1"], (0, 64)).reshape(1, 128)   # padded lanes stay 0

    # conv2: zero rows for conv1's padded channels; fold BN scale into columns.
    s2, t2 = bn_fold(p["bn2_gamma"], p["bn2_beta"], p["bn2_mean"], p["bn2_var"])
    w2 = jnp.pad(p["w2"], ((0, 0), (0, 64), (0, 0), (0, 0)))     # (128,128,4,4)
    w2 = w2.transpose(2, 3, 1, 0).reshape(4 * 4 * 128, 128) * s2[None, :]
    shift2 = t2.reshape(1, 128)

    # conv3: fold BN scale, then symmetric per-output-channel int8 quant.
    s3, t3 = bn_fold(p["bn3_gamma"], p["bn3_beta"], p["bn3_mean"], p["bn3_var"])
    w3 = p["w3"].transpose(2, 3, 1, 0).reshape(7 * 7 * 128, 1024) * s3[None, :]
    absmax = jnp.max(jnp.abs(w3), axis=0)
    scale3 = jnp.where(absmax > 0, absmax / 127.0, 1.0)
    w3_q = jnp.clip(jnp.round(w3 / scale3[None, :]), -127, 127).astype(jnp.int8)
    shift3 = t3.reshape(1, 1024)

    # fc1
    wf = p["wf"].T                                               # (1024, 256)
    shiftf = p["bf"].reshape(1, 256)

    bf16, f32 = jnp.bfloat16, jnp.float32
    return {
        "w1": w1.astype(bf16), "shift1": shift1.astype(f32),
        "w2": w2.astype(bf16), "shift2": shift2.astype(f32),
        "w3q": w3_q, "scale3": scale3.reshape(1, 1024).astype(f32),
        "shift3": shift3.astype(f32),
        "wf": wf.astype(bf16), "shiftf": shiftf.astype(f32),
    }


# ----------------------------------------------------------------------------
# Forward pass (mirrors Encoder.forward, BatchNorm in eval mode)
# ----------------------------------------------------------------------------
def encoder_forward(p, x):
    # x: (N, 1, 28, 28) NCHW (PyTorch convention); C==1 so NHWC is a reshape.
    n, c, h, w = x.shape
    x = x.reshape(n, h, w, c).astype(jnp.bfloat16)               # NHWC, bf16

    # conv1 + bias + leaky_relu(0.1)           -> (N, 14, 14, 128-padded) bf16
    patches, oh, ow = im2col_nhwc(x, 4, 4, 2, 1)                 # (N*196, 16)
    y = fused_gemm_act(patches, p["w1"], p["shift1"], slope=0.1)
    y = y.reshape(n, oh, ow, 128)

    # conv2 + bn2 + leaky_relu(0.1)            -> (N, 7, 7, 128) bf16
    patches, oh, ow = im2col_nhwc(y, 4, 4, 2, 1)                 # (N*49, 2048)
    y = fused_gemm_act(patches, p["w2"], p["shift2"], slope=0.1)
    y = y.reshape(n, oh, ow, 128)

    # conv3 + bn3 + leaky_relu(0.1) + fc1 + relu  -> (N, 256) f32
    # 7x7 valid conv on a 7x7 map == one patch per sample: pure reshape.
    a3 = y.reshape(n, oh * ow * 128)                             # (N, 6272)
    out = conv3_fc_fused(a3, p["w3q"], p["scale3"], p["shift3"],
                         p["wf"], p["shiftf"], slope=0.1)
    return out


if __name__ == "__main__":
    key = jax.random.PRNGKey(0)
    k_in, k_par = jax.random.split(key)
    # MNIST-style input implied by the architecture (28x28 -> 14 -> 7 -> 1).
    x = jax.random.normal(k_in, (2, 1, 28, 28), dtype=jnp.float32)
    raw_params = make_params(k_par)
    packed = pack_params(raw_params)         # one-time packing, outside jit

    fwd = jax.jit(encoder_forward)
    out = jax.block_until_ready(fwd(packed, x))

    assert out.shape == (2, 256) and out.dtype == jnp.float32
    assert bool(jnp.all(jnp.isfinite(out)))
    assert bool(jnp.all(out >= 0.0))  # final ReLU
    print("KERNEL_OK")
</pallas_src>

<mosaic_0001>
module attributes {stable_mosaic.version = 11 : i64} {
  func.func @_gemm_act_kernel(%arg0: i32, %arg1: i32, %arg2: memref<400x16xbf16, #tpu.memory_space<vmem>>, %arg3: memref<16x128xbf16, #tpu.memory_space<vmem>>, %arg4: memref<1x128xf32, #tpu.memory_space<vmem>>, %arg5: memref<400x128xbf16, #tpu.memory_space<vmem>>) attributes {dimension_semantics = [#tpu.dimension_semantics<parallel>, #tpu.dimension_semantics<parallel>], iteration_bounds = array<i64: 1, 1>, scalar_prefetch = 0 : i64, scratch_operands = 0 : i64, tpu.core_type = #tpu.core_type<tc>, window_params = [{transform_indices = @transform_0, window_bounds = array<i64: 400, 16>}, {transform_indices = @transform_1, window_bounds = array<i64: 16, 128>}, {transform_indices = @transform_2, window_bounds = array<i64: 1, 128>}, {transform_indices = @transform_3, window_bounds = array<i64: 400, 128>}]} {
    %c0 = arith.constant 0 : index
    %c0_0 = arith.constant 0 : index
    %0 = vector.load %arg2[%c0, %c0_0] : memref<400x16xbf16, #tpu.memory_space<vmem>>, vector<400x16xbf16>
    %c0_1 = arith.constant 0 : index
    %c0_2 = arith.constant 0 : index
    %1 = vector.load %arg3[%c0_1, %c0_2] : memref<16x128xbf16, #tpu.memory_space<vmem>>, vector<16x128xbf16>
    %cst = arith.constant dense<0.000000e+00> : vector<400x128xf32>
    %2 = tpu.matmul %0, %1, %cst {dimension_numbers = #tpu.dot_dimension_numbers<[1], [0], [0], [1], [0, 0, 1, 1], [], []>} : vector<400x16xbf16>, vector<16x128xbf16>, vector<400x128xf32> -> vector<400x128xf32>
    %c0_3 = arith.constant 0 : index
    %c0_4 = arith.constant 0 : index
    %3 = vector.load %arg4[%c0_3, %c0_4] : memref<1x128xf32, #tpu.memory_space<vmem>>, vector<1x128xf32>
    %4 = vector.broadcast %3 : vector<1x128xf32> to vector<400x128xf32>
    %5 = arith.addf %2, %4 : vector<400x128xf32>
    %cst_5 = arith.constant 1.000000e-01 : f32
    %6 = vector.broadcast %cst_5 : f32 to vector<400x128xf32>
    %7 = arith.mulf %6, %5 : vector<400x128xf32>
    %8 = arith.maximumf %5, %7 : vector<400x128xf32>
    %9 = arith.truncf %8 : vector<400x128xf32> to vector<400x128xbf16>
    %c0_6 = arith.constant 0 : index
    %c0_7 = arith.constant 0 : index
    %10 = vector.load %arg5[%c0_6, %c0_7] : memref<400x128xbf16, #tpu.memory_space<vmem>>, vector<400x128xbf16>
    tpu.vector_store %arg5[%c0_6, %c0_7], %9 {strides = array<i32>} : memref<400x128xbf16, #tpu.memory_space<vmem>>, vector<400x128xbf16>,
    return
  }
  func.func @transform_0(%arg0: i32, %arg1: i32) -> (i32, i32) {
    %c0_i32 = arith.constant 0 : i32
    %c0_i32_0 = arith.constant 0 : i32
    return %arg0, %c0_i32 : i32, i32
  }
  func.func @transform_1(%arg0: i32, %arg1: i32) -> (i32, i32) {
    %c0_i32 = arith.constant 0 : i32
    %c0_i32_0 = arith.constant 0 : i32
    return %c0_i32, %arg1 : i32, i32
  }
  func.func @transform_2(%arg0: i32, %arg1: i32) -> (i32, i32) {
    %c0_i32 = arith.constant 0 : i32
    %c0_i32_0 = arith.constant 0 : i32
    return %c0_i32, %arg1 : i32, i32
  }
  func.func @transform_3(%arg0: i32, %arg1: i32) -> (i32, i32) {
    %c0_i32 = arith.constant 0 : i32
    return %arg0, %arg1 : i32, i32
  }
}

module attributes {stable_mosaic.version = 11 : i64} {
  func.func @_gemm_act_kernel(%arg0: i32, %arg1: i32, %arg2: memref<112x2048xbf16, #tpu.memory_space<vmem>>, %arg3: memref<2048x128xbf16, #tpu.memory_space<vmem>>, %arg4: memref<1x128xf32, #tpu.memory_space<vmem>>, %arg5: memref<112x128xbf16, #tpu.memory_space<vmem>>) attributes {dimension_semantics = [#tpu.dimension_semantics<parallel>, #tpu.dimension_semantics<parallel>], iteration_bounds = array<i64: 1, 1>, scalar_prefetch = 0 : i64, scratch_operands = 0 : i64, tpu.core_type = #tpu.core_type<tc>, window_params = [{transform_indices = @transform_0, window_bounds = array<i64: 112, 2048>}, {transform_indices = @transform_1, window_bounds = array<i64: 2048, 128>}, {transform_indices = @transform_2, window_bounds = array<i64: 1, 128>}, {transform_indices = @transform_3, window_bounds = array<i64: 112, 128>}]} {
    %c0 = arith.constant 0 : index
    %c0_0 = arith.constant 0 : index
    %0 = vector.load %arg2[%c0, %c0_0] : memref<112x2048xbf16, #tpu.memory_space<vmem>>, vector<112x2048xbf16>
    %c0_1 = arith.constant 0 : index
    %c0_2 = arith.constant 0 : index
    %1 = vector.load %arg3[%c0_1, %c0_2] : memref<2048x128xbf16, #tpu.memory_space<vmem>>, vector<2048x128xbf16>
    %cst = arith.constant dense<0.000000e+00> : vector<112x128xf32>
    %2 = tpu.matmul %0, %1, %cst {dimension_numbers = #tpu.dot_dimension_numbers<[1], [0], [0], [1], [0, 0, 1, 1], [], []>} : vector<112x2048xbf16>, vector<2048x128xbf16>, vector<112x128xf32> -> vector<112x128xf32>
    %c0_3 = arith.constant 0 : index
    %c0_4 = arith.constant 0 : index
    %3 = vector.load %arg4[%c0_3, %c0_4] : memref<1x128xf32, #tpu.memory_space<vmem>>, vector<1x128xf32>
    %4 = vector.broadcast %3 : vector<1x128xf32> to vector<112x128xf32>
    %5 = arith.addf %2, %4 : vector<112x128xf32>
    %cst_5 = arith.constant 1.000000e-01 : f32
    %6 = vector.broadcast %cst_5 : f32 to vector<112x128xf32>
    %7 = arith.mulf %6, %5 : vector<112x128xf32>
    %8 = arith.maximumf %5, %7 : vector<112x128xf32>
    %9 = arith.truncf %8 : vector<112x128xf32> to vector<112x128xbf16>
    %c0_6 = arith.constant 0 : index
    %c0_7 = arith.constant 0 : index
    %10 = vector.load %arg5[%c0_6, %c0_7] : memref<112x128xbf16, #tpu.memory_space<vmem>>, vector<112x128xbf16>
    tpu.vector_store %arg5[%c0_6, %c0_7], %9 {strides = array<i32>} : memref<112x128xbf16, #tpu.memory_space<vmem>>, vector<112x128xbf16>,
    return
  }
  func.func @transform_0(%arg0: i32, %arg1: i32) -> (i32, i32) {
    %c0_i32 = arith.constant 0 : i32
    %c0_i32_0 = arith.constant 0 : i32
    return %arg0, %c0_i32 : i32, i32
  }
  func.func @transform_1(%arg0: i32, %arg1: i32) -> (i32, i32) {
    %c0_i32 = arith.constant 0 : i32
    %c0_i32_0 = arith.constant 0 : i32
    return %c0_i32, %arg1 : i32, i32
  }
  func.func @transform_2(%arg0: i32, %arg1: i32) -> (i32, i32) {
    %c0_i32 = arith.constant 0 : i32
    %c0_i32_0 = arith.constant 0 : i32
    return %c0_i32, %arg1 : i32, i32
  }
  func.func @transform_3(%arg0: i32, %arg1: i32) -> (i32, i32) {
    %c0_i32 = arith.constant 0 : i32
    return %arg0, %arg1 : i32, i32
  }
}

module attributes {stable_mosaic.version = 11 : i64} {
  func.func @_conv3_fc_kernel(%arg0: i32, %arg1: i32, %arg2: memref<16x6272xbf16, #tpu.memory_space<vmem>>, %arg3: memref<6272x256xi8, #tpu.memory_space<vmem>>, %arg4: memref<1x256xf32, #tpu.memory_space<vmem>>, %arg5: memref<1x256xf32, #tpu.memory_space<vmem>>, %arg6: memref<256x256xbf16, #tpu.memory_space<vmem>>, %arg7: memref<1x16x256xf32, #tpu.memory_space<vmem>>, %arg8: memref<16x256xf32, #tpu.memory_space<vmem>>) attributes {dimension_semantics = [#tpu.dimension_semantics<parallel>, #tpu.dimension_semantics<arbitrary>], iteration_bounds = array<i64: 1, 4>, scalar_prefetch = 0 : i64, scratch_operands = 1 : i64, tpu.core_type = #tpu.core_type<tc>, window_params = [{pipeline_mode = #tpu.pipeline_mode<synchronous>, transform_indices = @transform_0, window_bounds = array<i64: 16, 6272>}, {transform_indices = @transform_1, window_bounds = array<i64: 6272, 256>}, {transform_indices = @transform_2, window_bounds = array<i64: 1, 256>}, {transform_indices = @transform_3, window_bounds = array<i64: 1, 256>}, {transform_indices = @transform_4, window_bounds = array<i64: 256, 256>}, {transform_indices = @transform_5, window_bounds = array<i64: 1, 16, 256>}]} {
    %c0_i32 = arith.constant 0 : i32
    %0 = arith.cmpi eq, %arg1, %c0_i32 : i32
    %1 = arith.extui %0 : i1 to i32
    %c0_i32_0 = arith.constant 0 : i32
    %2 = arith.cmpi ne, %1, %c0_i32_0 : i32
    scf.if %2 {
      %cst_17 = arith.constant 0.000000e+00 : f32
      %25 = vector.broadcast %cst_17 : f32 to vector<16x256xf32>
      %c0_18 = arith.constant 0 : index
      %c0_19 = arith.constant 0 : index
      %26 = vector.load %arg8[%c0_18, %c0_19] : memref<16x256xf32, #tpu.memory_space<vmem>>, vector<16x256xf32>
      tpu.vector_store %arg8[%c0_18, %c0_19], %25 {strides = array<i32>} : memref<16x256xf32, #tpu.memory_space<vmem>>, vector<16x256xf32>,
    } else {
    }
    %c0 = arith.constant 0 : index
    %c0_1 = arith.constant 0 : index
    %3 = vector.load %arg3[%c0, %c0_1] : memref<6272x256xi8, #tpu.memory_space<vmem>>, vector<6272x256xi8>
    %4 = arith.sitofp %3 : vector<6272x256xi8> to vector<6272x256xbf16>
    %c0_2 = arith.constant 0 : index
    %c0_3 = arith.constant 0 : index
    %5 = vector.load %arg2[%c0_2, %c0_3] : memref<16x6272xbf16, #tpu.memory_space<vmem>>, vector<16x6272xbf16>
    %cst = arith.constant dense<0.000000e+00> : vector<16x256xf32>
    %6 = tpu.matmul %5, %4, %cst {dimension_numbers = #tpu.dot_dimension_numbers<[1], [0], [0], [1], [0, 0, 1, 1], [], []>} : vector<16x6272xbf16>, vector<6272x256xbf16>, vector<16x256xf32> -> vector<16x256xf32>
    %c0_4 = arith.constant 0 : index
    %c0_5 = arith.constant 0 : index
    %7 = vector.load %arg4[%c0_4, %c0_5] : memref<1x256xf32, #tpu.memory_space<vmem>>, vector<1x256xf32>
    %8 = vector.broadcast %7 : vector<1x256xf32> to vector<16x256xf32>
    %9 = arith.mulf %6, %8 : vector<16x256xf32>
    %c0_6 = arith.constant 0 : index
    %c0_7 = arith.constant 0 : index
    %10 = vector.load %arg5[%c0_6, %c0_7] : memref<1x256xf32, #tpu.memory_space<vmem>>, vector<1x256xf32>
    %11 = vector.broadcast %10 : vector<1x256xf32> to vector<16x256xf32>
    %12 = arith.addf %9, %11 : vector<16x256xf32>
    %cst_8 = arith.constant 1.000000e-01 : f32
    %13 = vector.broadcast %cst_8 : f32 to vector<16x256xf32>
    %14 = arith.mulf %13, %12 : vector<16x256xf32>
    %15 = arith.maximumf %12, %14 : vector<16x256xf32>
    %c0_9 = arith.constant 0 : index
    %c0_10 = arith.constant 0 : index
    %16 = vector.load %arg8[%c0_9, %c0_10] : memref<16x256xf32, #tpu.memory_space<vmem>>, vector<16x256xf32>
    %17 = arith.truncf %15 : vector<16x256xf32> to vector<16x256xbf16>
    %c0_11 = arith.constant 0 : index
    %c0_12 = arith.constant 0 : index
    %18 = vector.load %arg6[%c0_11, %c0_12] : memref<256x256xbf16, #tpu.memory_space<vmem>>, vector<256x256xbf16>
    %cst_13 = arith.constant dense<0.000000e+00> : vector<16x256xf32>
    %19 = tpu.matmul %17, %18, %cst_13 {dimension_numbers = #tpu.dot_dimension_numbers<[1], [0], [0], [1], [0, 0, 1, 1], [], []>} : vector<16x256xbf16>, vector<256x256xbf16>, vector<16x256xf32> -> vector<16x256xf32>
    %20 = arith.addf %16, %19 : vector<16x256xf32>
    %c0_14 = arith.constant 0 : index
    %c0_15 = arith.constant 0 : index
    %21 = vector.load %arg8[%c0_14, %c0_15] : memref<16x256xf32, #tpu.memory_space<vmem>>, vector<16x256xf32>
    tpu.vector_store %arg8[%c0_14, %c0_15], %20 {strides = array<i32>} : memref<16x256xf32, #tpu.memory_space<vmem>>, vector<16x256xf32>,
    %c3_i32 = arith.constant 3 : i32
    %22 = arith.cmpi eq, %arg1, %c3_i32 : i32
    %23 = arith.extui %22 : i1 to i32
    %c0_i32_16 = arith.constant 0 : i32
    %24 = arith.cmpi ne, %23, %c0_i32_16 : i32
    scf.if %24 {
      %c0_17 = arith.constant 0 : index
      %c0_18 = arith.constant 0 : index
      %25 = vector.load %arg8[%c0_17, %c0_18] : memref<16x256xf32, #tpu.memory_space<vmem>>, vector<16x256xf32>
      %c0_19 = arith.constant 0 : index
      %c0_20 = arith.constant 0 : index
      %c0_21 = arith.constant 0 : index
      %26 = vector.load %arg7[%c0_19, %c0_20, %c0_21] : memref<1x16x256xf32, #tpu.memory_space<vmem>>, vector<1x16x256xf32>
      %27 = vector.shape_cast %26 : vector<1x16x256xf32> to vector<16x256xf32>
      %28 = vector.shape_cast %25 : vector<16x256xf32> to vector<1x16x256xf32>
      tpu.vector_store %arg7[%c0_19, %c0_20, %c0_21], %28 {strides = array<i32>} : memref<1x16x256xf32, #tpu.memory_space<vmem>>, vector<1x16x256xf32>,
    } else {
    }
    return
  }
  func.func @transform_0(%arg0: i32, %arg1: i32) -> (i32, i32) {
    %c0_i32 = arith.constant 0 : i32
    %c0_i32_0 = arith.constant 0 : i32
    %c0_i32_1 = arith.constant 0 : i32
    return %c0_i32, %c0_i32_0 : i32, i32
  }
  func.func @transform_1(%arg0: i32, %arg1: i32) -> (i32, i32) {
    %c4_i32 = arith.constant 4 : i32
    %0 = arith.muli %arg0, %c4_i32 : i32
    %1 = arith.addi %0, %arg1 : i32
    %c0_i32 = arith.constant 0 : i32
    %c0_i32_0 = arith.constant 0 : i32
    return %c0_i32, %1 : i32, i32
  }
  func.func @transform_2(%arg0: i32, %arg1: i32) -> (i32, i32) {
    %c4_i32 = arith.constant 4 : i32
    %0 = arith.muli %arg0, %c4_i32 : i32
    %1 = arith.addi %0, %arg1 : i32
    %c0_i32 = arith.constant 0 : i32
    %c0_i32_0 = arith.constant 0 : i32
    return %c0_i32, %1 : i32, i32
  }
  func.func @transform_3(%arg0: i32, %arg1: i32) -> (i32, i32) {
    %c4_i32 = arith.constant 4 : i32
    %0 = arith.muli %arg0, %c4_i32 : i32
    %1 = arith.addi %0, %arg1 : i32
    %c0_i32 = arith.constant 0 : i32
    %c0_i32_0 = arith.constant 0 : i32
    return %c0_i32, %1 : i32, i32
  }
  func.func @transform_4(%arg0: i32, %arg1: i32) -> (i32, i32) {
    %c4_i32 = arith.constant 4 : i32
    %0 = arith.muli %arg0, %c4_i32 : i32
    %1 = arith.addi %0, %arg1 : i32
    %c0_i32 = arith.constant 0 : i32
    %c0_i32_0 = arith.constant 0 : i32
    return %1, %c0_i32 : i32, i32
  }
  func.func @transform_5(%arg0: i32, %arg1: i32) -> (i32, i32, i32) {
    %c0_i32 = arith.constant 0 : i32
    %c0_i32_0 = arith.constant 0 : i32
    %c0_i32_1 = arith.constant 0 : i32
    return %arg0, %c0_i32, %c0_i32_0 : i32, i32, i32
  }
}

</mosaic_0001>

<bundles_post_ra>
// kernel: encoder_forward.3
= control target key start
LH: loop header
LB: loop body
LE: loop exit
PB: predicated region body
PF: predicated region fallthrough
CT: control target
= control target key end

     0   :  { %8 = vsyncpa [#allocation3], 0  ;;  %s1736_s0 = inlined_call_operand.vmem [shape: bf16[400,16], index: 0, kind: input, shape index: {}]   ;;  %s1737_s1 = inlined_call_operand.hbm [shape: bf16[16,128], index: 1, kind: input, shape index: {}]   ;;  %s1738_s2 = inlined_call_operand.hbm [shape: f32[1,128], index: 2, kind: input, shape index: {}]   ;;  %s1739_s3 = inlined_call_operand.vmem [shape: bf16[400,128], index: 3, kind: output, shape index: {}]  }
   0x1   :  { %9 = vsyncpa [#allocation5], 0  ;;  %s1407_s12 = smov [#allocation2]   ;;  %s1359_s16 = scalar_lea.hbm %s1737_s1, 128 }
   0x2   :  { %s17_s13 = sshll.u32 %s1407_s12, 4  ;;  %p1360_p0 = scmp.ne.s32.totalorder %s1737_s1, %s1359_s16  ;;  %s18_s13 = int_to_ptr.vmem [resolvable:$true] %s17_s13 }
   0x3   :  { %p1363_p1 = scmp.lt.u32.totalorder %s1359_s16, %s1737_s1 }
   0x5   :  { %p1365_p2 = pnand %p1363_p1, %p1360_p0 }
   0x7   :  { %1368 = shalt.err (!%p1365_p2)
}
   0x8   :  { %s1369_s21 = scalar_lea.vmem %s18_s13, 128  ;;  %p1374_p4 = scmp.lt.s32.totalorder %s18_s13, %s18_s13 }
   0x9   :  { %p1370_p3 = scmp.ne.s32.totalorder %s18_s13, %s1369_s21  ;;  %p1375_p5 = scmp.lt.s32.totalorder %s1369_s21, %s1369_s21 }
   0xb   :  { %p1376_p6 = por %p1375_p5, %p1374_p4 }
   0xd   :  { %p1377_p7 = pnand %p1376_p6, %p1370_p3 }
   0xf   :  { %1380 = shalt.err (!%p1377_p7)
}
  0x10   :  { %s1408_s22 = smov 64   ;;  %s1409_s23 = smov 4  }
  0x11   :  { %23 = dma.hbm_to_vmem [thread:$0]  %s1737_s1, 128, %s18_s13, [#allocation3], %s1408_s22, %s1408_s22, %s1409_s23  }
  0x12   :  { %s1410_s26 = smov [#allocation4]   ;;  %s1381_s30 = scalar_lea.hbm %s1738_s2, 16 }
  0x13   :  { %s30_s27 = sshll.u32 %s1410_s26, 4  ;;  %p1382_p8 = scmp.ne.s32.totalorder %s1738_s2, %s1381_s30  ;;  %s31_s27 = int_to_ptr.vmem [resolvable:$true] %s30_s27 }
  0x14   :  { %p1385_p9 = scmp.lt.u32.totalorder %s1381_s30, %s1738_s2 }
  0x16   :  { %p1387_p10 = pnand %p1385_p9, %p1382_p8 }
  0x18   :  { %1390 = shalt.err (!%p1387_p10)
}
  0x19   :  { %s1391_s8 = scalar_lea.vmem %s31_s27, 16  ;;  %s1395_s1 = scalar_lea.vmem %s31_s27, 32 }
  0x1a   :  { %p1392_p11 = scmp.ne.s32.totalorder %s31_s27, %s1391_s8  ;;  %p1396_p12 = scmp.lt.s32.totalorder %s31_s27, %s31_s27 }
  0x1b   :  { %p1397_p13 = scmp.lt.s32.totalorder %s1395_s1, %s1391_s8 }
  0x1d   :  { %p1398_p0 = por %p1397_p13, %p1396_p12 }
  0x1f   :  { %p1399_p1 = pnand %p1398_p0, %p1392_p11 }
  0x21   :  { %1402 = shalt.err (!%p1399_p1)
}
  0x22   :  { %33 = dma.hbm_to_vmem [thread:$0]  %s1738_s2, 16, %s31_s27, [#allocation5]  }
  0x23   :  { %1403 = dma.done.wait [#allocation3], 128  }
  0x24   :  { %1404 = vsyncadd [#allocation3], 4294967168 }
  0x25   :  { %1405 = dma.done.wait [#allocation5], 16  }
  0x26   :  { %1406 = vsyncadd [#allocation5], 4294967280  ;;  %v1411_v0 = vmov 0.0   ;;  %vm1412_vm0 = vmmov 0   ;;  %v1333_v1 = vld [vmem:[#allocation2] sm:$0xff]   ;;  %vm231_vm1 = vcmask 130048  }
  0x27   :  { %1223 = vmatprep.subr.bf16.mxu0 %v1411_v0  ;;  %1225 = vmatprep.mubr.msk.bf16.mxu0 %vm1412_vm0, %v1411_v0  ;;  %v1334_v2 = vld [vmem:[%s1736_s0] sm:$0xff]   ;;  %v1335_v3 = vld [vmem:[%s1736_s0 + $0x68] sm:$0xff]   ;;  %v1337_v5 = vld [vmem:[%s1736_s0 + $0x70] sm:$0xff]  }
  0x28   :  { %1325 = vmatprep.subr.bf16.mxu1 %v1411_v0  ;;  %1277 = vmatprep.mubr.msk.bf16.mxu1 %vm1412_vm0, %v1411_v0  ;;  %v1336_v4 = vld [vmem:[%s1736_s0 + $0x8] sm:$0xff]   ;;  %v1338_v6 = vld [vmem:[%s1736_s0 + $0x10] sm:$0xff]   ;;  %v1339_v7 = vld [vmem:[%s1736_s0 + $0x78] sm:$0xff]  }
  0x29   :  { %1224 = vmatpush3.bf16.msra.mxu0 %v1333_v1  ;;  %1326 = vmatpush3.bf16.msra.mxu1 %v1333_v1  ;;  %v1340_v8 = vld [vmem:[%s1736_s0 + $0x18] sm:$0xff]   ;;  %v1341_v9 = vld [vmem:[%s1736_s0 + $0x80] sm:$0xff]   ;;  %v1343_v11 = vld [vmem:[%s1736_s0 + $0x88] sm:$0xff]  }
  0x2a   :  { %v1342_v10 = vld [vmem:[%s1736_s0 + $0x20] sm:$0xff]   ;;  %v1344_v12 = vld [vmem:[%s1736_s0 + $0x28] sm:$0xff]   ;;  %v1345_v13 = vld [vmem:[%s1736_s0 + $0x90] sm:$0xff]  }
  0x2b   :  { %v1346_v14 = vld [vmem:[%s1736_s0 + $0x30] sm:$0xff]   ;;  %v1347_v15 = vld [vmem:[%s1736_s0 + $0x98] sm:$0xff]   ;;  %v1349_v17 = vld [vmem:[%s1736_s0 + $0xa0] sm:$0xff]  }
  0x2c   :  { %1226 = vmatmul.mubr.msk.bf16.vlgmr.msra.gmra.mrb[0].mxu0 %vm231_vm1, %v1334_v2  ;;  %1278 = vmatmul.mubr.msk.bf16.vlgmr.msra.gmra.mrb[0].mxu1 %vm231_vm1, %v1335_v3  ;;  %v1348_v16 = vld [vmem:[%s1736_s0 + $0x38] sm:$0xff]   ;;  %v1350_v18 = vld [vmem:[%s1736_s0 + $0x40] sm:$0xff]   ;;  %v1351_v19 = vld [vmem:[%s1736_s0 + $0xa8] sm:$0xff]  }
  0x2d   :  { %1229 = vmatprep.mubr.msk.bf16.mxu0 %vm1412_vm0, %v1411_v0  ;;  %1281 = vmatprep.mubr.msk.bf16.mxu1 %vm1412_vm0, %v1411_v0  ;;  %v1352_v20 = vld [vmem:[%s1736_s0 + $0x48] sm:$0xff]   ;;  %v1353_v21 = vld [vmem:[%s1736_s0 + $0xb0] sm:$0xff]   ;;  %v1355_v23 = vld [vmem:[%s1736_s0 + $0xb8] sm:$0xff]  }
  0x2e   :  { %v1354_v22 = vld [vmem:[%s1736_s0 + $0x50] sm:$0xff]   ;;  %v1356_v24 = vld [vmem:[%s1736_s0 + $0x58] sm:$0xff]   ;;  %v1357_v25 = vld [vmem:[%s1736_s0 + $0xc0] sm:$0xff]  }
  0x2f   :  { %v1358_v26 = vld [vmem:[%s1736_s0 + $0x60] sm:$0xff]   ;;  %v1609_v27 = vld [vmem:[#allocation4] ss:$0 sm:$0xff] }
  0x34   :  { %1230 = vmatmul.mubr.msk.bf16.gmra.mrb[4].mxu0 %vm231_vm1, %v1336_v4  ;;  %1282 = vmatmul.mubr.msk.bf16.gmra.mrb[4].mxu1 %vm231_vm1, %v1337_v5 }
  0x35   :  { %1233 = vmatprep.mubr.msk.bf16.mxu0 %vm1412_vm0, %v1411_v0  ;;  %1285 = vmatprep.mubr.msk.bf16.mxu1 %vm1412_vm0, %v1411_v0 }
  0x3c   :  { %1234 = vmatmul.mubr.msk.bf16.gmra.mrb[8].mxu0 %vm231_vm1, %v1338_v6  ;;  %1286 = vmatmul.mubr.msk.bf16.gmra.mrb[8].mxu1 %vm231_vm1, %v1339_v7 }
  0x3d   :  { %1237 = vmatprep.mubr.msk.bf16.mxu0 %vm1412_vm0, %v1411_v0  ;;  %1289 = vmatprep.mubr.msk.bf16.mxu1 %vm1412_vm0, %v1411_v0 }
  0x44   :  { %1238 = vmatmul.mubr.msk.bf16.gmra.mrb[12].mxu0 %vm231_vm1, %v1340_v8  ;;  %1290 = vmatmul.mubr.msk.bf16.gmra.mrb[12].mxu1 %vm231_vm1, %v1341_v9 }
  0x45   :  { %1241 = vmatprep.mubr.msk.bf16.mxu0 %vm1412_vm0, %v1411_v0  ;;  %1293 = vmatprep.mubr.msk.bf16.mxu1 %vm1412_vm0, %v1411_v0 }
  0x4c   :  { %1242 = vmatmul.mubr.msk.bf16.gmra.mrb[16].mxu0 %vm231_vm1, %v1342_v10  ;;  %1294 = vmatmul.mubr.msk.bf16.gmra.mrb[16].mxu1 %vm231_vm1, %v1343_v11 }
  0x4d   :  { %1245 = vmatprep.mubr.msk.bf16.mxu0 %vm1412_vm0, %v1411_v0  ;;  %1297 = vmatprep.mubr.msk.bf16.mxu1 %vm1412_vm0, %v1411_v0 }
  0x54   :  { %1246 = vmatmul.mubr.msk.bf16.gmra.mrb[20].mxu0 %vm231_vm1, %v1344_v12  ;;  %1298 = vmatmul.mubr.msk.bf16.gmra.mrb[20].mxu1 %vm231_vm1, %v1345_v13 }
  0x55   :  { %1249 = vmatprep.mubr.msk.bf16.mxu0 %vm1412_vm0, %v1411_v0  ;;  %1301 = vmatprep.mubr.msk.bf16.mxu1 %vm1412_vm0, %v1411_v0 }
  0x5c   :  { %1250 = vmatmul.mubr.msk.bf16.gmra.mrb[24].mxu0 %vm231_vm1, %v1346_v14  ;;  %1302 = vmatmul.mubr.msk.bf16.gmra.mrb[24].mxu1 %vm231_vm1, %v1347_v15 }
  0x5d   :  { %1253 = vmatprep.mubr.msk.bf16.mxu0 %vm1412_vm0, %v1411_v0  ;;  %1305 = vmatprep.mubr.msk.bf16.mxu1 %vm1412_vm0, %v1411_v0 }
  0x64   :  { %1254 = vmatmul.mubr.msk.bf16.gmra.mrb[28].mxu0 %vm231_vm1, %v1348_v16  ;;  %1306 = vmatmul.mubr.msk.bf16.gmra.mrb[28].mxu1 %vm231_vm1, %v1349_v17 }
  0x65   :  { %1257 = vmatprep.mubr.msk.bf16.mxu0 %vm1412_vm0, %v1411_v0  ;;  %1309 = vmatprep.mubr.msk.bf16.mxu1 %vm1412_vm0, %v1411_v0 }
  0x6c   :  { %1258 = vmatmul.mubr.msk.bf16.gmra.mrb[32].mxu0 %vm231_vm1, %v1350_v18  ;;  %1310 = vmatmul.mubr.msk.bf16.gmra.mrb[32].mxu1 %vm231_vm1, %v1351_v19 }
  0x6d   :  { %1261 = vmatprep.mubr.msk.bf16.mxu0 %vm1412_vm0, %v1411_v0  ;;  %1313 = vmatprep.mubr.msk.bf16.mxu1 %vm1412_vm0, %v1411_v0 }
  0x74   :  { %1262 = vmatmul.mubr.msk.bf16.gmra.mrb[36].mxu0 %vm231_vm1, %v1352_v20  ;;  %1314 = vmatmul.mubr.msk.bf16.gmra.mrb[36].mxu1 %vm231_vm1, %v1353_v21 }
  0x75   :  { %1265 = vmatprep.mubr.msk.bf16.mxu0 %vm1412_vm0, %v1411_v0  ;;  %1317 = vmatprep.mubr.msk.bf16.mxu1 %vm1412_vm0, %v1411_v0 }
  0x7c   :  { %1266 = vmatmul.mubr.msk.bf16.gmra.mrb[40].mxu0 %vm231_vm1, %v1354_v22  ;;  %1318 = vmatmul.mubr.msk.bf16.gmra.mrb[40].mxu1 %vm231_vm1, %v1355_v23 }
  0x7d   :  { %1269 = vmatprep.mubr.msk.bf16.mxu0 %vm1412_vm0, %v1411_v0  ;;  %1321 = vmatprep.mubr.msk.bf16.mxu1 %vm1412_vm0, %v1411_v0 }
  0x84   :  { %1270 = vmatmul.mubr.msk.bf16.gmra.mrb[44].mxu0 %vm231_vm1, %v1356_v24  ;;  %1322 = vmatmul.mubr.msk.bf16.gmra.mrb[44].mxu1 %vm231_vm1, %v1357_v25 }
  0x85   :  { %1273 = vmatprep.mubr.msk.bf16.mxu0 %vm1412_vm0, %v1411_v0 }
  0x8c   :  { %1274 = vmatmul.mubr.msk.bf16.gmra.mrb[48].mxu0 %vm231_vm1, %v1358_v26 }
  0xff   :  { %v341_v28 = vpop.f32.mrb[0].mxu0  ;;  %v445_v29 = vpop.f32.mrb[0].mxu1 }
 0x100   :  { %v342_v30 = vadd.f32 %v1609_v27, %v341_v28  ;;  %v1227_v31 = vpop.f32.mrb[1].mxu0  ;;  %v446_v32 = vadd.f32 %v1609_v27, %v445_v29  ;;  %v1279_v33 = vpop.f32.mrb[1].mxu1 }
 0x101   :  { %v344_v34 = vpop.f32.mrb[2].mxu0  ;;  %v448_v35 = vpop.f32.mrb[2].mxu1 }
 0x102   :  { %v540_v36 = vmul.f32 0.1, %v342_v30  ;;  %v345_v37 = vadd.f32 %v1609_v27, %v344_v34  ;;  %v1228_v38 = vpop.f32.mrb[3].mxu0  ;;  %v566_v39 = vmul.f32 0.1, %v446_v32  ;;  %v449_v40 = vadd.f32 %v1609_v27, %v448_v35  ;;  %v1280_v41 = vpop.f32.mrb[3].mxu1 }
 0x104   :  { %v541_v42 = vmul.f32 0.1, %v345_v37  ;;  %v616_v43 = vmax.f32 %v446_v32, %v566_v39  ;;  %v567_v44 = vmul.f32 0.1, %v449_v40  ;;  %v590_v45 = vmax.f32 %v342_v30, %v540_v36 }
 0x106   :  { %v591_v46 = vmax.f32 %v345_v37, %v541_v42  ;;  %v617_v47 = vmax.f32 %v449_v40, %v567_v44 }
 0x107   :  { %v349_v48 = vpop.f32.mrb[4].mxu0  ;;  %v453_v49 = vpop.f32.mrb[4].mxu1 }
 0x108   :  { %v1051_v50 = vpack.c.bf16 %v591_v46, %v590_v45  ;;  %v1116_v51 = vpack.c.bf16 %v617_v47, %v616_v43  ;;  %v350_v52 = vadd.f32 %v1609_v27, %v349_v48  ;;  %v1231_v53 = vpop.f32.mrb[5].mxu0  ;;  %v454_v54 = vadd.f32 %v1609_v27, %v453_v49  ;;  %v1283_v55 = vpop.f32.mrb[5].mxu1 }
 0x109   :  { %v352_v56 = vpop.f32.mrb[6].mxu0  ;;  %v456_v57 = vpop.f32.mrb[6].mxu1 }
 0x10a   :  { %1052 = vst [vmem:[%s1739_s3] sm:$0xff] %v1051_v50   ;;  %1185 = vst [vmem:[%s1739_s3 + $0x68] sm:$0xff] %v1116_v51   ;;  %v542_v58 = vmul.f32 0.1, %v350_v52  ;;  %v353_v59 = vadd.f32 %v1609_v27, %v352_v56  ;;  %v1232_v60 = vpop.f32.mrb[7].mxu0  ;;  %v568_v61 = vmul.f32 0.1, %v454_v54  ;;  %v457_v62 = vadd.f32 %v1609_v27, %v456_v57 }
 0x10b   :  { %v1284_v63 = vpop.f32.mrb[7].mxu1 }
 0x10c   :  { %v543_v0 = vmul.f32 0.1, %v353_v59  ;;  %v618_v1 = vmax.f32 %v454_v54, %v568_v61  ;;  %v569_v2 = vmul.f32 0.1, %v457_v62  ;;  %v592_v3 = vmax.f32 %v350_v52, %v542_v58 }
 0x10e   :  { %v593_v4 = vmax.f32 %v353_v59, %v543_v0  ;;  %v619_v5 = vmax.f32 %v457_v62, %v569_v2 }
 0x10f   :  { %v357_v6 = vpop.f32.mrb[8].mxu0  ;;  %v461_v7 = vpop.f32.mrb[8].mxu1 }
 0x110   :  { %v1056_v8 = vpack.c.bf16 %v593_v4, %v592_v3  ;;  %v1121_v9 = vpack.c.bf16 %v619_v5, %v618_v1  ;;  %v358_v10 = vadd.f32 %v1609_v27, %v357_v6  ;;  %v1235_v11 = vpop.f32.mrb[9].mxu0  ;;  %v462_v12 = vadd.f32 %v1609_v27, %v461_v7  ;;  %v1287_v13 = vpop.f32.mrb[9].mxu1 }
 0x111   :  { %v360_v14 = vpop.f32.mrb[10].mxu0  ;;  %v464_v15 = vpop.f32.mrb[10].mxu1 }
 0x112   :  { %1173 = vst [vmem:[%s1739_s3 + $0x8] sm:$0xff] %v1056_v8   ;;  %1186 = vst [vmem:[%s1739_s3 + $0x70] sm:$0xff] %v1121_v9   ;;  %v544_v16 = vmul.f32 0.1, %v358_v10  ;;  %v361_v17 = vadd.f32 %v1609_v27, %v360_v14  ;;  %v1236_v18 = vpop.f32.mrb[11].mxu0  ;;  %v465_v20 = vadd.f32 %v1609_v27, %v464_v15  ;;  %v1288_v21 = vpop.f32.mrb[11].mxu1 }
 0x113   :  { %v570_v19 = vmul.f32 0.1, %v462_v12 }
 0x114   :  { %v545_v22 = vmul.f32 0.1, %v361_v17  ;;  %v571_v24 = vmul.f32 0.1, %v465_v20  ;;  %v594_v25 = vmax.f32 %v358_v10, %v544_v16 }
 0x115   :  { %v620_v23 = vmax.f32 %v462_v12, %v570_v19 }
 0x116   :  { %v595_v26 = vmax.f32 %v361_v17, %v545_v22  ;;  %v621_v28 = vmax.f32 %v465_v20, %v571_v24 }
 0x117   :  { %v365_v29 = vpop.f32.mrb[12].mxu0  ;;  %v469_v30 = vpop.f32.mrb[12].mxu1 }
 0x118   :  { %v1061_v31 = vpack.c.bf16 %v595_v26, %v594_v25  ;;  %v1126_v32 = vpack.c.bf16 %v621_v28, %v620_v23  ;;  %v366_v33 = vadd.f32 %v1609_v27, %v365_v29  ;;  %v1239_v34 = vpop.f32.mrb[13].mxu0  ;;  %v470_v35 = vadd.f32 %v1609_v27, %v469_v30  ;;  %v1291_v36 = vpop.f32.mrb[13].mxu1 }
 0x119   :  { %v368_v37 = vpop.f32.mrb[14].mxu0  ;;  %v472_v38 = vpop.f32.mrb[14].mxu1 }
 0x11a   :  { %1174 = vst [vmem:[%s1739_s3 + $0x10] sm:$0xff] %v1061_v31   ;;  %1187 = vst [vmem:[%s1739_s3 + $0x78] sm:$0xff] %v1126_v32   ;;  %v546_v39 = vmul.f32 0.1, %v366_v33  ;;  %v369_v40 = vadd.f32 %v1609_v27, %v368_v37  ;;  %v1240_v41 = vpop.f32.mrb[15].mxu0  ;;  %v473_v43 = vadd.f32 %v1609_v27, %v472_v38  ;;  %v1292_v44 = vpop.f32.mrb[15].mxu1 }
 0x11b   :  { %v572_v42 = vmul.f32 0.1, %v470_v35 }
 0x11c   :  { %v547_v45 = vmul.f32 0.1, %v369_v40  ;;  %v573_v47 = vmul.f32 0.1, %v473_v43  ;;  %v596_v48 = vmax.f32 %v366_v33, %v546_v39 }
 0x11d   :  { %v622_v46 = vmax.f32 %v470_v35, %v572_v42 }
 0x11e   :  { %v597_v49 = vmax.f32 %v369_v40, %v547_v45  ;;  %v623_v50 = vmax.f32 %v473_v43, %v573_v47 }
 0x11f   :  { %v373_v51 = vpop.f32.mrb[16].mxu0  ;;  %v477_v52 = vpop.f32.mrb[16].mxu1 }
 0x120   :  { %v1066_v53 = vpack.c.bf16 %v597_v49, %v596_v48  ;;  %v1131_v54 = vpack.c.bf16 %v623_v50, %v622_v46  ;;  %v374_v55 = vadd.f32 %v1609_v27, %v373_v51  ;;  %v1243_v56 = vpop.f32.mrb[17].mxu0  ;;  %v478_v57 = vadd.f32 %v1609_v27, %v477_v52  ;;  %v1295_v58 = vpop.f32.mrb[17].mxu1 }
 0x121   :  { %v376_v59 = vpop.f32.mrb[18].mxu0  ;;  %v480_v60 = vpop.f32.mrb[18].mxu1 }
 0x122   :  { %1175 = vst [vmem:[%s1739_s3 + $0x18] sm:$0xff] %v1066_v53   ;;  %1188 = vst [vmem:[%s1739_s3 + $0x80] sm:$0xff] %v1131_v54   ;;  %v548_v61 = vmul.f32 0.1, %v374_v55  ;;  %v377_v62 = vadd.f32 %v1609_v27, %v376_v59  ;;  %v1244_v63 = vpop.f32.mrb[19].mxu0  ;;  %v481_v1 = vadd.f32 %v1609_v27, %v480_v60  ;;  %v1296_v2 = vpop.f32.mrb[19].mxu1 }
 0x123   :  { %v574_v0 = vmul.f32 0.1, %v478_v57 }
 0x124   :  { %v549_v3 = vmul.f32 0.1, %v377_v62  ;;  %v575_v5 = vmul.f32 0.1, %v481_v1  ;;  %v598_v6 = vmax.f32 %v374_v55, %v548_v61 }
 0x125   :  { %v624_v4 = vmax.f32 %v478_v57, %v574_v0 }
 0x126   :  { %v599_v7 = vmax.f32 %v377_v62, %v549_v3  ;;  %v625_v8 = vmax.f32 %v481_v1, %v575_v5 }
 0x127   :  { %v381_v9 = vpop.f32.mrb[20].mxu0  ;;  %v485_v10 = vpop.f32.mrb[20].mxu1 }
 0x128   :  { %v1071_v11 = vpack.c.bf16 %v599_v7, %v598_v6  ;;  %v1136_v12 = vpack.c.bf16 %v625_v8, %v624_v4  ;;  %v382_v13 = vadd.f32 %v1609_v27, %v381_v9  ;;  %v1247_v14 = vpop.f32.mrb[21].mxu0  ;;  %v486_v15 = vadd.f32 %v1609_v27, %v485_v10  ;;  %v1299_v16 = vpop.f32.mrb[21].mxu1 }
 0x129   :  { %v384_v17 = vpop.f32.mrb[22].mxu0  ;;  %v488_v18 = vpop.f32.mrb[22].mxu1 }
 0x12a   :  { %1176 = vst [vmem:[%s1739_s3 + $0x20] sm:$0xff] %v1071_v11   ;;  %1189 = vst [vmem:[%s1739_s3 + $0x88] sm:$0xff] %v1136_v12   ;;  %v550_v19 = vmul.f32 0.1, %v382_v13  ;;  %v385_v20 = vadd.f32 %v1609_v27, %v384_v17  ;;  %v1248_v21 = vpop.f32.mrb[23].mxu0  ;;  %v489_v23 = vadd.f32 %v1609_v27, %v488_v18  ;;  %v1300_v24 = vpop.f32.mrb[23].mxu1 }
 0x12b   :  { %v576_v22 = vmul.f32 0.1, %v486_v15 }
 0x12c   :  { %v551_v25 = vmul.f32 0.1, %v385_v20  ;;  %v577_v28 = vmul.f32 0.1, %v489_v23  ;;  %v600_v29 = vmax.f32 %v382_v13, %v550_v19 }
 0x12d   :  { %v626_v26 = vmax.f32 %v486_v15, %v576_v22 }
 0x12e   :  { %v601_v30 = vmax.f32 %v385_v20, %v551_v25  ;;  %v627_v31 = vmax.f32 %v489_v23, %v577_v28 }
 0x12f   :  { %v389_v32 = vpop.f32.mrb[24].mxu0  ;;  %v493_v33 = vpop.f32.mrb[24].mxu1 }
 0x130   :  { %v1076_v34 = vpack.c.bf16 %v601_v30, %v600_v29  ;;  %v1141_v35 = vpack.c.bf16 %v627_v31, %v626_v26  ;;  %v390_v36 = vadd.f32 %v1609_v27, %v389_v32  ;;  %v1251_v37 = vpop.f32.mrb[25].mxu0  ;;  %v494_v38 = vadd.f32 %v1609_v27, %v493_v33  ;;  %v1303_v39 = vpop.f32.mrb[25].mxu1 }
 0x131   :  { %v392_v40 = vpop.f32.mrb[26].mxu0  ;;  %v496_v41 = vpop.f32.mrb[26].mxu1 }
 0x132   :  { %1177 = vst [vmem:[%s1739_s3 + $0x28] sm:$0xff] %v1076_v34   ;;  %1190 = vst [vmem:[%s1739_s3 + $0x90] sm:$0xff] %v1141_v35   ;;  %v552_v42 = vmul.f32 0.1, %v390_v36  ;;  %v393_v43 = vadd.f32 %v1609_v27, %v392_v40  ;;  %v1252_v44 = vpop.f32.mrb[27].mxu0  ;;  %v497_v46 = vadd.f32 %v1609_v27, %v496_v41  ;;  %v1304_v47 = vpop.f32.mrb[27].mxu1 }
 0x133   :  { %v578_v45 = vmul.f32 0.1, %v494_v38 }
 0x134   :  { %v553_v48 = vmul.f32 0.1, %v393_v43  ;;  %v579_v50 = vmul.f32 0.1, %v497_v46  ;;  %v602_v51 = vmax.f32 %v390_v36, %v552_v42 }
 0x135   :  { %v628_v49 = vmax.f32 %v494_v38, %v578_v45 }
 0x136   :  { %v603_v52 = vmax.f32 %v393_v43, %v553_v48  ;;  %v629_v53 = vmax.f32 %v497_v46, %v579_v50 }
 0x137   :  { %v397_v54 = vpop.f32.mrb[28].mxu0  ;;  %v501_v55 = vpop.f32.mrb[28].mxu1 }
 0x138   :  { %v1081_v56 = vpack.c.bf16 %v603_v52, %v602_v51  ;;  %v1146_v57 = vpack.c.bf16 %v629_v53, %v628_v49  ;;  %v398_v58 = vadd.f32 %v1609_v27, %v397_v54  ;;  %v1255_v59 = vpop.f32.mrb[29].mxu0  ;;  %v502_v60 = vadd.f32 %v1609_v27, %v501_v55  ;;  %v1307_v61 = vpop.f32.mrb[29].mxu1 }
 0x139   :  { %v400_v62 = vpop.f32.mrb[30].mxu0  ;;  %v504_v63 = vpop.f32.mrb[30].mxu1 }
 0x13a   :  { %1178 = vst [vmem:[%s1739_s3 + $0x30] sm:$0xff] %v1081_v56   ;;  %1191 = vst [vmem:[%s1739_s3 + $0x98] sm:$0xff] %v1146_v57   ;;  %v554_v0 = vmul.f32 0.1, %v398_v58  ;;  %v401_v1 = vadd.f32 %v1609_v27, %v400_v62  ;;  %v1256_v2 = vpop.f32.mrb[31].mxu0  ;;  %v505_v4 = vadd.f32 %v1609_v27, %v504_v63  ;;  %v1308_v5 = vpop.f32.mrb[31].mxu1 }
 0x13b   :  { %v580_v3 = vmul.f32 0.1, %v502_v60 }
 0x13c   :  { %v555_v6 = vmul.f32 0.1, %v401_v1  ;;  %v581_v8 = vmul.f32 0.1, %v505_v4  ;;  %v604_v9 = vmax.f32 %v398_v58, %v554_v0 }
 0x13d   :  { %v630_v7 = vmax.f32 %v502_v60, %v580_v3 }
 0x13e   :  { %v605_v10 = vmax.f32 %v401_v1, %v555_v6  ;;  %v631_v11 = vmax.f32 %v505_v4, %v581_v8 }
 0x13f   :  { %v405_v12 = vpop.f32.mrb[32].mxu0  ;;  %v509_v13 = vpop.f32.mrb[32].mxu1 }
 0x140   :  { %v1086_v14 = vpack.c.bf16 %v605_v10, %v604_v9  ;;  %v1151_v15 = vpack.c.bf16 %v631_v11, %v630_v7  ;;  %v406_v16 = vadd.f32 %v1609_v27, %v405_v12  ;;  %v1259_v17 = vpop.f32.mrb[33].mxu0  ;;  %v510_v18 = vadd.f32 %v1609_v27, %v509_v13  ;;  %v1311_v19 = vpop.f32.mrb[33].mxu1 }
 0x141   :  { %v408_v20 = vpop.f32.mrb[34].mxu0  ;;  %v512_v21 = vpop.f32.mrb[34].mxu1 }
 0x142   :  { %1179 = vst [vmem:[%s1739_s3 + $0x38] sm:$0xff] %v1086_v14   ;;  %1192 = vst [vmem:[%s1739_s3 + $0xa0] sm:$0xff] %v1151_v15   ;;  %v556_v22 = vmul.f32 0.1, %v406_v16  ;;  %v409_v23 = vadd.f32 %v1609_v27, %v408_v20  ;;  %v1260_v24 = vpop.f32.mrb[35].mxu0  ;;  %v513_v26 = vadd.f32 %v1609_v27, %v512_v21  ;;  %v1312_v28 = vpop.f32.mrb[35].mxu1 }
 0x143   :  { %v582_v25 = vmul.f32 0.1, %v510_v18 }
 0x144   :  { %v557_v29 = vmul.f32 0.1, %v409_v23  ;;  %v583_v31 = vmul.f32 0.1, %v513_v26  ;;  %v606_v32 = vmax.f32 %v406_v16, %v556_v22 }
 0x145   :  { %v632_v30 = vmax.f32 %v510_v18, %v582_v25 }
 0x146   :  { %v607_v33 = vmax.f32 %v409_v23, %v557_v29  ;;  %v633_v34 = vmax.f32 %v513_v26, %v583_v31 }
 0x147   :  { %v413_v35 = vpop.f32.mrb[36].mxu0  ;;  %v517_v36 = vpop.f32.mrb[36].mxu1 }
 0x148   :  { %v1091_v37 = vpack.c.bf16 %v607_v33, %v606_v32  ;;  %v1156_v38 = vpack.c.bf16 %v633_v34, %v632_v30  ;;  %v414_v39 = vadd.f32 %v1609_v27, %v413_v35  ;;  %v1263_v40 = vpop.f32.mrb[37].mxu0  ;;  %v518_v41 = vadd.f32 %v1609_v27, %v517_v36  ;;  %v1315_v42 = vpop.f32.mrb[37].mxu1 }
 0x149   :  { %v416_v43 = vpop.f32.mrb[38].mxu0  ;;  %v520_v44 = vpop.f32.mrb[38].mxu1 }
 0x14a   :  { %1180 = vst [vmem:[%s1739_s3 + $0x40] sm:$0xff] %v1091_v37   ;;  %1193 = vst [vmem:[%s1739_s3 + $0xa8] sm:$0xff] %v1156_v38   ;;  %v558_v45 = vmul.f32 0.1, %v414_v39  ;;  %v417_v46 = vadd.f32 %v1609_v27, %v416_v43  ;;  %v1264_v47 = vpop.f32.mrb[39].mxu0  ;;  %v521_v49 = vadd.f32 %v1609_v27, %v520_v44  ;;  %v1316_v50 = vpop.f32.mrb[39].mxu1 }
 0x14b   :  { %v584_v48 = vmul.f32 0.1, %v518_v41 }
 0x14c   :  { %v559_v51 = vmul.f32 0.1, %v417_v46  ;;  %v585_v53 = vmul.f32 0.1, %v521_v49  ;;  %v608_v54 = vmax.f32 %v414_v39, %v558_v45 }
 0x14d   :  { %v634_v52 = vmax.f32 %v518_v41, %v584_v48 }
 0x14e   :  { %v609_v55 = vmax.f32 %v417_v46, %v559_v51  ;;  %v635_v56 = vmax.f32 %v521_v49, %v585_v53 }
 0x14f   :  { %v421_v57 = vpop.f32.mrb[40].mxu0  ;;  %v525_v58 = vpop.f32.mrb[40].mxu1 }
 0x150   :  { %v1096_v59 = vpack.c.bf16 %v609_v55, %v608_v54  ;;  %v1161_v60 = vpack.c.bf16 %v635_v56, %v634_v52  ;;  %v422_v61 = vadd.f32 %v1609_v27, %v421_v57  ;;  %v1267_v62 = vpop.f32.mrb[41].mxu0  ;;  %v526_v63 = vadd.f32 %v1609_v27, %v525_v58  ;;  %v1319_v0 = vpop.f32.mrb[41].mxu1 }
 0x151   :  { %v424_v1 = vpop.f32.mrb[42].mxu0  ;;  %v528_v2 = vpop.f32.mrb[42].mxu1 }
 0x152   :  { %1181 = vst [vmem:[%s1739_s3 + $0x48] sm:$0xff] %v1096_v59   ;;  %1194 = vst [vmem:[%s1739_s3 + $0xb0] sm:$0xff] %v1161_v60   ;;  %v560_v3 = vmul.f32 0.1, %v422_v61  ;;  %v425_v4 = vadd.f32 %v1609_v27, %v424_v1  ;;  %v1268_v5 = vpop.f32.mrb[43].mxu0  ;;  %v529_v7 = vadd.f32 %v1609_v27, %v528_v2  ;;  %v1320_v8 = vpop.f32.mrb[43].mxu1 }
 0x153   :  { %v586_v6 = vmul.f32 0.1, %v526_v63 }
 0x154   :  { %v561_v9 = vmul.f32 0.1, %v425_v4  ;;  %v587_v11 = vmul.f32 0.1, %v529_v7  ;;  %v610_v12 = vmax.f32 %v422_v61, %v560_v3 }
 0x155   :  { %v636_v10 = vmax.f32 %v526_v63, %v586_v6 }
 0x156   :  { %v611_v13 = vmax.f32 %v425_v4, %v561_v9  ;;  %v637_v14 = vmax.f32 %v529_v7, %v587_v11 }
 0x157   :  { %v429_v15 = vpop.f32.mrb[44].mxu0  ;;  %v533_v16 = vpop.f32.mrb[44].mxu1 }
 0x158   :  { %v1101_v17 = vpack.c.bf16 %v611_v13, %v610_v12  ;;  %v1166_v18 = vpack.c.bf16 %v637_v14, %v636_v10  ;;  %v430_v19 = vadd.f32 %v1609_v27, %v429_v15  ;;  %v1271_v20 = vpop.f32.mrb[45].mxu0  ;;  %v534_v21 = vadd.f32 %v1609_v27, %v533_v16  ;;  %v1323_v22 = vpop.f32.mrb[45].mxu1 }
 0x159   :  { %v432_v23 = vpop.f32.mrb[46].mxu0  ;;  %v536_v24 = vpop.f32.mrb[46].mxu1 }
 0x15a   :  { %1182 = vst [vmem:[%s1739_s3 + $0x50] sm:$0xff] %v1101_v17   ;;  %1195 = vst [vmem:[%s1739_s3 + $0xb8] sm:$0xff] %v1166_v18   ;;  %v562_v25 = vmul.f32 0.1, %v430_v19  ;;  %v433_v26 = vadd.f32 %v1609_v27, %v432_v23  ;;  %v1272_v28 = vpop.f32.mrb[47].mxu0  ;;  %v537_v30 = vadd.f32 %v1609_v27, %v536_v24  ;;  %v1324_v31 = vpop.f32.mrb[47].mxu1 }
 0x15b   :  { %v588_v29 = vmul.f32 0.1, %v534_v21 }
 0x15c   :  { %v563_v32 = vmul.f32 0.1, %v433_v26  ;;  %v589_v34 = vmul.f32 0.1, %v537_v30  ;;  %v612_v35 = vmax.f32 %v430_v19, %v562_v25 }
 0x15d   :  { %v638_v33 = vmax.f32 %v534_v21, %v588_v29 }
 0x15e   :  { %v613_v36 = vmax.f32 %v433_v26, %v563_v32  ;;  %v639_v37 = vmax.f32 %v537_v30, %v589_v34 }
 0x15f   :  { %v437_v38 = vpop.f32.mrb[48].mxu0 }
 0x160   :  { %v1106_v39 = vpack.c.bf16 %v613_v36, %v612_v35  ;;  %v1171_v40 = vpack.c.bf16 %v639_v37, %v638_v33  ;;  %v438_v41 = vadd.f32 %v1609_v27, %v437_v38  ;;  %v1275_v42 = vpop.f32.mrb[49].mxu0 }
 0x161   :  { %v440_v43 = vpop.f32.mrb[50].mxu0 }
 0x162   :  { %1183 = vst [vmem:[%s1739_s3 + $0x58] sm:$0xff] %v1106_v39   ;;  %1196 = vst [vmem:[%s1739_s3 + $0xc0] sm:$0xff] %v1171_v40   ;;  %v564_v44 = vmul.f32 0.1, %v438_v41  ;;  %v441_v45 = vadd.f32 %v1609_v27, %v440_v43  ;;  %v1276_v46 = vpop.f32.mrb[51].mxu0 }
 0x164   :  { %v565_v47 = vmul.f32 0.1, %v441_v45  ;;  %v614_v48 = vmax.f32 %v438_v41, %v564_v44 }
 0x166   :  { %v615_v49 = vmax.f32 %v441_v45, %v565_v47 }
 0x168   :  { %v1111_v50 = vpack.c.bf16 %v615_v49, %v614_v48 }
 0x16a   :  { %1184 = vst [vmem:[%s1739_s3 + $0x60] sm:$0xff] %v1111_v50  }
 0x16b   :  { %894 = vsyncpa [#allocation3], 1 }
 0x16c   :  { %895 = vsyncpa [#allocation5], 1 }

// kernel: encoder_forward.4
= control target key start
LH: loop header
LB: loop body
LE: loop exit
PB: predicated region body
PF: predicated region fallthrough
CT: control target
= control target key end

     0   :  { %s4340_s1 = inlined_call_operand.vmem [shape: bf16[2048,128], index: 1, kind: input, shape index: {}]   ;;  %s4341_s0 = inlined_call_operand.vmem [shape: bf16[112,2048], index: 0, kind: input, shape index: {}]   ;;  %s4342_s2 = inlined_call_operand.vmem [shape: f32[1,128], index: 2, kind: input, shape index: {}]   ;;  %s4343_s3 = inlined_call_operand.vmem [shape: bf16[112,128], index: 3, kind: output, shape index: {}]  }
   0x1   :  { %v3306_v0 = vld [vmem:[%s4340_s1 + $0x40] sm:$0xff]   ;;  %v3310_v4 = vld [vmem:[%s4340_s1 + $0x48] sm:$0xff]   ;;  %v3314_v8 = vld [vmem:[%s4340_s1 + $0x50] sm:$0xff]  }
   0x2   :  { %v3307_v1 = vld [vmem:[%s4340_s1 + $0xc0] sm:$0xff]   ;;  %2842 = vmatprep.subr.bf16.mxu0 %v3306_v0  ;;  %v3311_v5 = vld [vmem:[%s4340_s1 + $0xc8] sm:$0xff]   ;;  %v3315_v9 = vld [vmem:[%s4340_s1 + $0xd0] sm:$0xff]  }
   0x3   :  { %v3308_v2 = vld [vmem:[%s4340_s1] sm:$0xff]   ;;  %2900 = vmatprep.subr.bf16.mxu1 %v3307_v1  ;;  %v3312_v6 = vld [vmem:[%s4340_s1 + $0x8] sm:$0xff]   ;;  %v3316_v10 = vld [vmem:[%s4340_s1 + $0x10] sm:$0xff]  }
   0x4   :  { %v3309_v3 = vld [vmem:[%s4340_s1 + $0x80] sm:$0xff]   ;;  %2843 = vmatpush3.bf16.msra.mxu0 %v3308_v2  ;;  %v3313_v7 = vld [vmem:[%s4340_s1 + $0x88] sm:$0xff]   ;;  %v3317_v11 = vld [vmem:[%s4340_s1 + $0x90] sm:$0xff]  }
   0x5   :  { %2901 = vmatpush3.bf16.msra.mxu1 %v3309_v3  ;;  %2844 = vmatprep.subr.bf16.mxu0 %v3310_v4  ;;  %v3318_v12 = vld [vmem:[%s4340_s1 + $0x58] sm:$0xff]   ;;  %v3322_v16 = vld [vmem:[%s4340_s1 + $0x60] sm:$0xff]   ;;  %v3326_v20 = vld [vmem:[%s4340_s1 + $0x68] sm:$0xff]  }
   0x6   :  { %2902 = vmatprep.subr.bf16.mxu1 %v3311_v5  ;;  %v3319_v13 = vld [vmem:[%s4340_s1 + $0xd8] sm:$0xff]   ;;  %v3323_v17 = vld [vmem:[%s4340_s1 + $0xe0] sm:$0xff]   ;;  %v3327_v21 = vld [vmem:[%s4340_s1 + $0xe8] sm:$0xff]  }
   0x7   :  { %v3320_v14 = vld [vmem:[%s4340_s1 + $0x18] sm:$0xff]   ;;  %v3324_v18 = vld [vmem:[%s4340_s1 + $0x20] sm:$0xff]   ;;  %v3328_v22 = vld [vmem:[%s4340_s1 + $0x28] sm:$0xff]  }
   0x8   :  { %2845 = vmatpush3.bf16.msra.mxu0 %v3312_v6  ;;  %v3321_v15 = vld [vmem:[%s4340_s1 + $0x98] sm:$0xff]   ;;  %v3325_v19 = vld [vmem:[%s4340_s1 + $0xa0] sm:$0xff]   ;;  %v3329_v23 = vld [vmem:[%s4340_s1 + $0xa8] sm:$0xff]  }
   0x9   :  { %2903 = vmatpush3.bf16.msra.mxu1 %v3313_v7  ;;  %2846 = vmatprep.subr.bf16.mxu0 %v3314_v8  ;;  %v3330_v24 = vld [vmem:[%s4340_s1 + $0x70] sm:$0xff]   ;;  %v3334_v28 = vld [vmem:[%s4340_s1 + $0x78] sm:$0xff]   ;;  %v15_v32 = vld [vmem:[%s4341_s0] sm:$0xff] }
   0xa   :  { %2904 = vmatprep.subr.bf16.mxu1 %v3315_v9  ;;  %v3331_v25 = vld [vmem:[%s4340_s1 + $0xf0] sm:$0xff]   ;;  %v3335_v29 = vld [vmem:[%s4340_s1 + $0xf8] sm:$0xff]   ;;  %v23_v33 = vld [vmem:[%s4341_s0 + $0x40] sm:$0xff] }
   0xb   :  { %v3332_v26 = vld [vmem:[%s4340_s1 + $0x30] sm:$0xff]   ;;  %v3336_v30 = vld [vmem:[%s4340_s1 + $0x38] sm:$0xff]   ;;  %v16_v34 = vld [vmem:[%s4341_s0 + $0x8] sm:$0xff]  ;;  %v2533_v35 = vcombine.low %v15_v32, %v23_v33  ;;  %v2534_v36 = vcombine.high %v15_v32, %v23_v33 }
   0xc   :  { %2847 = vmatpush3.bf16.msra.mxu0 %v3316_v10  ;;  %v3333_v27 = vld [vmem:[%s4340_s1 + $0xb0] sm:$0xff]   ;;  %v3337_v31 = vld [vmem:[%s4340_s1 + $0xb8] sm:$0xff]   ;;  %v24_v37 = vld [vmem:[%s4341_s0 + $0x48] sm:$0xff] }
   0xd   :  { %2905 = vmatpush3.bf16.msra.mxu1 %v3317_v11  ;;  %2848 = vmatprep.subr.bf16.mxu0 %v3318_v12  ;;  %v2535_v38 = vcombine.low %v16_v34, %v24_v37  ;;  %v2536_v39 = vcombine.high %v16_v34, %v24_v37  ;;  %v3338_v40 = vld [vmem:[%s4340_s1 + $0x140] sm:$0xff]   ;;  %v32_v47 = vld [vmem:[%s4341_s0 + $0x88] sm:$0xff]  ;;  %v3346_v56 = vld [vmem:[%s4340_s1 + $0x150] sm:$0xff]  }
   0xe   :  { %2906 = vmatprep.subr.bf16.mxu1 %v3319_v13  ;;  %1750 = vmatprep.mubr.bf16.mxu0 %v2534_v36  ;;  %v3339_v41 = vld [vmem:[%s4340_s1 + $0x100] sm:$0xff]   ;;  %v40_v48 = vld [vmem:[%s4341_s0 + $0xc8] sm:$0xff]  ;;  %v3347_v63 = vld [vmem:[%s4340_s1 + $0x110] sm:$0xff]  }
   0xf   :  { %1839 = vmatprep.mubr.bf16.mxu1 %v2536_v39  ;;  %v3340_v42 = vld [vmem:[%s4340_s1 + $0x1c0] sm:$0xff]   ;;  %v2552_v49 = vcombine.high %v32_v47, %v40_v48  ;;  %v3342_v50 = vld [vmem:[%s4340_s1 + $0x148] sm:$0xff]   ;;  %v2551_v53 = vcombine.low %v32_v47, %v40_v48  ;;  %v3348_v0 = vld [vmem:[%s4340_s1 + $0x1d0] sm:$0xff]  }
  0x10   :  { %2849 = vmatpush3.bf16.msra.mxu0 %v3320_v14  ;;  %v3341_v43 = vld [vmem:[%s4340_s1 + $0x180] sm:$0xff]   ;;  %v3343_v52 = vld [vmem:[%s4340_s1 + $0x108] sm:$0xff]   ;;  %v3349_v1 = vld [vmem:[%s4340_s1 + $0x190] sm:$0xff]  }
  0x11   :  { %2907 = vmatpush3.bf16.msra.mxu1 %v3321_v15  ;;  %2850 = vmatprep.subr.bf16.mxu0 %v3322_v16  ;;  %v31_v44 = vld [vmem:[%s4341_s0 + $0x80] sm:$0xff]  ;;  %v3344_v54 = vld [vmem:[%s4340_s1 + $0x1c8] sm:$0xff]   ;;  %v3350_v3 = vld [vmem:[%s4340_s1 + $0x158] sm:$0xff]  }
  0x12   :  { %2908 = vmatprep.subr.bf16.mxu1 %v3323_v17  ;;  %v39_v45 = vld [vmem:[%s4341_s0 + $0xc0] sm:$0xff]  ;;  %v3345_v55 = vld [vmem:[%s4340_s1 + $0x188] sm:$0xff]   ;;  %v3351_v5 = vld [vmem:[%s4340_s1 + $0x118] sm:$0xff]  }
  0x13   :  { %v2550_v46 = vcombine.high %v31_v44, %v39_v45  ;;  %v2549_v51 = vcombine.low %v31_v44, %v39_v45  ;;  %v47_v57 = vld [vmem:[%s4341_s0 + $0x100] sm:$0xff]  ;;  %v48_v59 = vld [vmem:[%s4341_s0 + $0x108] sm:$0xff]  ;;  %v3352_v12 = vld [vmem:[%s4340_s1 + $0x1d8] sm:$0xff]  }
  0x14   :  { %2851 = vmatpush3.bf16.msra.mxu0 %v3324_v18  ;;  %v55_v58 = vld [vmem:[%s4341_s0 + $0x140] sm:$0xff]  ;;  %v56_v60 = vld [vmem:[%s4341_s0 + $0x148] sm:$0xff]  ;;  %v3353_v13 = vld [vmem:[%s4340_s1 + $0x198] sm:$0xff]  }
  0x15   :  { %2909 = vmatpush3.bf16.msra.mxu1 %v3325_v19  ;;  %2852 = vmatprep.subr.bf16.mxu0 %v3326_v20  ;;  %v2566_v61 = vcombine.high %v47_v57, %v55_v58  ;;  %v2568_v62 = vcombine.high %v48_v59, %v56_v60  ;;  %v2565_v2 = vcombine.low %v47_v57, %v55_v58  ;;  %v63_v6 = vld [vmem:[%s4341_s0 + $0x180] sm:$0xff]  ;;  %v64_v8 = vld [vmem:[%s4341_s0 + $0x188] sm:$0xff]  ;;  %v3367_v47 = vld [vmem:[%s4340_s1 + $0x138] sm:$0xff]  }
  0x16   :  { %2910 = vmatprep.subr.bf16.mxu1 %v3327_v21  ;;  %v2567_v4 = vcombine.low %v48_v59, %v56_v60  ;;  %v71_v7 = vld [vmem:[%s4341_s0 + $0x1c0] sm:$0xff]  ;;  %v72_v10 = vld [vmem:[%s4341_s0 + $0x1c8] sm:$0xff]  ;;  %v25_v57 = vld [vmem:[%s4341_s0 + $0x50] sm:$0xff] }
  0x17   :  { %v2582_v9 = vcombine.high %v63_v6, %v71_v7  ;;  %v2584_v11 = vcombine.high %v64_v8, %v72_v10  ;;  %v3354_v14 = vld [vmem:[%s4340_s1 + $0x160] sm:$0xff]   ;;  %v2581_v16 = vcombine.low %v63_v6, %v71_v7  ;;  %v2583_v20 = vcombine.low %v64_v8, %v72_v10  ;;  %v96_v32 = vld [vmem:[%s4341_s0 + $0x288] sm:$0xff]  ;;  %v18_v58 = vld [vmem:[%s4341_s0 + $0x18] sm:$0xff] }
  0x18   :  { %2853 = vmatpush3.bf16.msra.mxu0 %v3328_v22  ;;  %v3355_v15 = vld [vmem:[%s4340_s1 + $0x120] sm:$0xff]   ;;  %v80_v22 = vld [vmem:[%s4341_s0 + $0x208] sm:$0xff]  ;;  %v26_v59 = vld [vmem:[%s4341_s0 + $0x58] sm:$0xff] }
  0x19   :  { %2911 = vmatpush3.bf16.msra.mxu1 %v3329_v23  ;;  %2854 = vmatprep.subr.bf16.mxu0 %v3330_v24  ;;  %v3356_v17 = vld [vmem:[%s4340_s1 + $0x1e0] sm:$0xff]   ;;  %v88_v23 = vld [vmem:[%s4341_s0 + $0x248] sm:$0xff] }
  0x1a   :  { %2912 = vmatprep.subr.bf16.mxu1 %v3331_v25  ;;  %v79_v18 = vld [vmem:[%s4341_s0 + $0x200] sm:$0xff]  ;;  %v2600_v24 = vcombine.high %v80_v22, %v88_v23  ;;  %v104_v33 = vld [vmem:[%s4341_s0 + $0x2c8] sm:$0xff]  ;;  %v2599_v36 = vcombine.low %v80_v22, %v88_v23 }
  0x1b   :  { %v87_v19 = vld [vmem:[%s4341_s0 + $0x240] sm:$0xff]  ;;  %v2616_v39 = vcombine.high %v96_v32, %v104_v33  ;;  %v112_v44 = vld [vmem:[%s4341_s0 + $0x308] sm:$0xff] }
  0x1c   :  { %2855 = vmatpush3.bf16.msra.mxu0 %v3332_v26  ;;  %v2598_v21 = vcombine.high %v79_v18, %v87_v19  ;;  %v3357_v25 = vld [vmem:[%s4340_s1 + $0x1a0] sm:$0xff]   ;;  %v3358_v26 = vld [vmem:[%s4340_s1 + $0x168] sm:$0xff]   ;;  %v2597_v34 = vcombine.low %v79_v18, %v87_v19  ;;  %v58_v18 = vld [vmem:[%s4341_s0 + $0x158] sm:$0xff] }
  0x1d   :  { %2913 = vmatpush3.bf16.msra.mxu1 %v3333_v27  ;;  %2856 = vmatprep.subr.bf16.mxu0 %v3334_v28  ;;  %v3359_v27 = vld [vmem:[%s4340_s1 + $0x128] sm:$0xff]   ;;  %v3371_v6 = vld [vmem:[%s4340_s1 + $0x200] sm:$0xff]   ;;  %v3380_v19 = vld [vmem:[%s4340_s1 + $0x2d0] sm:$0xff]  }
  0x1e   :  { %2914 = vmatprep.subr.bf16.mxu1 %v3335_v29  ;;  %v3360_v28 = vld [vmem:[%s4340_s1 + $0x1e8] sm:$0xff]   ;;  %v3373_v7 = vld [vmem:[%s4340_s1 + $0x280] sm:$0xff]  }
  0x1f   :  { %v3361_v29 = vld [vmem:[%s4340_s1 + $0x1a8] sm:$0xff]  }
  0x20   :  { %2857 = vmatpush3.bf16.msra.mxu0 %v3336_v30  ;;  %v95_v30 = vld [vmem:[%s4341_s0 + $0x280] sm:$0xff]  ;;  %v120_v45 = vld [vmem:[%s4341_s0 + $0x348] sm:$0xff] }
  0x21   :  { %2915 = vmatpush3.bf16.msra.mxu1 %v3337_v31  ;;  %2958 = vmatprep.subr.bf16.mxu0 %v3338_v40  ;;  %v103_v31 = vld [vmem:[%s4341_s0 + $0x2c0] sm:$0xff]  ;;  %v3364_v40 = vld [vmem:[%s4340_s1 + $0x1f0] sm:$0xff]   ;;  %v3374_v10 = vld [vmem:[%s4340_s1 + $0x248] sm:$0xff]  }
  0x22   :  { %3016 = vmatprep.subr.bf16.mxu1 %v3340_v42  ;;  %v2614_v37 = vcombine.high %v95_v30, %v103_v31  ;;  %v111_v42 = vld [vmem:[%s4341_s0 + $0x300] sm:$0xff]  ;;  %v2613_v48 = vcombine.low %v95_v30, %v103_v31  ;;  %v3384_v30 = vld [vmem:[%s4340_s1 + $0x2d8] sm:$0xff]  }
  0x23   :  { %1751 = vmatmul.mubr.bf16.vlgmr.msra.gmra.mrb[0].mxu0 %v2533_v35  ;;  %v3362_v35 = vld [vmem:[%s4340_s1 + $0x170] sm:$0xff]   ;;  %v66_v31 = vld [vmem:[%s4341_s0 + $0x198] sm:$0xff] }
  0x24   :  { %1840 = vmatmul.mubr.bf16.vlgmr.msra.gmra.mrb[0].mxu1 %v2535_v38  ;;  %2959 = vmatpush3.bf16.msra.mxu0 %v3339_v41  ;;  %v3363_v38 = vld [vmem:[%s4340_s1 + $0x130] sm:$0xff]  }
  0x25   :  { %3017 = vmatpush3.bf16.msra.mxu1 %v3341_v43  ;;  %1758 = vmatprep.mubr.bf16.mxu0 %v2550_v46  ;;  %v3365_v41 = vld [vmem:[%s4340_s1 + $0x1b0] sm:$0xff]   ;;  %v119_v43 = vld [vmem:[%s4341_s0 + $0x340] sm:$0xff]  ;;  %v3366_v46 = vld [vmem:[%s4340_s1 + $0x178] sm:$0xff]  }
  0x26   :  { %1847 = vmatprep.mubr.bf16.mxu1 %v2552_v49  ;;  %2960 = vmatprep.subr.bf16.mxu0 %v3342_v50  ;;  %v3368_v49 = vld [vmem:[%s4340_s1 + $0x1f8] sm:$0xff]   ;;  %v2615_v50 = vcombine.low %v96_v32, %v104_v33  ;;  %v2629_v60 = vcombine.low %v111_v42, %v119_v43 }
  0x27   :  { %3018 = vmatprep.subr.bf16.mxu1 %v3344_v54  ;;  %v3370_v54 = vld [vmem:[%s4340_s1 + $0x240] sm:$0xff]   ;;  %v74_v32 = vld [vmem:[%s4341_s0 + $0x1d8] sm:$0xff] }
  0x28   :  { %2961 = vmatpush3.bf16.msra.mxu0 %v3343_v52  ;;  %v3369_v52 = vld [vmem:[%s4340_s1 + $0x1b8] sm:$0xff]  }
  0x29   :  { %3019 = vmatpush3.bf16.msra.mxu1 %v3345_v55  ;;  %2962 = vmatprep.subr.bf16.mxu0 %v3346_v56  ;;  %v3372_v55 = vld [vmem:[%s4340_s1 + $0x2c0] sm:$0xff]   ;;  %v17_v56 = vld [vmem:[%s4341_s0 + $0x10] sm:$0xff]  ;;  %v3385_v33 = vld [vmem:[%s4340_s1 + $0x298] sm:$0xff]  }
  0x2a   :  { %3020 = vmatprep.subr.bf16.mxu1 %v3348_v0  ;;  %v33_v0 = vld [vmem:[%s4341_s0 + $0x90] sm:$0xff] }
  0x2b   :  { %1759 = vmatmul.mubr.bf16.gmra.mrb[4].mxu0 %v2549_v51  ;;  %v2630_v51 = vcombine.high %v111_v42, %v119_v43  ;;  %v3390_v42 = vld [vmem:[%s4340_s1 + $0x268] sm:$0xff]   ;;  %v81_v43 = vld [vmem:[%s4341_s0 + $0x210] sm:$0xff] }
  0x2c   :  { %1848 = vmatmul.mubr.bf16.gmra.mrb[4].mxu1 %v2551_v53  ;;  %1766 = vmatprep.mubr.bf16.mxu0 %v2566_v61  ;;  %v2632_v53 = vcombine.high %v112_v44, %v120_v45  ;;  %v2631_v61 = vcombine.low %v112_v44, %v120_v45  ;;  %v3392_v44 = vld [vmem:[%s4340_s1 + $0x2e8] sm:$0xff]   ;;  %v89_v45 = vld [vmem:[%s4341_s0 + $0x250] sm:$0xff] }
  0x2d   :  { %1855 = vmatprep.mubr.bf16.mxu1 %v2568_v62  ;;  %2963 = vmatpush3.bf16.msra.mxu0 %v3347_v63  ;;  %v2538_v62 = vcombine.high %v17_v56, %v25_v57  ;;  %v2540_v63 = vcombine.high %v18_v58, %v26_v59 }
  0x2e   :  { %3021 = vmatpush3.bf16.msra.mxu1 %v3349_v1  ;;  %2964 = vmatprep.subr.bf16.mxu0 %v3350_v3  ;;  %v41_v1 = vld [vmem:[%s4341_s0 + $0xd0] sm:$0xff]  ;;  %v2537_v3 = vcombine.low %v17_v56, %v25_v57 }
  0x2f   :  { %3022 = vmatprep.subr.bf16.mxu1 %v3352_v12  ;;  %v2554_v8 = vcombine.high %v33_v0, %v41_v1  ;;  %v3376_v12 = vld [vmem:[%s4340_s1 + $0x2c8] sm:$0xff]   ;;  %v3395_v56 = vld [vmem:[%s4340_s1 + $0x230] sm:$0xff]  }
  0x30   :  { %v3397_v57 = vld [vmem:[%s4340_s1 + $0x2b0] sm:$0xff]  }
  0x31   :  { %2965 = vmatpush3.bf16.msra.mxu0 %v3351_v5  ;;  %v2539_v5 = vcombine.low %v18_v58, %v26_v59  ;;  %v3398_v58 = vld [vmem:[%s4340_s1 + $0x278] sm:$0xff]   ;;  %v97_v59 = vld [vmem:[%s4341_s0 + $0x290] sm:$0xff] }
  0x32   :  { %3023 = vmatpush3.bf16.msra.mxu1 %v3353_v13  ;;  %2966 = vmatprep.subr.bf16.mxu0 %v3354_v14  ;;  %v3377_v13 = vld [vmem:[%s4340_s1 + $0x288] sm:$0xff]   ;;  %v3378_v14 = vld [vmem:[%s4340_s1 + $0x250] sm:$0xff]  }
  0x33   :  { %1767 = vmatmul.mubr.bf16.gmra.mrb[8].mxu0 %v2565_v2  ;;  %3024 = vmatprep.subr.bf16.mxu1 %v3356_v17  ;;  %v34_v2 = vld [vmem:[%s4341_s0 + $0x98] sm:$0xff] }
  0x34   :  { %1856 = vmatmul.mubr.bf16.gmra.mrb[8].mxu1 %v2567_v4  ;;  %1774 = vmatprep.mubr.bf16.mxu0 %v2582_v9  ;;  %v42_v4 = vld [vmem:[%s4341_s0 + $0xd8] sm:$0xff] }
  0x35   :  { %1863 = vmatprep.mubr.bf16.mxu1 %v2584_v11  ;;  %2967 = vmatpush3.bf16.msra.mxu0 %v3355_v15  ;;  %v2556_v9 = vcombine.high %v34_v2, %v42_v4  ;;  %v3375_v11 = vld [vmem:[%s4340_s1 + $0x208] sm:$0xff]   ;;  %v49_v15 = vld [vmem:[%s4341_s0 + $0x110] sm:$0xff]  ;;  %v50_v17 = vld [vmem:[%s4341_s0 + $0x118] sm:$0xff] }
  0x36   :  { %3025 = vmatpush3.bf16.msra.mxu1 %v3357_v25  ;;  %2968 = vmatprep.subr.bf16.mxu0 %v3358_v26  ;;  %v2572_v23 = vcombine.high %v50_v17, %v58_v18  ;;  %v3381_v25 = vld [vmem:[%s4340_s1 + $0x290] sm:$0xff]   ;;  %v3382_v26 = vld [vmem:[%s4340_s1 + $0x258] sm:$0xff]  }
  0x37   :  { %3026 = vmatprep.subr.bf16.mxu1 %v3360_v28  ;;  %v65_v28 = vld [vmem:[%s4341_s0 + $0x190] sm:$0xff] }
  0x39   :  { %2969 = vmatpush3.bf16.msra.mxu0 %v3359_v27  ;;  %v3383_v27 = vld [vmem:[%s4340_s1 + $0x218] sm:$0xff]  }
  0x3a   :  { %3027 = vmatpush3.bf16.msra.mxu1 %v3361_v29  ;;  %2970 = vmatprep.subr.bf16.mxu0 %v3362_v35  ;;  %v73_v29 = vld [vmem:[%s4341_s0 + $0x1d0] sm:$0xff] }
  0x3b   :  { %1775 = vmatmul.mubr.bf16.gmra.mrb[12].mxu0 %v2581_v16  ;;  %3028 = vmatprep.subr.bf16.mxu1 %v3364_v40  ;;  %v57_v16 = vld [vmem:[%s4341_s0 + $0x150] sm:$0xff]  ;;  %v2588_v40 = vcombine.high %v66_v31, %v74_v32 }
  0x3c   :  { %1864 = vmatmul.mubr.bf16.gmra.mrb[12].mxu1 %v2583_v20  ;;  %1782 = vmatprep.mubr.bf16.mxu0 %v2598_v21  ;;  %v2553_v20 = vcombine.low %v33_v0, %v41_v1  ;;  %v2555_v21 = vcombine.low %v34_v2, %v42_v4  ;;  %v2570_v22 = vcombine.high %v49_v15, %v57_v16  ;;  %v3399_v0 = vld [vmem:[%s4340_s1 + $0x238] sm:$0xff]   ;;  %v3402_v2 = vld [vmem:[%s4340_s1 + $0x340] sm:$0xff]  }
  0x3d   :  { %1871 = vmatprep.mubr.bf16.mxu1 %v2600_v24  ;;  %2971 = vmatpush3.bf16.msra.mxu0 %v3363_v38  ;;  %v3379_v24 = vld [vmem:[%s4340_s1 + $0x210] sm:$0xff]   ;;  %v2569_v35 = vcombine.low %v49_v15, %v57_v16  ;;  %v2586_v38 = vcombine.high %v65_v28, %v73_v29  ;;  %v3401_v1 = vld [vmem:[%s4340_s1 + $0x2b8] sm:$0xff]   ;;  %v3404_v4 = vld [vmem:[%s4340_s1 + $0x3c0] sm:$0xff]  }
  0x3e   :  { %3029 = vmatpush3.bf16.msra.mxu1 %v3365_v41  ;;  %2972 = vmatprep.subr.bf16.mxu0 %v3366_v46  ;;  %v3389_v41 = vld [vmem:[%s4340_s1 + $0x2a0] sm:$0xff]   ;;  %v82_v46 = vld [vmem:[%s4341_s0 + $0x218] sm:$0xff] }
  0x3f   :  { %3030 = vmatprep.subr.bf16.mxu1 %v3368_v49  ;;  %v3393_v49 = vld [vmem:[%s4340_s1 + $0x2a8] sm:$0xff]   ;;  %v19_v16 = vld [vmem:[%s4341_s0 + $0x20] sm:$0xff] }
  0x41   :  { %2973 = vmatpush3.bf16.msra.mxu0 %v3367_v47  ;;  %v90_v47 = vld [vmem:[%s4341_s0 + $0x258] sm:$0xff] }
  0x42   :  { %3031 = vmatpush3.bf16.msra.mxu1 %v3369_v52  ;;  %3074 = vmatprep.subr.bf16.mxu0 %v3370_v54  ;;  %v3396_v52 = vld [vmem:[%s4340_s1 + $0x2f0] sm:$0xff]   ;;  %v2602_v54 = vcombine.high %v81_v43, %v89_v45 }
  0x43   :  { %1783 = vmatmul.mubr.bf16.gmra.mrb[16].mxu0 %v2597_v34  ;;  %3132 = vmatprep.subr.bf16.mxu1 %v3372_v55  ;;  %v3386_v34 = vld [vmem:[%s4340_s1 + $0x260] sm:$0xff]   ;;  %v2604_v55 = vcombine.high %v82_v46, %v90_v47 }
  0x44   :  { %1872 = vmatmul.mubr.bf16.gmra.mrb[16].mxu1 %v2599_v36  ;;  %1790 = vmatprep.mubr.bf16.mxu0 %v2614_v37  ;;  %v3388_v36 = vld [vmem:[%s4340_s1 + $0x2e0] sm:$0xff]   ;;  %v2571_v37 = vcombine.low %v50_v17, %v58_v18  ;;  %v20_v18 = vld [vmem:[%s4341_s0 + $0x28] sm:$0xff] }
  0x45   :  { %1879 = vmatprep.mubr.bf16.mxu1 %v2616_v39  ;;  %v3387_v39 = vld [vmem:[%s4340_s1 + $0x220] sm:$0xff]  }
  0x46   :  { %v27_v17 = vld [vmem:[%s4341_s0 + $0x60] sm:$0xff] }
  0x4b   :  { %1791 = vmatmul.mubr.bf16.gmra.mrb[20].mxu0 %v2613_v48  ;;  %v3391_v48 = vld [vmem:[%s4340_s1 + $0x228] sm:$0xff]  }
  0x4c   :  { %1880 = vmatmul.mubr.bf16.gmra.mrb[20].mxu1 %v2615_v50  ;;  %1798 = vmatprep.mubr.bf16.mxu0 %v2630_v51  ;;  %v3394_v50 = vld [vmem:[%s4340_s1 + $0x270] sm:$0xff]   ;;  %v2585_v51 = vcombine.low %v65_v28, %v73_v29  ;;  %v44_v28 = vld [vmem:[%s4341_s0 + $0xe8] sm:$0xff] }
  0x4d   :  { %1887 = vmatprep.mubr.bf16.mxu1 %v2632_v53  ;;  %v2587_v53 = vcombine.low %v66_v31, %v74_v32  ;;  %v3405_v31 = vld [vmem:[%s4340_s1 + $0x380] sm:$0xff]  }
  0x53   :  { %1799 = vmatmul.mubr.bf16.gmra.mrb[24].mxu0 %v2629_v60  ;;  %v105_v60 = vld [vmem:[%s4341_s0 + $0x2d0] sm:$0xff] }
  0x54   :  { %1888 = vmatmul.mubr.bf16.gmra.mrb[24].mxu1 %v2631_v61  ;;  %1928 = vmatprep.mubr.bf16.mxu0 %v2538_v62  ;;  %v3400_v61 = vld [vmem:[%s4340_s1 + $0x2f8] sm:$0xff]  }
  0x55   :  { %2017 = vmatprep.mubr.bf16.mxu1 %v2540_v63  ;;  %v98_v62 = vld [vmem:[%s4341_s0 + $0x298] sm:$0xff] }
  0x56   :  { %v106_v63 = vld [vmem:[%s4341_s0 + $0x2d8] sm:$0xff] }
  0x5b   :  { %1929 = vmatmul.mubr.bf16.vlgmr.msra.gmra.mrb[28].mxu0 %v2537_v3  ;;  %v2601_v3 = vcombine.low %v81_v43, %v89_v45  ;;  %v3412_v43 = vld [vmem:[%s4340_s1 + $0x3d0] sm:$0xff]  }
  0x5c   :  { %2018 = vmatmul.mubr.bf16.vlgmr.msra.gmra.mrb[28].mxu1 %v2539_v5  ;;  %3075 = vmatpush3.bf16.msra.mxu0 %v3371_v6  ;;  %v2603_v5 = vcombine.low %v82_v46, %v90_v47  ;;  %v2618_v6 = vcombine.high %v97_v59, %v105_v60  ;;  %v3411_v47 = vld [vmem:[%s4340_s1 + $0x310] sm:$0xff]  }
  0x5d   :  { %3133 = vmatpush3.bf16.msra.mxu1 %v3373_v7  ;;  %1936 = vmatprep.mubr.bf16.mxu0 %v2554_v8  ;;  %v2620_v7 = vcombine.high %v98_v62, %v106_v63  ;;  %v113_v8 = vld [vmem:[%s4341_s0 + $0x310] sm:$0xff] }
  0x5e   :  { %2025 = vmatprep.mubr.bf16.mxu1 %v2556_v9  ;;  %3076 = vmatprep.subr.bf16.mxu0 %v3374_v10  ;;  %v121_v9 = vld [vmem:[%s4341_s0 + $0x350] sm:$0xff]  ;;  %v114_v10 = vld [vmem:[%s4341_s0 + $0x318] sm:$0xff] }
  0x5f   :  { %3134 = vmatprep.subr.bf16.mxu1 %v3376_v12  ;;  %v2617_v12 = vcombine.low %v97_v59, %v105_v60  ;;  %v3420_v60 = vld [vmem:[%s4340_s1 + $0x3e0] sm:$0xff]  }
  0x60   :  { %3077 = vmatpush3.bf16.msra.mxu0 %v3375_v11  ;;  %v122_v11 = vld [vmem:[%s4341_s0 + $0x358] sm:$0xff] }
  0x61   :  { %3135 = vmatpush3.bf16.msra.mxu1 %v3377_v13  ;;  %3078 = vmatprep.subr.bf16.mxu0 %v3378_v14  ;;  %v2619_v13 = vcombine.low %v98_v62, %v106_v63  ;;  %v2634_v14 = vcombine.high %v113_v8, %v121_v9  ;;  %v2636_v15 = vcombine.high %v114_v10, %v122_v11 }
  0x62   :  { %3136 = vmatprep.subr.bf16.mxu1 %v3380_v19  ;;  %v28_v19 = vld [vmem:[%s4341_s0 + $0x68] sm:$0xff] }
  0x63   :  { %1937 = vmatmul.mubr.bf16.gmra.mrb[32].mxu0 %v2553_v20  ;;  %v2633_v20 = vcombine.low %v113_v8, %v121_v9  ;;  %v2543_v29 = vcombine.low %v20_v18, %v28_v19  ;;  %v92_v8 = vld [vmem:[%s4341_s0 + $0x268] sm:$0xff] }
  0x64   :  { %2026 = vmatmul.mubr.bf16.gmra.mrb[32].mxu1 %v2555_v21  ;;  %1944 = vmatprep.mubr.bf16.mxu0 %v2570_v22  ;;  %v2635_v21 = vcombine.low %v114_v10, %v122_v11  ;;  %v2542_v22 = vcombine.high %v19_v16, %v27_v17  ;;  %v3425_v9 = vld [vmem:[%s4340_s1 + $0x3a8] sm:$0xff]   ;;  %v3426_v10 = vld [vmem:[%s4340_s1 + $0x370] sm:$0xff]  }
  0x65   :  { %2033 = vmatprep.mubr.bf16.mxu1 %v2572_v23  ;;  %3079 = vmatpush3.bf16.msra.mxu0 %v3379_v24  ;;  %v2544_v23 = vcombine.high %v20_v18, %v28_v19  ;;  %v35_v24 = vld [vmem:[%s4341_s0 + $0xa0] sm:$0xff]  ;;  %v3430_v18 = vld [vmem:[%s4340_s1 + $0x378] sm:$0xff]  }
  0x66   :  { %3137 = vmatpush3.bf16.msra.mxu1 %v3381_v25  ;;  %3080 = vmatprep.subr.bf16.mxu0 %v3382_v26  ;;  %v43_v25 = vld [vmem:[%s4341_s0 + $0xe0] sm:$0xff]  ;;  %v36_v26 = vld [vmem:[%s4341_s0 + $0xa8] sm:$0xff]  ;;  %v3432_v19 = vld [vmem:[%s4340_s1 + $0x3f8] sm:$0xff]  }
  0x67   :  { %3138 = vmatprep.subr.bf16.mxu1 %v3384_v30  ;;  %v3403_v30 = vld [vmem:[%s4340_s1 + $0x300] sm:$0xff]   ;;  %v2558_v32 = vcombine.high %v35_v24, %v43_v25  ;;  %v2559_v45 = vcombine.low %v36_v26, %v44_v28 }
  0x69   :  { %3081 = vmatpush3.bf16.msra.mxu0 %v3383_v27  ;;  %v2541_v27 = vcombine.low %v19_v16, %v27_v17  ;;  %v3427_v16 = vld [vmem:[%s4340_s1 + $0x330] sm:$0xff]  }
  0x6a   :  { %3139 = vmatpush3.bf16.msra.mxu1 %v3385_v33  ;;  %3082 = vmatprep.subr.bf16.mxu0 %v3386_v34  ;;  %v3406_v33 = vld [vmem:[%s4340_s1 + $0x348] sm:$0xff]   ;;  %v2560_v34 = vcombine.high %v36_v26, %v44_v28  ;;  %v3429_v17 = vld [vmem:[%s4340_s1 + $0x3b0] sm:$0xff]  }
  0x6b   :  { %1945 = vmatmul.mubr.bf16.gmra.mrb[36].mxu0 %v2569_v35  ;;  %3140 = vmatprep.subr.bf16.mxu1 %v3388_v36  ;;  %v3407_v35 = vld [vmem:[%s4340_s1 + $0x308] sm:$0xff]  }
  0x6c   :  { %2034 = vmatmul.mubr.bf16.gmra.mrb[36].mxu1 %v2571_v37  ;;  %1952 = vmatprep.mubr.bf16.mxu0 %v2586_v38  ;;  %v3408_v36 = vld [vmem:[%s4340_s1 + $0x3c8] sm:$0xff]   ;;  %v3410_v38 = vld [vmem:[%s4340_s1 + $0x350] sm:$0xff]  }
  0x6d   :  { %2041 = vmatprep.mubr.bf16.mxu1 %v2588_v40  ;;  %3083 = vmatpush3.bf16.msra.mxu0 %v3387_v39  ;;  %v3409_v37 = vld [vmem:[%s4340_s1 + $0x388] sm:$0xff]   ;;  %v51_v39 = vld [vmem:[%s4341_s0 + $0x120] sm:$0xff] }
  0x6e   :  { %3141 = vmatpush3.bf16.msra.mxu1 %v3389_v41  ;;  %3084 = vmatprep.subr.bf16.mxu0 %v3390_v42  ;;  %v59_v40 = vld [vmem:[%s4341_s0 + $0x160] sm:$0xff]  ;;  %v52_v41 = vld [vmem:[%s4341_s0 + $0x128] sm:$0xff] }
  0x6f   :  { %3142 = vmatprep.subr.bf16.mxu1 %v3392_v44  ;;  %v60_v42 = vld [vmem:[%s4341_s0 + $0x168] sm:$0xff]  ;;  %v2557_v44 = vcombine.low %v35_v24, %v43_v25  ;;  %v2574_v46 = vcombine.high %v51_v39, %v59_v40  ;;  %v2573_v59 = vcombine.low %v51_v39, %v59_v40  ;;  %v3433_v25 = vld [vmem:[%s4340_s1 + $0x3b8] sm:$0xff]   ;;  %v29_v39 = vld [vmem:[%s4341_s0 + $0x70] sm:$0xff] }
  0x70   :  { %v108_v24 = vld [vmem:[%s4341_s0 + $0x2e8] sm:$0xff]  ;;  %v22_v40 = vld [vmem:[%s4341_s0 + $0x38] sm:$0xff] }
  0x71   :  { %3085 = vmatpush3.bf16.msra.mxu0 %v3391_v48  ;;  %v2576_v48 = vcombine.high %v52_v41, %v60_v42 }
  0x72   :  { %3143 = vmatpush3.bf16.msra.mxu1 %v3393_v49  ;;  %3086 = vmatprep.subr.bf16.mxu0 %v3394_v50  ;;  %v3413_v49 = vld [vmem:[%s4340_s1 + $0x390] sm:$0xff]   ;;  %v3414_v50 = vld [vmem:[%s4340_s1 + $0x358] sm:$0xff]  }
  0x73   :  { %1953 = vmatmul.mubr.bf16.gmra.mrb[40].mxu0 %v2585_v51  ;;  %3144 = vmatprep.subr.bf16.mxu1 %v3396_v52  ;;  %v3416_v51 = vld [vmem:[%s4340_s1 + $0x3d8] sm:$0xff]  }
  0x74   :  { %2042 = vmatmul.mubr.bf16.gmra.mrb[40].mxu1 %v2587_v53  ;;  %1960 = vmatprep.mubr.bf16.mxu0 %v2602_v54  ;;  %v3415_v52 = vld [vmem:[%s4340_s1 + $0x318] sm:$0xff]   ;;  %v67_v53 = vld [vmem:[%s4341_s0 + $0x1a0] sm:$0xff] }
  0x75   :  { %2049 = vmatprep.mubr.bf16.mxu1 %v2604_v55  ;;  %3087 = vmatpush3.bf16.msra.mxu0 %v3395_v56  ;;  %v75_v54 = vld [vmem:[%s4341_s0 + $0x1e0] sm:$0xff]  ;;  %v68_v55 = vld [vmem:[%s4341_s0 + $0x1a8] sm:$0xff] }
  0x76   :  { %3145 = vmatpush3.bf16.msra.mxu1 %v3397_v57  ;;  %3088 = vmatprep.subr.bf16.mxu0 %v3398_v58  ;;  %v76_v56 = vld [vmem:[%s4341_s0 + $0x1e8] sm:$0xff]  ;;  %v3417_v57 = vld [vmem:[%s4340_s1 + $0x398] sm:$0xff]   ;;  %v3418_v58 = vld [vmem:[%s4340_s1 + $0x360] sm:$0xff]   ;;  %v2590_v62 = vcombine.high %v67_v53, %v75_v54  ;;  %v2589_v11 = vcombine.low %v67_v53, %v75_v54 }
  0x77   :  { %3146 = vmatprep.subr.bf16.mxu1 %v3400_v61  ;;  %v2575_v61 = vcombine.low %v52_v41, %v60_v42  ;;  %v2592_v63 = vcombine.high %v68_v55, %v76_v56  ;;  %v30_v41 = vld [vmem:[%s4341_s0 + $0x78] sm:$0xff]  ;;  %v53_v54 = vld [vmem:[%s4341_s0 + $0x130] sm:$0xff] }
  0x79   :  { %3089 = vmatpush3.bf16.msra.mxu0 %v3399_v0  ;;  %v3419_v0 = vld [vmem:[%s4340_s1 + $0x320] sm:$0xff]  }
  0x7a   :  { %3147 = vmatpush3.bf16.msra.mxu1 %v3401_v1  ;;  %3190 = vmatprep.subr.bf16.mxu0 %v3402_v2  ;;  %v3421_v1 = vld [vmem:[%s4340_s1 + $0x3a0] sm:$0xff]   ;;  %v3422_v2 = vld [vmem:[%s4340_s1 + $0x368] sm:$0xff]  }
  0x7b   :  { %1961 = vmatmul.mubr.bf16.gmra.mrb[44].mxu0 %v2601_v3  ;;  %3248 = vmatprep.subr.bf16.mxu1 %v3404_v4  ;;  %v3424_v3 = vld [vmem:[%s4340_s1 + $0x3e8] sm:$0xff]   ;;  %v83_v4 = vld [vmem:[%s4341_s0 + $0x220] sm:$0xff] }
  0x7c   :  { %2050 = vmatmul.mubr.bf16.gmra.mrb[44].mxu1 %v2603_v5  ;;  %1968 = vmatprep.mubr.bf16.mxu0 %v2618_v6  ;;  %v91_v5 = vld [vmem:[%s4341_s0 + $0x260] sm:$0xff]  ;;  %v84_v6 = vld [vmem:[%s4341_s0 + $0x228] sm:$0xff] }
  0x7d   :  { %2057 = vmatprep.mubr.bf16.mxu1 %v2620_v7  ;;  %v3423_v7 = vld [vmem:[%s4340_s1 + $0x328] sm:$0xff]   ;;  %v2605_v26 = vcombine.low %v83_v4, %v91_v5 }
  0x83   :  { %1969 = vmatmul.mubr.bf16.gmra.mrb[48].mxu0 %v2617_v12  ;;  %v3428_v12 = vld [vmem:[%s4340_s1 + $0x3f0] sm:$0xff]  }
  0x84   :  { %2058 = vmatmul.mubr.bf16.gmra.mrb[48].mxu1 %v2619_v13  ;;  %1976 = vmatprep.mubr.bf16.mxu0 %v2634_v14  ;;  %v2591_v13 = vcombine.low %v68_v55, %v76_v56  ;;  %v2606_v14 = vcombine.high %v83_v4, %v91_v5  ;;  %v61_v55 = vld [vmem:[%s4341_s0 + $0x170] sm:$0xff]  ;;  %v54_v56 = vld [vmem:[%s4341_s0 + $0x138] sm:$0xff] }
  0x85   :  { %2065 = vmatprep.mubr.bf16.mxu1 %v2636_v15  ;;  %v2608_v15 = vcombine.high %v84_v6, %v92_v8 }
  0x8b   :  { %1977 = vmatmul.mubr.bf16.gmra.mrb[52].mxu0 %v2633_v20  ;;  %v99_v20 = vld [vmem:[%s4341_s0 + $0x2a0] sm:$0xff] }
  0x8c   :  { %2066 = vmatmul.mubr.bf16.gmra.mrb[52].mxu1 %v2635_v21  ;;  %2106 = vmatprep.mubr.bf16.mxu0 %v2542_v22  ;;  %v107_v21 = vld [vmem:[%s4341_s0 + $0x2e0] sm:$0xff]  ;;  %v3431_v22 = vld [vmem:[%s4340_s1 + $0x338] sm:$0xff]  }
  0x8d   :  { %2195 = vmatprep.mubr.bf16.mxu1 %v2544_v23  ;;  %v100_v23 = vld [vmem:[%s4341_s0 + $0x2a8] sm:$0xff]  ;;  %v2622_v28 = vcombine.high %v99_v20, %v107_v21 }
  0x93   :  { %2107 = vmatmul.mubr.bf16.vlgmr.msra.gmra.mrb[56].mxu0 %v2541_v27  ;;  %v2607_v27 = vcombine.low %v84_v6, %v92_v8  ;;  %v85_v6 = vld [vmem:[%s4341_s0 + $0x230] sm:$0xff]  ;;  %v86_v8 = vld [vmem:[%s4341_s0 + $0x238] sm:$0xff] }
  0x94   :  { %2196 = vmatmul.mubr.bf16.vlgmr.msra.gmra.mrb[56].mxu1 %v2543_v29  ;;  %3191 = vmatpush3.bf16.msra.mxu0 %v3403_v30  ;;  %v2624_v29 = vcombine.high %v100_v23, %v108_v24  ;;  %v115_v30 = vld [vmem:[%s4341_s0 + $0x320] sm:$0xff] }
  0x95   :  { %3249 = vmatpush3.bf16.msra.mxu1 %v3405_v31  ;;  %2114 = vmatprep.mubr.bf16.mxu0 %v2558_v32  ;;  %v123_v31 = vld [vmem:[%s4341_s0 + $0x360] sm:$0xff]  ;;  %v116_v32 = vld [vmem:[%s4341_s0 + $0x328] sm:$0xff] }
  0x96   :  { %2203 = vmatprep.mubr.bf16.mxu1 %v2560_v34  ;;  %3192 = vmatprep.subr.bf16.mxu0 %v3406_v33  ;;  %v124_v33 = vld [vmem:[%s4341_s0 + $0x368] sm:$0xff]  ;;  %v2621_v34 = vcombine.low %v99_v20, %v107_v21  ;;  %v2637_v42 = vcombine.low %v115_v30, %v123_v31 }
  0x97   :  { %3250 = vmatprep.subr.bf16.mxu1 %v3408_v36  ;;  %v2638_v36 = vcombine.high %v115_v30, %v123_v31 }
  0x98   :  { %3193 = vmatpush3.bf16.msra.mxu0 %v3407_v35  ;;  %v2623_v35 = vcombine.low %v100_v23, %v108_v24  ;;  %v125_v23 = vld [vmem:[%s4341_s0 + $0x370] sm:$0xff]  ;;  %v118_v24 = vld [vmem:[%s4341_s0 + $0x338] sm:$0xff] }
  0x99   :  { %3251 = vmatpush3.bf16.msra.mxu1 %v3409_v37  ;;  %3194 = vmatprep.subr.bf16.mxu0 %v3410_v38  ;;  %v2640_v37 = vcombine.high %v116_v32, %v124_v33  ;;  %v21_v38 = vld [vmem:[%s4341_s0 + $0x30] sm:$0xff] }
  0x9a   :  { %3252 = vmatprep.subr.bf16.mxu1 %v3412_v43  ;;  %v2639_v43 = vcombine.low %v116_v32, %v124_v33  ;;  %v4177_v32 = vld [vmem:[%s4342_s2] ss:$0 sm:$0xff] }
  0x9b   :  { %2115 = vmatmul.mubr.bf16.gmra.mrb[60].mxu0 %v2557_v44  ;;  %v2546_v44 = vcombine.high %v21_v38, %v29_v39 }
  0x9c   :  { %2204 = vmatmul.mubr.bf16.gmra.mrb[60].mxu1 %v2559_v45  ;;  %2122 = vmatprep.mubr.bf16.mxu0 %v2574_v46  ;;  %v2548_v45 = vcombine.high %v22_v40, %v30_v41  ;;  %v37_v46 = vld [vmem:[%s4341_s0 + $0xb0] sm:$0xff] }
  0x9d   :  { %2211 = vmatprep.mubr.bf16.mxu1 %v2576_v48  ;;  %3195 = vmatpush3.bf16.msra.mxu0 %v3411_v47  ;;  %v45_v47 = vld [vmem:[%s4341_s0 + $0xf0] sm:$0xff]  ;;  %v38_v48 = vld [vmem:[%s4341_s0 + $0xb8] sm:$0xff] }
  0x9e   :  { %3253 = vmatpush3.bf16.msra.mxu1 %v3413_v49  ;;  %3196 = vmatprep.subr.bf16.mxu0 %v3414_v50  ;;  %v46_v49 = vld [vmem:[%s4341_s0 + $0xf8] sm:$0xff]  ;;  %v2545_v50 = vcombine.low %v21_v38, %v29_v39 }
  0x9f   :  { %3254 = vmatprep.subr.bf16.mxu1 %v3416_v51  ;;  %v2547_v51 = vcombine.low %v22_v40, %v30_v41  ;;  %v2564_v53 = vcombine.high %v38_v48, %v46_v49 }
  0xa1   :  { %3197 = vmatpush3.bf16.msra.mxu0 %v3415_v52  ;;  %v2562_v52 = vcombine.high %v37_v46, %v45_v47 }
  0xa2   :  { %3255 = vmatpush3.bf16.msra.mxu1 %v3417_v57  ;;  %3198 = vmatprep.subr.bf16.mxu0 %v3418_v58  ;;  %v62_v57 = vld [vmem:[%s4341_s0 + $0x178] sm:$0xff]  ;;  %v2561_v58 = vcombine.low %v37_v46, %v45_v47 }
  0xa3   :  { %2123 = vmatmul.mubr.bf16.gmra.mrb[64].mxu0 %v2573_v59  ;;  %3256 = vmatprep.subr.bf16.mxu1 %v3420_v60  ;;  %v2563_v59 = vcombine.low %v38_v48, %v46_v49  ;;  %v2578_v60 = vcombine.high %v53_v54, %v61_v55 }
  0xa4   :  { %2212 = vmatmul.mubr.bf16.gmra.mrb[64].mxu1 %v2575_v61  ;;  %2130 = vmatprep.mubr.bf16.mxu0 %v2590_v62  ;;  %v2580_v61 = vcombine.high %v54_v56, %v62_v57  ;;  %v69_v62 = vld [vmem:[%s4341_s0 + $0x1b0] sm:$0xff] }
  0xa5   :  { %2219 = vmatprep.mubr.bf16.mxu1 %v2592_v63  ;;  %3199 = vmatpush3.bf16.msra.mxu0 %v3419_v0  ;;  %v77_v63 = vld [vmem:[%s4341_s0 + $0x1f0] sm:$0xff]  ;;  %v70_v0 = vld [vmem:[%s4341_s0 + $0x1b8] sm:$0xff] }
  0xa6   :  { %3257 = vmatpush3.bf16.msra.mxu1 %v3421_v1  ;;  %3200 = vmatprep.subr.bf16.mxu0 %v3422_v2  ;;  %v78_v1 = vld [vmem:[%s4341_s0 + $0x1f8] sm:$0xff]  ;;  %v2577_v2 = vcombine.low %v53_v54, %v61_v55  ;;  %v2594_v4 = vcombine.high %v69_v62, %v77_v63 }
  0xa7   :  { %3258 = vmatprep.subr.bf16.mxu1 %v3424_v3  ;;  %v2579_v3 = vcombine.low %v54_v56, %v62_v57  ;;  %v2596_v5 = vcombine.high %v70_v0, %v78_v1 }
  0xa9   :  { %3201 = vmatpush3.bf16.msra.mxu0 %v3423_v7  ;;  %v93_v7 = vld [vmem:[%s4341_s0 + $0x270] sm:$0xff] }
  0xaa   :  { %3259 = vmatpush3.bf16.msra.mxu1 %v3425_v9  ;;  %3202 = vmatprep.subr.bf16.mxu0 %v3426_v10  ;;  %v94_v9 = vld [vmem:[%s4341_s0 + $0x278] sm:$0xff]  ;;  %v2593_v10 = vcombine.low %v69_v62, %v77_v63 }
  0xab   :  { %2131 = vmatmul.mubr.bf16.gmra.mrb[68].mxu0 %v2589_v11  ;;  %3260 = vmatprep.subr.bf16.mxu1 %v3428_v12  ;;  %v2595_v11 = vcombine.low %v70_v0, %v78_v1  ;;  %v2610_v12 = vcombine.high %v85_v6, %v93_v7 }
  0xac   :  { %2220 = vmatmul.mubr.bf16.gmra.mrb[68].mxu1 %v2591_v13  ;;  %2138 = vmatprep.mubr.bf16.mxu0 %v2606_v14  ;;  %v2612_v13 = vcombine.high %v86_v8, %v94_v9  ;;  %v101_v14 = vld [vmem:[%s4341_s0 + $0x2b0] sm:$0xff] }
  0xad   :  { %2227 = vmatprep.mubr.bf16.mxu1 %v2608_v15  ;;  %3203 = vmatpush3.bf16.msra.mxu0 %v3427_v16  ;;  %v109_v15 = vld [vmem:[%s4341_s0 + $0x2f0] sm:$0xff]  ;;  %v102_v16 = vld [vmem:[%s4341_s0 + $0x2b8] sm:$0xff] }
  0xae   :  { %3261 = vmatpush3.bf16.msra.mxu1 %v3429_v17  ;;  %3204 = vmatprep.subr.bf16.mxu0 %v3430_v18  ;;  %v110_v17 = vld [vmem:[%s4341_s0 + $0x2f8] sm:$0xff]  ;;  %v2609_v18 = vcombine.low %v85_v6, %v93_v7  ;;  %v2626_v20 = vcombine.high %v101_v14, %v109_v15 }
  0xaf   :  { %3262 = vmatprep.subr.bf16.mxu1 %v3432_v19  ;;  %v2611_v19 = vcombine.low %v86_v8, %v94_v9  ;;  %v2628_v21 = vcombine.high %v102_v16, %v110_v17 }
  0xb1   :  { %3205 = vmatpush3.bf16.msra.mxu0 %v3431_v22  ;;  %v117_v22 = vld [vmem:[%s4341_s0 + $0x330] sm:$0xff] }
  0xb2   :  { %3263 = vmatpush3.bf16.msra.mxu1 %v3433_v25  ;;  %v126_v25 = vld [vmem:[%s4341_s0 + $0x378] sm:$0xff] }
  0xb3   :  { %2139 = vmatmul.mubr.bf16.gmra.mrb[72].mxu0 %v2605_v26  ;;  %v2625_v26 = vcombine.low %v101_v14, %v109_v15  ;;  %v2643_v38 = vcombine.low %v118_v24, %v126_v25 }
  0xb4   :  { %2228 = vmatmul.mubr.bf16.gmra.mrb[72].mxu1 %v2607_v27  ;;  %2146 = vmatprep.mubr.bf16.mxu0 %v2622_v28  ;;  %v2627_v27 = vcombine.low %v102_v16, %v110_v17  ;;  %v2642_v28 = vcombine.high %v117_v22, %v125_v23 }
  0xb5   :  { %2235 = vmatprep.mubr.bf16.mxu1 %v2624_v29  ;;  %v2644_v29 = vcombine.high %v118_v24, %v126_v25 }
  0xbb   :  { %2147 = vmatmul.mubr.bf16.gmra.mrb[76].mxu0 %v2621_v34  ;;  %v2641_v34 = vcombine.low %v117_v22, %v125_v23 }
  0xbc   :  { %2236 = vmatmul.mubr.bf16.gmra.mrb[76].mxu1 %v2623_v35  ;;  %2154 = vmatprep.mubr.bf16.mxu0 %v2638_v36 }
  0xbd   :  { %2243 = vmatprep.mubr.bf16.mxu1 %v2640_v37 }
  0xc3   :  { %2155 = vmatmul.mubr.bf16.gmra.mrb[80].mxu0 %v2637_v42 }
  0xc4   :  { %2244 = vmatmul.mubr.bf16.gmra.mrb[80].mxu1 %v2639_v43  ;;  %2284 = vmatprep.mubr.bf16.mxu0 %v2546_v44 }
  0xc5   :  { %2373 = vmatprep.mubr.bf16.mxu1 %v2548_v45 }
  0xcb   :  { %2285 = vmatmul.mubr.bf16.vlgmr.msra.gmra.mrb[84].mxu0 %v2545_v50 }
  0xcc   :  { %2374 = vmatmul.mubr.bf16.vlgmr.msra.gmra.mrb[84].mxu1 %v2547_v51  ;;  %2292 = vmatprep.mubr.bf16.mxu0 %v2562_v52 }
  0xcd   :  { %2381 = vmatprep.mubr.bf16.mxu1 %v2564_v53 }
  0xd3   :  { %2293 = vmatmul.mubr.bf16.gmra.mrb[88].mxu0 %v2561_v58 }
  0xd4   :  { %2382 = vmatmul.mubr.bf16.gmra.mrb[88].mxu1 %v2563_v59  ;;  %2300 = vmatprep.mubr.bf16.mxu0 %v2578_v60 }
  0xd5   :  { %2389 = vmatprep.mubr.bf16.mxu1 %v2580_v61 }
  0xdb   :  { %2301 = vmatmul.mubr.bf16.gmra.mrb[92].mxu0 %v2577_v2 }
  0xdc   :  { %2390 = vmatmul.mubr.bf16.gmra.mrb[92].mxu1 %v2579_v3  ;;  %2308 = vmatprep.mubr.bf16.mxu0 %v2594_v4 }
  0xdd   :  { %2397 = vmatprep.mubr.bf16.mxu1 %v2596_v5 }
  0xe3   :  { %2309 = vmatmul.mubr.bf16.gmra.mrb[96].mxu0 %v2593_v10 }
  0xe4   :  { %2398 = vmatmul.mubr.bf16.gmra.mrb[96].mxu1 %v2595_v11  ;;  %2316 = vmatprep.mubr.bf16.mxu0 %v2610_v12 }
  0xe5   :  { %2405 = vmatprep.mubr.bf16.mxu1 %v2612_v13 }
  0xeb   :  { %2317 = vmatmul.mubr.bf16.gmra.mrb[100].mxu0 %v2609_v18 }
  0xec   :  { %2406 = vmatmul.mubr.bf16.gmra.mrb[100].mxu1 %v2611_v19  ;;  %2324 = vmatprep.mubr.bf16.mxu0 %v2626_v20 }
  0xed   :  { %2413 = vmatprep.mubr.bf16.mxu1 %v2628_v21 }
  0xf3   :  { %2325 = vmatmul.mubr.bf16.gmra.mrb[104].mxu0 %v2625_v26 }
  0xf4   :  { %2414 = vmatmul.mubr.bf16.gmra.mrb[104].mxu1 %v2627_v27  ;;  %2332 = vmatprep.mubr.bf16.mxu0 %v2642_v28 }
  0xf5   :  { %2421 = vmatprep.mubr.bf16.mxu1 %v2644_v29 }
  0xf6   :  { %v2858_v30 = vpop.f32.mrb[0].mxu0 }
  0xf7   :  { %v2916_v31 = vpop.f32.mrb[0].mxu1  ;;  %v2859_v33 = vpop.f32.mrb[1].mxu0 }
  0xf8   :  { %v2860_v35 = vadd.f32 %v2859_v33, %v2858_v30  ;;  %v2917_v36 = vpop.f32.mrb[1].mxu1  ;;  %v2861_v37 = vpop.f32.mrb[2].mxu0 }
  0xf9   :  { %v2918_v39 = vadd.f32 %v2917_v36, %v2916_v31  ;;  %v2919_v40 = vpop.f32.mrb[2].mxu1  ;;  %v2862_v41 = vpop.f32.mrb[3].mxu0 }
  0xfa   :  { %v1753_v42 = vadd.f32 %v2860_v35, %v4177_v32  ;;  %v2863_v43 = vadd.f32 %v2862_v41, %v2861_v37  ;;  %v2920_v44 = vpop.f32.mrb[3].mxu1 }
  0xfb   :  { %v2921_v45 = vadd.f32 %v2920_v44, %v2919_v40  ;;  %2333 = vmatmul.mubr.bf16.gmra.mrb[108].mxu0 %v2641_v34 }
  0xfc   :  { %v4180_v46 = vadd.f32 %v2918_v39, %v1753_v42  ;;  %v1756_v47 = vadd.f32 %v2863_v43, %v4177_v32  ;;  %2422 = vmatmul.mubr.bf16.gmra.mrb[108].mxu1 %v2643_v38 }
  0xfe   :  { %v4183_v48 = vadd.f32 %v2921_v45, %v1756_v47  ;;  %v2864_v49 = vpop.f32.mrb[4].mxu0 }
  0xff   :  { %v2922_v50 = vpop.f32.mrb[4].mxu1  ;;  %v2865_v51 = vpop.f32.mrb[5].mxu0 }
 0x100   :  { %v2866_v52 = vadd.f32 %v2865_v51, %v2864_v49  ;;  %v2923_v53 = vpop.f32.mrb[5].mxu1  ;;  %v2867_v54 = vpop.f32.mrb[6].mxu0 }
 0x101   :  { %v2924_v55 = vadd.f32 %v2923_v53, %v2922_v50  ;;  %v2925_v56 = vpop.f32.mrb[6].mxu1  ;;  %v2868_v57 = vpop.f32.mrb[7].mxu0 }
 0x102   :  { %v1761_v58 = vadd.f32 %v2866_v52, %v4177_v32  ;;  %v2869_v59 = vadd.f32 %v2868_v57, %v2867_v54  ;;  %v2926_v60 = vpop.f32.mrb[7].mxu1 }
 0x103   :  { %v2927_v61 = vadd.f32 %v2926_v60, %v2925_v56 }
 0x104   :  { %v4186_v62 = vadd.f32 %v2924_v55, %v1761_v58  ;;  %v1764_v63 = vadd.f32 %v2869_v59, %v4177_v32 }
 0x106   :  { %v4189_v0 = vadd.f32 %v2927_v61, %v1764_v63  ;;  %v2870_v1 = vpop.f32.mrb[8].mxu0 }
 0x107   :  { %v2928_v2 = vpop.f32.mrb[8].mxu1  ;;  %v2871_v3 = vpop.f32.mrb[9].mxu0 }
 0x108   :  { %v2872_v4 = vadd.f32 %v2871_v3, %v2870_v1  ;;  %v2929_v5 = vpop.f32.mrb[9].mxu1  ;;  %v2873_v6 = vpop.f32.mrb[10].mxu0 }
 0x109   :  { %v2930_v7 = vadd.f32 %v2929_v5, %v2928_v2  ;;  %v2931_v8 = vpop.f32.mrb[10].mxu1  ;;  %v2874_v9 = vpop.f32.mrb[11].mxu0 }
 0x10a   :  { %v1769_v10 = vadd.f32 %v2872_v4, %v4177_v32  ;;  %v2875_v11 = vadd.f32 %v2874_v9, %v2873_v6  ;;  %v2932_v12 = vpop.f32.mrb[11].mxu1 }
 0x10b   :  { %v2933_v13 = vadd.f32 %v2932_v12, %v2931_v8 }
 0x10c   :  { %v4192_v14 = vadd.f32 %v2930_v7, %v1769_v10  ;;  %v1772_v15 = vadd.f32 %v2875_v11, %v4177_v32 }
 0x10e   :  { %v4195_v16 = vadd.f32 %v2933_v13, %v1772_v15  ;;  %v2876_v17 = vpop.f32.mrb[12].mxu0 }
 0x10f   :  { %v2934_v18 = vpop.f32.mrb[12].mxu1  ;;  %v2877_v19 = vpop.f32.mrb[13].mxu0 }
 0x110   :  { %v2878_v20 = vadd.f32 %v2877_v19, %v2876_v17  ;;  %v2935_v21 = vpop.f32.mrb[13].mxu1  ;;  %v2879_v22 = vpop.f32.mrb[14].mxu0 }
 0x111   :  { %v2936_v23 = vadd.f32 %v2935_v21, %v2934_v18  ;;  %v2937_v24 = vpop.f32.mrb[14].mxu1  ;;  %v2880_v25 = vpop.f32.mrb[15].mxu0 }
 0x112   :  { %v1777_v26 = vadd.f32 %v2878_v20, %v4177_v32  ;;  %v2881_v27 = vadd.f32 %v2880_v25, %v2879_v22  ;;  %v2938_v28 = vpop.f32.mrb[15].mxu1 }
 0x113   :  { %v2939_v29 = vadd.f32 %v2938_v28, %v2937_v24 }
 0x114   :  { %v4198_v30 = vadd.f32 %v2936_v23, %v1777_v26  ;;  %v1780_v31 = vadd.f32 %v2881_v27, %v4177_v32 }
 0x116   :  { %v4201_v33 = vadd.f32 %v2939_v29, %v1780_v31  ;;  %v2882_v34 = vpop.f32.mrb[16].mxu0 }
 0x117   :  { %v2940_v35 = vpop.f32.mrb[16].mxu1  ;;  %v2883_v36 = vpop.f32.mrb[17].mxu0 }
 0x118   :  { %v2884_v37 = vadd.f32 %v2883_v36, %v2882_v34  ;;  %v2941_v38 = vpop.f32.mrb[17].mxu1  ;;  %v2885_v39 = vpop.f32.mrb[18].mxu0 }
 0x119   :  { %v2942_v40 = vadd.f32 %v2941_v38, %v2940_v35  ;;  %v2943_v41 = vpop.f32.mrb[18].mxu1  ;;  %v2886_v42 = vpop.f32.mrb[19].mxu0 }
 0x11a   :  { %v1785_v43 = vadd.f32 %v2884_v37, %v4177_v32  ;;  %v2887_v44 = vadd.f32 %v2886_v42, %v2885_v39  ;;  %v2944_v45 = vpop.f32.mrb[19].mxu1 }
 0x11b   :  { %v2945_v47 = vadd.f32 %v2944_v45, %v2943_v41 }
 0x11c   :  { %v4204_v49 = vadd.f32 %v2942_v40, %v1785_v43  ;;  %v1788_v50 = vadd.f32 %v2887_v44, %v4177_v32 }
 0x11e   :  { %v4207_v51 = vadd.f32 %v2945_v47, %v1788_v50  ;;  %v2888_v52 = vpop.f32.mrb[20].mxu0 }
 0x11f   :  { %v2946_v53 = vpop.f32.mrb[20].mxu1  ;;  %v2889_v54 = vpop.f32.mrb[21].mxu0 }
 0x120   :  { %v2890_v55 = vadd.f32 %v2889_v54, %v2888_v52  ;;  %v2947_v56 = vpop.f32.mrb[21].mxu1  ;;  %v2891_v57 = vpop.f32.mrb[22].mxu0 }
 0x121   :  { %v2948_v58 = vadd.f32 %v2947_v56, %v2946_v53  ;;  %v2949_v59 = vpop.f32.mrb[22].mxu1  ;;  %v2892_v60 = vpop.f32.mrb[23].mxu0 }
 0x122   :  { %v1793_v61 = vadd.f32 %v2890_v55, %v4177_v32  ;;  %v2893_v63 = vadd.f32 %v2892_v60, %v2891_v57  ;;  %v2950_v1 = vpop.f32.mrb[23].mxu1 }
 0x123   :  { %v2951_v2 = vadd.f32 %v2950_v1, %v2949_v59 }
 0x124   :  { %v4210_v3 = vadd.f32 %v2948_v58, %v1793_v61  ;;  %v1796_v4 = vadd.f32 %v2893_v63, %v4177_v32 }
 0x126   :  { %v4213_v5 = vadd.f32 %v2951_v2, %v1796_v4  ;;  %v2894_v6 = vpop.f32.mrb[24].mxu0 }
 0x127   :  { %v2952_v7 = vpop.f32.mrb[24].mxu1  ;;  %v2895_v8 = vpop.f32.mrb[25].mxu0 }
 0x128   :  { %v2896_v9 = vadd.f32 %v2895_v8, %v2894_v6  ;;  %v2953_v10 = vpop.f32.mrb[25].mxu1  ;;  %v2897_v11 = vpop.f32.mrb[26].mxu0 }
 0x129   :  { %v2954_v12 = vadd.f32 %v2953_v10, %v2952_v7  ;;  %v2955_v13 = vpop.f32.mrb[26].mxu1  ;;  %v2898_v15 = vpop.f32.mrb[27].mxu0 }
 0x12a   :  { %v1801_v17 = vadd.f32 %v2896_v9, %v4177_v32  ;;  %v2899_v18 = vadd.f32 %v2898_v15, %v2897_v11  ;;  %v2956_v19 = vpop.f32.mrb[27].mxu1 }
 0x12b   :  { %v2957_v20 = vadd.f32 %v2956_v19, %v2955_v13 }
 0x12c   :  { %v4216_v21 = vadd.f32 %v2954_v12, %v1801_v17  ;;  %v1804_v22 = vadd.f32 %v2899_v18, %v4177_v32 }
 0x12e   :  { %v4219_v23 = vadd.f32 %v2957_v20, %v1804_v22  ;;  %v2974_v24 = vpop.f32.mrb[28].mxu0 }
 0x12f   :  { %v3032_v25 = vpop.f32.mrb[28].mxu1  ;;  %v2975_v26 = vpop.f32.mrb[29].mxu0 }
 0x130   :  { %v2976_v27 = vadd.f32 %v2975_v26, %v2974_v24  ;;  %v3033_v28 = vpop.f32.mrb[29].mxu1  ;;  %v2977_v29 = vpop.f32.mrb[30].mxu0 }
 0x131   :  { %v3034_v31 = vadd.f32 %v3033_v28, %v3032_v25  ;;  %v3035_v34 = vpop.f32.mrb[30].mxu1  ;;  %v2978_v35 = vpop.f32.mrb[31].mxu0 }
 0x132   :  { %v1931_v36 = vadd.f32 %v2976_v27, %v4180_v46  ;;  %v2979_v37 = vadd.f32 %v2978_v35, %v2977_v29  ;;  %v3036_v38 = vpop.f32.mrb[31].mxu1 }
 0x133   :  { %v3037_v39 = vadd.f32 %v3036_v38, %v3035_v34 }
 0x134   :  { %v4222_v40 = vadd.f32 %v3034_v31, %v1931_v36  ;;  %v1934_v32 = vadd.f32 %v2979_v37, %v4183_v48 }
 0x136   :  { %v4225_v41 = vadd.f32 %v3037_v39, %v1934_v32  ;;  %v2980_v42 = vpop.f32.mrb[32].mxu0 }
 0x137   :  { %v3038_v43 = vpop.f32.mrb[32].mxu1  ;;  %v2981_v44 = vpop.f32.mrb[33].mxu0 }
 0x138   :  { %v2982_v45 = vadd.f32 %v2981_v44, %v2980_v42  ;;  %v3039_v47 = vpop.f32.mrb[33].mxu1  ;;  %v2983_v50 = vpop.f32.mrb[34].mxu0 }
 0x139   :  { %v3040_v52 = vadd.f32 %v3039_v47, %v3038_v43  ;;  %v3041_v53 = vpop.f32.mrb[34].mxu1  ;;  %v2984_v54 = vpop.f32.mrb[35].mxu0 }
 0x13a   :  { %v1939_v46 = vadd.f32 %v2982_v45, %v4186_v62  ;;  %v2985_v55 = vadd.f32 %v2984_v54, %v2983_v50  ;;  %v3042_v56 = vpop.f32.mrb[35].mxu1 }
 0x13b   :  { %v3043_v57 = vadd.f32 %v3042_v56, %v3041_v53 }
 0x13c   :  { %v4228_v58 = vadd.f32 %v3040_v52, %v1939_v46  ;;  %v1942_v48 = vadd.f32 %v2985_v55, %v4189_v0 }
 0x13e   :  { %v4231_v59 = vadd.f32 %v3043_v57, %v1942_v48  ;;  %v2986_v60 = vpop.f32.mrb[36].mxu0 }
 0x13f   :  { %v3044_v61 = vpop.f32.mrb[36].mxu1  ;;  %v2987_v63 = vpop.f32.mrb[37].mxu0 }
 0x140   :  { %v2988_v1 = vadd.f32 %v2987_v63, %v2986_v60  ;;  %v3045_v2 = vpop.f32.mrb[37].mxu1  ;;  %v2989_v4 = vpop.f32.mrb[38].mxu0 }
 0x141   :  { %v3046_v6 = vadd.f32 %v3045_v2, %v3044_v61  ;;  %v3047_v7 = vpop.f32.mrb[38].mxu1  ;;  %v2990_v8 = vpop.f32.mrb[39].mxu0 }
 0x142   :  { %v1947_v62 = vadd.f32 %v2988_v1, %v4192_v14  ;;  %v2991_v9 = vadd.f32 %v2990_v8, %v2989_v4  ;;  %v3048_v10 = vpop.f32.mrb[39].mxu1 }
 0x143   :  { %v3049_v11 = vadd.f32 %v3048_v10, %v3047_v7 }
 0x144   :  { %v4234_v12 = vadd.f32 %v3046_v6, %v1947_v62  ;;  %v1950_v0 = vadd.f32 %v2991_v9, %v4195_v16 }
 0x146   :  { %v4237_v13 = vadd.f32 %v3049_v11, %v1950_v0  ;;  %v2992_v15 = vpop.f32.mrb[40].mxu0 }
 0x147   :  { %v3050_v17 = vpop.f32.mrb[40].mxu1  ;;  %v2993_v18 = vpop.f32.mrb[41].mxu0 }
 0x148   :  { %v2994_v19 = vadd.f32 %v2993_v18, %v2992_v15  ;;  %v3051_v20 = vpop.f32.mrb[41].mxu1  ;;  %v2995_v22 = vpop.f32.mrb[42].mxu0 }
 0x149   :  { %v3052_v24 = vadd.f32 %v3051_v20, %v3050_v17  ;;  %v3053_v25 = vpop.f32.mrb[42].mxu1  ;;  %v2996_v26 = vpop.f32.mrb[43].mxu0 }
 0x14a   :  { %v1955_v14 = vadd.f32 %v2994_v19, %v4198_v30  ;;  %v2997_v27 = vadd.f32 %v2996_v26, %v2995_v22  ;;  %v3054_v28 = vpop.f32.mrb[43].mxu1 }
 0x14b   :  { %v3055_v29 = vadd.f32 %v3054_v28, %v3053_v25 }
 0x14c   :  { %v4240_v31 = vadd.f32 %v3052_v24, %v1955_v14  ;;  %v1958_v16 = vadd.f32 %v2997_v27, %v4201_v33 }
 0x14e   :  { %v4243_v34 = vadd.f32 %v3055_v29, %v1958_v16  ;;  %v2998_v35 = vpop.f32.mrb[44].mxu0 }
 0x14f   :  { %v3056_v36 = vpop.f32.mrb[44].mxu1  ;;  %v2999_v37 = vpop.f32.mrb[45].mxu0 }
 0x150   :  { %v3000_v38 = vadd.f32 %v2999_v37, %v2998_v35  ;;  %v3057_v39 = vpop.f32.mrb[45].mxu1  ;;  %v3001_v32 = vpop.f32.mrb[46].mxu0 }
 0x151   :  { %v3058_v42 = vadd.f32 %v3057_v39, %v3056_v36  ;;  %v3059_v43 = vpop.f32.mrb[46].mxu1  ;;  %v3002_v44 = vpop.f32.mrb[47].mxu0 }
 0x152   :  { %v1963_v30 = vadd.f32 %v3000_v38, %v4204_v49  ;;  %v3003_v45 = vadd.f32 %v3002_v44, %v3001_v32  ;;  %v3060_v47 = vpop.f32.mrb[47].mxu1 }
 0x153   :  { %v3061_v50 = vadd.f32 %v3060_v47, %v3059_v43 }
 0x154   :  { %v4246_v52 = vadd.f32 %v3058_v42, %v1963_v30  ;;  %v1966_v33 = vadd.f32 %v3003_v45, %v4207_v51 }
 0x156   :  { %v4249_v53 = vadd.f32 %v3061_v50, %v1966_v33  ;;  %v3004_v54 = vpop.f32.mrb[48].mxu0 }
 0x157   :  { %v3062_v46 = vpop.f32.mrb[48].mxu1  ;;  %v3005_v55 = vpop.f32.mrb[49].mxu0 }
 0x158   :  { %v3006_v56 = vadd.f32 %v3005_v55, %v3004_v54  ;;  %v3063_v57 = vpop.f32.mrb[49].mxu1  ;;  %v3007_v48 = vpop.f32.mrb[50].mxu0 }
 0x159   :  { %v3064_v60 = vadd.f32 %v3063_v57, %v3062_v46  ;;  %v3065_v61 = vpop.f32.mrb[50].mxu1  ;;  %v3008_v63 = vpop.f32.mrb[51].mxu0 }
 0x15a   :  { %v1971_v49 = vadd.f32 %v3006_v56, %v4210_v3  ;;  %v3009_v1 = vadd.f32 %v3008_v63, %v3007_v48  ;;  %v3066_v2 = vpop.f32.mrb[51].mxu1 }
 0x15b   :  { %v3067_v4 = vadd.f32 %v3066_v2, %v3065_v61 }
 0x15c   :  { %v4252_v6 = vadd.f32 %v3064_v60, %v1971_v49  ;;  %v1974_v51 = vadd.f32 %v3009_v1, %v4213_v5 }
 0x15e   :  { %v4255_v7 = vadd.f32 %v3067_v4, %v1974_v51  ;;  %v3010_v8 = vpop.f32.mrb[52].mxu0 }
 0x15f   :  { %v3068_v62 = vpop.f32.mrb[52].mxu1  ;;  %v3011_v9 = vpop.f32.mrb[53].mxu0 }
 0x160   :  { %v3012_v10 = vadd.f32 %v3011_v9, %v3010_v8  ;;  %v3069_v11 = vpop.f32.mrb[53].mxu1  ;;  %v3013_v0 = vpop.f32.mrb[54].mxu0 }
 0x161   :  { %v3070_v15 = vadd.f32 %v3069_v11, %v3068_v62  ;;  %v3071_v17 = vpop.f32.mrb[54].mxu1  ;;  %v3014_v18 = vpop.f32.mrb[55].mxu0 }
 0x162   :  { %v1979_v3 = vadd.f32 %v3012_v10, %v4216_v21  ;;  %v3015_v19 = vadd.f32 %v3014_v18, %v3013_v0  ;;  %v3072_v20 = vpop.f32.mrb[55].mxu1 }
 0x163   :  { %v3073_v22 = vadd.f32 %v3072_v20, %v3071_v17 }
 0x164   :  { %v4258_v24 = vadd.f32 %v3070_v15, %v1979_v3  ;;  %v1982_v5 = vadd.f32 %v3015_v19, %v4219_v23 }
 0x166   :  { %v4261_v25 = vadd.f32 %v3073_v22, %v1982_v5  ;;  %v3090_v26 = vpop.f32.mrb[56].mxu0 }
 0x167   :  { %v3148_v14 = vpop.f32.mrb[56].mxu1  ;;  %v3091_v27 = vpop.f32.mrb[57].mxu0 }
 0x168   :  { %v3092_v28 = vadd.f32 %v3091_v27, %v3090_v26  ;;  %v3149_v29 = vpop.f32.mrb[57].mxu1  ;;  %v3093_v16 = vpop.f32.mrb[58].mxu0 }
 0x169   :  { %v3150_v35 = vadd.f32 %v3149_v29, %v3148_v14  ;;  %v3151_v36 = vpop.f32.mrb[58].mxu1  ;;  %v3094_v37 = vpop.f32.mrb[59].mxu0 }
 0x16a   :  { %v2109_v21 = vadd.f32 %v3092_v28, %v4222_v40  ;;  %v3095_v38 = vadd.f32 %v3094_v37, %v3093_v16  ;;  %v3152_v39 = vpop.f32.mrb[59].mxu1 }
 0x16b   :  { %v3153_v32 = vadd.f32 %v3152_v39, %v3151_v36 }
 0x16c   :  { %v4264_v42 = vadd.f32 %v3150_v35, %v2109_v21  ;;  %v2112_v23 = vadd.f32 %v3095_v38, %v4225_v41 }
 0x16e   :  { %v4267_v43 = vadd.f32 %v3153_v32, %v2112_v23  ;;  %v3096_v44 = vpop.f32.mrb[60].mxu0 }
 0x16f   :  { %v3154_v30 = vpop.f32.mrb[60].mxu1  ;;  %v3097_v45 = vpop.f32.mrb[61].mxu0 }
 0x170   :  { %v3098_v47 = vadd.f32 %v3097_v45, %v3096_v44  ;;  %v3155_v50 = vpop.f32.mrb[61].mxu1  ;;  %v3099_v33 = vpop.f32.mrb[62].mxu0 }
 0x171   :  { %v3156_v54 = vadd.f32 %v3155_v50, %v3154_v30  ;;  %v3157_v46 = vpop.f32.mrb[62].mxu1  ;;  %v3100_v55 = vpop.f32.mrb[63].mxu0 }
 0x172   :  { %v2117_v40 = vadd.f32 %v3098_v47, %v4228_v58  ;;  %v3101_v56 = vadd.f32 %v3100_v55, %v3099_v33  ;;  %v3158_v57 = vpop.f32.mrb[63].mxu1 }
 0x173   :  { %v3159_v48 = vadd.f32 %v3158_v57, %v3157_v46 }
 0x174   :  { %v4270_v60 = vadd.f32 %v3156_v54, %v2117_v40  ;;  %v2120_v41 = vadd.f32 %v3101_v56, %v4231_v59 }
 0x176   :  { %v4273_v61 = vadd.f32 %v3159_v48, %v2120_v41  ;;  %v3102_v63 = vpop.f32.mrb[64].mxu0 }
 0x177   :  { %v3160_v49 = vpop.f32.mrb[64].mxu1  ;;  %v3103_v1 = vpop.f32.mrb[65].mxu0 }
 0x178   :  { %v3104_v2 = vadd.f32 %v3103_v1, %v3102_v63  ;;  %v3161_v4 = vpop.f32.mrb[65].mxu1  ;;  %v3105_v51 = vpop.f32.mrb[66].mxu0 }
 0x179   :  { %v3162_v8 = vadd.f32 %v3161_v4, %v3160_v49  ;;  %v3163_v62 = vpop.f32.mrb[66].mxu1  ;;  %v3106_v9 = vpop.f32.mrb[67].mxu0 }
 0x17a   :  { %v2125_v58 = vadd.f32 %v3104_v2, %v4234_v12  ;;  %v3107_v10 = vadd.f32 %v3106_v9, %v3105_v51  ;;  %v3164_v11 = vpop.f32.mrb[67].mxu1 }
 0x17b   :  { %v3165_v0 = vadd.f32 %v3164_v11, %v3163_v62 }
 0x17c   :  { %v4276_v15 = vadd.f32 %v3162_v8, %v2125_v58  ;;  %v2128_v59 = vadd.f32 %v3107_v10, %v4237_v13 }
 0x17e   :  { %v4279_v17 = vadd.f32 %v3165_v0, %v2128_v59  ;;  %v3108_v18 = vpop.f32.mrb[68].mxu0 }
 0x17f   :  { %v3166_v3 = vpop.f32.mrb[68].mxu1  ;;  %v3109_v19 = vpop.f32.mrb[69].mxu0 }
 0x180   :  { %v3110_v20 = vadd.f32 %v3109_v19, %v3108_v18  ;;  %v3167_v22 = vpop.f32.mrb[69].mxu1  ;;  %v3111_v5 = vpop.f32.mrb[70].mxu0 }
 0x181   :  { %v3168_v26 = vadd.f32 %v3167_v22, %v3166_v3  ;;  %v3169_v14 = vpop.f32.mrb[70].mxu1  ;;  %v3112_v27 = vpop.f32.mrb[71].mxu0 }
 0x182   :  { %v2133_v12 = vadd.f32 %v3110_v20, %v4240_v31  ;;  %v3113_v28 = vadd.f32 %v3112_v27, %v3111_v5  ;;  %v3170_v29 = vpop.f32.mrb[71].mxu1 }
 0x183   :  { %v3171_v16 = vadd.f32 %v3170_v29, %v3169_v14 }
 0x184   :  { %v4282_v35 = vadd.f32 %v3168_v26, %v2133_v12  ;;  %v2136_v13 = vadd.f32 %v3113_v28, %v4243_v34 }
 0x186   :  { %v4285_v36 = vadd.f32 %v3171_v16, %v2136_v13  ;;  %v3114_v37 = vpop.f32.mrb[72].mxu0 }
 0x187   :  { %v3172_v21 = vpop.f32.mrb[72].mxu1  ;;  %v3115_v38 = vpop.f32.mrb[73].mxu0 }
 0x188   :  { %v3116_v39 = vadd.f32 %v3115_v38, %v3114_v37  ;;  %v3173_v32 = vpop.f32.mrb[73].mxu1  ;;  %v3117_v23 = vpop.f32.mrb[74].mxu0 }
 0x189   :  { %v3174_v44 = vadd.f32 %v3173_v32, %v3172_v21  ;;  %v3175_v30 = vpop.f32.mrb[74].mxu1  ;;  %v3118_v45 = vpop.f32.mrb[75].mxu0 }
 0x18a   :  { %v2141_v31 = vadd.f32 %v3116_v39, %v4246_v52  ;;  %v3119_v47 = vadd.f32 %v3118_v45, %v3117_v23  ;;  %v3176_v50 = vpop.f32.mrb[75].mxu1 }
 0x18b   :  { %v3177_v33 = vadd.f32 %v3176_v50, %v3175_v30 }
 0x18c   :  { %v4288_v54 = vadd.f32 %v3174_v44, %v2141_v31  ;;  %v2144_v34 = vadd.f32 %v3119_v47, %v4249_v53 }
 0x18e   :  { %v4291_v46 = vadd.f32 %v3177_v33, %v2144_v34  ;;  %v3120_v55 = vpop.f32.mrb[76].mxu0 }
 0x18f   :  { %v3178_v40 = vpop.f32.mrb[76].mxu1  ;;  %v3121_v56 = vpop.f32.mrb[77].mxu0 }
 0x190   :  { %v3122_v57 = vadd.f32 %v3121_v56, %v3120_v55  ;;  %v3179_v48 = vpop.f32.mrb[77].mxu1  ;;  %v3123_v41 = vpop.f32.mrb[78].mxu0 }
 0x191   :  { %v3180_v63 = vadd.f32 %v3179_v48, %v3178_v40  ;;  %v3181_v49 = vpop.f32.mrb[78].mxu1  ;;  %v3124_v1 = vpop.f32.mrb[79].mxu0 }
 0x192   :  { %v2149_v52 = vadd.f32 %v3122_v57, %v4252_v6  ;;  %v3125_v2 = vadd.f32 %v3124_v1, %v3123_v41  ;;  %v3182_v4 = vpop.f32.mrb[79].mxu1 }
 0x193   :  { %v3183_v51 = vadd.f32 %v3182_v4, %v3181_v49 }
 0x194   :  { %v4294_v8 = vadd.f32 %v3180_v63, %v2149_v52  ;;  %v2152_v53 = vadd.f32 %v3125_v2, %v4255_v7 }
 0x196   :  { %v4297_v62 = vadd.f32 %v3183_v51, %v2152_v53  ;;  %v3126_v9 = vpop.f32.mrb[80].mxu0 }
 0x197   :  { %v3184_v58 = vpop.f32.mrb[80].mxu1  ;;  %v3127_v10 = vpop.f32.mrb[81].mxu0 }
 0x198   :  { %v3128_v11 = vadd.f32 %v3127_v10, %v3126_v9  ;;  %v3185_v0 = vpop.f32.mrb[81].mxu1  ;;  %v3129_v59 = vpop.f32.mrb[82].mxu0 }
 0x199   :  { %v3186_v18 = vadd.f32 %v3185_v0, %v3184_v58  ;;  %v3187_v3 = vpop.f32.mrb[82].mxu1  ;;  %v3130_v19 = vpop.f32.mrb[83].mxu0 }
 0x19a   :  { %v2157_v6 = vadd.f32 %v3128_v11, %v4258_v24  ;;  %v3131_v20 = vadd.f32 %v3130_v19, %v3129_v59  ;;  %v3188_v22 = vpop.f32.mrb[83].mxu1 }
 0x19b   :  { %v3189_v5 = vadd.f32 %v3188_v22, %v3187_v3 }
 0x19c   :  { %v4300_v26 = vadd.f32 %v3186_v18, %v2157_v6  ;;  %v2160_v7 = vadd.f32 %v3131_v20, %v4261_v25 }
 0x19e   :  { %v4303_v14 = vadd.f32 %v3189_v5, %v2160_v7  ;;  %v3206_v27 = vpop.f32.mrb[84].mxu0 }
 0x19f   :  { %v3264_v12 = vpop.f32.mrb[84].mxu1  ;;  %v3207_v28 = vpop.f32.mrb[85].mxu0 }
 0x1a0   :  { %v3208_v29 = vadd.f32 %v3207_v28, %v3206_v27  ;;  %v3265_v16 = vpop.f32.mrb[85].mxu1  ;;  %v3209_v13 = vpop.f32.mrb[86].mxu0 }
 0x1a1   :  { %v3266_v37 = vadd.f32 %v3265_v16, %v3264_v12  ;;  %v3267_v21 = vpop.f32.mrb[86].mxu1  ;;  %v3210_v38 = vpop.f32.mrb[87].mxu0 }
 0x1a2   :  { %v2287_v24 = vadd.f32 %v3208_v29, %v4264_v42  ;;  %v3211_v39 = vadd.f32 %v3210_v38, %v3209_v13  ;;  %v3268_v32 = vpop.f32.mrb[87].mxu1 }
 0x1a3   :  { %v3269_v23 = vadd.f32 %v3268_v32, %v3267_v21 }
 0x1a4   :  { %v2376_v44 = vadd.f32 %v3266_v37, %v2287_v24  ;;  %v2290_v30 = vadd.f32 %v3211_v39, %v4267_v43 }
 0x1a6   :  { %v2430_v25 = vmul.f32 0.1, %v2376_v44  ;;  %v2379_v45 = vadd.f32 %v3269_v23, %v2290_v30  ;;  %v3212_v31 = vpop.f32.mrb[88].mxu0 }
 0x1a7   :  { %v3270_v47 = vpop.f32.mrb[88].mxu1  ;;  %v3213_v50 = vpop.f32.mrb[89].mxu0 }
 0x1a8   :  { %v2431_v33 = vmul.f32 0.1, %v2379_v45  ;;  %v3214_v34 = vadd.f32 %v3213_v50, %v3212_v31  ;;  %v3271_v55 = vpop.f32.mrb[89].mxu1  ;;  %v3215_v40 = vpop.f32.mrb[90].mxu0  ;;  %v2444_v41 = vmax.f32 %v2376_v44, %v2430_v25 }
 0x1a9   :  { %v3272_v56 = vadd.f32 %v3271_v55, %v3270_v47  ;;  %v3273_v57 = vpop.f32.mrb[90].mxu1  ;;  %v3216_v48 = vpop.f32.mrb[91].mxu0 }
 0x1aa   :  { %v2445_v42 = vmax.f32 %v2379_v45, %v2431_v33  ;;  %v2295_v63 = vadd.f32 %v3214_v34, %v4270_v60  ;;  %v3217_v49 = vadd.f32 %v3216_v48, %v3215_v40  ;;  %v3274_v1 = vpop.f32.mrb[91].mxu1 }
 0x1ab   :  { %v3275_v52 = vadd.f32 %v3274_v1, %v3273_v57 }
 0x1ac   :  { %v2804_v43 = vpack.c.bf16 %v2445_v42, %v2444_v41  ;;  %v2384_v2 = vadd.f32 %v3272_v56, %v2295_v63  ;;  %v2298_v4 = vadd.f32 %v3217_v49, %v4273_v61 }
 0x1ae   :  { %2805 = vst [vmem:[%s4343_s3] sm:$0xff] %v2804_v43   ;;  %v2432_v51 = vmul.f32 0.1, %v2384_v2  ;;  %v2387_v53 = vadd.f32 %v3275_v52, %v2298_v4  ;;  %v3218_v9 = vpop.f32.mrb[92].mxu0 }
 0x1af   :  { %v3276_v58 = vpop.f32.mrb[92].mxu1  ;;  %v3219_v10 = vpop.f32.mrb[93].mxu0 }
 0x1b0   :  { %v2433_v11 = vmul.f32 0.1, %v2387_v53  ;;  %v3220_v0 = vadd.f32 %v3219_v10, %v3218_v9  ;;  %v3277_v59 = vpop.f32.mrb[93].mxu1  ;;  %v3221_v60 = vpop.f32.mrb[94].mxu0  ;;  %v2446_v6 = vmax.f32 %v2384_v2, %v2432_v51 }
 0x1b1   :  { %v3278_v18 = vadd.f32 %v3277_v59, %v3276_v58  ;;  %v3279_v3 = vpop.f32.mrb[94].mxu1  ;;  %v3222_v19 = vpop.f32.mrb[95].mxu0 }
 0x1b2   :  { %v2447_v20 = vmax.f32 %v2387_v53, %v2433_v11  ;;  %v2303_v61 = vadd.f32 %v3220_v0, %v4276_v15  ;;  %v3223_v22 = vadd.f32 %v3222_v19, %v3221_v60  ;;  %v3280_v5 = vpop.f32.mrb[95].mxu1 }
 0x1b3   :  { %v3281_v7 = vadd.f32 %v3280_v5, %v3279_v3 }
 0x1b4   :  { %v2809_v27 = vpack.c.bf16 %v2447_v20, %v2446_v6  ;;  %v2392_v12 = vadd.f32 %v3278_v18, %v2303_v61  ;;  %v2306_v28 = vadd.f32 %v3223_v22, %v4279_v17 }
 0x1b6   :  { %2836 = vst [vmem:[%s4343_s3 + $0x8] sm:$0xff] %v2809_v27   ;;  %v2434_v29 = vmul.f32 0.1, %v2392_v12  ;;  %v2395_v16 = vadd.f32 %v3281_v7, %v2306_v28  ;;  %v3224_v13 = vpop.f32.mrb[96].mxu0 }
 0x1b7   :  { %v3282_v37 = vpop.f32.mrb[96].mxu1  ;;  %v3225_v21 = vpop.f32.mrb[97].mxu0 }
 0x1b8   :  { %v2435_v38 = vmul.f32 0.1, %v2395_v16  ;;  %v3226_v24 = vadd.f32 %v3225_v21, %v3224_v13  ;;  %v3283_v39 = vpop.f32.mrb[97].mxu1  ;;  %v3227_v15 = vpop.f32.mrb[98].mxu0  ;;  %v2448_v30 = vmax.f32 %v2392_v12, %v2434_v29 }
 0x1b9   :  { %v3284_v32 = vadd.f32 %v3283_v39, %v3282_v37  ;;  %v3285_v23 = vpop.f32.mrb[98].mxu1  ;;  %v3228_v44 = vpop.f32.mrb[99].mxu0 }
 0x1ba   :  { %v2449_v25 = vmax.f32 %v2395_v16, %v2435_v38  ;;  %v2311_v17 = vadd.f32 %v3226_v24, %v4282_v35  ;;  %v3229_v45 = vadd.f32 %v3228_v44, %v3227_v15  ;;  %v3286_v31 = vpop.f32.mrb[99].mxu1 }
 0x1bb   :  { %v3287_v47 = vadd.f32 %v3286_v31, %v3285_v23 }
 0x1bc   :  { %v2814_v50 = vpack.c.bf16 %v2449_v25, %v2448_v30  ;;  %v2400_v33 = vadd.f32 %v3284_v32, %v2311_v17  ;;  %v2314_v34 = vadd.f32 %v3229_v45, %v4285_v36 }
 0x1be   :  { %2837 = vst [vmem:[%s4343_s3 + $0x10] sm:$0xff] %v2814_v50   ;;  %v2436_v55 = vmul.f32 0.1, %v2400_v33  ;;  %v2403_v40 = vadd.f32 %v3287_v47, %v2314_v34  ;;  %v3230_v56 = vpop.f32.mrb[100].mxu0 }
 0x1bf   :  { %v3288_v57 = vpop.f32.mrb[100].mxu1  ;;  %v3231_v48 = vpop.f32.mrb[101].mxu0 }
 0x1c0   :  { %v2437_v41 = vmul.f32 0.1, %v2403_v40  ;;  %v3232_v42 = vadd.f32 %v3231_v48, %v3230_v56  ;;  %v3289_v63 = vpop.f32.mrb[101].mxu1  ;;  %v3233_v35 = vpop.f32.mrb[102].mxu0  ;;  %v2450_v43 = vmax.f32 %v2400_v33, %v2436_v55 }
 0x1c1   :  { %v3290_v49 = vadd.f32 %v3289_v63, %v3288_v57  ;;  %v3291_v1 = vpop.f32.mrb[102].mxu1  ;;  %v3234_v52 = vpop.f32.mrb[103].mxu0 }
 0x1c2   :  { %v2451_v2 = vmax.f32 %v2403_v40, %v2437_v41  ;;  %v2319_v36 = vadd.f32 %v3232_v42, %v4288_v54  ;;  %v3235_v4 = vadd.f32 %v3234_v52, %v3233_v35  ;;  %v3292_v51 = vpop.f32.mrb[103].mxu1 }
 0x1c3   :  { %v3293_v53 = vadd.f32 %v3292_v51, %v3291_v1 }
 0x1c4   :  { %v2819_v9 = vpack.c.bf16 %v2451_v2, %v2450_v43  ;;  %v2408_v58 = vadd.f32 %v3290_v49, %v2319_v36  ;;  %v2322_v10 = vadd.f32 %v3235_v4, %v4291_v46 }
 0x1c6   :  { %2838 = vst [vmem:[%s4343_s3 + $0x18] sm:$0xff] %v2819_v9   ;;  %v2438_v11 = vmul.f32 0.1, %v2408_v58  ;;  %v2411_v0 = vadd.f32 %v3293_v53, %v2322_v10  ;;  %v3236_v59 = vpop.f32.mrb[104].mxu0 }
 0x1c7   :  { %v3294_v60 = vpop.f32.mrb[104].mxu1  ;;  %v3237_v18 = vpop.f32.mrb[105].mxu0 }
 0x1c8   :  { %v2439_v3 = vmul.f32 0.1, %v2411_v0  ;;  %v3238_v19 = vadd.f32 %v3237_v18, %v3236_v59  ;;  %v3295_v6 = vpop.f32.mrb[105].mxu1  ;;  %v3239_v54 = vpop.f32.mrb[106].mxu0  ;;  %v2452_v5 = vmax.f32 %v2408_v58, %v2438_v11 }
 0x1c9   :  { %v3296_v20 = vadd.f32 %v3295_v6, %v3294_v60  ;;  %v3297_v61 = vpop.f32.mrb[106].mxu1  ;;  %v3240_v22 = vpop.f32.mrb[107].mxu0 }
 0x1ca   :  { %v2453_v7 = vmax.f32 %v2411_v0, %v2439_v3  ;;  %v2327_v46 = vadd.f32 %v3238_v19, %v4294_v8  ;;  %v3241_v27 = vadd.f32 %v3240_v22, %v3239_v54  ;;  %v3298_v12 = vpop.f32.mrb[107].mxu1 }
 0x1cb   :  { %v3299_v28 = vadd.f32 %v3298_v12, %v3297_v61 }
 0x1cc   :  { %v2824_v29 = vpack.c.bf16 %v2453_v7, %v2452_v5  ;;  %v2416_v16 = vadd.f32 %v3296_v20, %v2327_v46  ;;  %v2330_v13 = vadd.f32 %v3241_v27, %v4297_v62 }
 0x1ce   :  { %2839 = vst [vmem:[%s4343_s3 + $0x20] sm:$0xff] %v2824_v29   ;;  %v2440_v37 = vmul.f32 0.1, %v2416_v16  ;;  %v2419_v21 = vadd.f32 %v3299_v28, %v2330_v13  ;;  %v3242_v38 = vpop.f32.mrb[108].mxu0 }
 0x1cf   :  { %v3300_v24 = vpop.f32.mrb[108].mxu1  ;;  %v3243_v39 = vpop.f32.mrb[109].mxu0 }
 0x1d0   :  { %v2441_v15 = vmul.f32 0.1, %v2419_v21  ;;  %v3244_v32 = vadd.f32 %v3243_v39, %v3242_v38  ;;  %v3301_v23 = vpop.f32.mrb[109].mxu1  ;;  %v3245_v8 = vpop.f32.mrb[110].mxu0  ;;  %v2454_v17 = vmax.f32 %v2416_v16, %v2440_v37 }
 0x1d1   :  { %v3302_v44 = vadd.f32 %v3301_v23, %v3300_v24  ;;  %v3303_v30 = vpop.f32.mrb[110].mxu1  ;;  %v3246_v25 = vpop.f32.mrb[111].mxu0 }
 0x1d2   :  { %v2455_v45 = vmax.f32 %v2419_v21, %v2441_v15  ;;  %v2335_v62 = vadd.f32 %v3244_v32, %v4300_v26  ;;  %v3247_v31 = vadd.f32 %v3246_v25, %v3245_v8  ;;  %v3304_v47 = vpop.f32.mrb[111].mxu1 }
 0x1d3   :  { %v3305_v50 = vadd.f32 %v3304_v47, %v3303_v30 }
 0x1d4   :  { %v2829_v33 = vpack.c.bf16 %v2455_v45, %v2454_v17  ;;  %v2424_v34 = vadd.f32 %v3302_v44, %v2335_v62  ;;  %v2338_v55 = vadd.f32 %v3247_v31, %v4303_v14 }
 0x1d6   :  { %2840 = vst [vmem:[%s4343_s3 + $0x28] sm:$0xff] %v2829_v33   ;;  %v2442_v40 = vmul.f32 0.1, %v2424_v34  ;;  %v2427_v56 = vadd.f32 %v3305_v50, %v2338_v55 }
 0x1d8   :  { %v2443_v57 = vmul.f32 0.1, %v2427_v56  ;;  %v2456_v48 = vmax.f32 %v2424_v34, %v2442_v40 }
 0x1da   :  { %v2457_v41 = vmax.f32 %v2427_v56, %v2443_v57 }
 0x1dc   :  { %v2834_v42 = vpack.c.bf16 %v2457_v41, %v2456_v48 }
 0x1de   :  { %2841 = vst [vmem:[%s4343_s3 + $0x30] sm:$0xff] %v2834_v42  }

// kernel: encoder_forward.5
= control target key start
LH: loop header
LB: loop body
LE: loop exit
PB: predicated region body
PF: predicated region fallthrough
CT: control target
= control target key end

     0   :  { %s4541_s18 = smov 0   ;;  %s4543_s19 = smov 0   ;;  %s6004_s0 = inlined_call_operand.vmem [shape: bf16[16,6272], index: 0, kind: input, shape index: {}]   ;;  %s6005_s1 = inlined_call_operand.vmem [shape: s8[6272,1024], index: 1, kind: input, shape index: {}]   ;;  %s6006_s2 = inlined_call_operand.vmem [shape: f32[1,1024], index: 2, kind: input, shape index: {}]   ;;  %s6007_s3 = inlined_call_operand.vmem [shape: f32[1,1024], index: 3, kind: input, shape index: {}]   ;;  %s6008_s4 = inlined_call_operand.vmem [shape: bf16[1024,256], index: 4, kind: input, shape index: {}]   ;;  %s6009_s5 = inlined_call_operand.vmem [shape: f32[1,16,256], index: 5, kind: output, shape index: {}]  }
   0x1   :  { %s4545_s20 = smov 0   ;;  %s4547_s21 = smov 0  }
   0x2   :  { %s4549_s22 = smov 0  }
   0x3 LB: > { %s24_s23 = sadd.s32 1, %s4503_s21  ;;  %p66_p1 = scmp.ne.s32.totalorder %s4495_s19, %s4491_s18  ;;  %s4507_s22 = sphi %s4549_s22, %s15_s22   ;;  %s4503_s21 = sphi %s4547_s21, %s6013_s21   ;;  %s4499_s20 = sphi %s4545_s20, %s6012_s20   ;;  %s4495_s19 = sphi %s4543_s19, %s6011_s19   ;;  %s4491_s18 = sphi %s4541_s18, %s6010_s18  }
   0x4   : > { %p25_p0 = scmp.ge.s32.totalorder %s24_s23, 4  ;;  %p67_p2 = scmp.eq.s32.totalorder %s4507_s22, 0 }
   0x5   : > { %s59_s25 = sadd.s32 1, %s4495_s19  ;;  %p4111_p5 = scmp.ge.s32.totalorder %s4507_s22, 4 }
   0x6   : > { %s6015_s23 = smov (%p25_p0, %s24_s23), 0  ;;  %p68_p3 = por %p67_p2, %p66_p1 }
   0x7   : > { %s56_s24 = ssub.s32 %s4503_s21, %s6015_s23  ;;  %211 = sbr.rel (%p4111_p5) target bundleno = 214 (0xd6), region = 20 }
   0x8   : > { %p57_p4 = scmp.eq.s32.totalorder %s56_s24, 0 }
   0xa   : > { %s4576_s26 = scalar_select %p57_p4, %s4495_s19, %s59_s25  }
   0xe   : > { %214 = sbr.rel (!%p68_p3) target bundleno = 214 (0xd6), region = 24  ;;  %s216_s27 = sand.u32 (%p68_p3), 1, %s4495_s19  }
   0xf   : > { %s4206_s28 = sshll.u32 (%p68_p3), %s4503_s21, 4  ;;  %s4304_s29 = smul.u32 (%p68_p3), 3136, %s216_s27 }
  0x10   : > { %s4584_s7 = scalar_lea.vmem (%p68_p3), %s6005_s1, %s4206_s28 }
  0x11   : > { %v236_v0 = vld [vmem:[%s4584_s7] sm:$0xff] (%p68_p3)  ;;  %v238_v1 = vld [vmem:[%s4584_s7 + $0x8] sm:$0xff] (%p68_p3)  ;;  %s4592_s8 = scalar_lea.vmem (%p68_p3), [#allocation3], %s4304_s29 }
  0x12   : > { %v240_v2 = vld [vmem:[%s4584_s7 + $0x40] sm:$0xff] (%p68_p3)  ;;  %v242_v3 = vld [vmem:[%s4584_s7 + $0x48] sm:$0xff] (%p68_p3)  ;;  %237 = vst [vmem:[%s4592_s8] sm:$0xff] (%p68_p3), %v236_v0  ;;  %239 = vst [vmem:[%s4592_s8 + $0x8] sm:$0xff] (%p68_p3), %v238_v1 }
  0x13   : > { %v244_v4 = vld [vmem:[%s4584_s7 + $0x80] sm:$0xff] (%p68_p3)  ;;  %v246_v5 = vld [vmem:[%s4584_s7 + $0x88] sm:$0xff] (%p68_p3)  ;;  %241 = vst [vmem:[%s4592_s8 + $0x10] sm:$0xff] (%p68_p3), %v240_v2  ;;  %243 = vst [vmem:[%s4592_s8 + $0x18] sm:$0xff] (%p68_p3), %v242_v3 }
  0x14   : > { %245 = vst [vmem:[%s4592_s8 + $0x20] sm:$0xff] (%p68_p3), %v244_v4  ;;  %247 = vst [vmem:[%s4592_s8 + $0x28] sm:$0xff] (%p68_p3), %v246_v5  ;;  %v248_v6 = vld [vmem:[%s4584_s7 + $0xc0] sm:$0xff] (%p68_p3)  ;;  %v250_v7 = vld [vmem:[%s4584_s7 + $0xc8] sm:$0xff] (%p68_p3) }
  0x15   : > { %v252_v8 = vld [vmem:[%s4584_s7 + $0x100] sm:$0xff]  ;;  %249 = vst [vmem:[%s4592_s8 + $0x30] sm:$0xff] %v248_v6  ;;  %251 = vst [vmem:[%s4592_s8 + $0x38] sm:$0xff] %v250_v7  ;;  %v254_v9 = vld [vmem:[%s4584_s7 + $0x108] sm:$0xff] }
  0x16   : > { %253 = vst [vmem:[%s4592_s8 + $0x40] sm:$0xff] %v252_v8  ;;  %v256_v10 = vld [vmem:[%s4584_s7 + $0x140] sm:$0xff]  ;;  %v258_v11 = vld [vmem:[%s4584_s7 + $0x148] sm:$0xff]  ;;  %255 = vst [vmem:[%s4592_s8 + $0x48] sm:$0xff] %v254_v9 }
  0x17   : > { %257 = vst [vmem:[%s4592_s8 + $0x50] sm:$0xff] %v256_v10  ;;  %259 = vst [vmem:[%s4592_s8 + $0x58] sm:$0xff] %v258_v11  ;;  %v260_v12 = vld [vmem:[%s4584_s7 + $0x180] sm:$0xff]  ;;  %v262_v13 = vld [vmem:[%s4584_s7 + $0x188] sm:$0xff] }
  0x18   : > { %v264_v14 = vld [vmem:[%s4584_s7 + $0x1c0] sm:$0xff]  ;;  %261 = vst [vmem:[%s4592_s8 + $0x60] sm:$0xff] %v260_v12  ;;  %263 = vst [vmem:[%s4592_s8 + $0x68] sm:$0xff] %v262_v13  ;;  %v266_v15 = vld [vmem:[%s4584_s7 + $0x1c8] sm:$0xff] }
  0x19   : > { %265 = vst [vmem:[%s4592_s8 + $0x70] sm:$0xff] %v264_v14  ;;  %v268_v16 = vld [vmem:[%s4584_s7 + $0x200] sm:$0xff]  ;;  %v270_v17 = vld [vmem:[%s4584_s7 + $0x208] sm:$0xff]  ;;  %267 = vst [vmem:[%s4592_s8 + $0x78] sm:$0xff] %v266_v15 }
  0x1a   : > { %269 = vst [vmem:[%s4592_s8 + $0x80] sm:$0xff] %v268_v16  ;;  %271 = vst [vmem:[%s4592_s8 + $0x88] sm:$0xff] %v270_v17  ;;  %v272_v18 = vld [vmem:[%s4584_s7 + $0x240] sm:$0xff]  ;;  %v274_v19 = vld [vmem:[%s4584_s7 + $0x248] sm:$0xff] }
  0x1b   : > { %v276_v20 = vld [vmem:[%s4584_s7 + $0x280] sm:$0xff]  ;;  %273 = vst [vmem:[%s4592_s8 + $0x90] sm:$0xff] %v272_v18  ;;  %275 = vst [vmem:[%s4592_s8 + $0x98] sm:$0xff] %v274_v19  ;;  %v278_v21 = vld [vmem:[%s4584_s7 + $0x288] sm:$0xff] }
  0x1c   : > { %277 = vst [vmem:[%s4592_s8 + $0xa0] sm:$0xff] %v276_v20  ;;  %v280_v22 = vld [vmem:[%s4584_s7 + $0x2c0] sm:$0xff]  ;;  %v282_v23 = vld [vmem:[%s4584_s7 + $0x2c8] sm:$0xff]  ;;  %279 = vst [vmem:[%s4592_s8 + $0xa8] sm:$0xff] %v278_v21 }
  0x1d   : > { %281 = vst [vmem:[%s4592_s8 + $0xb0] sm:$0xff] %v280_v22  ;;  %283 = vst [vmem:[%s4592_s8 + $0xb8] sm:$0xff] %v282_v23  ;;  %v284_v24 = vld [vmem:[%s4584_s7 + $0x300] sm:$0xff]  ;;  %v286_v25 = vld [vmem:[%s4584_s7 + $0x308] sm:$0xff] }
  0x1e   : > { %v288_v26 = vld [vmem:[%s4584_s7 + $0x340] sm:$0xff]  ;;  %285 = vst [vmem:[%s4592_s8 + $0xc0] sm:$0xff] %v284_v24  ;;  %287 = vst [vmem:[%s4592_s8 + $0xc8] sm:$0xff] %v286_v25  ;;  %v290_v27 = vld [vmem:[%s4584_s7 + $0x348] sm:$0xff] }
  0x1f   : > { %289 = vst [vmem:[%s4592_s8 + $0xd0] sm:$0xff] %v288_v26  ;;  %v292_v28 = vld [vmem:[%s4584_s7 + $0x380] sm:$0xff]  ;;  %v294_v29 = vld [vmem:[%s4584_s7 + $0x388] sm:$0xff]  ;;  %291 = vst [vmem:[%s4592_s8 + $0xd8] sm:$0xff] %v290_v27 }
  0x20   : > { %293 = vst [vmem:[%s4592_s8 + $0xe0] sm:$0xff] %v292_v28  ;;  %295 = vst [vmem:[%s4592_s8 + $0xe8] sm:$0xff] %v294_v29  ;;  %v296_v30 = vld [vmem:[%s4584_s7 + $0x3c0] sm:$0xff]  ;;  %v298_v31 = vld [vmem:[%s4584_s7 + $0x3c8] sm:$0xff] }
  0x21   : > { %v300_v32 = vld [vmem:[%s4584_s7 + $0x400] sm:$0xff]  ;;  %297 = vst [vmem:[%s4592_s8 + $0xf0] sm:$0xff] %v296_v30  ;;  %299 = vst [vmem:[%s4592_s8 + $0xf8] sm:$0xff] %v298_v31  ;;  %v302_v33 = vld [vmem:[%s4584_s7 + $0x408] sm:$0xff] }
  0x22   : > { %301 = vst [vmem:[%s4592_s8 + $0x100] sm:$0xff] %v300_v32  ;;  %v304_v34 = vld [vmem:[%s4584_s7 + $0x440] sm:$0xff]  ;;  %v306_v35 = vld [vmem:[%s4584_s7 + $0x448] sm:$0xff]  ;;  %303 = vst [vmem:[%s4592_s8 + $0x108] sm:$0xff] %v302_v33 }
  0x23   : > { %305 = vst [vmem:[%s4592_s8 + $0x110] sm:$0xff] %v304_v34  ;;  %307 = vst [vmem:[%s4592_s8 + $0x118] sm:$0xff] %v306_v35  ;;  %v308_v36 = vld [vmem:[%s4584_s7 + $0x480] sm:$0xff]  ;;  %v310_v37 = vld [vmem:[%s4584_s7 + $0x488] sm:$0xff] }
  0x24   : > { %v312_v38 = vld [vmem:[%s4584_s7 + $0x4c0] sm:$0xff]  ;;  %309 = vst [vmem:[%s4592_s8 + $0x120] sm:$0xff] %v308_v36  ;;  %311 = vst [vmem:[%s4592_s8 + $0x128] sm:$0xff] %v310_v37  ;;  %v314_v39 = vld [vmem:[%s4584_s7 + $0x4c8] sm:$0xff] }
  0x25   : > { %313 = vst [vmem:[%s4592_s8 + $0x130] sm:$0xff] %v312_v38  ;;  %v316_v40 = vld [vmem:[%s4584_s7 + $0x500] sm:$0xff]  ;;  %v318_v41 = vld [vmem:[%s4584_s7 + $0x508] sm:$0xff]  ;;  %315 = vst [vmem:[%s4592_s8 + $0x138] sm:$0xff] %v314_v39 }
  0x26   : > { %317 = vst [vmem:[%s4592_s8 + $0x140] sm:$0xff] %v316_v40  ;;  %319 = vst [vmem:[%s4592_s8 + $0x148] sm:$0xff] %v318_v41  ;;  %v320_v42 = vld [vmem:[%s4584_s7 + $0x540] sm:$0xff]  ;;  %v322_v43 = vld [vmem:[%s4584_s7 + $0x548] sm:$0xff] }
  0x27   : > { %v324_v44 = vld [vmem:[%s4584_s7 + $0x580] sm:$0xff]  ;;  %321 = vst [vmem:[%s4592_s8 + $0x150] sm:$0xff] %v320_v42  ;;  %323 = vst [vmem:[%s4592_s8 + $0x158] sm:$0xff] %v322_v43  ;;  %v326_v45 = vld [vmem:[%s4584_s7 + $0x588] sm:$0xff] }
  0x28   : > { %325 = vst [vmem:[%s4592_s8 + $0x160] sm:$0xff] %v324_v44  ;;  %v328_v46 = vld [vmem:[%s4584_s7 + $0x5c0] sm:$0xff]  ;;  %v330_v47 = vld [vmem:[%s4584_s7 + $0x5c8] sm:$0xff]  ;;  %327 = vst [vmem:[%s4592_s8 + $0x168] sm:$0xff] %v326_v45 }
  0x29   : > { %329 = vst [vmem:[%s4592_s8 + $0x170] sm:$0xff] %v328_v46  ;;  %331 = vst [vmem:[%s4592_s8 + $0x178] sm:$0xff] %v330_v47  ;;  %v332_v48 = vld [vmem:[%s4584_s7 + $0x600] sm:$0xff]  ;;  %v334_v49 = vld [vmem:[%s4584_s7 + $0x608] sm:$0xff] }
  0x2a   : > { %v336_v50 = vld [vmem:[%s4584_s7 + $0x640] sm:$0xff]  ;;  %333 = vst [vmem:[%s4592_s8 + $0x180] sm:$0xff] %v332_v48  ;;  %335 = vst [vmem:[%s4592_s8 + $0x188] sm:$0xff] %v334_v49  ;;  %v338_v51 = vld [vmem:[%s4584_s7 + $0x648] sm:$0xff] }
  0x2b   : > { %337 = vst [vmem:[%s4592_s8 + $0x190] sm:$0xff] %v336_v50  ;;  %v340_v52 = vld [vmem:[%s4584_s7 + $0x680] sm:$0xff]  ;;  %v342_v53 = vld [vmem:[%s4584_s7 + $0x688] sm:$0xff]  ;;  %339 = vst [vmem:[%s4592_s8 + $0x198] sm:$0xff] %v338_v51 }
  0x2c   : > { %341 = vst [vmem:[%s4592_s8 + $0x1a0] sm:$0xff] %v340_v52  ;;  %343 = vst [vmem:[%s4592_s8 + $0x1a8] sm:$0xff] %v342_v53  ;;  %v344_v54 = vld [vmem:[%s4584_s7 + $0x6c0] sm:$0xff]  ;;  %v346_v55 = vld [vmem:[%s4584_s7 + $0x6c8] sm:$0xff] }
  0x2d   : > { %v348_v56 = vld [vmem:[%s4584_s7 + $0x700] sm:$0xff]  ;;  %345 = vst [vmem:[%s4592_s8 + $0x1b0] sm:$0xff] %v344_v54  ;;  %347 = vst [vmem:[%s4592_s8 + $0x1b8] sm:$0xff] %v346_v55  ;;  %v350_v57 = vld [vmem:[%s4584_s7 + $0x708] sm:$0xff] }
  0x2e   : > { %349 = vst [vmem:[%s4592_s8 + $0x1c0] sm:$0xff] %v348_v56  ;;  %v352_v58 = vld [vmem:[%s4584_s7 + $0x740] sm:$0xff]  ;;  %v354_v59 = vld [vmem:[%s4584_s7 + $0x748] sm:$0xff]  ;;  %351 = vst [vmem:[%s4592_s8 + $0x1c8] sm:$0xff] %v350_v57 }
  0x2f   : > { %353 = vst [vmem:[%s4592_s8 + $0x1d0] sm:$0xff] %v352_v58  ;;  %355 = vst [vmem:[%s4592_s8 + $0x1d8] sm:$0xff] %v354_v59  ;;  %v356_v60 = vld [vmem:[%s4584_s7 + $0x780] sm:$0xff]  ;;  %v358_v61 = vld [vmem:[%s4584_s7 + $0x788] sm:$0xff] }
  0x30   : > { %v360_v62 = vld [vmem:[%s4584_s7 + $0x7c0] sm:$0xff]  ;;  %357 = vst [vmem:[%s4592_s8 + $0x1e0] sm:$0xff] %v356_v60  ;;  %359 = vst [vmem:[%s4592_s8 + $0x1e8] sm:$0xff] %v358_v61  ;;  %v362_v63 = vld [vmem:[%s4584_s7 + $0x7c8] sm:$0xff] }
  0x31   : > { %361 = vst [vmem:[%s4592_s8 + $0x1f0] sm:$0xff] %v360_v62  ;;  %v364_v0 = vld [vmem:[%s4584_s7 + $0x800] sm:$0xff]  ;;  %v366_v1 = vld [vmem:[%s4584_s7 + $0x808] sm:$0xff]  ;;  %363 = vst [vmem:[%s4592_s8 + $0x1f8] sm:$0xff] %v362_v63 }
  0x32   : > { %365 = vst [vmem:[%s4592_s8 + $0x200] sm:$0xff] %v364_v0  ;;  %367 = vst [vmem:[%s4592_s8 + $0x208] sm:$0xff] %v366_v1  ;;  %v368_v2 = vld [vmem:[%s4584_s7 + $0x840] sm:$0xff]  ;;  %v370_v3 = vld [vmem:[%s4584_s7 + $0x848] sm:$0xff] }
  0x33   : > { %v372_v4 = vld [vmem:[%s4584_s7 + $0x880] sm:$0xff]  ;;  %369 = vst [vmem:[%s4592_s8 + $0x210] sm:$0xff] %v368_v2  ;;  %371 = vst [vmem:[%s4592_s8 + $0x218] sm:$0xff] %v370_v3  ;;  %v374_v5 = vld [vmem:[%s4584_s7 + $0x888] sm:$0xff] }
  0x34   : > { %373 = vst [vmem:[%s4592_s8 + $0x220] sm:$0xff] %v372_v4  ;;  %v376_v6 = vld [vmem:[%s4584_s7 + $0x8c0] sm:$0xff]  ;;  %v378_v7 = vld [vmem:[%s4584_s7 + $0x8c8] sm:$0xff]  ;;  %375 = vst [vmem:[%s4592_s8 + $0x228] sm:$0xff] %v374_v5 }
  0x35   : > { %377 = vst [vmem:[%s4592_s8 + $0x230] sm:$0xff] %v376_v6  ;;  %379 = vst [vmem:[%s4592_s8 + $0x238] sm:$0xff] %v378_v7  ;;  %v380_v8 = vld [vmem:[%s4584_s7 + $0x900] sm:$0xff]  ;;  %v382_v9 = vld [vmem:[%s4584_s7 + $0x908] sm:$0xff] }
  0x36   : > { %v384_v10 = vld [vmem:[%s4584_s7 + $0x940] sm:$0xff]  ;;  %381 = vst [vmem:[%s4592_s8 + $0x240] sm:$0xff] %v380_v8  ;;  %383 = vst [vmem:[%s4592_s8 + $0x248] sm:$0xff] %v382_v9  ;;  %v386_v11 = vld [vmem:[%s4584_s7 + $0x948] sm:$0xff] }
  0x37   : > { %385 = vst [vmem:[%s4592_s8 + $0x250] sm:$0xff] %v384_v10  ;;  %v388_v12 = vld [vmem:[%s4584_s7 + $0x980] sm:$0xff]  ;;  %v390_v13 = vld [vmem:[%s4584_s7 + $0x988] sm:$0xff]  ;;  %387 = vst [vmem:[%s4592_s8 + $0x258] sm:$0xff] %v386_v11 }
  0x38   : > { %389 = vst [vmem:[%s4592_s8 + $0x260] sm:$0xff] %v388_v12  ;;  %391 = vst [vmem:[%s4592_s8 + $0x268] sm:$0xff] %v390_v13  ;;  %v392_v14 = vld [vmem:[%s4584_s7 + $0x9c0] sm:$0xff]  ;;  %v394_v15 = vld [vmem:[%s4584_s7 + $0x9c8] sm:$0xff] }
  0x39   : > { %v396_v16 = vld [vmem:[%s4584_s7 + $0xa00] sm:$0xff]  ;;  %393 = vst [vmem:[%s4592_s8 + $0x270] sm:$0xff] %v392_v14  ;;  %395 = vst [vmem:[%s4592_s8 + $0x278] sm:$0xff] %v394_v15  ;;  %v398_v17 = vld [vmem:[%s4584_s7 + $0xa08] sm:$0xff] }
  0x3a   : > { %397 = vst [vmem:[%s4592_s8 + $0x280] sm:$0xff] %v396_v16  ;;  %v400_v18 = vld [vmem:[%s4584_s7 + $0xa40] sm:$0xff]  ;;  %v402_v19 = vld [vmem:[%s4584_s7 + $0xa48] sm:$0xff]  ;;  %399 = vst [vmem:[%s4592_s8 + $0x288] sm:$0xff] %v398_v17 }
  0x3b   : > { %401 = vst [vmem:[%s4592_s8 + $0x290] sm:$0xff] %v400_v18  ;;  %403 = vst [vmem:[%s4592_s8 + $0x298] sm:$0xff] %v402_v19  ;;  %v404_v20 = vld [vmem:[%s4584_s7 + $0xa80] sm:$0xff]  ;;  %v406_v21 = vld [vmem:[%s4584_s7 + $0xa88] sm:$0xff] }
  0x3c   : > { %v408_v22 = vld [vmem:[%s4584_s7 + $0xac0] sm:$0xff]  ;;  %405 = vst [vmem:[%s4592_s8 + $0x2a0] sm:$0xff] %v404_v20  ;;  %407 = vst [vmem:[%s4592_s8 + $0x2a8] sm:$0xff] %v406_v21  ;;  %v410_v23 = vld [vmem:[%s4584_s7 + $0xac8] sm:$0xff] }
  0x3d   : > { %409 = vst [vmem:[%s4592_s8 + $0x2b0] sm:$0xff] %v408_v22  ;;  %v412_v24 = vld [vmem:[%s4584_s7 + $0xb00] sm:$0xff]  ;;  %v414_v25 = vld [vmem:[%s4584_s7 + $0xb08] sm:$0xff]  ;;  %411 = vst [vmem:[%s4592_s8 + $0x2b8] sm:$0xff] %v410_v23 }
  0x3e   : > { %413 = vst [vmem:[%s4592_s8 + $0x2c0] sm:$0xff] %v412_v24  ;;  %415 = vst [vmem:[%s4592_s8 + $0x2c8] sm:$0xff] %v414_v25  ;;  %v416_v26 = vld [vmem:[%s4584_s7 + $0xb40] sm:$0xff]  ;;  %v418_v27 = vld [vmem:[%s4584_s7 + $0xb48] sm:$0xff] }
  0x3f   : > { %v420_v28 = vld [vmem:[%s4584_s7 + $0xb80] sm:$0xff]  ;;  %417 = vst [vmem:[%s4592_s8 + $0x2d0] sm:$0xff] %v416_v26  ;;  %419 = vst [vmem:[%s4592_s8 + $0x2d8] sm:$0xff] %v418_v27  ;;  %v422_v29 = vld [vmem:[%s4584_s7 + $0xb88] sm:$0xff] }
  0x40   : > { %421 = vst [vmem:[%s4592_s8 + $0x2e0] sm:$0xff] %v420_v28  ;;  %v424_v30 = vld [vmem:[%s4584_s7 + $0xbc0] sm:$0xff]  ;;  %v426_v31 = vld [vmem:[%s4584_s7 + $0xbc8] sm:$0xff]  ;;  %423 = vst [vmem:[%s4592_s8 + $0x2e8] sm:$0xff] %v422_v29 }
  0x41   : > { %425 = vst [vmem:[%s4592_s8 + $0x2f0] sm:$0xff] %v424_v30  ;;  %427 = vst [vmem:[%s4592_s8 + $0x2f8] sm:$0xff] %v426_v31  ;;  %v428_v32 = vld [vmem:[%s4584_s7 + $0xc00] sm:$0xff]  ;;  %v430_v33 = vld [vmem:[%s4584_s7 + $0xc08] sm:$0xff] }
  0x42   : > { %v432_v34 = vld [vmem:[%s4584_s7 + $0xc40] sm:$0xff]  ;;  %429 = vst [vmem:[%s4592_s8 + $0x300] sm:$0xff] %v428_v32  ;;  %431 = vst [vmem:[%s4592_s8 + $0x308] sm:$0xff] %v430_v33  ;;  %v434_v35 = vld [vmem:[%s4584_s7 + $0xc48] sm:$0xff] }
  0x43   : > { %433 = vst [vmem:[%s4592_s8 + $0x310] sm:$0xff] %v432_v34  ;;  %v436_v36 = vld [vmem:[%s4584_s7 + $0xc80] sm:$0xff]  ;;  %v438_v37 = vld [vmem:[%s4584_s7 + $0xc88] sm:$0xff]  ;;  %435 = vst [vmem:[%s4592_s8 + $0x318] sm:$0xff] %v434_v35 }
  0x44   : > { %437 = vst [vmem:[%s4592_s8 + $0x320] sm:$0xff] %v436_v36  ;;  %439 = vst [vmem:[%s4592_s8 + $0x328] sm:$0xff] %v438_v37  ;;  %v440_v38 = vld [vmem:[%s4584_s7 + $0xcc0] sm:$0xff]  ;;  %v442_v39 = vld [vmem:[%s4584_s7 + $0xcc8] sm:$0xff] }
  0x45   : > { %v444_v40 = vld [vmem:[%s4584_s7 + $0xd00] sm:$0xff]  ;;  %441 = vst [vmem:[%s4592_s8 + $0x330] sm:$0xff] %v440_v38  ;;  %443 = vst [vmem:[%s4592_s8 + $0x338] sm:$0xff] %v442_v39  ;;  %v446_v41 = vld [vmem:[%s4584_s7 + $0xd08] sm:$0xff] }
  0x46   : > { %445 = vst [vmem:[%s4592_s8 + $0x340] sm:$0xff] %v444_v40  ;;  %v448_v42 = vld [vmem:[%s4584_s7 + $0xd40] sm:$0xff]  ;;  %v450_v43 = vld [vmem:[%s4584_s7 + $0xd48] sm:$0xff]  ;;  %447 = vst [vmem:[%s4592_s8 + $0x348] sm:$0xff] %v446_v41 }
  0x47   : > { %449 = vst [vmem:[%s4592_s8 + $0x350] sm:$0xff] %v448_v42  ;;  %451 = vst [vmem:[%s4592_s8 + $0x358] sm:$0xff] %v450_v43  ;;  %v452_v44 = vld [vmem:[%s4584_s7 + $0xd80] sm:$0xff]  ;;  %v454_v45 = vld [vmem:[%s4584_s7 + $0xd88] sm:$0xff] }
  0x48   : > { %v456_v46 = vld [vmem:[%s4584_s7 + $0xdc0] sm:$0xff]  ;;  %453 = vst [vmem:[%s4592_s8 + $0x360] sm:$0xff] %v452_v44  ;;  %455 = vst [vmem:[%s4592_s8 + $0x368] sm:$0xff] %v454_v45  ;;  %v458_v47 = vld [vmem:[%s4584_s7 + $0xdc8] sm:$0xff] }
  0x49   : > { %457 = vst [vmem:[%s4592_s8 + $0x370] sm:$0xff] %v456_v46  ;;  %v460_v48 = vld [vmem:[%s4584_s7 + $0xe00] sm:$0xff]  ;;  %v462_v49 = vld [vmem:[%s4584_s7 + $0xe08] sm:$0xff]  ;;  %459 = vst [vmem:[%s4592_s8 + $0x378] sm:$0xff] %v458_v47 }
  0x4a   : > { %461 = vst [vmem:[%s4592_s8 + $0x380] sm:$0xff] %v460_v48  ;;  %463 = vst [vmem:[%s4592_s8 + $0x388] sm:$0xff] %v462_v49  ;;  %v464_v50 = vld [vmem:[%s4584_s7 + $0xe40] sm:$0xff]  ;;  %v466_v51 = vld [vmem:[%s4584_s7 + $0xe48] sm:$0xff] }
  0x4b   : > { %v468_v52 = vld [vmem:[%s4584_s7 + $0xe80] sm:$0xff]  ;;  %465 = vst [vmem:[%s4592_s8 + $0x390] sm:$0xff] %v464_v50  ;;  %467 = vst [vmem:[%s4592_s8 + $0x398] sm:$0xff] %v466_v51  ;;  %v470_v53 = vld [vmem:[%s4584_s7 + $0xe88] sm:$0xff] }
  0x4c   : > { %469 = vst [vmem:[%s4592_s8 + $0x3a0] sm:$0xff] %v468_v52  ;;  %v472_v54 = vld [vmem:[%s4584_s7 + $0xec0] sm:$0xff]  ;;  %v474_v55 = vld [vmem:[%s4584_s7 + $0xec8] sm:$0xff]  ;;  %471 = vst [vmem:[%s4592_s8 + $0x3a8] sm:$0xff] %v470_v53 }
  0x4d   : > { %473 = vst [vmem:[%s4592_s8 + $0x3b0] sm:$0xff] %v472_v54  ;;  %475 = vst [vmem:[%s4592_s8 + $0x3b8] sm:$0xff] %v474_v55  ;;  %v476_v56 = vld [vmem:[%s4584_s7 + $0xf00] sm:$0xff]  ;;  %v478_v57 = vld [vmem:[%s4584_s7 + $0xf08] sm:$0xff] }
  0x4e   : > { %v480_v58 = vld [vmem:[%s4584_s7 + $0xf40] sm:$0xff]  ;;  %477 = vst [vmem:[%s4592_s8 + $0x3c0] sm:$0xff] %v476_v56  ;;  %479 = vst [vmem:[%s4592_s8 + $0x3c8] sm:$0xff] %v478_v57  ;;  %v482_v59 = vld [vmem:[%s4584_s7 + $0xf48] sm:$0xff] }
  0x4f   : > { %481 = vst [vmem:[%s4592_s8 + $0x3d0] sm:$0xff] %v480_v58  ;;  %v484_v60 = vld [vmem:[%s4584_s7 + $0xf80] sm:$0xff]  ;;  %v486_v61 = vld [vmem:[%s4584_s7 + $0xf88] sm:$0xff]  ;;  %483 = vst [vmem:[%s4592_s8 + $0x3d8] sm:$0xff] %v482_v59 }
  0x50   : > { %485 = vst [vmem:[%s4592_s8 + $0x3e0] sm:$0xff] %v484_v60  ;;  %487 = vst [vmem:[%s4592_s8 + $0x3e8] sm:$0xff] %v486_v61  ;;  %v488_v62 = vld [vmem:[%s4584_s7 + $0xfc0] sm:$0xff]  ;;  %v490_v63 = vld [vmem:[%s4584_s7 + $0xfc8] sm:$0xff] }
  0x51   : > { %v492_v0 = vld [vmem:[%s4584_s7 + $0x1000] sm:$0xff]  ;;  %489 = vst [vmem:[%s4592_s8 + $0x3f0] sm:$0xff] %v488_v62  ;;  %491 = vst [vmem:[%s4592_s8 + $0x3f8] sm:$0xff] %v490_v63  ;;  %v494_v1 = vld [vmem:[%s4584_s7 + $0x1008] sm:$0xff] }
  0x52   : > { %493 = vst [vmem:[%s4592_s8 + $0x400] sm:$0xff] %v492_v0  ;;  %v496_v2 = vld [vmem:[%s4584_s7 + $0x1040] sm:$0xff]  ;;  %v498_v3 = vld [vmem:[%s4584_s7 + $0x1048] sm:$0xff]  ;;  %495 = vst [vmem:[%s4592_s8 + $0x408] sm:$0xff] %v494_v1 }
  0x53   : > { %497 = vst [vmem:[%s4592_s8 + $0x410] sm:$0xff] %v496_v2  ;;  %499 = vst [vmem:[%s4592_s8 + $0x418] sm:$0xff] %v498_v3  ;;  %v500_v4 = vld [vmem:[%s4584_s7 + $0x1080] sm:$0xff]  ;;  %v502_v5 = vld [vmem:[%s4584_s7 + $0x1088] sm:$0xff] }
  0x54   : > { %v504_v6 = vld [vmem:[%s4584_s7 + $0x10c0] sm:$0xff]  ;;  %501 = vst [vmem:[%s4592_s8 + $0x420] sm:$0xff] %v500_v4  ;;  %503 = vst [vmem:[%s4592_s8 + $0x428] sm:$0xff] %v502_v5  ;;  %v506_v7 = vld [vmem:[%s4584_s7 + $0x10c8] sm:$0xff] }
  0x55   : > { %505 = vst [vmem:[%s4592_s8 + $0x430] sm:$0xff] %v504_v6  ;;  %v508_v8 = vld [vmem:[%s4584_s7 + $0x1100] sm:$0xff]  ;;  %v510_v9 = vld [vmem:[%s4584_s7 + $0x1108] sm:$0xff]  ;;  %507 = vst [vmem:[%s4592_s8 + $0x438] sm:$0xff] %v506_v7 }
  0x56   : > { %509 = vst [vmem:[%s4592_s8 + $0x440] sm:$0xff] %v508_v8  ;;  %511 = vst [vmem:[%s4592_s8 + $0x448] sm:$0xff] %v510_v9  ;;  %v512_v10 = vld [vmem:[%s4584_s7 + $0x1140] sm:$0xff]  ;;  %v514_v11 = vld [vmem:[%s4584_s7 + $0x1148] sm:$0xff] }
  0x57   : > { %v516_v12 = vld [vmem:[%s4584_s7 + $0x1180] sm:$0xff]  ;;  %513 = vst [vmem:[%s4592_s8 + $0x450] sm:$0xff] %v512_v10  ;;  %515 = vst [vmem:[%s4592_s8 + $0x458] sm:$0xff] %v514_v11  ;;  %v518_v13 = vld [vmem:[%s4584_s7 + $0x1188] sm:$0xff] }
  0x58   : > { %517 = vst [vmem:[%s4592_s8 + $0x460] sm:$0xff] %v516_v12  ;;  %v520_v14 = vld [vmem:[%s4584_s7 + $0x11c0] sm:$0xff]  ;;  %v522_v15 = vld [vmem:[%s4584_s7 + $0x11c8] sm:$0xff]  ;;  %519 = vst [vmem:[%s4592_s8 + $0x468] sm:$0xff] %v518_v13 }
  0x59   : > { %521 = vst [vmem:[%s4592_s8 + $0x470] sm:$0xff] %v520_v14  ;;  %523 = vst [vmem:[%s4592_s8 + $0x478] sm:$0xff] %v522_v15  ;;  %v524_v16 = vld [vmem:[%s4584_s7 + $0x1200] sm:$0xff]  ;;  %v526_v17 = vld [vmem:[%s4584_s7 + $0x1208] sm:$0xff] }
  0x5a   : > { %v528_v18 = vld [vmem:[%s4584_s7 + $0x1240] sm:$0xff]  ;;  %525 = vst [vmem:[%s4592_s8 + $0x480] sm:$0xff] %v524_v16  ;;  %527 = vst [vmem:[%s4592_s8 + $0x488] sm:$0xff] %v526_v17  ;;  %v530_v19 = vld [vmem:[%s4584_s7 + $0x1248] sm:$0xff] }
  0x5b   : > { %529 = vst [vmem:[%s4592_s8 + $0x490] sm:$0xff] %v528_v18  ;;  %v532_v20 = vld [vmem:[%s4584_s7 + $0x1280] sm:$0xff]  ;;  %v534_v21 = vld [vmem:[%s4584_s7 + $0x1288] sm:$0xff]  ;;  %531 = vst [vmem:[%s4592_s8 + $0x498] sm:$0xff] %v530_v19 }
  0x5c   : > { %533 = vst [vmem:[%s4592_s8 + $0x4a0] sm:$0xff] %v532_v20  ;;  %535 = vst [vmem:[%s4592_s8 + $0x4a8] sm:$0xff] %v534_v21  ;;  %v536_v22 = vld [vmem:[%s4584_s7 + $0x12c0] sm:$0xff]  ;;  %v538_v23 = vld [vmem:[%s4584_s7 + $0x12c8] sm:$0xff] }
  0x5d   : > { %v540_v24 = vld [vmem:[%s4584_s7 + $0x1300] sm:$0xff]  ;;  %537 = vst [vmem:[%s4592_s8 + $0x4b0] sm:$0xff] %v536_v22  ;;  %539 = vst [vmem:[%s4592_s8 + $0x4b8] sm:$0xff] %v538_v23  ;;  %v542_v25 = vld [vmem:[%s4584_s7 + $0x1308] sm:$0xff] }
  0x5e   : > { %541 = vst [vmem:[%s4592_s8 + $0x4c0] sm:$0xff] %v540_v24  ;;  %v544_v26 = vld [vmem:[%s4584_s7 + $0x1340] sm:$0xff]  ;;  %v546_v27 = vld [vmem:[%s4584_s7 + $0x1348] sm:$0xff]  ;;  %543 = vst [vmem:[%s4592_s8 + $0x4c8] sm:$0xff] %v542_v25 }
  0x5f   : > { %545 = vst [vmem:[%s4592_s8 + $0x4d0] sm:$0xff] %v544_v26  ;;  %547 = vst [vmem:[%s4592_s8 + $0x4d8] sm:$0xff] %v546_v27  ;;  %v548_v28 = vld [vmem:[%s4584_s7 + $0x1380] sm:$0xff]  ;;  %v550_v29 = vld [vmem:[%s4584_s7 + $0x1388] sm:$0xff] }
  0x60   : > { %v552_v30 = vld [vmem:[%s4584_s7 + $0x13c0] sm:$0xff]  ;;  %549 = vst [vmem:[%s4592_s8 + $0x4e0] sm:$0xff] %v548_v28  ;;  %551 = vst [vmem:[%s4592_s8 + $0x4e8] sm:$0xff] %v550_v29  ;;  %v554_v31 = vld [vmem:[%s4584_s7 + $0x13c8] sm:$0xff] }
  0x61   : > { %553 = vst [vmem:[%s4592_s8 + $0x4f0] sm:$0xff] %v552_v30  ;;  %v556_v32 = vld [vmem:[%s4584_s7 + $0x1400] sm:$0xff]  ;;  %v558_v33 = vld [vmem:[%s4584_s7 + $0x1408] sm:$0xff]  ;;  %555 = vst [vmem:[%s4592_s8 + $0x4f8] sm:$0xff] %v554_v31 }
  0x62   : > { %557 = vst [vmem:[%s4592_s8 + $0x500] sm:$0xff] %v556_v32  ;;  %559 = vst [vmem:[%s4592_s8 + $0x508] sm:$0xff] %v558_v33  ;;  %v560_v34 = vld [vmem:[%s4584_s7 + $0x1440] sm:$0xff]  ;;  %v562_v35 = vld [vmem:[%s4584_s7 + $0x1448] sm:$0xff] }
  0x63   : > { %v564_v36 = vld [vmem:[%s4584_s7 + $0x1480] sm:$0xff]  ;;  %561 = vst [vmem:[%s4592_s8 + $0x510] sm:$0xff] %v560_v34  ;;  %563 = vst [vmem:[%s4592_s8 + $0x518] sm:$0xff] %v562_v35  ;;  %v566_v37 = vld [vmem:[%s4584_s7 + $0x1488] sm:$0xff] }
  0x64   : > { %565 = vst [vmem:[%s4592_s8 + $0x520] sm:$0xff] %v564_v36  ;;  %v568_v38 = vld [vmem:[%s4584_s7 + $0x14c0] sm:$0xff]  ;;  %v570_v39 = vld [vmem:[%s4584_s7 + $0x14c8] sm:$0xff]  ;;  %567 = vst [vmem:[%s4592_s8 + $0x528] sm:$0xff] %v566_v37 }
  0x65   : > { %569 = vst [vmem:[%s4592_s8 + $0x530] sm:$0xff] %v568_v38  ;;  %571 = vst [vmem:[%s4592_s8 + $0x538] sm:$0xff] %v570_v39  ;;  %v572_v40 = vld [vmem:[%s4584_s7 + $0x1500] sm:$0xff]  ;;  %v574_v41 = vld [vmem:[%s4584_s7 + $0x1508] sm:$0xff] }
  0x66   : > { %v576_v42 = vld [vmem:[%s4584_s7 + $0x1540] sm:$0xff]  ;;  %573 = vst [vmem:[%s4592_s8 + $0x540] sm:$0xff] %v572_v40  ;;  %575 = vst [vmem:[%s4592_s8 + $0x548] sm:$0xff] %v574_v41  ;;  %v578_v43 = vld [vmem:[%s4584_s7 + $0x1548] sm:$0xff] }
  0x67   : > { %577 = vst [vmem:[%s4592_s8 + $0x550] sm:$0xff] %v576_v42  ;;  %v580_v44 = vld [vmem:[%s4584_s7 + $0x1580] sm:$0xff]  ;;  %v582_v45 = vld [vmem:[%s4584_s7 + $0x1588] sm:$0xff]  ;;  %579 = vst [vmem:[%s4592_s8 + $0x558] sm:$0xff] %v578_v43 }
  0x68   : > { %581 = vst [vmem:[%s4592_s8 + $0x560] sm:$0xff] %v580_v44  ;;  %583 = vst [vmem:[%s4592_s8 + $0x568] sm:$0xff] %v582_v45  ;;  %v584_v46 = vld [vmem:[%s4584_s7 + $0x15c0] sm:$0xff]  ;;  %v586_v47 = vld [vmem:[%s4584_s7 + $0x15c8] sm:$0xff] }
  0x69   : > { %v588_v48 = vld [vmem:[%s4584_s7 + $0x1600] sm:$0xff]  ;;  %585 = vst [vmem:[%s4592_s8 + $0x570] sm:$0xff] %v584_v46  ;;  %587 = vst [vmem:[%s4592_s8 + $0x578] sm:$0xff] %v586_v47  ;;  %v590_v49 = vld [vmem:[%s4584_s7 + $0x1608] sm:$0xff] }
  0x6a   : > { %589 = vst [vmem:[%s4592_s8 + $0x580] sm:$0xff] %v588_v48  ;;  %v592_v50 = vld [vmem:[%s4584_s7 + $0x1640] sm:$0xff]  ;;  %v594_v51 = vld [vmem:[%s4584_s7 + $0x1648] sm:$0xff]  ;;  %591 = vst [vmem:[%s4592_s8 + $0x588] sm:$0xff] %v590_v49 }
  0x6b   : > { %593 = vst [vmem:[%s4592_s8 + $0x590] sm:$0xff] %v592_v50  ;;  %595 = vst [vmem:[%s4592_s8 + $0x598] sm:$0xff] %v594_v51  ;;  %v596_v52 = vld [vmem:[%s4584_s7 + $0x1680] sm:$0xff]  ;;  %v598_v53 = vld [vmem:[%s4584_s7 + $0x1688] sm:$0xff] }
  0x6c   : > { %v600_v54 = vld [vmem:[%s4584_s7 + $0x16c0] sm:$0xff]  ;;  %597 = vst [vmem:[%s4592_s8 + $0x5a0] sm:$0xff] %v596_v52  ;;  %599 = vst [vmem:[%s4592_s8 + $0x5a8] sm:$0xff] %v598_v53  ;;  %v602_v55 = vld [vmem:[%s4584_s7 + $0x16c8] sm:$0xff] }
  0x6d   : > { %601 = vst [vmem:[%s4592_s8 + $0x5b0] sm:$0xff] %v600_v54  ;;  %v604_v56 = vld [vmem:[%s4584_s7 + $0x1700] sm:$0xff]  ;;  %v606_v57 = vld [vmem:[%s4584_s7 + $0x1708] sm:$0xff]  ;;  %603 = vst [vmem:[%s4592_s8 + $0x5b8] sm:$0xff] %v602_v55 }
  0x6e   : > { %605 = vst [vmem:[%s4592_s8 + $0x5c0] sm:$0xff] %v604_v56  ;;  %607 = vst [vmem:[%s4592_s8 + $0x5c8] sm:$0xff] %v606_v57  ;;  %v608_v58 = vld [vmem:[%s4584_s7 + $0x1740] sm:$0xff]  ;;  %v610_v59 = vld [vmem:[%s4584_s7 + $0x1748] sm:$0xff] }
  0x6f   : > { %v612_v60 = vld [vmem:[%s4584_s7 + $0x1780] sm:$0xff]  ;;  %609 = vst [vmem:[%s4592_s8 + $0x5d0] sm:$0xff] %v608_v58  ;;  %611 = vst [vmem:[%s4592_s8 + $0x5d8] sm:$0xff] %v610_v59  ;;  %v614_v61 = vld [vmem:[%s4584_s7 + $0x1788] sm:$0xff] }
  0x70   : > { %613 = vst [vmem:[%s4592_s8 + $0x5e0] sm:$0xff] %v612_v60  ;;  %v616_v62 = vld [vmem:[%s4584_s7 + $0x17c0] sm:$0xff]  ;;  %v618_v63 = vld [vmem:[%s4584_s7 + $0x17c8] sm:$0xff]  ;;  %615 = vst [vmem:[%s4592_s8 + $0x5e8] sm:$0xff] %v614_v61 }
  0x71   : > { %617 = vst [vmem:[%s4592_s8 + $0x5f0] sm:$0xff] %v616_v62  ;;  %619 = vst [vmem:[%s4592_s8 + $0x5f8] sm:$0xff] %v618_v63  ;;  %v620_v0 = vld [vmem:[%s4584_s7 + $0x1800] sm:$0xff]  ;;  %v622_v1 = vld [vmem:[%s4584_s7 + $0x1808] sm:$0xff] }
  0x72   : > { %v624_v2 = vld [vmem:[%s4584_s7 + $0x1840] sm:$0xff]  ;;  %621 = vst [vmem:[%s4592_s8 + $0x600] sm:$0xff] %v620_v0  ;;  %623 = vst [vmem:[%s4592_s8 + $0x608] sm:$0xff] %v622_v1  ;;  %v626_v3 = vld [vmem:[%s4584_s7 + $0x1848] sm:$0xff] }
  0x73   : > { %625 = vst [vmem:[%s4592_s8 + $0x610] sm:$0xff] %v624_v2  ;;  %v628_v4 = vld [vmem:[%s4584_s7 + $0x1880] sm:$0xff]  ;;  %v630_v5 = vld [vmem:[%s4584_s7 + $0x1888] sm:$0xff]  ;;  %627 = vst [vmem:[%s4592_s8 + $0x618] sm:$0xff] %v626_v3 }
  0x74   : > { %629 = vst [vmem:[%s4592_s8 + $0x620] sm:$0xff] %v628_v4  ;;  %631 = vst [vmem:[%s4592_s8 + $0x628] sm:$0xff] %v630_v5  ;;  %v632_v6 = vld [vmem:[%s4584_s7 + $0x18c0] sm:$0xff]  ;;  %v634_v7 = vld [vmem:[%s4584_s7 + $0x18c8] sm:$0xff] }
  0x75   : > { %v636_v8 = vld [vmem:[%s4584_s7 + $0x1900] sm:$0xff]  ;;  %633 = vst [vmem:[%s4592_s8 + $0x630] sm:$0xff] %v632_v6  ;;  %635 = vst [vmem:[%s4592_s8 + $0x638] sm:$0xff] %v634_v7  ;;  %v638_v9 = vld [vmem:[%s4584_s7 + $0x1908] sm:$0xff] }
  0x76   : > { %637 = vst [vmem:[%s4592_s8 + $0x640] sm:$0xff] %v636_v8  ;;  %v640_v10 = vld [vmem:[%s4584_s7 + $0x1940] sm:$0xff]  ;;  %v642_v11 = vld [vmem:[%s4584_s7 + $0x1948] sm:$0xff]  ;;  %639 = vst [vmem:[%s4592_s8 + $0x648] sm:$0xff] %v638_v9 }
  0x77   : > { %641 = vst [vmem:[%s4592_s8 + $0x650] sm:$0xff] %v640_v10  ;;  %643 = vst [vmem:[%s4592_s8 + $0x658] sm:$0xff] %v642_v11  ;;  %v644_v12 = vld [vmem:[%s4584_s7 + $0x1980] sm:$0xff]  ;;  %v646_v13 = vld [vmem:[%s4584_s7 + $0x1988] sm:$0xff] }
  0x78   : > { %v648_v14 = vld [vmem:[%s4584_s7 + $0x19c0] sm:$0xff]  ;;  %645 = vst [vmem:[%s4592_s8 + $0x660] sm:$0xff] %v644_v12  ;;  %647 = vst [vmem:[%s4592_s8 + $0x668] sm:$0xff] %v646_v13  ;;  %v650_v15 = vld [vmem:[%s4584_s7 + $0x19c8] sm:$0xff] }
  0x79   : > { %649 = vst [vmem:[%s4592_s8 + $0x670] sm:$0xff] %v648_v14  ;;  %v652_v16 = vld [vmem:[%s4584_s7 + $0x1a00] sm:$0xff]  ;;  %v654_v17 = vld [vmem:[%s4584_s7 + $0x1a08] sm:$0xff]  ;;  %651 = vst [vmem:[%s4592_s8 + $0x678] sm:$0xff] %v650_v15 }
  0x7a   : > { %653 = vst [vmem:[%s4592_s8 + $0x680] sm:$0xff] %v652_v16  ;;  %655 = vst [vmem:[%s4592_s8 + $0x688] sm:$0xff] %v654_v17  ;;  %v656_v18 = vld [vmem:[%s4584_s7 + $0x1a40] sm:$0xff]  ;;  %v658_v19 = vld [vmem:[%s4584_s7 + $0x1a48] sm:$0xff] }
  0x7b   : > { %v660_v20 = vld [vmem:[%s4584_s7 + $0x1a80] sm:$0xff]  ;;  %657 = vst [vmem:[%s4592_s8 + $0x690] sm:$0xff] %v656_v18  ;;  %659 = vst [vmem:[%s4592_s8 + $0x698] sm:$0xff] %v658_v19  ;;  %v662_v21 = vld [vmem:[%s4584_s7 + $0x1a88] sm:$0xff] }
  0x7c   : > { %661 = vst [vmem:[%s4592_s8 + $0x6a0] sm:$0xff] %v660_v20  ;;  %v664_v22 = vld [vmem:[%s4584_s7 + $0x1ac0] sm:$0xff]  ;;  %v666_v23 = vld [vmem:[%s4584_s7 + $0x1ac8] sm:$0xff]  ;;  %663 = vst [vmem:[%s4592_s8 + $0x6a8] sm:$0xff] %v662_v21 }
  0x7d   : > { %665 = vst [vmem:[%s4592_s8 + $0x6b0] sm:$0xff] %v664_v22  ;;  %667 = vst [vmem:[%s4592_s8 + $0x6b8] sm:$0xff] %v666_v23  ;;  %v668_v24 = vld [vmem:[%s4584_s7 + $0x1b00] sm:$0xff]  ;;  %v670_v25 = vld [vmem:[%s4584_s7 + $0x1b08] sm:$0xff] }
  0x7e   : > { %v672_v26 = vld [vmem:[%s4584_s7 + $0x1b40] sm:$0xff]  ;;  %669 = vst [vmem:[%s4592_s8 + $0x6c0] sm:$0xff] %v668_v24  ;;  %671 = vst [vmem:[%s4592_s8 + $0x6c8] sm:$0xff] %v670_v25  ;;  %v674_v27 = vld [vmem:[%s4584_s7 + $0x1b48] sm:$0xff] }
  0x7f   : > { %673 = vst [vmem:[%s4592_s8 + $0x6d0] sm:$0xff] %v672_v26  ;;  %v676_v28 = vld [vmem:[%s4584_s7 + $0x1b80] sm:$0xff]  ;;  %v678_v29 = vld [vmem:[%s4584_s7 + $0x1b88] sm:$0xff]  ;;  %675 = vst [vmem:[%s4592_s8 + $0x6d8] sm:$0xff] %v674_v27 }
  0x80   : > { %677 = vst [vmem:[%s4592_s8 + $0x6e0] sm:$0xff] %v676_v28  ;;  %679 = vst [vmem:[%s4592_s8 + $0x6e8] sm:$0xff] %v678_v29  ;;  %v680_v30 = vld [vmem:[%s4584_s7 + $0x1bc0] sm:$0xff]  ;;  %v682_v31 = vld [vmem:[%s4584_s7 + $0x1bc8] sm:$0xff] }
  0x81   : > { %v684_v32 = vld [vmem:[%s4584_s7 + $0x1c00] sm:$0xff]  ;;  %681 = vst [vmem:[%s4592_s8 + $0x6f0] sm:$0xff] %v680_v30  ;;  %683 = vst [vmem:[%s4592_s8 + $0x6f8] sm:$0xff] %v682_v31  ;;  %v686_v33 = vld [vmem:[%s4584_s7 + $0x1c08] sm:$0xff] }
  0x82   : > { %685 = vst [vmem:[%s4592_s8 + $0x700] sm:$0xff] %v684_v32  ;;  %v688_v34 = vld [vmem:[%s4584_s7 + $0x1c40] sm:$0xff]  ;;  %v690_v35 = vld [vmem:[%s4584_s7 + $0x1c48] sm:$0xff]  ;;  %687 = vst [vmem:[%s4592_s8 + $0x708] sm:$0xff] %v686_v33 }
  0x83   : > { %689 = vst [vmem:[%s4592_s8 + $0x710] sm:$0xff] %v688_v34  ;;  %691 = vst [vmem:[%s4592_s8 + $0x718] sm:$0xff] %v690_v35  ;;  %v692_v36 = vld [vmem:[%s4584_s7 + $0x1c80] sm:$0xff]  ;;  %v694_v37 = vld [vmem:[%s4584_s7 + $0x1c88] sm:$0xff] }
  0x84   : > { %v696_v38 = vld [vmem:[%s4584_s7 + $0x1cc0] sm:$0xff]  ;;  %693 = vst [vmem:[%s4592_s8 + $0x720] sm:$0xff] %v692_v36  ;;  %695 = vst [vmem:[%s4592_s8 + $0x728] sm:$0xff] %v694_v37  ;;  %v698_v39 = vld [vmem:[%s4584_s7 + $0x1cc8] sm:$0xff] }
  0x85   : > { %697 = vst [vmem:[%s4592_s8 + $0x730] sm:$0xff] %v696_v38  ;;  %v700_v40 = vld [vmem:[%s4584_s7 + $0x1d00] sm:$0xff]  ;;  %v702_v41 = vld [vmem:[%s4584_s7 + $0x1d08] sm:$0xff]  ;;  %699 = vst [vmem:[%s4592_s8 + $0x738] sm:$0xff] %v698_v39 }
  0x86   : > { %701 = vst [vmem:[%s4592_s8 + $0x740] sm:$0xff] %v700_v40  ;;  %703 = vst [vmem:[%s4592_s8 + $0x748] sm:$0xff] %v702_v41  ;;  %v704_v42 = vld [vmem:[%s4584_s7 + $0x1d40] sm:$0xff]  ;;  %v706_v43 = vld [vmem:[%s4584_s7 + $0x1d48] sm:$0xff] }
  0x87   : > { %v708_v44 = vld [vmem:[%s4584_s7 + $0x1d80] sm:$0xff]  ;;  %705 = vst [vmem:[%s4592_s8 + $0x750] sm:$0xff] %v704_v42  ;;  %707 = vst [vmem:[%s4592_s8 + $0x758] sm:$0xff] %v706_v43  ;;  %v710_v45 = vld [vmem:[%s4584_s7 + $0x1d88] sm:$0xff] }
  0x88   : > { %709 = vst [vmem:[%s4592_s8 + $0x760] sm:$0xff] %v708_v44  ;;  %v712_v46 = vld [vmem:[%s4584_s7 + $0x1dc0] sm:$0xff]  ;;  %v714_v47 = vld [vmem:[%s4584_s7 + $0x1dc8] sm:$0xff]  ;;  %711 = vst [vmem:[%s4592_s8 + $0x768] sm:$0xff] %v710_v45 }
  0x89   : > { %713 = vst [vmem:[%s4592_s8 + $0x770] sm:$0xff] %v712_v46  ;;  %715 = vst [vmem:[%s4592_s8 + $0x778] sm:$0xff] %v714_v47  ;;  %v716_v48 = vld [vmem:[%s4584_s7 + $0x1e00] sm:$0xff]  ;;  %v718_v49 = vld [vmem:[%s4584_s7 + $0x1e08] sm:$0xff] }
  0x8a   : > { %v720_v50 = vld [vmem:[%s4584_s7 + $0x1e40] sm:$0xff]  ;;  %717 = vst [vmem:[%s4592_s8 + $0x780] sm:$0xff] %v716_v48  ;;  %719 = vst [vmem:[%s4592_s8 + $0x788] sm:$0xff] %v718_v49  ;;  %v722_v51 = vld [vmem:[%s4584_s7 + $0x1e48] sm:$0xff] }
  0x8b   : > { %721 = vst [vmem:[%s4592_s8 + $0x790] sm:$0xff] %v720_v50  ;;  %v724_v52 = vld [vmem:[%s4584_s7 + $0x1e80] sm:$0xff]  ;;  %v726_v53 = vld [vmem:[%s4584_s7 + $0x1e88] sm:$0xff]  ;;  %723 = vst [vmem:[%s4592_s8 + $0x798] sm:$0xff] %v722_v51 }
  0x8c   : > { %725 = vst [vmem:[%s4592_s8 + $0x7a0] sm:$0xff] %v724_v52  ;;  %727 = vst [vmem:[%s4592_s8 + $0x7a8] sm:$0xff] %v726_v53  ;;  %v728_v54 = vld [vmem:[%s4584_s7 + $0x1ec0] sm:$0xff]  ;;  %v730_v55 = vld [vmem:[%s4584_s7 + $0x1ec8] sm:$0xff] }
  0x8d   : > { %v732_v56 = vld [vmem:[%s4584_s7 + $0x1f00] sm:$0xff]  ;;  %729 = vst [vmem:[%s4592_s8 + $0x7b0] sm:$0xff] %v728_v54  ;;  %731 = vst [vmem:[%s4592_s8 + $0x7b8] sm:$0xff] %v730_v55  ;;  %v734_v57 = vld [vmem:[%s4584_s7 + $0x1f08] sm:$0xff] }
  0x8e   : > { %733 = vst [vmem:[%s4592_s8 + $0x7c0] sm:$0xff] %v732_v56  ;;  %v736_v58 = vld [vmem:[%s4584_s7 + $0x1f40] sm:$0xff]  ;;  %v738_v59 = vld [vmem:[%s4584_s7 + $0x1f48] sm:$0xff]  ;;  %735 = vst [vmem:[%s4592_s8 + $0x7c8] sm:$0xff] %v734_v57 }
  0x8f   : > { %737 = vst [vmem:[%s4592_s8 + $0x7d0] sm:$0xff] %v736_v58  ;;  %739 = vst [vmem:[%s4592_s8 + $0x7d8] sm:$0xff] %v738_v59  ;;  %v740_v60 = vld [vmem:[%s4584_s7 + $0x1f80] sm:$0xff]  ;;  %v742_v61 = vld [vmem:[%s4584_s7 + $0x1f88] sm:$0xff] }
  0x90   : > { %v744_v62 = vld [vmem:[%s4584_s7 + $0x1fc0] sm:$0xff]  ;;  %741 = vst [vmem:[%s4592_s8 + $0x7e0] sm:$0xff] %v740_v60  ;;  %743 = vst [vmem:[%s4592_s8 + $0x7e8] sm:$0xff] %v742_v61  ;;  %v746_v63 = vld [vmem:[%s4584_s7 + $0x1fc8] sm:$0xff] }
  0x91   : > { %745 = vst [vmem:[%s4592_s8 + $0x7f0] sm:$0xff] %v744_v62  ;;  %v748_v0 = vld [vmem:[%s4584_s7 + $0x2000] sm:$0xff]  ;;  %v750_v1 = vld [vmem:[%s4584_s7 + $0x2008] sm:$0xff]  ;;  %747 = vst [vmem:[%s4592_s8 + $0x7f8] sm:$0xff] %v746_v63 }
  0x92   : > { %749 = vst [vmem:[%s4592_s8 + $0x800] sm:$0xff] %v748_v0  ;;  %751 = vst [vmem:[%s4592_s8 + $0x808] sm:$0xff] %v750_v1  ;;  %v752_v2 = vld [vmem:[%s4584_s7 + $0x2040] sm:$0xff]  ;;  %v754_v3 = vld [vmem:[%s4584_s7 + $0x2048] sm:$0xff] }
  0x93   : > { %v756_v4 = vld [vmem:[%s4584_s7 + $0x2080] sm:$0xff]  ;;  %753 = vst [vmem:[%s4592_s8 + $0x810] sm:$0xff] %v752_v2  ;;  %755 = vst [vmem:[%s4592_s8 + $0x818] sm:$0xff] %v754_v3  ;;  %v758_v5 = vld [vmem:[%s4584_s7 + $0x2088] sm:$0xff] }
  0x94   : > { %757 = vst [vmem:[%s4592_s8 + $0x820] sm:$0xff] %v756_v4  ;;  %v760_v6 = vld [vmem:[%s4584_s7 + $0x20c0] sm:$0xff]  ;;  %v762_v7 = vld [vmem:[%s4584_s7 + $0x20c8] sm:$0xff]  ;;  %759 = vst [vmem:[%s4592_s8 + $0x828] sm:$0xff] %v758_v5 }
  0x95   : > { %761 = vst [vmem:[%s4592_s8 + $0x830] sm:$0xff] %v760_v6  ;;  %763 = vst [vmem:[%s4592_s8 + $0x838] sm:$0xff] %v762_v7  ;;  %v764_v8 = vld [vmem:[%s4584_s7 + $0x2100] sm:$0xff]  ;;  %v766_v9 = vld [vmem:[%s4584_s7 + $0x2108] sm:$0xff] }
  0x96   : > { %v768_v10 = vld [vmem:[%s4584_s7 + $0x2140] sm:$0xff]  ;;  %765 = vst [vmem:[%s4592_s8 + $0x840] sm:$0xff] %v764_v8  ;;  %767 = vst [vmem:[%s4592_s8 + $0x848] sm:$0xff] %v766_v9  ;;  %v770_v11 = vld [vmem:[%s4584_s7 + $0x2148] sm:$0xff] }
  0x97   : > { %769 = vst [vmem:[%s4592_s8 + $0x850] sm:$0xff] %v768_v10  ;;  %v772_v12 = vld [vmem:[%s4584_s7 + $0x2180] sm:$0xff]  ;;  %v774_v13 = vld [vmem:[%s4584_s7 + $0x2188] sm:$0xff]  ;;  %771 = vst [vmem:[%s4592_s8 + $0x858] sm:$0xff] %v770_v11 }
  0x98   : > { %773 = vst [vmem:[%s4592_s8 + $0x860] sm:$0xff] %v772_v12  ;;  %775 = vst [vmem:[%s4592_s8 + $0x868] sm:$0xff] %v774_v13  ;;  %v776_v14 = vld [vmem:[%s4584_s7 + $0x21c0] sm:$0xff]  ;;  %v778_v15 = vld [vmem:[%s4584_s7 + $0x21c8] sm:$0xff] }
  0x99   : > { %v780_v16 = vld [vmem:[%s4584_s7 + $0x2200] sm:$0xff]  ;;  %777 = vst [vmem:[%s4592_s8 + $0x870] sm:$0xff] %v776_v14  ;;  %779 = vst [vmem:[%s4592_s8 + $0x878] sm:$0xff] %v778_v15  ;;  %v782_v17 = vld [vmem:[%s4584_s7 + $0x2208] sm:$0xff] }
  0x9a   : > { %781 = vst [vmem:[%s4592_s8 + $0x880] sm:$0xff] %v780_v16  ;;  %v784_v18 = vld [vmem:[%s4584_s7 + $0x2240] sm:$0xff]  ;;  %v786_v19 = vld [vmem:[%s4584_s7 + $0x2248] sm:$0xff]  ;;  %783 = vst [vmem:[%s4592_s8 + $0x888] sm:$0xff] %v782_v17 }
  0x9b   : > { %785 = vst [vmem:[%s4592_s8 + $0x890] sm:$0xff] %v784_v18  ;;  %787 = vst [vmem:[%s4592_s8 + $0x898] sm:$0xff] %v786_v19  ;;  %v788_v20 = vld [vmem:[%s4584_s7 + $0x2280] sm:$0xff]  ;;  %v790_v21 = vld [vmem:[%s4584_s7 + $0x2288] sm:$0xff] }
  0x9c   : > { %v792_v22 = vld [vmem:[%s4584_s7 + $0x22c0] sm:$0xff]  ;;  %789 = vst [vmem:[%s4592_s8 + $0x8a0] sm:$0xff] %v788_v20  ;;  %791 = vst [vmem:[%s4592_s8 + $0x8a8] sm:$0xff] %v790_v21  ;;  %v794_v23 = vld [vmem:[%s4584_s7 + $0x22c8] sm:$0xff] }
  0x9d   : > { %793 = vst [vmem:[%s4592_s8 + $0x8b0] sm:$0xff] %v792_v22  ;;  %v796_v24 = vld [vmem:[%s4584_s7 + $0x2300] sm:$0xff]  ;;  %v798_v25 = vld [vmem:[%s4584_s7 + $0x2308] sm:$0xff]  ;;  %795 = vst [vmem:[%s4592_s8 + $0x8b8] sm:$0xff] %v794_v23 }
  0x9e   : > { %797 = vst [vmem:[%s4592_s8 + $0x8c0] sm:$0xff] %v796_v24  ;;  %799 = vst [vmem:[%s4592_s8 + $0x8c8] sm:$0xff] %v798_v25  ;;  %v800_v26 = vld [vmem:[%s4584_s7 + $0x2340] sm:$0xff]  ;;  %v802_v27 = vld [vmem:[%s4584_s7 + $0x2348] sm:$0xff] }
  0x9f   : > { %v804_v28 = vld [vmem:[%s4584_s7 + $0x2380] sm:$0xff]  ;;  %801 = vst [vmem:[%s4592_s8 + $0x8d0] sm:$0xff] %v800_v26  ;;  %803 = vst [vmem:[%s4592_s8 + $0x8d8] sm:$0xff] %v802_v27  ;;  %v806_v29 = vld [vmem:[%s4584_s7 + $0x2388] sm:$0xff] }
  0xa0   : > { %805 = vst [vmem:[%s4592_s8 + $0x8e0] sm:$0xff] %v804_v28  ;;  %v808_v30 = vld [vmem:[%s4584_s7 + $0x23c0] sm:$0xff]  ;;  %v810_v31 = vld [vmem:[%s4584_s7 + $0x23c8] sm:$0xff]  ;;  %807 = vst [vmem:[%s4592_s8 + $0x8e8] sm:$0xff] %v806_v29 }
  0xa1   : > { %809 = vst [vmem:[%s4592_s8 + $0x8f0] sm:$0xff] %v808_v30  ;;  %811 = vst [vmem:[%s4592_s8 + $0x8f8] sm:$0xff] %v810_v31  ;;  %v812_v32 = vld [vmem:[%s4584_s7 + $0x2400] sm:$0xff]  ;;  %v814_v33 = vld [vmem:[%s4584_s7 + $0x2408] sm:$0xff] }
  0xa2   : > { %v816_v34 = vld [vmem:[%s4584_s7 + $0x2440] sm:$0xff]  ;;  %813 = vst [vmem:[%s4592_s8 + $0x900] sm:$0xff] %v812_v32  ;;  %815 = vst [vmem:[%s4592_s8 + $0x908] sm:$0xff] %v814_v33  ;;  %v818_v35 = vld [vmem:[%s4584_s7 + $0x2448] sm:$0xff] }
  0xa3   : > { %817 = vst [vmem:[%s4592_s8 + $0x910] sm:$0xff] %v816_v34  ;;  %v820_v36 = vld [vmem:[%s4584_s7 + $0x2480] sm:$0xff]  ;;  %v822_v37 = vld [vmem:[%s4584_s7 + $0x2488] sm:$0xff]  ;;  %819 = vst [vmem:[%s4592_s8 + $0x918] sm:$0xff] %v818_v35 }
  0xa4   : > { %821 = vst [vmem:[%s4592_s8 + $0x920] sm:$0xff] %v820_v36  ;;  %823 = vst [vmem:[%s4592_s8 + $0x928] sm:$0xff] %v822_v37  ;;  %v824_v38 = vld [vmem:[%s4584_s7 + $0x24c0] sm:$0xff]  ;;  %v826_v39 = vld [vmem:[%s4584_s7 + $0x24c8] sm:$0xff] }
  0xa5   : > { %v828_v40 = vld [vmem:[%s4584_s7 + $0x2500] sm:$0xff]  ;;  %825 = vst [vmem:[%s4592_s8 + $0x930] sm:$0xff] %v824_v38  ;;  %827 = vst [vmem:[%s4592_s8 + $0x938] sm:$0xff] %v826_v39  ;;  %v830_v41 = vld [vmem:[%s4584_s7 + $0x2508] sm:$0xff] }
  0xa6   : > { %829 = vst [vmem:[%s4592_s8 + $0x940] sm:$0xff] %v828_v40  ;;  %v832_v42 = vld [vmem:[%s4584_s7 + $0x2540] sm:$0xff]  ;;  %v834_v43 = vld [vmem:[%s4584_s7 + $0x2548] sm:$0xff]  ;;  %831 = vst [vmem:[%s4592_s8 + $0x948] sm:$0xff] %v830_v41 }
  0xa7   : > { %833 = vst [vmem:[%s4592_s8 + $0x950] sm:$0xff] %v832_v42  ;;  %835 = vst [vmem:[%s4592_s8 + $0x958] sm:$0xff] %v834_v43  ;;  %v836_v44 = vld [vmem:[%s4584_s7 + $0x2580] sm:$0xff]  ;;  %v838_v45 = vld [vmem:[%s4584_s7 + $0x2588] sm:$0xff] }
  0xa8   : > { %v840_v46 = vld [vmem:[%s4584_s7 + $0x25c0] sm:$0xff]  ;;  %837 = vst [vmem:[%s4592_s8 + $0x960] sm:$0xff] %v836_v44  ;;  %839 = vst [vmem:[%s4592_s8 + $0x968] sm:$0xff] %v838_v45  ;;  %v842_v47 = vld [vmem:[%s4584_s7 + $0x25c8] sm:$0xff] }
  0xa9   : > { %841 = vst [vmem:[%s4592_s8 + $0x970] sm:$0xff] %v840_v46  ;;  %v844_v48 = vld [vmem:[%s4584_s7 + $0x2600] sm:$0xff]  ;;  %v846_v49 = vld [vmem:[%s4584_s7 + $0x2608] sm:$0xff]  ;;  %843 = vst [vmem:[%s4592_s8 + $0x978] sm:$0xff] %v842_v47 }
  0xaa   : > { %845 = vst [vmem:[%s4592_s8 + $0x980] sm:$0xff] %v844_v48  ;;  %847 = vst [vmem:[%s4592_s8 + $0x988] sm:$0xff] %v846_v49  ;;  %v848_v50 = vld [vmem:[%s4584_s7 + $0x2640] sm:$0xff]  ;;  %v850_v51 = vld [vmem:[%s4584_s7 + $0x2648] sm:$0xff] }
  0xab   : > { %v852_v52 = vld [vmem:[%s4584_s7 + $0x2680] sm:$0xff]  ;;  %849 = vst [vmem:[%s4592_s8 + $0x990] sm:$0xff] %v848_v50  ;;  %851 = vst [vmem:[%s4592_s8 + $0x998] sm:$0xff] %v850_v51  ;;  %v854_v53 = vld [vmem:[%s4584_s7 + $0x2688] sm:$0xff] }
  0xac   : > { %853 = vst [vmem:[%s4592_s8 + $0x9a0] sm:$0xff] %v852_v52  ;;  %v856_v54 = vld [vmem:[%s4584_s7 + $0x26c0] sm:$0xff]  ;;  %v858_v55 = vld [vmem:[%s4584_s7 + $0x26c8] sm:$0xff]  ;;  %855 = vst [vmem:[%s4592_s8 + $0x9a8] sm:$0xff] %v854_v53 }
  0xad   : > { %857 = vst [vmem:[%s4592_s8 + $0x9b0] sm:$0xff] %v856_v54  ;;  %859 = vst [vmem:[%s4592_s8 + $0x9b8] sm:$0xff] %v858_v55  ;;  %v860_v56 = vld [vmem:[%s4584_s7 + $0x2700] sm:$0xff]  ;;  %v862_v57 = vld [vmem:[%s4584_s7 + $0x2708] sm:$0xff] }
  0xae   : > { %v864_v58 = vld [vmem:[%s4584_s7 + $0x2740] sm:$0xff]  ;;  %861 = vst [vmem:[%s4592_s8 + $0x9c0] sm:$0xff] %v860_v56  ;;  %863 = vst [vmem:[%s4592_s8 + $0x9c8] sm:$0xff] %v862_v57  ;;  %v866_v59 = vld [vmem:[%s4584_s7 + $0x2748] sm:$0xff] }
  0xaf   : > { %865 = vst [vmem:[%s4592_s8 + $0x9d0] sm:$0xff] %v864_v58  ;;  %v868_v60 = vld [vmem:[%s4584_s7 + $0x2780] sm:$0xff]  ;;  %v870_v61 = vld [vmem:[%s4584_s7 + $0x2788] sm:$0xff]  ;;  %867 = vst [vmem:[%s4592_s8 + $0x9d8] sm:$0xff] %v866_v59 }
  0xb0   : > { %869 = vst [vmem:[%s4592_s8 + $0x9e0] sm:$0xff] %v868_v60  ;;  %871 = vst [vmem:[%s4592_s8 + $0x9e8] sm:$0xff] %v870_v61  ;;  %v872_v62 = vld [vmem:[%s4584_s7 + $0x27c0] sm:$0xff]  ;;  %v874_v63 = vld [vmem:[%s4584_s7 + $0x27c8] sm:$0xff] }
  0xb1   : > { %v876_v0 = vld [vmem:[%s4584_s7 + $0x2800] sm:$0xff]  ;;  %873 = vst [vmem:[%s4592_s8 + $0x9f0] sm:$0xff] %v872_v62  ;;  %875 = vst [vmem:[%s4592_s8 + $0x9f8] sm:$0xff] %v874_v63  ;;  %v878_v1 = vld [vmem:[%s4584_s7 + $0x2808] sm:$0xff] }
  0xb2   : > { %877 = vst [vmem:[%s4592_s8 + $0xa00] sm:$0xff] %v876_v0  ;;  %v880_v2 = vld [vmem:[%s4584_s7 + $0x2840] sm:$0xff]  ;;  %v882_v3 = vld [vmem:[%s4584_s7 + $0x2848] sm:$0xff]  ;;  %879 = vst [vmem:[%s4592_s8 + $0xa08] sm:$0xff] %v878_v1 }
  0xb3   : > { %881 = vst [vmem:[%s4592_s8 + $0xa10] sm:$0xff] %v880_v2  ;;  %883 = vst [vmem:[%s4592_s8 + $0xa18] sm:$0xff] %v882_v3  ;;  %v884_v4 = vld [vmem:[%s4584_s7 + $0x2880] sm:$0xff]  ;;  %v886_v5 = vld [vmem:[%s4584_s7 + $0x2888] sm:$0xff] }
  0xb4   : > { %v888_v6 = vld [vmem:[%s4584_s7 + $0x28c0] sm:$0xff]  ;;  %885 = vst [vmem:[%s4592_s8 + $0xa20] sm:$0xff] %v884_v4  ;;  %887 = vst [vmem:[%s4592_s8 + $0xa28] sm:$0xff] %v886_v5  ;;  %v890_v7 = vld [vmem:[%s4584_s7 + $0x28c8] sm:$0xff] }
  0xb5   : > { %889 = vst [vmem:[%s4592_s8 + $0xa30] sm:$0xff] %v888_v6  ;;  %v892_v8 = vld [vmem:[%s4584_s7 + $0x2900] sm:$0xff]  ;;  %v894_v9 = vld [vmem:[%s4584_s7 + $0x2908] sm:$0xff]  ;;  %891 = vst [vmem:[%s4592_s8 + $0xa38] sm:$0xff] %v890_v7 }
  0xb6   : > { %893 = vst [vmem:[%s4592_s8 + $0xa40] sm:$0xff] %v892_v8  ;;  %895 = vst [vmem:[%s4592_s8 + $0xa48] sm:$0xff] %v894_v9  ;;  %v896_v10 = vld [vmem:[%s4584_s7 + $0x2940] sm:$0xff]  ;;  %v898_v11 = vld [vmem:[%s4584_s7 + $0x2948] sm:$0xff] }
  0xb7   : > { %v900_v12 = vld [vmem:[%s4584_s7 + $0x2980] sm:$0xff]  ;;  %897 = vst [vmem:[%s4592_s8 + $0xa50] sm:$0xff] %v896_v10  ;;  %899 = vst [vmem:[%s4592_s8 + $0xa58] sm:$0xff] %v898_v11  ;;  %v902_v13 = vld [vmem:[%s4584_s7 + $0x2988] sm:$0xff] }
  0xb8   : > { %901 = vst [vmem:[%s4592_s8 + $0xa60] sm:$0xff] %v900_v12  ;;  %v904_v14 = vld [vmem:[%s4584_s7 + $0x29c0] sm:$0xff]  ;;  %v906_v15 = vld [vmem:[%s4584_s7 + $0x29c8] sm:$0xff]  ;;  %903 = vst [vmem:[%s4592_s8 + $0xa68] sm:$0xff] %v902_v13 }
  0xb9   : > { %905 = vst [vmem:[%s4592_s8 + $0xa70] sm:$0xff] %v904_v14  ;;  %907 = vst [vmem:[%s4592_s8 + $0xa78] sm:$0xff] %v906_v15  ;;  %v908_v16 = vld [vmem:[%s4584_s7 + $0x2a00] sm:$0xff]  ;;  %v910_v17 = vld [vmem:[%s4584_s7 + $0x2a08] sm:$0xff] }
  0xba   : > { %v912_v18 = vld [vmem:[%s4584_s7 + $0x2a40] sm:$0xff]  ;;  %909 = vst [vmem:[%s4592_s8 + $0xa80] sm:$0xff] %v908_v16  ;;  %911 = vst [vmem:[%s4592_s8 + $0xa88] sm:$0xff] %v910_v17  ;;  %v914_v19 = vld [vmem:[%s4584_s7 + $0x2a48] sm:$0xff] }
  0xbb   : > { %913 = vst [vmem:[%s4592_s8 + $0xa90] sm:$0xff] %v912_v18  ;;  %v916_v20 = vld [vmem:[%s4584_s7 + $0x2a80] sm:$0xff]  ;;  %v918_v21 = vld [vmem:[%s4584_s7 + $0x2a88] sm:$0xff]  ;;  %915 = vst [vmem:[%s4592_s8 + $0xa98] sm:$0xff] %v914_v19 }
  0xbc   : > { %917 = vst [vmem:[%s4592_s8 + $0xaa0] sm:$0xff] %v916_v20  ;;  %919 = vst [vmem:[%s4592_s8 + $0xaa8] sm:$0xff] %v918_v21  ;;  %v920_v22 = vld [vmem:[%s4584_s7 + $0x2ac0] sm:$0xff]  ;;  %v922_v23 = vld [vmem:[%s4584_s7 + $0x2ac8] sm:$0xff] }
  0xbd   : > { %v924_v24 = vld [vmem:[%s4584_s7 + $0x2b00] sm:$0xff]  ;;  %921 = vst [vmem:[%s4592_s8 + $0xab0] sm:$0xff] %v920_v22  ;;  %923 = vst [vmem:[%s4592_s8 + $0xab8] sm:$0xff] %v922_v23  ;;  %v926_v25 = vld [vmem:[%s4584_s7 + $0x2b08] sm:$0xff] }
  0xbe   : > { %925 = vst [vmem:[%s4592_s8 + $0xac0] sm:$0xff] %v924_v24  ;;  %v928_v26 = vld [vmem:[%s4584_s7 + $0x2b40] sm:$0xff]  ;;  %v930_v27 = vld [vmem:[%s4584_s7 + $0x2b48] sm:$0xff]  ;;  %927 = vst [vmem:[%s4592_s8 + $0xac8] sm:$0xff] %v926_v25 }
  0xbf   : > { %929 = vst [vmem:[%s4592_s8 + $0xad0] sm:$0xff] %v928_v26  ;;  %931 = vst [vmem:[%s4592_s8 + $0xad8] sm:$0xff] %v930_v27  ;;  %v932_v28 = vld [vmem:[%s4584_s7 + $0x2b80] sm:$0xff]  ;;  %v934_v29 = vld [vmem:[%s4584_s7 + $0x2b88] sm:$0xff] }
  0xc0   : > { %v936_v30 = vld [vmem:[%s4584_s7 + $0x2bc0] sm:$0xff]  ;;  %933 = vst [vmem:[%s4592_s8 + $0xae0] sm:$0xff] %v932_v28  ;;  %935 = vst [vmem:[%s4592_s8 + $0xae8] sm:$0xff] %v934_v29  ;;  %v938_v31 = vld [vmem:[%s4584_s7 + $0x2bc8] sm:$0xff] }
  0xc1   : > { %937 = vst [vmem:[%s4592_s8 + $0xaf0] sm:$0xff] %v936_v30  ;;  %v940_v32 = vld [vmem:[%s4584_s7 + $0x2c00] sm:$0xff]  ;;  %v942_v33 = vld [vmem:[%s4584_s7 + $0x2c08] sm:$0xff]  ;;  %939 = vst [vmem:[%s4592_s8 + $0xaf8] sm:$0xff] %v938_v31 }
  0xc2   : > { %941 = vst [vmem:[%s4592_s8 + $0xb00] sm:$0xff] %v940_v32  ;;  %943 = vst [vmem:[%s4592_s8 + $0xb08] sm:$0xff] %v942_v33  ;;  %v944_v34 = vld [vmem:[%s4584_s7 + $0x2c40] sm:$0xff]  ;;  %v946_v35 = vld [vmem:[%s4584_s7 + $0x2c48] sm:$0xff] }
  0xc3   : > { %v948_v36 = vld [vmem:[%s4584_s7 + $0x2c80] sm:$0xff]  ;;  %945 = vst [vmem:[%s4592_s8 + $0xb10] sm:$0xff] %v944_v34  ;;  %947 = vst [vmem:[%s4592_s8 + $0xb18] sm:$0xff] %v946_v35  ;;  %v950_v37 = vld [vmem:[%s4584_s7 + $0x2c88] sm:$0xff] }
  0xc4   : > { %949 = vst [vmem:[%s4592_s8 + $0xb20] sm:$0xff] %v948_v36  ;;  %v952_v38 = vld [vmem:[%s4584_s7 + $0x2cc0] sm:$0xff]  ;;  %v954_v39 = vld [vmem:[%s4584_s7 + $0x2cc8] sm:$0xff]  ;;  %951 = vst [vmem:[%s4592_s8 + $0xb28] sm:$0xff] %v950_v37 }
  0xc5   : > { %953 = vst [vmem:[%s4592_s8 + $0xb30] sm:$0xff] %v952_v38  ;;  %955 = vst [vmem:[%s4592_s8 + $0xb38] sm:$0xff] %v954_v39  ;;  %v956_v40 = vld [vmem:[%s4584_s7 + $0x2d00] sm:$0xff]  ;;  %v958_v41 = vld [vmem:[%s4584_s7 + $0x2d08] sm:$0xff] }
  0xc6   : > { %v960_v42 = vld [vmem:[%s4584_s7 + $0x2d40] sm:$0xff]  ;;  %957 = vst [vmem:[%s4592_s8 + $0xb40] sm:$0xff] %v956_v40  ;;  %959 = vst [vmem:[%s4592_s8 + $0xb48] sm:$0xff] %v958_v41  ;;  %v962_v43 = vld [vmem:[%s4584_s7 + $0x2d48] sm:$0xff] }
  0xc7   : > { %961 = vst [vmem:[%s4592_s8 + $0xb50] sm:$0xff] %v960_v42  ;;  %v964_v44 = vld [vmem:[%s4584_s7 + $0x2d80] sm:$0xff]  ;;  %v966_v45 = vld [vmem:[%s4584_s7 + $0x2d88] sm:$0xff]  ;;  %963 = vst [vmem:[%s4592_s8 + $0xb58] sm:$0xff] %v962_v43 }
  0xc8   : > { %965 = vst [vmem:[%s4592_s8 + $0xb60] sm:$0xff] %v964_v44  ;;  %967 = vst [vmem:[%s4592_s8 + $0xb68] sm:$0xff] %v966_v45  ;;  %v968_v46 = vld [vmem:[%s4584_s7 + $0x2dc0] sm:$0xff]  ;;  %v970_v47 = vld [vmem:[%s4584_s7 + $0x2dc8] sm:$0xff] }
  0xc9   : > { %v972_v48 = vld [vmem:[%s4584_s7 + $0x2e00] sm:$0xff]  ;;  %969 = vst [vmem:[%s4592_s8 + $0xb70] sm:$0xff] %v968_v46  ;;  %971 = vst [vmem:[%s4592_s8 + $0xb78] sm:$0xff] %v970_v47  ;;  %v974_v49 = vld [vmem:[%s4584_s7 + $0x2e08] sm:$0xff] }
  0xca   : > { %973 = vst [vmem:[%s4592_s8 + $0xb80] sm:$0xff] %v972_v48  ;;  %v976_v50 = vld [vmem:[%s4584_s7 + $0x2e40] sm:$0xff]  ;;  %v978_v51 = vld [vmem:[%s4584_s7 + $0x2e48] sm:$0xff]  ;;  %975 = vst [vmem:[%s4592_s8 + $0xb88] sm:$0xff] %v974_v49 }
  0xcb   : > { %977 = vst [vmem:[%s4592_s8 + $0xb90] sm:$0xff] %v976_v50  ;;  %979 = vst [vmem:[%s4592_s8 + $0xb98] sm:$0xff] %v978_v51  ;;  %v980_v52 = vld [vmem:[%s4584_s7 + $0x2e80] sm:$0xff]  ;;  %v982_v53 = vld [vmem:[%s4584_s7 + $0x2e88] sm:$0xff] }
  0xcc   : > { %v984_v54 = vld [vmem:[%s4584_s7 + $0x2ec0] sm:$0xff]  ;;  %981 = vst [vmem:[%s4592_s8 + $0xba0] sm:$0xff] %v980_v52  ;;  %983 = vst [vmem:[%s4592_s8 + $0xba8] sm:$0xff] %v982_v53  ;;  %v986_v55 = vld [vmem:[%s4584_s7 + $0x2ec8] sm:$0xff] }
  0xcd   : > { %985 = vst [vmem:[%s4592_s8 + $0xbb0] sm:$0xff] %v984_v54  ;;  %v988_v56 = vld [vmem:[%s4584_s7 + $0x2f00] sm:$0xff]  ;;  %v990_v57 = vld [vmem:[%s4584_s7 + $0x2f08] sm:$0xff]  ;;  %987 = vst [vmem:[%s4592_s8 + $0xbb8] sm:$0xff] %v986_v55 }
  0xce   : > { %989 = vst [vmem:[%s4592_s8 + $0xbc0] sm:$0xff] %v988_v56  ;;  %991 = vst [vmem:[%s4592_s8 + $0xbc8] sm:$0xff] %v990_v57  ;;  %v992_v58 = vld [vmem:[%s4584_s7 + $0x2f40] sm:$0xff]  ;;  %v994_v59 = vld [vmem:[%s4584_s7 + $0x2f48] sm:$0xff] }
  0xcf   : > { %v996_v60 = vld [vmem:[%s4584_s7 + $0x2f80] sm:$0xff]  ;;  %993 = vst [vmem:[%s4592_s8 + $0xbd0] sm:$0xff] %v992_v58  ;;  %995 = vst [vmem:[%s4592_s8 + $0xbd8] sm:$0xff] %v994_v59  ;;  %v998_v61 = vld [vmem:[%s4584_s7 + $0x2f88] sm:$0xff] }
  0xd0   : > { %997 = vst [vmem:[%s4592_s8 + $0xbe0] sm:$0xff] %v996_v60  ;;  %v1000_v62 = vld [vmem:[%s4584_s7 + $0x2fc0] sm:$0xff]  ;;  %v1002_v63 = vld [vmem:[%s4584_s7 + $0x2fc8] sm:$0xff]  ;;  %999 = vst [vmem:[%s4592_s8 + $0xbe8] sm:$0xff] %v998_v61 }
  0xd1   : > { %1001 = vst [vmem:[%s4592_s8 + $0xbf0] sm:$0xff] %v1000_v62  ;;  %1003 = vst [vmem:[%s4592_s8 + $0xbf8] sm:$0xff] %v1002_v63  ;;  %v1004_v0 = vld [vmem:[%s4584_s7 + $0x3000] sm:$0xff]  ;;  %v1006_v1 = vld [vmem:[%s4584_s7 + $0x3008] sm:$0xff] }
  0xd2   : > { %v1008_v2 = vld [vmem:[%s4584_s7 + $0x3040] sm:$0xff]  ;;  %1005 = vst [vmem:[%s4592_s8 + $0xc00] sm:$0xff] %v1004_v0  ;;  %1007 = vst [vmem:[%s4592_s8 + $0xc08] sm:$0xff] %v1006_v1  ;;  %v1010_v3 = vld [vmem:[%s4584_s7 + $0x3048] sm:$0xff] }
  0xd3   : > { %1009 = vst [vmem:[%s4592_s8 + $0xc10] sm:$0xff] %v1008_v2  ;;  %v1012_v4 = vld [vmem:[%s4584_s7 + $0x3080] sm:$0xff]  ;;  %v1014_v5 = vld [vmem:[%s4584_s7 + $0x3088] sm:$0xff]  ;;  %1011 = vst [vmem:[%s4592_s8 + $0xc18] sm:$0xff] %v1010_v3 }
  0xd4   : > { %1013 = vst [vmem:[%s4592_s8 + $0xc20] sm:$0xff] %v1012_v4  ;;  %1015 = vst [vmem:[%s4592_s8 + $0xc28] sm:$0xff] %v1014_v5  ;;  %v1016_v6 = vld [vmem:[%s4584_s7 + $0x30c0] sm:$0xff]  ;;  %v1018_v7 = vld [vmem:[%s4584_s7 + $0x30c8] sm:$0xff] }
  0xd5   : > { %1017 = vst [vmem:[%s4592_s8 + $0xc30] sm:$0xff] %v1016_v6  ;;  %1019 = vst [vmem:[%s4592_s8 + $0xc38] sm:$0xff] %v1018_v7 }
  0xd6 PF: > { %p4114_p6 = scmp.ge.s32.totalorder %s4507_s22, 1  ;;  %p1062_p7 = scmp.lt.s32.totalorder %s4507_s22, 5 }
  0xd8   : > { %p1063_p8 = pnand %p4114_p6, %p1062_p7 }
  0xd9   : > { %s1069_s9 = sand.u32 (!%p1063_p8), 1, %s4491_s18   ;;  %s4115_s10 = sshll.u32 (!%p1063_p8), %s4499_s20, 1 }
  0xda   : > { %1066 = sbr.rel (%p1063_p8) target bundleno = 1492 (0x5d4), region = 59  ;;  %p1122_p9 = scmp.lt.s32.totalorder (!%p1063_p8), %s4115_s10, 7 }
  0xdb   : > { %s4305_s11 = smul.u32 (!%p1063_p8), 3136, %s1069_s9  ;;  %s4117_s12 = sshll.u32 (!%p1063_p8), %s4499_s20, 5 }
  0xdc   : > { %p1140_p10 = scmp.lt.s32.totalorder (!%p1063_p8), %s4117_s12, 127  ;;  %p4120_p11 = scmp.ne.s32.totalorder (!%p1063_p8), %s4499_s20, 0 }
  0xdd   : > { %s5392_s29 = scalar_lea.vmem (!%p1063_p8), [#allocation3], %s4305_s11 }
  0xe1   : > { %s6017_s10 = smov (!%p1122_p9, %s4115_s10), 7  ;;  %s6019_s12 = smov (!%p1140_p10, %s4117_s12), 127 }
  0xe2   : > { %s1124_s15 = scalar_lea.vmem %s6006_s2, %s6017_s10  ;;  %s1133_s24 = scalar_lea.vmem %s6007_s3, %s6017_s10  ;;  %v4509_v8 = vmov (!%p4120_p11), 0.0  }
  0xe3   : > { %s4207_s25 = sshll.u32 %s6019_s12, 3  ;;  %1157 = sbr.rel (%p4120_p11) target bundleno = 234 (0xea), region = 67  ;;  %1158 = vst [vmem:[#allocation2] sm:$0xff] (!%p4120_p11), %v4509_v8  ;;  %1159 = vst [vmem:[#allocation2 + $0x8] sm:$0xff] (!%p4120_p11), %v4509_v8 }
  0xe4   : > { %s5390_s28 = scalar_lea.vmem %s6008_s4, %s4207_s25  ;;  %1160 = vst [vmem:[#allocation2 + $0x10] sm:$0xff] (!%p4120_p11), %v4509_v8  ;;  %1161 = vst [vmem:[#allocation2 + $0x18] sm:$0xff] (!%p4120_p11), %v4509_v8 }
  0xea PF: > { %v1163_v9 = vld [vmem:[%s5392_s29 + $0x8] sm:$0xff]  ;;  %v1162_v11 = vld [vmem:[%s5392_s29] sm:$0xff]  ;;  %v1165_v19 = vld [vmem:[%s5392_s29 + $0x18] sm:$0xff]  ;;  %p4202_p12 = scmp.ne.s32.totalorder %s4499_s20, 3 }
  0xeb   : > { %v1355_v10 = vld [vmem:[%s5392_s29 + $0x608] sm:$0xff]  ;;  %v1555_v12 = vunpack.c.l.s8.bf16 %v1163_v9  ;;  %v1557_v13 = vunpack.c.h.s8.bf16 %v1163_v9  ;;  %v1354_v16 = vld [vmem:[%s5392_s29 + $0x600] sm:$0xff]  ;;  %v1554_v17 = vunpack.c.l.s8.bf16 %v1162_v11  ;;  %v1357_v20 = vld [vmem:[%s5392_s29 + $0x618] sm:$0xff]  ;;  %v1556_v21 = vunpack.c.h.s8.bf16 %v1162_v11 }
  0xec   : > { %v1939_v14 = vunpack.c.l.s8.bf16 %v1355_v10  ;;  %v1941_v15 = vunpack.c.h.s8.bf16 %v1355_v10  ;;  %v1938_v18 = vunpack.c.l.s8.bf16 %v1354_v16  ;;  %v1940_v22 = vunpack.c.h.s8.bf16 %v1354_v16  ;;  %v1164_v25 = vld [vmem:[%s5392_s29 + $0x10] sm:$0xff]  ;;  %v1167_v31 = vld [vmem:[%s5392_s29 + $0x28] sm:$0xff]  ;;  %v1166_v38 = vld [vmem:[%s5392_s29 + $0x20] sm:$0xff] }
  0xed   : > { %2634 = vmatprep.subr.bf16.mxu1 %v1555_v12  ;;  %v1559_v23 = vunpack.c.l.s8.bf16 %v1165_v19  ;;  %v1943_v24 = vunpack.c.l.s8.bf16 %v1357_v20  ;;  %v1356_v26 = vld [vmem:[%s5392_s29 + $0x610] sm:$0xff]  ;;  %v1558_v27 = vunpack.c.l.s8.bf16 %v1164_v25  ;;  %v1561_v29 = vunpack.c.h.s8.bf16 %v1165_v19  ;;  %v1359_v32 = vld [vmem:[%s5392_s29 + $0x628] sm:$0xff]  ;;  %v1358_v39 = vld [vmem:[%s5392_s29 + $0x620] sm:$0xff] }
  0xee   : > { %3150 = vmatprep.subr.bf16.mxu0 %v1939_v14  ;;  %2635 = vmatpush1.bf16.msra.mxu1 %v1554_v17  ;;  %v1942_v28 = vunpack.c.l.s8.bf16 %v1356_v26  ;;  %v1945_v30 = vunpack.c.h.s8.bf16 %v1357_v20  ;;  %v4350_v33 = vld [vmem:[%s6004_s0 + $0x4] ss:$196 sps:$4 sm:$0xff]   ;;  %v1560_v34 = vunpack.c.h.s8.bf16 %v1164_v25  ;;  %v1944_v35 = vunpack.c.h.s8.bf16 %v1356_v26  ;;  %v1169_v45 = vld [vmem:[%s5392_s29 + $0x38] sm:$0xff]  ;;  %v1168_v51 = vld [vmem:[%s5392_s29 + $0x30] sm:$0xff] }
  0xef   : > { %3151 = vmatpush1.bf16.msra.mxu0 %v1938_v18  ;;  %2636 = vmatprep.subr.bf16.mxu1 %v1557_v13  ;;  %v1563_v36 = vunpack.c.l.s8.bf16 %v1167_v31  ;;  %v1947_v37 = vunpack.c.l.s8.bf16 %v1359_v32  ;;  %v4353_v40 = vld [vmem:[%s6004_s0 + $0x64] ss:$196 sps:$4 sm:$0xff]   ;;  %v1562_v41 = vunpack.c.l.s8.bf16 %v1166_v38  ;;  %v1946_v42 = vunpack.c.l.s8.bf16 %v1358_v39  ;;  %v1361_v46 = vld [vmem:[%s5392_s29 + $0x638] sm:$0xff]  ;;  %v1360_v52 = vld [vmem:[%s5392_s29 + $0x630] sm:$0xff] }
  0xf0   : > { %3152 = vmatprep.subr.bf16.mxu0 %v1941_v15  ;;  %2666 = vmatprep.mubr.bf16.mxu1 %v4350_v33  ;;  %v1565_v43 = vunpack.c.h.s8.bf16 %v1167_v31  ;;  %v1949_v44 = vunpack.c.h.s8.bf16 %v1359_v32  ;;  %v1564_v47 = vunpack.c.h.s8.bf16 %v1166_v38  ;;  %v1948_v48 = vunpack.c.h.s8.bf16 %v1358_v39  ;;  %v1171_v57 = vld [vmem:[%s5392_s29 + $0x48] sm:$0xff]  ;;  %v1170_v63 = vld [vmem:[%s5392_s29 + $0x40] sm:$0xff]  ;;  %v1173_v5 = vld [vmem:[%s5392_s29 + $0x58] sm:$0xff] }
  0xf1   : > { %3182 = vmatprep.mubr.bf16.mxu0 %v4353_v40  ;;  %v1567_v49 = vunpack.c.l.s8.bf16 %v1169_v45  ;;  %v1951_v50 = vunpack.c.l.s8.bf16 %v1361_v46  ;;  %v1566_v53 = vunpack.c.l.s8.bf16 %v1168_v51  ;;  %v1950_v54 = vunpack.c.l.s8.bf16 %v1360_v52  ;;  %v1363_v58 = vld [vmem:[%s5392_s29 + $0x648] sm:$0xff]  ;;  %v1362_v0 = vld [vmem:[%s5392_s29 + $0x640] sm:$0xff]  ;;  %v1365_v6 = vld [vmem:[%s5392_s29 + $0x658] sm:$0xff] }
  0xf2   : > { %2637 = vmatpush1.bf16.msra.mxu1 %v1556_v21  ;;  %v1569_v55 = vunpack.c.h.s8.bf16 %v1169_v45  ;;  %v1953_v56 = vunpack.c.h.s8.bf16 %v1361_v46  ;;  %v1568_v59 = vunpack.c.h.s8.bf16 %v1168_v51  ;;  %v1952_v60 = vunpack.c.h.s8.bf16 %v1360_v52  ;;  %v1172_v7 = vld [vmem:[%s5392_s29 + $0x50] sm:$0xff]  ;;  %v1175_v17 = vld [vmem:[%s5392_s29 + $0x68] sm:$0xff]  ;;  %v1174_v19 = vld [vmem:[%s5392_s29 + $0x60] sm:$0xff] }
  0xf3   : > { %3153 = vmatpush1.bf16.msra.mxu0 %v1940_v22  ;;  %2638 = vmatprep.subr.bf16.mxu1 %v1559_v23  ;;  %v1571_v61 = vunpack.c.l.s8.bf16 %v1171_v57  ;;  %v1955_v62 = vunpack.c.l.s8.bf16 %v1363_v58  ;;  %v1570_v1 = vunpack.c.l.s8.bf16 %v1170_v63  ;;  %v1954_v2 = vunpack.c.l.s8.bf16 %v1362_v0  ;;  %v1364_v8 = vld [vmem:[%s5392_s29 + $0x650] sm:$0xff]  ;;  %v1367_v18 = vld [vmem:[%s5392_s29 + $0x668] sm:$0xff]  ;;  %v1366_v20 = vld [vmem:[%s5392_s29 + $0x660] sm:$0xff] }
  0xf4   : > { %3154 = vmatprep.subr.bf16.mxu0 %v1943_v24  ;;  %v1573_v3 = vunpack.c.h.s8.bf16 %v1171_v57  ;;  %v1957_v4 = vunpack.c.h.s8.bf16 %v1363_v58  ;;  %v1572_v9 = vunpack.c.h.s8.bf16 %v1170_v63  ;;  %v1956_v10 = vunpack.c.h.s8.bf16 %v1362_v0  ;;  %v1176_v31 = vld [vmem:[%s5392_s29 + $0x70] sm:$0xff] }
  0xf5   : > { %v1575_v11 = vunpack.c.l.s8.bf16 %v1173_v5  ;;  %v1959_v12 = vunpack.c.l.s8.bf16 %v1365_v6  ;;  %v1574_v13 = vunpack.c.l.s8.bf16 %v1172_v7  ;;  %v1958_v14 = vunpack.c.l.s8.bf16 %v1364_v8  ;;  %v1368_v32 = vld [vmem:[%s5392_s29 + $0x670] sm:$0xff] }
  0xf6   : > { %2639 = vmatpush1.bf16.msra.mxu1 %v1558_v27  ;;  %v1577_v15 = vunpack.c.h.s8.bf16 %v1173_v5  ;;  %v1961_v16 = vunpack.c.h.s8.bf16 %v1365_v6  ;;  %v1576_v21 = vunpack.c.h.s8.bf16 %v1172_v7  ;;  %v1960_v22 = vunpack.c.h.s8.bf16 %v1364_v8  ;;  %v4356_v57 = vld [vmem:[%s6004_s0 + $0xc] ss:$196 sps:$4 sm:$0xff]  }
  0xf7   : > { %3155 = vmatpush1.bf16.msra.mxu0 %v1942_v28  ;;  %2640 = vmatprep.subr.bf16.mxu1 %v1561_v29  ;;  %v1579_v23 = vunpack.c.l.s8.bf16 %v1175_v17  ;;  %v1963_v24 = vunpack.c.l.s8.bf16 %v1367_v18  ;;  %v1578_v25 = vunpack.c.l.s8.bf16 %v1174_v19  ;;  %v1962_v26 = vunpack.c.l.s8.bf16 %v1366_v20  ;;  %v1177_v29 = vld [vmem:[%s5392_s29 + $0x78] sm:$0xff]  ;;  %v4359_v58 = vld [vmem:[%s6004_s0 + $0x6c] ss:$196 sps:$4 sm:$0xff]  }
  0xf8   : > { %3156 = vmatprep.subr.bf16.mxu0 %v1945_v30  ;;  %v1581_v27 = vunpack.c.h.s8.bf16 %v1175_v17  ;;  %v1965_v28 = vunpack.c.h.s8.bf16 %v1367_v18  ;;  %v1369_v30 = vld [vmem:[%s5392_s29 + $0x678] sm:$0xff]  ;;  %v1580_v33 = vunpack.c.h.s8.bf16 %v1174_v19  ;;  %v1966_v38 = vunpack.c.l.s8.bf16 %v1368_v32  ;;  %v1180_v63 = vld [vmem:[%s5392_s29 + $0x90] sm:$0xff]  ;;  %v1183_v5 = vld [vmem:[%s5392_s29 + $0xa8] sm:$0xff] }
  0xf9   : > { %v1585_v39 = vunpack.c.h.s8.bf16 %v1177_v29  ;;  %v1969_v40 = vunpack.c.h.s8.bf16 %v1369_v30  ;;  %v1584_v45 = vunpack.c.h.s8.bf16 %v1176_v31  ;;  %v1968_v46 = vunpack.c.h.s8.bf16 %v1368_v32  ;;  %v1372_v0 = vld [vmem:[%s5392_s29 + $0x690] sm:$0xff]  ;;  %v1375_v6 = vld [vmem:[%s5392_s29 + $0x6a8] sm:$0xff]  ;;  %v1185_v17 = vld [vmem:[%s5392_s29 + $0xb8] sm:$0xff] }
  0xfa   : > { %2641 = vmatpush1.bf16.msra.mxu1 %v1560_v34  ;;  %v1964_v34 = vunpack.c.h.s8.bf16 %v1366_v20  ;;  %v1592_v7 = vunpack.c.h.s8.bf16 %v1180_v63  ;;  %v1976_v8 = vunpack.c.h.s8.bf16 %v1372_v0  ;;  %v1377_v18 = vld [vmem:[%s5392_s29 + $0x6b8] sm:$0xff] }
  0xfb   : > { %3157 = vmatpush1.bf16.msra.mxu0 %v1944_v35  ;;  %2642 = vmatprep.subr.bf16.mxu1 %v1563_v36  ;;  %v1583_v35 = vunpack.c.l.s8.bf16 %v1177_v29  ;;  %v1967_v36 = vunpack.c.l.s8.bf16 %v1369_v30  ;;  %v1187_v29 = vld [vmem:[%s5392_s29 + $0xc8] sm:$0xff] }
  0xfc   : > { %3158 = vmatprep.subr.bf16.mxu0 %v1947_v37  ;;  %v1582_v37 = vunpack.c.l.s8.bf16 %v1176_v31  ;;  %v1379_v30 = vld [vmem:[%s5392_s29 + $0x6c8] sm:$0xff] }
  0xfe   : > { %2643 = vmatpush1.bf16.msra.mxu1 %v1562_v41  ;;  %v1179_v41 = vld [vmem:[%s5392_s29 + $0x88] sm:$0xff] }
  0xff   : > { %3159 = vmatpush1.bf16.msra.mxu0 %v1946_v42  ;;  %2644 = vmatprep.subr.bf16.mxu1 %v1565_v43  ;;  %v1371_v42 = vld [vmem:[%s5392_s29 + $0x688] sm:$0xff]  ;;  %v1178_v43 = vld [vmem:[%s5392_s29 + $0x80] sm:$0xff] }
 0x100   : > { %3160 = vmatprep.subr.bf16.mxu0 %v1949_v44  ;;  %v1370_v44 = vld [vmem:[%s5392_s29 + $0x680] sm:$0xff]  ;;  %v1586_v51 = vunpack.c.l.s8.bf16 %v1178_v43 }
 0x101   : > { %v1970_v52 = vunpack.c.l.s8.bf16 %v1370_v44 }
 0x102   : > { %2645 = vmatpush1.bf16.msra.mxu1 %v1564_v47  ;;  %v1587_v47 = vunpack.c.l.s8.bf16 %v1179_v41 }
 0x103   : > { %3161 = vmatpush1.bf16.msra.mxu0 %v1948_v48  ;;  %2646 = vmatprep.subr.bf16.mxu1 %v1567_v49  ;;  %v1971_v48 = vunpack.c.l.s8.bf16 %v1371_v42  ;;  %v4348_v49 = vld [vmem:[%s6004_s0] ss:$196 sps:$4 sm:$0xff]  }
 0x104   : > { %3162 = vmatprep.subr.bf16.mxu0 %v1951_v50  ;;  %v4351_v50 = vld [vmem:[%s6004_s0 + $0x60] ss:$196 sps:$4 sm:$0xff]  }
 0x106   : > { %2647 = vmatpush1.bf16.msra.mxu1 %v1566_v53  ;;  %v1589_v53 = vunpack.c.h.s8.bf16 %v1179_v41  ;;  %v1189_v41 = vld [vmem:[%s5392_s29 + $0xd8] sm:$0xff] }
 0x107   : > { %3163 = vmatpush1.bf16.msra.mxu0 %v1950_v54  ;;  %2648 = vmatprep.subr.bf16.mxu1 %v1569_v55  ;;  %v1973_v54 = vunpack.c.h.s8.bf16 %v1371_v42  ;;  %v1181_v55 = vld [vmem:[%s5392_s29 + $0x98] sm:$0xff] }
 0x108   : > { %3164 = vmatprep.subr.bf16.mxu0 %v1953_v56  ;;  %v1373_v56 = vld [vmem:[%s5392_s29 + $0x698] sm:$0xff] }
 0x109   : > { %v1381_v42 = vld [vmem:[%s5392_s29 + $0x6d8] sm:$0xff] }
 0x10a   : > { %2649 = vmatpush1.bf16.msra.mxu1 %v1568_v59  ;;  %v1588_v59 = vunpack.c.h.s8.bf16 %v1178_v43 }
 0x10b   : > { %3165 = vmatpush1.bf16.msra.mxu0 %v1952_v60  ;;  %2650 = vmatprep.subr.bf16.mxu1 %v1571_v61  ;;  %v1972_v60 = vunpack.c.h.s8.bf16 %v1370_v44  ;;  %v1591_v61 = vunpack.c.l.s8.bf16 %v1181_v55 }
 0x10c   : > { %3166 = vmatprep.subr.bf16.mxu0 %v1955_v62  ;;  %v1975_v62 = vunpack.c.l.s8.bf16 %v1373_v56 }
 0x10e   : > { %2651 = vmatpush1.bf16.msra.mxu1 %v1570_v1  ;;  %v1590_v1 = vunpack.c.l.s8.bf16 %v1180_v63 }
 0x10f   : > { %3167 = vmatpush1.bf16.msra.mxu0 %v1954_v2  ;;  %2652 = vmatprep.subr.bf16.mxu1 %v1573_v3  ;;  %v1974_v2 = vunpack.c.l.s8.bf16 %v1372_v0  ;;  %v1593_v3 = vunpack.c.h.s8.bf16 %v1181_v55 }
 0x110   : > { %3168 = vmatprep.subr.bf16.mxu0 %v1957_v4  ;;  %v1977_v4 = vunpack.c.h.s8.bf16 %v1373_v56 }
 0x112   : > { %2653 = vmatpush1.bf16.msra.mxu1 %v1572_v9  ;;  %v1595_v9 = vunpack.c.l.s8.bf16 %v1183_v5 }
 0x113   : > { %3169 = vmatpush1.bf16.msra.mxu0 %v1956_v10  ;;  %2654 = vmatprep.subr.bf16.mxu1 %v1575_v11  ;;  %v1979_v10 = vunpack.c.l.s8.bf16 %v1375_v6  ;;  %v1182_v11 = vld [vmem:[%s5392_s29 + $0xa0] sm:$0xff] }
 0x114   : > { %3170 = vmatprep.subr.bf16.mxu0 %v1959_v12  ;;  %v1374_v12 = vld [vmem:[%s5392_s29 + $0x6a0] sm:$0xff]  ;;  %v1596_v19 = vunpack.c.h.s8.bf16 %v1182_v11 }
 0x115   : > { %v1980_v20 = vunpack.c.h.s8.bf16 %v1374_v12 }
 0x116   : > { %2655 = vmatpush1.bf16.msra.mxu1 %v1574_v13  ;;  %v1594_v13 = vunpack.c.l.s8.bf16 %v1182_v11 }
 0x117   : > { %3171 = vmatpush1.bf16.msra.mxu0 %v1958_v14  ;;  %2656 = vmatprep.subr.bf16.mxu1 %v1577_v15  ;;  %v1978_v14 = vunpack.c.l.s8.bf16 %v1374_v12  ;;  %v1597_v15 = vunpack.c.h.s8.bf16 %v1183_v5 }
 0x118   : > { %3172 = vmatprep.subr.bf16.mxu0 %v1961_v16  ;;  %v1981_v16 = vunpack.c.h.s8.bf16 %v1375_v6 }
 0x11a   : > { %2657 = vmatpush1.bf16.msra.mxu1 %v1576_v21  ;;  %v1599_v21 = vunpack.c.l.s8.bf16 %v1185_v17 }
 0x11b   : > { %3173 = vmatpush1.bf16.msra.mxu0 %v1960_v22  ;;  %2658 = vmatprep.subr.bf16.mxu1 %v1579_v23  ;;  %v1983_v22 = vunpack.c.l.s8.bf16 %v1377_v18  ;;  %v1184_v23 = vld [vmem:[%s5392_s29 + $0xb0] sm:$0xff] }
 0x11c   : > { %3174 = vmatprep.subr.bf16.mxu0 %v1963_v24  ;;  %v1376_v24 = vld [vmem:[%s5392_s29 + $0x6b0] sm:$0xff]  ;;  %v1600_v31 = vunpack.c.h.s8.bf16 %v1184_v23 }
 0x11d   : > { %v1984_v32 = vunpack.c.h.s8.bf16 %v1376_v24 }
 0x11e   : > { %2659 = vmatpush1.bf16.msra.mxu1 %v1578_v25  ;;  %v1598_v25 = vunpack.c.l.s8.bf16 %v1184_v23 }
 0x11f   : > { %3175 = vmatpush1.bf16.msra.mxu0 %v1962_v26  ;;  %2660 = vmatprep.subr.bf16.mxu1 %v1581_v27  ;;  %v1982_v26 = vunpack.c.l.s8.bf16 %v1376_v24  ;;  %v1601_v27 = vunpack.c.h.s8.bf16 %v1185_v17 }
 0x120   : > { %3176 = vmatprep.subr.bf16.mxu0 %v1965_v28  ;;  %v1985_v28 = vunpack.c.h.s8.bf16 %v1377_v18 }
 0x122   : > { %2661 = vmatpush1.bf16.msra.mxu1 %v1580_v33  ;;  %v1603_v33 = vunpack.c.l.s8.bf16 %v1187_v29 }
 0x123   : > { %3177 = vmatpush1.bf16.msra.mxu0 %v1964_v34  ;;  %2662 = vmatprep.subr.bf16.mxu1 %v1583_v35  ;;  %v1987_v34 = vunpack.c.l.s8.bf16 %v1379_v30  ;;  %v1186_v35 = vld [vmem:[%s5392_s29 + $0xc0] sm:$0xff] }
 0x124   : > { %3178 = vmatprep.subr.bf16.mxu0 %v1967_v36  ;;  %v1378_v36 = vld [vmem:[%s5392_s29 + $0x6c0] sm:$0xff]  ;;  %v1604_v43 = vunpack.c.h.s8.bf16 %v1186_v35 }
 0x125   : > { %v1988_v44 = vunpack.c.h.s8.bf16 %v1378_v36 }
 0x126   : > { %2663 = vmatpush1.bf16.msra.mxu1 %v1582_v37  ;;  %v1602_v37 = vunpack.c.l.s8.bf16 %v1186_v35  ;;  %v1196_v35 = vld [vmem:[%s5392_s29 + $0x110] sm:$0xff] }
 0x127   : > { %3179 = vmatpush1.bf16.msra.mxu0 %v1966_v38  ;;  %2664 = vmatprep.subr.bf16.mxu1 %v1585_v39  ;;  %v1986_v38 = vunpack.c.l.s8.bf16 %v1378_v36  ;;  %v1605_v39 = vunpack.c.h.s8.bf16 %v1187_v29  ;;  %v4362_v29 = vld [vmem:[%s6004_s0 + $0x14] ss:$196 sps:$4 sm:$0xff]  }
 0x128   : > { %3180 = vmatprep.subr.bf16.mxu0 %v1969_v40  ;;  %v1989_v40 = vunpack.c.h.s8.bf16 %v1379_v30  ;;  %v4365_v30 = vld [vmem:[%s6004_s0 + $0x74] ss:$196 sps:$4 sm:$0xff]  }
 0x129   : > { %v1388_v36 = vld [vmem:[%s5392_s29 + $0x710] sm:$0xff] }
 0x12a   : > { %2665 = vmatpush1.bf16.msra.mxu1 %v1584_v45  ;;  %v1607_v45 = vunpack.c.l.s8.bf16 %v1189_v41 }
 0x12b   : > { %3181 = vmatpush1.bf16.msra.mxu0 %v1968_v46  ;;  %2677 = vmatprep.subr.bf16.mxu1 %v1587_v47  ;;  %v1991_v46 = vunpack.c.l.s8.bf16 %v1381_v42  ;;  %v1188_v47 = vld [vmem:[%s5392_s29 + $0xd0] sm:$0xff] }
 0x12c   : > { %3193 = vmatprep.subr.bf16.mxu0 %v1971_v48  ;;  %v1380_v48 = vld [vmem:[%s5392_s29 + $0x6d0] sm:$0xff]  ;;  %v1608_v55 = vunpack.c.h.s8.bf16 %v1188_v47 }
 0x12d   : > { %2667 = vmatmul.mubr.bf16.vlgmr.msra.gmra.mrb[0].mxu1 %v4348_v49  ;;  %v1606_v49 = vunpack.c.l.s8.bf16 %v1188_v47  ;;  %v1992_v56 = vunpack.c.h.s8.bf16 %v1380_v48  ;;  %v1198_v47 = vld [vmem:[%s5392_s29 + $0x120] sm:$0xff] }
 0x12e   : > { %3183 = vmatmul.mubr.bf16.vlgmr.msra.gmra.mrb[0].mxu0 %v4351_v50  ;;  %2678 = vmatpush1.bf16.msra.mxu1 %v1586_v51  ;;  %v1990_v50 = vunpack.c.l.s8.bf16 %v1380_v48  ;;  %v1609_v51 = vunpack.c.h.s8.bf16 %v1189_v41  ;;  %v1199_v41 = vld [vmem:[%s5392_s29 + $0x128] sm:$0xff]  ;;  %v1390_v48 = vld [vmem:[%s5392_s29 + $0x720] sm:$0xff] }
 0x12f   : > { %3194 = vmatpush1.bf16.msra.mxu0 %v1970_v52  ;;  %2679 = vmatprep.subr.bf16.mxu1 %v1589_v53  ;;  %v1993_v52 = vunpack.c.h.s8.bf16 %v1381_v42  ;;  %v1191_v53 = vld [vmem:[%s5392_s29 + $0xe8] sm:$0xff] }
 0x130   : > { %3195 = vmatprep.subr.bf16.mxu0 %v1973_v54  ;;  %2709 = vmatprep.mubr.bf16.mxu1 %v4356_v57  ;;  %v1383_v54 = vld [vmem:[%s5392_s29 + $0x6e8] sm:$0xff]  ;;  %v1611_v57 = vunpack.c.l.s8.bf16 %v1191_v53  ;;  %v1613_v63 = vunpack.c.h.s8.bf16 %v1191_v53  ;;  %v1201_v53 = vld [vmem:[%s5392_s29 + $0x138] sm:$0xff] }
 0x131   : > { %3225 = vmatprep.mubr.bf16.mxu0 %v4359_v58  ;;  %v1995_v58 = vunpack.c.l.s8.bf16 %v1383_v54  ;;  %v1997_v0 = vunpack.c.h.s8.bf16 %v1383_v54  ;;  %v1391_v42 = vld [vmem:[%s5392_s29 + $0x728] sm:$0xff]  ;;  %v1393_v54 = vld [vmem:[%s5392_s29 + $0x738] sm:$0xff] }
 0x132   : > { %2680 = vmatpush1.bf16.msra.mxu1 %v1588_v59  ;;  %v1190_v59 = vld [vmem:[%s5392_s29 + $0xe0] sm:$0xff] }
 0x133   : > { %3196 = vmatpush1.bf16.msra.mxu0 %v1972_v60  ;;  %2681 = vmatprep.subr.bf16.mxu1 %v1591_v61  ;;  %v1382_v60 = vld [vmem:[%s5392_s29 + $0x6e0] sm:$0xff]  ;;  %v1610_v61 = vunpack.c.l.s8.bf16 %v1190_v59 }
 0x134   : > { %3197 = vmatprep.subr.bf16.mxu0 %v1975_v62  ;;  %v1994_v62 = vunpack.c.l.s8.bf16 %v1382_v60 }
 0x136   : > { %2682 = vmatpush1.bf16.msra.mxu1 %v1590_v1  ;;  %v1193_v1 = vld [vmem:[%s5392_s29 + $0xf8] sm:$0xff] }
 0x137   : > { %3198 = vmatpush1.bf16.msra.mxu0 %v1974_v2  ;;  %2683 = vmatprep.subr.bf16.mxu1 %v1593_v3  ;;  %v1385_v2 = vld [vmem:[%s5392_s29 + $0x6f8] sm:$0xff]  ;;  %v1612_v3 = vunpack.c.h.s8.bf16 %v1190_v59  ;;  %v1615_v5 = vunpack.c.l.s8.bf16 %v1193_v1  ;;  %v1617_v11 = vunpack.c.h.s8.bf16 %v1193_v1  ;;  %v1200_v59 = vld [vmem:[%s5392_s29 + $0x130] sm:$0xff]  ;;  %v1203_v1 = vld [vmem:[%s5392_s29 + $0x148] sm:$0xff] }
 0x138   : > { %3199 = vmatprep.subr.bf16.mxu0 %v1977_v4  ;;  %v1996_v4 = vunpack.c.h.s8.bf16 %v1382_v60  ;;  %v1999_v6 = vunpack.c.l.s8.bf16 %v1385_v2  ;;  %v2001_v12 = vunpack.c.h.s8.bf16 %v1385_v2  ;;  %v1392_v60 = vld [vmem:[%s5392_s29 + $0x730] sm:$0xff]  ;;  %v1395_v2 = vld [vmem:[%s5392_s29 + $0x748] sm:$0xff] }
 0x13a   : > { %2684 = vmatpush1.bf16.msra.mxu1 %v1592_v7  ;;  %v1192_v7 = vld [vmem:[%s5392_s29 + $0xf0] sm:$0xff] }
 0x13b   : > { %3200 = vmatpush1.bf16.msra.mxu0 %v1976_v8  ;;  %2685 = vmatprep.subr.bf16.mxu1 %v1595_v9  ;;  %v1384_v8 = vld [vmem:[%s5392_s29 + $0x6f0] sm:$0xff]  ;;  %v1614_v9 = vunpack.c.l.s8.bf16 %v1192_v7 }
 0x13c   : > { %3201 = vmatprep.subr.bf16.mxu0 %v1979_v10  ;;  %v1998_v10 = vunpack.c.l.s8.bf16 %v1384_v8 }
 0x13e   : > { %2686 = vmatpush1.bf16.msra.mxu1 %v1594_v13  ;;  %v1195_v13 = vld [vmem:[%s5392_s29 + $0x108] sm:$0xff] }
 0x13f   : > { %3202 = vmatpush1.bf16.msra.mxu0 %v1978_v14  ;;  %2687 = vmatprep.subr.bf16.mxu1 %v1597_v15  ;;  %v1387_v14 = vld [vmem:[%s5392_s29 + $0x708] sm:$0xff]  ;;  %v1616_v15 = vunpack.c.h.s8.bf16 %v1192_v7  ;;  %v1619_v17 = vunpack.c.l.s8.bf16 %v1195_v13  ;;  %v1202_v7 = vld [vmem:[%s5392_s29 + $0x140] sm:$0xff] }
 0x140   : > { %3203 = vmatprep.subr.bf16.mxu0 %v1981_v16  ;;  %v2000_v16 = vunpack.c.h.s8.bf16 %v1384_v8  ;;  %v2003_v18 = vunpack.c.l.s8.bf16 %v1387_v14  ;;  %v1394_v8 = vld [vmem:[%s5392_s29 + $0x740] sm:$0xff] }
 0x142   : > { %2688 = vmatpush1.bf16.msra.mxu1 %v1596_v19  ;;  %v1194_v19 = vld [vmem:[%s5392_s29 + $0x100] sm:$0xff] }
 0x143   : > { %3204 = vmatpush1.bf16.msra.mxu0 %v1980_v20  ;;  %2689 = vmatprep.subr.bf16.mxu1 %v1599_v21  ;;  %v1386_v20 = vld [vmem:[%s5392_s29 + $0x700] sm:$0xff]  ;;  %v4354_v21 = vld [vmem:[%s6004_s0 + $0x8] ss:$196 sps:$4 sm:$0xff]   ;;  %v1618_v23 = vunpack.c.l.s8.bf16 %v1194_v19 }
 0x144   : > { %3205 = vmatprep.subr.bf16.mxu0 %v1983_v22  ;;  %v4357_v22 = vld [vmem:[%s6004_s0 + $0x68] ss:$196 sps:$4 sm:$0xff]   ;;  %v2002_v24 = vunpack.c.l.s8.bf16 %v1386_v20 }
 0x146   : > { %2690 = vmatpush1.bf16.msra.mxu1 %v1598_v25  ;;  %v1621_v25 = vunpack.c.h.s8.bf16 %v1195_v13  ;;  %v1205_v13 = vld [vmem:[%s5392_s29 + $0x158] sm:$0xff] }
 0x147   : > { %3206 = vmatpush1.bf16.msra.mxu0 %v1982_v26  ;;  %2691 = vmatprep.subr.bf16.mxu1 %v1601_v27  ;;  %v2005_v26 = vunpack.c.h.s8.bf16 %v1387_v14  ;;  %v1197_v27 = vld [vmem:[%s5392_s29 + $0x118] sm:$0xff] }
 0x148   : > { %3207 = vmatprep.subr.bf16.mxu0 %v1985_v28  ;;  %v1389_v28 = vld [vmem:[%s5392_s29 + $0x718] sm:$0xff] }
 0x149   : > { %v1397_v14 = vld [vmem:[%s5392_s29 + $0x758] sm:$0xff] }
 0x14a   : > { %2692 = vmatpush1.bf16.msra.mxu1 %v1600_v31  ;;  %v1620_v31 = vunpack.c.h.s8.bf16 %v1194_v19  ;;  %v1204_v19 = vld [vmem:[%s5392_s29 + $0x150] sm:$0xff] }
 0x14b   : > { %3208 = vmatpush1.bf16.msra.mxu0 %v1984_v32  ;;  %2693 = vmatprep.subr.bf16.mxu1 %v1603_v33  ;;  %v2004_v32 = vunpack.c.h.s8.bf16 %v1386_v20  ;;  %v1623_v33 = vunpack.c.l.s8.bf16 %v1197_v27  ;;  %v1396_v20 = vld [vmem:[%s5392_s29 + $0x750] sm:$0xff] }
 0x14c   : > { %3209 = vmatprep.subr.bf16.mxu0 %v1987_v34  ;;  %v2007_v34 = vunpack.c.l.s8.bf16 %v1389_v28 }
 0x14e   : > { %2694 = vmatpush1.bf16.msra.mxu1 %v1602_v37  ;;  %v1622_v37 = vunpack.c.l.s8.bf16 %v1196_v35 }
 0x14f   : > { %3210 = vmatpush1.bf16.msra.mxu0 %v1986_v38  ;;  %2695 = vmatprep.subr.bf16.mxu1 %v1605_v39  ;;  %v2006_v38 = vunpack.c.l.s8.bf16 %v1388_v36  ;;  %v1625_v39 = vunpack.c.h.s8.bf16 %v1197_v27  ;;  %v1640_v27 = vunpack.c.h.s8.bf16 %v1204_v19 }
 0x150   : > { %3211 = vmatprep.subr.bf16.mxu0 %v1989_v40  ;;  %v2009_v40 = vunpack.c.h.s8.bf16 %v1389_v28  ;;  %v2024_v28 = vunpack.c.h.s8.bf16 %v1396_v20 }
 0x152   : > { %2696 = vmatpush1.bf16.msra.mxu1 %v1604_v43  ;;  %v1624_v43 = vunpack.c.h.s8.bf16 %v1196_v35 }
 0x153   : > { %3212 = vmatpush1.bf16.msra.mxu0 %v1988_v44  ;;  %2697 = vmatprep.subr.bf16.mxu1 %v1607_v45  ;;  %v2008_v44 = vunpack.c.h.s8.bf16 %v1388_v36  ;;  %v1627_v45 = vunpack.c.l.s8.bf16 %v1199_v41 }
 0x154   : > { %3213 = vmatprep.subr.bf16.mxu0 %v1991_v46  ;;  %v2011_v46 = vunpack.c.l.s8.bf16 %v1391_v42 }
 0x156   : > { %2698 = vmatpush1.bf16.msra.mxu1 %v1606_v49  ;;  %v1626_v49 = vunpack.c.l.s8.bf16 %v1198_v47 }
 0x157   : > { %3214 = vmatpush1.bf16.msra.mxu0 %v1990_v50  ;;  %2699 = vmatprep.subr.bf16.mxu1 %v1609_v51  ;;  %v2010_v50 = vunpack.c.l.s8.bf16 %v1390_v48  ;;  %v1629_v51 = vunpack.c.h.s8.bf16 %v1199_v41 }
 0x158   : > { %3215 = vmatprep.subr.bf16.mxu0 %v1993_v52  ;;  %v2013_v52 = vunpack.c.h.s8.bf16 %v1391_v42 }
 0x15a   : > { %2700 = vmatpush1.bf16.msra.mxu1 %v1608_v55  ;;  %v1628_v55 = vunpack.c.h.s8.bf16 %v1198_v47 }
 0x15b   : > { %3216 = vmatpush1.bf16.msra.mxu0 %v1992_v56  ;;  %2701 = vmatprep.subr.bf16.mxu1 %v1611_v57  ;;  %v2012_v56 = vunpack.c.h.s8.bf16 %v1390_v48  ;;  %v1631_v57 = vunpack.c.l.s8.bf16 %v1201_v53 }
 0x15c   : > { %3217 = vmatprep.subr.bf16.mxu0 %v1995_v58  ;;  %v2015_v58 = vunpack.c.l.s8.bf16 %v1393_v54 }
 0x15e   : > { %2702 = vmatpush1.bf16.msra.mxu1 %v1610_v61  ;;  %v1630_v61 = vunpack.c.l.s8.bf16 %v1200_v59 }
 0x15f   : > { %3218 = vmatpush1.bf16.msra.mxu0 %v1994_v62  ;;  %2703 = vmatprep.subr.bf16.mxu1 %v1613_v63  ;;  %v2014_v62 = vunpack.c.l.s8.bf16 %v1392_v60  ;;  %v1633_v63 = vunpack.c.h.s8.bf16 %v1201_v53 }
 0x160   : > { %3219 = vmatprep.subr.bf16.mxu0 %v1997_v0  ;;  %v2017_v0 = vunpack.c.h.s8.bf16 %v1393_v54 }
 0x162   : > { %2704 = vmatpush1.bf16.msra.mxu1 %v1612_v3  ;;  %v1632_v3 = vunpack.c.h.s8.bf16 %v1200_v59 }
 0x163   : > { %3220 = vmatpush1.bf16.msra.mxu0 %v1996_v4  ;;  %2705 = vmatprep.subr.bf16.mxu1 %v1615_v5  ;;  %v2016_v4 = vunpack.c.h.s8.bf16 %v1392_v60  ;;  %v1635_v5 = vunpack.c.l.s8.bf16 %v1203_v1 }
 0x164   : > { %3221 = vmatprep.subr.bf16.mxu0 %v1999_v6  ;;  %v2019_v6 = vunpack.c.l.s8.bf16 %v1395_v2 }
 0x166   : > { %2706 = vmatpush1.bf16.msra.mxu1 %v1614_v9  ;;  %v1634_v9 = vunpack.c.l.s8.bf16 %v1202_v7 }
 0x167   : > { %3222 = vmatpush1.bf16.msra.mxu0 %v1998_v10  ;;  %2707 = vmatprep.subr.bf16.mxu1 %v1617_v11  ;;  %v2018_v10 = vunpack.c.l.s8.bf16 %v1394_v8  ;;  %v1637_v11 = vunpack.c.h.s8.bf16 %v1203_v1  ;;  %v4368_v1 = vld [vmem:[%s6004_s0 + $0x1c] ss:$196 sps:$4 sm:$0xff]  }
 0x168   : > { %3223 = vmatprep.subr.bf16.mxu0 %v2001_v12  ;;  %v2021_v12 = vunpack.c.h.s8.bf16 %v1395_v2  ;;  %v4371_v2 = vld [vmem:[%s6004_s0 + $0x7c] ss:$196 sps:$4 sm:$0xff]  }
 0x16a   : > { %2708 = vmatpush1.bf16.msra.mxu1 %v1616_v15  ;;  %v1636_v15 = vunpack.c.h.s8.bf16 %v1202_v7  ;;  %v1212_v7 = vld [vmem:[%s5392_s29 + $0x190] sm:$0xff] }
 0x16b   : > { %3224 = vmatpush1.bf16.msra.mxu0 %v2000_v16  ;;  %2720 = vmatprep.subr.bf16.mxu1 %v1619_v17  ;;  %v2020_v16 = vunpack.c.h.s8.bf16 %v1394_v8  ;;  %v1639_v17 = vunpack.c.l.s8.bf16 %v1205_v13  ;;  %v1404_v8 = vld [vmem:[%s5392_s29 + $0x790] sm:$0xff] }
 0x16c   : > { %3236 = vmatprep.subr.bf16.mxu0 %v2003_v18  ;;  %v2023_v18 = vunpack.c.l.s8.bf16 %v1397_v14 }
 0x16d   : > { %2710 = vmatmul.mubr.bf16.vlgmr.msra.gmra.mrb[0].mxu1 %v4354_v21  ;;  %v1638_v21 = vunpack.c.l.s8.bf16 %v1204_v19  ;;  %v1214_v19 = vld [vmem:[%s5392_s29 + $0x1a0] sm:$0xff] }
 0x16e   : > { %3226 = vmatmul.mubr.bf16.vlgmr.msra.gmra.mrb[0].mxu0 %v4357_v22  ;;  %2721 = vmatpush1.bf16.msra.mxu1 %v1618_v23  ;;  %v2022_v22 = vunpack.c.l.s8.bf16 %v1396_v20  ;;  %v1641_v23 = vunpack.c.h.s8.bf16 %v1205_v13  ;;  %v1215_v13 = vld [vmem:[%s5392_s29 + $0x1a8] sm:$0xff]  ;;  %v1406_v20 = vld [vmem:[%s5392_s29 + $0x7a0] sm:$0xff] }
 0x16f   : > { %3237 = vmatpush1.bf16.msra.mxu0 %v2002_v24  ;;  %2722 = vmatprep.subr.bf16.mxu1 %v1621_v25  ;;  %v2025_v24 = vunpack.c.h.s8.bf16 %v1397_v14  ;;  %v1207_v25 = vld [vmem:[%s5392_s29 + $0x168] sm:$0xff] }
 0x170   : > { %3238 = vmatprep.subr.bf16.mxu0 %v2005_v26  ;;  %2752 = vmatprep.mubr.bf16.mxu1 %v4362_v29  ;;  %v1399_v26 = vld [vmem:[%s5392_s29 + $0x768] sm:$0xff]  ;;  %v1643_v29 = vunpack.c.l.s8.bf16 %v1207_v25  ;;  %v1645_v35 = vunpack.c.h.s8.bf16 %v1207_v25  ;;  %v1217_v25 = vld [vmem:[%s5392_s29 + $0x1b8] sm:$0xff] }
 0x171   : > { %3268 = vmatprep.mubr.bf16.mxu0 %v4365_v30  ;;  %v2027_v30 = vunpack.c.l.s8.bf16 %v1399_v26  ;;  %v2029_v36 = vunpack.c.h.s8.bf16 %v1399_v26  ;;  %v1407_v14 = vld [vmem:[%s5392_s29 + $0x7a8] sm:$0xff]  ;;  %v1409_v26 = vld [vmem:[%s5392_s29 + $0x7b8] sm:$0xff] }
 0x172   : > { %2723 = vmatpush1.bf16.msra.mxu1 %v1620_v31  ;;  %v1206_v31 = vld [vmem:[%s5392_s29 + $0x160] sm:$0xff] }
 0x173   : > { %3239 = vmatpush1.bf16.msra.mxu0 %v2004_v32  ;;  %2724 = vmatprep.subr.bf16.mxu1 %v1623_v33  ;;  %v1398_v32 = vld [vmem:[%s5392_s29 + $0x760] sm:$0xff]  ;;  %v1642_v33 = vunpack.c.l.s8.bf16 %v1206_v31 }
 0x174   : > { %3240 = vmatprep.subr.bf16.mxu0 %v2007_v34  ;;  %v2026_v34 = vunpack.c.l.s8.bf16 %v1398_v32 }
 0x176   : > { %2725 = vmatpush1.bf16.msra.mxu1 %v1622_v37  ;;  %v1209_v37 = vld [vmem:[%s5392_s29 + $0x178] sm:$0xff] }
 0x177   : > { %3241 = vmatpush1.bf16.msra.mxu0 %v2006_v38  ;;  %2726 = vmatprep.subr.bf16.mxu1 %v1625_v39  ;;  %v1401_v38 = vld [vmem:[%s5392_s29 + $0x778] sm:$0xff]  ;;  %v1644_v39 = vunpack.c.h.s8.bf16 %v1206_v31  ;;  %v1647_v41 = vunpack.c.l.s8.bf16 %v1209_v37  ;;  %v1649_v47 = vunpack.c.h.s8.bf16 %v1209_v37  ;;  %v1216_v31 = vld [vmem:[%s5392_s29 + $0x1b0] sm:$0xff]  ;;  %v1219_v37 = vld [vmem:[%s5392_s29 + $0x1c8] sm:$0xff] }
 0x178   : > { %3242 = vmatprep.subr.bf16.mxu0 %v2009_v40  ;;  %v2028_v40 = vunpack.c.h.s8.bf16 %v1398_v32  ;;  %v2031_v42 = vunpack.c.l.s8.bf16 %v1401_v38  ;;  %v2033_v48 = vunpack.c.h.s8.bf16 %v1401_v38  ;;  %v1408_v32 = vld [vmem:[%s5392_s29 + $0x7b0] sm:$0xff]  ;;  %v1411_v38 = vld [vmem:[%s5392_s29 + $0x7c8] sm:$0xff] }
 0x17a   : > { %2727 = vmatpush1.bf16.msra.mxu1 %v1624_v43  ;;  %v1208_v43 = vld [vmem:[%s5392_s29 + $0x170] sm:$0xff] }
 0x17b   : > { %3243 = vmatpush1.bf16.msra.mxu0 %v2008_v44  ;;  %2728 = vmatprep.subr.bf16.mxu1 %v1627_v45  ;;  %v1400_v44 = vld [vmem:[%s5392_s29 + $0x770] sm:$0xff]  ;;  %v1646_v45 = vunpack.c.l.s8.bf16 %v1208_v43 }
 0x17c   : > { %3244 = vmatprep.subr.bf16.mxu0 %v2011_v46  ;;  %v2030_v46 = vunpack.c.l.s8.bf16 %v1400_v44 }
 0x17e   : > { %2729 = vmatpush1.bf16.msra.mxu1 %v1626_v49  ;;  %v1211_v49 = vld [vmem:[%s5392_s29 + $0x188] sm:$0xff] }
 0x17f   : > { %3245 = vmatpush1.bf16.msra.mxu0 %v2010_v50  ;;  %2730 = vmatprep.subr.bf16.mxu1 %v1629_v51  ;;  %v1403_v50 = vld [vmem:[%s5392_s29 + $0x788] sm:$0xff]  ;;  %v1648_v51 = vunpack.c.h.s8.bf16 %v1208_v43  ;;  %v1651_v53 = vunpack.c.l.s8.bf16 %v1211_v49  ;;  %v1218_v43 = vld [vmem:[%s5392_s29 + $0x1c0] sm:$0xff] }
 0x180   : > { %3246 = vmatprep.subr.bf16.mxu0 %v2013_v52  ;;  %v2032_v52 = vunpack.c.h.s8.bf16 %v1400_v44  ;;  %v2035_v54 = vunpack.c.l.s8.bf16 %v1403_v50  ;;  %v1410_v44 = vld [vmem:[%s5392_s29 + $0x7c0] sm:$0xff] }
 0x182   : > { %2731 = vmatpush1.bf16.msra.mxu1 %v1628_v55  ;;  %v1210_v55 = vld [vmem:[%s5392_s29 + $0x180] sm:$0xff] }
 0x183   : > { %3247 = vmatpush1.bf16.msra.mxu0 %v2012_v56  ;;  %2732 = vmatprep.subr.bf16.mxu1 %v1631_v57  ;;  %v1402_v56 = vld [vmem:[%s5392_s29 + $0x780] sm:$0xff]  ;;  %v4360_v57 = vld [vmem:[%s6004_s0 + $0x10] ss:$196 sps:$4 sm:$0xff]   ;;  %v1650_v59 = vunpack.c.l.s8.bf16 %v1210_v55 }
 0x184   : > { %3248 = vmatprep.subr.bf16.mxu0 %v2015_v58  ;;  %v4363_v58 = vld [vmem:[%s6004_s0 + $0x70] ss:$196 sps:$4 sm:$0xff]   ;;  %v2034_v60 = vunpack.c.l.s8.bf16 %v1402_v56 }
 0x186   : > { %2733 = vmatpush1.bf16.msra.mxu1 %v1630_v61  ;;  %v1653_v61 = vunpack.c.h.s8.bf16 %v1211_v49  ;;  %v1221_v49 = vld [vmem:[%s5392_s29 + $0x1d8] sm:$0xff] }
 0x187   : > { %3249 = vmatpush1.bf16.msra.mxu0 %v2014_v62  ;;  %2734 = vmatprep.subr.bf16.mxu1 %v1633_v63  ;;  %v2037_v62 = vunpack.c.h.s8.bf16 %v1403_v50  ;;  %v1213_v63 = vld [vmem:[%s5392_s29 + $0x198] sm:$0xff] }
 0x188   : > { %3250 = vmatprep.subr.bf16.mxu0 %v2017_v0  ;;  %v1405_v0 = vld [vmem:[%s5392_s29 + $0x798] sm:$0xff] }
 0x189   : > { %v1413_v50 = vld [vmem:[%s5392_s29 + $0x7d8] sm:$0xff] }
 0x18a   : > { %2735 = vmatpush1.bf16.msra.mxu1 %v1632_v3  ;;  %v1652_v3 = vunpack.c.h.s8.bf16 %v1210_v55  ;;  %v1220_v55 = vld [vmem:[%s5392_s29 + $0x1d0] sm:$0xff] }
 0x18b   : > { %3251 = vmatpush1.bf16.msra.mxu0 %v2016_v4  ;;  %2736 = vmatprep.subr.bf16.mxu1 %v1635_v5  ;;  %v2036_v4 = vunpack.c.h.s8.bf16 %v1402_v56  ;;  %v1655_v5 = vunpack.c.l.s8.bf16 %v1213_v63  ;;  %v1412_v56 = vld [vmem:[%s5392_s29 + $0x7d0] sm:$0xff] }
 0x18c   : > { %3252 = vmatprep.subr.bf16.mxu0 %v2019_v6  ;;  %v2039_v6 = vunpack.c.l.s8.bf16 %v1405_v0 }
 0x18e   : > { %2737 = vmatpush1.bf16.msra.mxu1 %v1634_v9  ;;  %v1654_v9 = vunpack.c.l.s8.bf16 %v1212_v7 }
 0x18f   : > { %3253 = vmatpush1.bf16.msra.mxu0 %v2018_v10  ;;  %2738 = vmatprep.subr.bf16.mxu1 %v1637_v11  ;;  %v2038_v10 = vunpack.c.l.s8.bf16 %v1404_v8  ;;  %v1657_v11 = vunpack.c.h.s8.bf16 %v1213_v63  ;;  %v1672_v63 = vunpack.c.h.s8.bf16 %v1220_v55 }
 0x190   : > { %3254 = vmatprep.subr.bf16.mxu0 %v2021_v12  ;;  %v2041_v12 = vunpack.c.h.s8.bf16 %v1405_v0  ;;  %v2056_v0 = vunpack.c.h.s8.bf16 %v1412_v56 }
 0x192   : > { %2739 = vmatpush1.bf16.msra.mxu1 %v1636_v15  ;;  %v1656_v15 = vunpack.c.h.s8.bf16 %v1212_v7 }
 0x193   : > { %3255 = vmatpush1.bf16.msra.mxu0 %v2020_v16  ;;  %2740 = vmatprep.subr.bf16.mxu1 %v1639_v17  ;;  %v2040_v16 = vunpack.c.h.s8.bf16 %v1404_v8  ;;  %v1659_v17 = vunpack.c.l.s8.bf16 %v1215_v13 }
 0x194   : > { %3256 = vmatprep.subr.bf16.mxu0 %v2023_v18  ;;  %v2043_v18 = vunpack.c.l.s8.bf16 %v1407_v14 }
 0x196   : > { %2741 = vmatpush1.bf16.msra.mxu1 %v1638_v21  ;;  %v1658_v21 = vunpack.c.l.s8.bf16 %v1214_v19 }
 0x197   : > { %3257 = vmatpush1.bf16.msra.mxu0 %v2022_v22  ;;  %2742 = vmatprep.subr.bf16.mxu1 %v1641_v23  ;;  %v2042_v22 = vunpack.c.l.s8.bf16 %v1406_v20  ;;  %v1661_v23 = vunpack.c.h.s8.bf16 %v1215_v13 }
 0x198   : > { %3258 = vmatprep.subr.bf16.mxu0 %v2025_v24  ;;  %v2045_v24 = vunpack.c.h.s8.bf16 %v1407_v14 }
 0x19a   : > { %2743 = vmatpush1.bf16.msra.mxu1 %v1640_v27  ;;  %v1660_v27 = vunpack.c.h.s8.bf16 %v1214_v19 }
 0x19b   : > { %3259 = vmatpush1.bf16.msra.mxu0 %v2024_v28  ;;  %2744 = vmatprep.subr.bf16.mxu1 %v1643_v29  ;;  %v2044_v28 = vunpack.c.h.s8.bf16 %v1406_v20  ;;  %v1663_v29 = vunpack.c.l.s8.bf16 %v1217_v25 }
 0x19c   : > { %3260 = vmatprep.subr.bf16.mxu0 %v2027_v30  ;;  %v2047_v30 = vunpack.c.l.s8.bf16 %v1409_v26 }
 0x19e   : > { %2745 = vmatpush1.bf16.msra.mxu1 %v1642_v33  ;;  %v1662_v33 = vunpack.c.l.s8.bf16 %v1216_v31 }
 0x19f   : > { %3261 = vmatpush1.bf16.msra.mxu0 %v2026_v34  ;;  %2746 = vmatprep.subr.bf16.mxu1 %v1645_v35  ;;  %v2046_v34 = vunpack.c.l.s8.bf16 %v1408_v32  ;;  %v1665_v35 = vunpack.c.h.s8.bf16 %v1217_v25 }
 0x1a0   : > { %3262 = vmatprep.subr.bf16.mxu0 %v2029_v36  ;;  %v2049_v36 = vunpack.c.h.s8.bf16 %v1409_v26 }
 0x1a2   : > { %2747 = vmatpush1.bf16.msra.mxu1 %v1644_v39  ;;  %v1664_v39 = vunpack.c.h.s8.bf16 %v1216_v31 }
 0x1a3   : > { %3263 = vmatpush1.bf16.msra.mxu0 %v2028_v40  ;;  %2748 = vmatprep.subr.bf16.mxu1 %v1647_v41  ;;  %v2048_v40 = vunpack.c.h.s8.bf16 %v1408_v32  ;;  %v1667_v41 = vunpack.c.l.s8.bf16 %v1219_v37 }
 0x1a4   : > { %3264 = vmatprep.subr.bf16.mxu0 %v2031_v42  ;;  %v2051_v42 = vunpack.c.l.s8.bf16 %v1411_v38 }
 0x1a6   : > { %2749 = vmatpush1.bf16.msra.mxu1 %v1646_v45  ;;  %v1666_v45 = vunpack.c.l.s8.bf16 %v1218_v43 }
 0x1a7   : > { %3265 = vmatpush1.bf16.msra.mxu0 %v2030_v46  ;;  %2750 = vmatprep.subr.bf16.mxu1 %v1649_v47  ;;  %v2050_v46 = vunpack.c.l.s8.bf16 %v1410_v44  ;;  %v1669_v47 = vunpack.c.h.s8.bf16 %v1219_v37  ;;  %v4374_v37 = vld [vmem:[%s6004_s0 + $0x24] ss:$196 sps:$4 sm:$0xff]  }
 0x1a8   : > { %3266 = vmatprep.subr.bf16.mxu0 %v2033_v48  ;;  %v2053_v48 = vunpack.c.h.s8.bf16 %v1411_v38  ;;  %v4377_v38 = vld [vmem:[%s6004_s0 + $0x84] ss:$196 sps:$4 sm:$0xff]  }
 0x1aa   : > { %2751 = vmatpush1.bf16.msra.mxu1 %v1648_v51  ;;  %v1668_v51 = vunpack.c.h.s8.bf16 %v1218_v43  ;;  %v1228_v43 = vld [vmem:[%s5392_s29 + $0x210] sm:$0xff] }
 0x1ab   : > { %3267 = vmatpush1.bf16.msra.mxu0 %v2032_v52  ;;  %2763 = vmatprep.subr.bf16.mxu1 %v1651_v53  ;;  %v2052_v52 = vunpack.c.h.s8.bf16 %v1410_v44  ;;  %v1671_v53 = vunpack.c.l.s8.bf16 %v1221_v49  ;;  %v1420_v44 = vld [vmem:[%s5392_s29 + $0x810] sm:$0xff] }
 0x1ac   : > { %3279 = vmatprep.subr.bf16.mxu0 %v2035_v54  ;;  %v2055_v54 = vunpack.c.l.s8.bf16 %v1413_v50 }
 0x1ad   : > { %2753 = vmatmul.mubr.bf16.vlgmr.msra.gmra.mrb[0].mxu1 %v4360_v57  ;;  %v1670_v57 = vunpack.c.l.s8.bf16 %v1220_v55  ;;  %v1230_v55 = vld [vmem:[%s5392_s29 + $0x220] sm:$0xff] }
 0x1ae   : > { %3269 = vmatmul.mubr.bf16.vlgmr.msra.gmra.mrb[0].mxu0 %v4363_v58  ;;  %2764 = vmatpush1.bf16.msra.mxu1 %v1650_v59  ;;  %v2054_v58 = vunpack.c.l.s8.bf16 %v1412_v56  ;;  %v1673_v59 = vunpack.c.h.s8.bf16 %v1221_v49  ;;  %v1231_v49 = vld [vmem:[%s5392_s29 + $0x228] sm:$0xff]  ;;  %v1422_v56 = vld [vmem:[%s5392_s29 + $0x820] sm:$0xff] }
 0x1af   : > { %3280 = vmatpush1.bf16.msra.mxu0 %v2034_v60  ;;  %2765 = vmatprep.subr.bf16.mxu1 %v1653_v61  ;;  %v2057_v60 = vunpack.c.h.s8.bf16 %v1413_v50  ;;  %v1223_v61 = vld [vmem:[%s5392_s29 + $0x1e8] sm:$0xff] }
 0x1b0   : > { %3281 = vmatprep.subr.bf16.mxu0 %v2037_v62  ;;  %2795 = vmatprep.mubr.bf16.mxu1 %v4368_v1  ;;  %v1415_v62 = vld [vmem:[%s5392_s29 + $0x7e8] sm:$0xff]  ;;  %v1675_v1 = vunpack.c.l.s8.bf16 %v1223_v61  ;;  %v1677_v7 = vunpack.c.h.s8.bf16 %v1223_v61  ;;  %v1233_v61 = vld [vmem:[%s5392_s29 + $0x238] sm:$0xff] }
 0x1b1   : > { %3311 = vmatprep.mubr.bf16.mxu0 %v4371_v2  ;;  %v2059_v2 = vunpack.c.l.s8.bf16 %v1415_v62  ;;  %v2061_v8 = vunpack.c.h.s8.bf16 %v1415_v62  ;;  %v1423_v50 = vld [vmem:[%s5392_s29 + $0x828] sm:$0xff]  ;;  %v1425_v62 = vld [vmem:[%s5392_s29 + $0x838] sm:$0xff] }
 0x1b2   : > { %2766 = vmatpush1.bf16.msra.mxu1 %v1652_v3  ;;  %v1222_v3 = vld [vmem:[%s5392_s29 + $0x1e0] sm:$0xff] }
 0x1b3   : > { %3282 = vmatpush1.bf16.msra.mxu0 %v2036_v4  ;;  %2767 = vmatprep.subr.bf16.mxu1 %v1655_v5  ;;  %v1414_v4 = vld [vmem:[%s5392_s29 + $0x7e0] sm:$0xff]  ;;  %v1674_v5 = vunpack.c.l.s8.bf16 %v1222_v3 }
 0x1b4   : > { %3283 = vmatprep.subr.bf16.mxu0 %v2039_v6  ;;  %v2058_v6 = vunpack.c.l.s8.bf16 %v1414_v4 }
 0x1b6   : > { %2768 = vmatpush1.bf16.msra.mxu1 %v1654_v9  ;;  %v1225_v9 = vld [vmem:[%s5392_s29 + $0x1f8] sm:$0xff] }
 0x1b7   : > { %3284 = vmatpush1.bf16.msra.mxu0 %v2038_v10  ;;  %2769 = vmatprep.subr.bf16.mxu1 %v1657_v11  ;;  %v1417_v10 = vld [vmem:[%s5392_s29 + $0x7f8] sm:$0xff]  ;;  %v1676_v11 = vunpack.c.h.s8.bf16 %v1222_v3  ;;  %v1679_v13 = vunpack.c.l.s8.bf16 %v1225_v9  ;;  %v1681_v19 = vunpack.c.h.s8.bf16 %v1225_v9  ;;  %v1232_v3 = vld [vmem:[%s5392_s29 + $0x230] sm:$0xff]  ;;  %v1235_v9 = vld [vmem:[%s5392_s29 + $0x248] sm:$0xff] }
 0x1b8   : > { %3285 = vmatprep.subr.bf16.mxu0 %v2041_v12  ;;  %v2060_v12 = vunpack.c.h.s8.bf16 %v1414_v4  ;;  %v2063_v14 = vunpack.c.l.s8.bf16 %v1417_v10  ;;  %v2065_v20 = vunpack.c.h.s8.bf16 %v1417_v10  ;;  %v1424_v4 = vld [vmem:[%s5392_s29 + $0x830] sm:$0xff]  ;;  %v1427_v10 = vld [vmem:[%s5392_s29 + $0x848] sm:$0xff] }
 0x1ba   : > { %2770 = vmatpush1.bf16.msra.mxu1 %v1656_v15  ;;  %v1224_v15 = vld [vmem:[%s5392_s29 + $0x1f0] sm:$0xff] }
 0x1bb   : > { %3286 = vmatpush1.bf16.msra.mxu0 %v2040_v16  ;;  %2771 = vmatprep.subr.bf16.mxu1 %v1659_v17  ;;  %v1416_v16 = vld [vmem:[%s5392_s29 + $0x7f0] sm:$0xff]  ;;  %v1678_v17 = vunpack.c.l.s8.bf16 %v1224_v15 }
 0x1bc   : > { %3287 = vmatprep.subr.bf16.mxu0 %v2043_v18  ;;  %v2062_v18 = vunpack.c.l.s8.bf16 %v1416_v16 }
 0x1be   : > { %2772 = vmatpush1.bf16.msra.mxu1 %v1658_v21  ;;  %v1227_v21 = vld [vmem:[%s5392_s29 + $0x208] sm:$0xff] }
 0x1bf   : > { %3288 = vmatpush1.bf16.msra.mxu0 %v2042_v22  ;;  %2773 = vmatprep.subr.bf16.mxu1 %v1661_v23  ;;  %v1419_v22 = vld [vmem:[%s5392_s29 + $0x808] sm:$0xff]  ;;  %v1680_v23 = vunpack.c.h.s8.bf16 %v1224_v15  ;;  %v1683_v25 = vunpack.c.l.s8.bf16 %v1227_v21  ;;  %v1234_v15 = vld [vmem:[%s5392_s29 + $0x240] sm:$0xff] }
 0x1c0   : > { %3289 = vmatprep.subr.bf16.mxu0 %v2045_v24  ;;  %v2064_v24 = vunpack.c.h.s8.bf16 %v1416_v16  ;;  %v2067_v26 = vunpack.c.l.s8.bf16 %v1419_v22  ;;  %v1426_v16 = vld [vmem:[%s5392_s29 + $0x840] sm:$0xff] }
 0x1c2   : > { %2774 = vmatpush1.bf16.msra.mxu1 %v1660_v27  ;;  %v1226_v27 = vld [vmem:[%s5392_s29 + $0x200] sm:$0xff] }
 0x1c3   : > { %3290 = vmatpush1.bf16.msra.mxu0 %v2044_v28  ;;  %2775 = vmatprep.subr.bf16.mxu1 %v1663_v29  ;;  %v1418_v28 = vld [vmem:[%s5392_s29 + $0x800] sm:$0xff]  ;;  %v4366_v29 = vld [vmem:[%s6004_s0 + $0x18] ss:$196 sps:$4 sm:$0xff]   ;;  %v1682_v31 = vunpack.c.l.s8.bf16 %v1226_v27 }
 0x1c4   : > { %3291 = vmatprep.subr.bf16.mxu0 %v2047_v30  ;;  %v4369_v30 = vld [vmem:[%s6004_s0 + $0x78] ss:$196 sps:$4 sm:$0xff]   ;;  %v2066_v32 = vunpack.c.l.s8.bf16 %v1418_v28 }
 0x1c6   : > { %2776 = vmatpush1.bf16.msra.mxu1 %v1662_v33  ;;  %v1685_v33 = vunpack.c.h.s8.bf16 %v1227_v21  ;;  %v1237_v21 = vld [vmem:[%s5392_s29 + $0x258] sm:$0xff] }
 0x1c7   : > { %3292 = vmatpush1.bf16.msra.mxu0 %v2046_v34  ;;  %2777 = vmatprep.subr.bf16.mxu1 %v1665_v35  ;;  %v2069_v34 = vunpack.c.h.s8.bf16 %v1419_v22  ;;  %v1229_v35 = vld [vmem:[%s5392_s29 + $0x218] sm:$0xff] }
 0x1c8   : > { %3293 = vmatprep.subr.bf16.mxu0 %v2049_v36  ;;  %v1421_v36 = vld [vmem:[%s5392_s29 + $0x818] sm:$0xff] }
 0x1c9   : > { %v1429_v22 = vld [vmem:[%s5392_s29 + $0x858] sm:$0xff] }
 0x1ca   : > { %2778 = vmatpush1.bf16.msra.mxu1 %v1664_v39  ;;  %v1684_v39 = vunpack.c.h.s8.bf16 %v1226_v27  ;;  %v1236_v27 = vld [vmem:[%s5392_s29 + $0x250] sm:$0xff] }
 0x1cb   : > { %3294 = vmatpush1.bf16.msra.mxu0 %v2048_v40  ;;  %2779 = vmatprep.subr.bf16.mxu1 %v1667_v41  ;;  %v2068_v40 = vunpack.c.h.s8.bf16 %v1418_v28  ;;  %v1687_v41 = vunpack.c.l.s8.bf16 %v1229_v35  ;;  %v1428_v28 = vld [vmem:[%s5392_s29 + $0x850] sm:$0xff] }
 0x1cc   : > { %3295 = vmatprep.subr.bf16.mxu0 %v2051_v42  ;;  %v2071_v42 = vunpack.c.l.s8.bf16 %v1421_v36 }
 0x1ce   : > { %2780 = vmatpush1.bf16.msra.mxu1 %v1666_v45  ;;  %v1686_v45 = vunpack.c.l.s8.bf16 %v1228_v43 }
 0x1cf   : > { %3296 = vmatpush1.bf16.msra.mxu0 %v2050_v46  ;;  %2781 = vmatprep.subr.bf16.mxu1 %v1669_v47  ;;  %v2070_v46 = vunpack.c.l.s8.bf16 %v1420_v44  ;;  %v1689_v47 = vunpack.c.h.s8.bf16 %v1229_v35  ;;  %v1704_v35 = vunpack.c.h.s8.bf16 %v1236_v27 }
 0x1d0   : > { %3297 = vmatprep.subr.bf16.mxu0 %v2053_v48  ;;  %v2073_v48 = vunpack.c.h.s8.bf16 %v1421_v36  ;;  %v2088_v36 = vunpack.c.h.s8.bf16 %v1428_v28 }
 0x1d2   : > { %2782 = vmatpush1.bf16.msra.mxu1 %v1668_v51  ;;  %v1688_v51 = vunpack.c.h.s8.bf16 %v1228_v43 }
 0x1d3   : > { %3298 = vmatpush1.bf16.msra.mxu0 %v2052_v52  ;;  %2783 = vmatprep.subr.bf16.mxu1 %v1671_v53  ;;  %v2072_v52 = vunpack.c.h.s8.bf16 %v1420_v44  ;;  %v1691_v53 = vunpack.c.l.s8.bf16 %v1231_v49 }
 0x1d4   : > { %3299 = vmatprep.subr.bf16.mxu0 %v2055_v54  ;;  %v2075_v54 = vunpack.c.l.s8.bf16 %v1423_v50 }
 0x1d6   : > { %2784 = vmatpush1.bf16.msra.mxu1 %v1670_v57  ;;  %v1690_v57 = vunpack.c.l.s8.bf16 %v1230_v55 }
 0x1d7   : > { %3300 = vmatpush1.bf16.msra.mxu0 %v2054_v58  ;;  %2785 = vmatprep.subr.bf16.mxu1 %v1673_v59  ;;  %v2074_v58 = vunpack.c.l.s8.bf16 %v1422_v56  ;;  %v1693_v59 = vunpack.c.h.s8.bf16 %v1231_v49 }
 0x1d8   : > { %3301 = vmatprep.subr.bf16.mxu0 %v2057_v60  ;;  %v2077_v60 = vunpack.c.h.s8.bf16 %v1423_v50 }
 0x1da   : > { %2786 = vmatpush1.bf16.msra.mxu1 %v1672_v63  ;;  %v1692_v63 = vunpack.c.h.s8.bf16 %v1230_v55 }
 0x1db   : > { %3302 = vmatpush1.bf16.msra.mxu0 %v2056_v0  ;;  %2787 = vmatprep.subr.bf16.mxu1 %v1675_v1  ;;  %v2076_v0 = vunpack.c.h.s8.bf16 %v1422_v56  ;;  %v1695_v1 = vunpack.c.l.s8.bf16 %v1233_v61 }
 0x1dc   : > { %3303 = vmatprep.subr.bf16.mxu0 %v2059_v2  ;;  %v2079_v2 = vunpack.c.l.s8.bf16 %v1425_v62 }
 0x1de   : > { %2788 = vmatpush1.bf16.msra.mxu1 %v1674_v5  ;;  %v1694_v5 = vunpack.c.l.s8.bf16 %v1232_v3 }
 0x1df   : > { %3304 = vmatpush1.bf16.msra.mxu0 %v2058_v6  ;;  %2789 = vmatprep.subr.bf16.mxu1 %v1677_v7  ;;  %v2078_v6 = vunpack.c.l.s8.bf16 %v1424_v4  ;;  %v1697_v7 = vunpack.c.h.s8.bf16 %v1233_v61 }
 0x1e0   : > { %3305 = vmatprep.subr.bf16.mxu0 %v2061_v8  ;;  %v2081_v8 = vunpack.c.h.s8.bf16 %v1425_v62 }
 0x1e2   : > { %2790 = vmatpush1.bf16.msra.mxu1 %v1676_v11  ;;  %v1696_v11 = vunpack.c.h.s8.bf16 %v1232_v3 }
 0x1e3   : > { %3306 = vmatpush1.bf16.msra.mxu0 %v2060_v12  ;;  %2791 = vmatprep.subr.bf16.mxu1 %v1679_v13  ;;  %v2080_v12 = vunpack.c.h.s8.bf16 %v1424_v4  ;;  %v1699_v13 = vunpack.c.l.s8.bf16 %v1235_v9 }
 0x1e4   : > { %3307 = vmatprep.subr.bf16.mxu0 %v2063_v14  ;;  %v2083_v14 = vunpack.c.l.s8.bf16 %v1427_v10 }
 0x1e6   : > { %2792 = vmatpush1.bf16.msra.mxu1 %v1678_v17  ;;  %v1698_v17 = vunpack.c.l.s8.bf16 %v1234_v15 }
 0x1e7   : > { %3308 = vmatpush1.bf16.msra.mxu0 %v2062_v18  ;;  %2793 = vmatprep.subr.bf16.mxu1 %v1681_v19  ;;  %v2082_v18 = vunpack.c.l.s8.bf16 %v1426_v16  ;;  %v1701_v19 = vunpack.c.h.s8.bf16 %v1235_v9  ;;  %v4380_v9 = vld [vmem:[%s6004_s0 + $0x2c] ss:$196 sps:$4 sm:$0xff]  }
 0x1e8   : > { %3309 = vmatprep.subr.bf16.mxu0 %v2065_v20  ;;  %v2085_v20 = vunpack.c.h.s8.bf16 %v1427_v10  ;;  %v4383_v10 = vld [vmem:[%s6004_s0 + $0x8c] ss:$196 sps:$4 sm:$0xff]  }
 0x1ea   : > { %2794 = vmatpush1.bf16.msra.mxu1 %v1680_v23  ;;  %v1700_v23 = vunpack.c.h.s8.bf16 %v1234_v15  ;;  %v1244_v15 = vld [vmem:[%s5392_s29 + $0x290] sm:$0xff] }
 0x1eb   : > { %3310 = vmatpush1.bf16.msra.mxu0 %v2064_v24  ;;  %2806 = vmatprep.subr.bf16.mxu1 %v1683_v25  ;;  %v2084_v24 = vunpack.c.h.s8.bf16 %v1426_v16  ;;  %v1703_v25 = vunpack.c.l.s8.bf16 %v1237_v21  ;;  %v1436_v16 = vld [vmem:[%s5392_s29 + $0x890] sm:$0xff] }
 0x1ec   : > { %3322 = vmatprep.subr.bf16.mxu0 %v2067_v26  ;;  %v2087_v26 = vunpack.c.l.s8.bf16 %v1429_v22 }
 0x1ed   : > { %2796 = vmatmul.mubr.bf16.vlgmr.msra.gmra.mrb[0].mxu1 %v4366_v29  ;;  %v1702_v29 = vunpack.c.l.s8.bf16 %v1236_v27  ;;  %v1246_v27 = vld [vmem:[%s5392_s29 + $0x2a0] sm:$0xff] }
 0x1ee   : > { %3312 = vmatmul.mubr.bf16.vlgmr.msra.gmra.mrb[0].mxu0 %v4369_v30  ;;  %2807 = vmatpush1.bf16.msra.mxu1 %v1682_v31  ;;  %v2086_v30 = vunpack.c.l.s8.bf16 %v1428_v28  ;;  %v1705_v31 = vunpack.c.h.s8.bf16 %v1237_v21  ;;  %v1247_v21 = vld [vmem:[%s5392_s29 + $0x2a8] sm:$0xff]  ;;  %v1438_v28 = vld [vmem:[%s5392_s29 + $0x8a0] sm:$0xff] }
 0x1ef   : > { %3323 = vmatpush1.bf16.msra.mxu0 %v2066_v32  ;;  %2808 = vmatprep.subr.bf16.mxu1 %v1685_v33  ;;  %v2089_v32 = vunpack.c.h.s8.bf16 %v1429_v22  ;;  %v1239_v33 = vld [vmem:[%s5392_s29 + $0x268] sm:$0xff] }
 0x1f0   : > { %3324 = vmatprep.subr.bf16.mxu0 %v2069_v34  ;;  %2838 = vmatprep.mubr.bf16.mxu1 %v4374_v37  ;;  %v1431_v34 = vld [vmem:[%s5392_s29 + $0x868] sm:$0xff]  ;;  %v1707_v37 = vunpack.c.l.s8.bf16 %v1239_v33  ;;  %v1709_v43 = vunpack.c.h.s8.bf16 %v1239_v33  ;;  %v1249_v33 = vld [vmem:[%s5392_s29 + $0x2b8] sm:$0xff] }
 0x1f1   : > { %3354 = vmatprep.mubr.bf16.mxu0 %v4377_v38  ;;  %v2091_v38 = vunpack.c.l.s8.bf16 %v1431_v34  ;;  %v2093_v44 = vunpack.c.h.s8.bf16 %v1431_v34  ;;  %v1439_v22 = vld [vmem:[%s5392_s29 + $0x8a8] sm:$0xff]  ;;  %v1441_v34 = vld [vmem:[%s5392_s29 + $0x8b8] sm:$0xff] }
 0x1f2   : > { %2809 = vmatpush1.bf16.msra.mxu1 %v1684_v39  ;;  %v1238_v39 = vld [vmem:[%s5392_s29 + $0x260] sm:$0xff] }
 0x1f3   : > { %3325 = vmatpush1.bf16.msra.mxu0 %v2068_v40  ;;  %2810 = vmatprep.subr.bf16.mxu1 %v1687_v41  ;;  %v1430_v40 = vld [vmem:[%s5392_s29 + $0x860] sm:$0xff]  ;;  %v1706_v41 = vunpack.c.l.s8.bf16 %v1238_v39 }
 0x1f4   : > { %3326 = vmatprep.subr.bf16.mxu0 %v2071_v42  ;;  %v2090_v42 = vunpack.c.l.s8.bf16 %v1430_v40 }
 0x1f6   : > { %2811 = vmatpush1.bf16.msra.mxu1 %v1686_v45  ;;  %v1241_v45 = vld [vmem:[%s5392_s29 + $0x278] sm:$0xff] }
 0x1f7   : > { %3327 = vmatpush1.bf16.msra.mxu0 %v2070_v46  ;;  %2812 = vmatprep.subr.bf16.mxu1 %v1689_v47  ;;  %v1433_v46 = vld [vmem:[%s5392_s29 + $0x878] sm:$0xff]  ;;  %v1708_v47 = vunpack.c.h.s8.bf16 %v1238_v39  ;;  %v1711_v49 = vunpack.c.l.s8.bf16 %v1241_v45  ;;  %v1713_v55 = vunpack.c.h.s8.bf16 %v1241_v45  ;;  %v1248_v39 = vld [vmem:[%s5392_s29 + $0x2b0] sm:$0xff]  ;;  %v1251_v45 = vld [vmem:[%s5392_s29 + $0x2c8] sm:$0xff] }
 0x1f8   : > { %3328 = vmatprep.subr.bf16.mxu0 %v2073_v48  ;;  %v2092_v48 = vunpack.c.h.s8.bf16 %v1430_v40  ;;  %v2095_v50 = vunpack.c.l.s8.bf16 %v1433_v46  ;;  %v2097_v56 = vunpack.c.h.s8.bf16 %v1433_v46  ;;  %v1440_v40 = vld [vmem:[%s5392_s29 + $0x8b0] sm:$0xff]  ;;  %v1443_v46 = vld [vmem:[%s5392_s29 + $0x8c8] sm:$0xff] }
 0x1fa   : > { %2813 = vmatpush1.bf16.msra.mxu1 %v1688_v51  ;;  %v1240_v51 = vld [vmem:[%s5392_s29 + $0x270] sm:$0xff] }
 0x1fb   : > { %3329 = vmatpush1.bf16.msra.mxu0 %v2072_v52  ;;  %2814 = vmatprep.subr.bf16.mxu1 %v1691_v53  ;;  %v1432_v52 = vld [vmem:[%s5392_s29 + $0x870] sm:$0xff]  ;;  %v1710_v53 = vunpack.c.l.s8.bf16 %v1240_v51 }
 0x1fc   : > { %3330 = vmatprep.subr.bf16.mxu0 %v2075_v54  ;;  %v2094_v54 = vunpack.c.l.s8.bf16 %v1432_v52 }
 0x1fe   : > { %2815 = vmatpush1.bf16.msra.mxu1 %v1690_v57  ;;  %v1243_v57 = vld [vmem:[%s5392_s29 + $0x288] sm:$0xff] }
 0x1ff   : > { %3331 = vmatpush1.bf16.msra.mxu0 %v2074_v58  ;;  %2816 = vmatprep.subr.bf16.mxu1 %v1693_v59  ;;  %v1435_v58 = vld [vmem:[%s5392_s29 + $0x888] sm:$0xff]  ;;  %v1712_v59 = vunpack.c.h.s8.bf16 %v1240_v51  ;;  %v1715_v61 = vunpack.c.l.s8.bf16 %v1243_v57  ;;  %v1250_v51 = vld [vmem:[%s5392_s29 + $0x2c0] sm:$0xff] }
 0x200   : > { %3332 = vmatprep.subr.bf16.mxu0 %v2077_v60  ;;  %v2096_v60 = vunpack.c.h.s8.bf16 %v1432_v52  ;;  %v2099_v62 = vunpack.c.l.s8.bf16 %v1435_v58  ;;  %v1442_v52 = vld [vmem:[%s5392_s29 + $0x8c0] sm:$0xff] }
 0x202   : > { %2817 = vmatpush1.bf16.msra.mxu1 %v1692_v63  ;;  %v1242_v63 = vld [vmem:[%s5392_s29 + $0x280] sm:$0xff] }
 0x203   : > { %3333 = vmatpush1.bf16.msra.mxu0 %v2076_v0  ;;  %2818 = vmatprep.subr.bf16.mxu1 %v1695_v1  ;;  %v1434_v0 = vld [vmem:[%s5392_s29 + $0x880] sm:$0xff]  ;;  %v1714_v3 = vunpack.c.l.s8.bf16 %v1242_v63 }
 0x204   : > { %3334 = vmatprep.subr.bf16.mxu0 %v2079_v2  ;;  %v4372_v1 = vld [vmem:[%s6004_s0 + $0x20] ss:$196 sps:$4 sm:$0xff]   ;;  %v2098_v4 = vunpack.c.l.s8.bf16 %v1434_v0 }
 0x205   : > { %v4375_v2 = vld [vmem:[%s6004_s0 + $0x80] ss:$196 sps:$4 sm:$0xff]  }
 0x206   : > { %2819 = vmatpush1.bf16.msra.mxu1 %v1694_v5  ;;  %v1717_v5 = vunpack.c.h.s8.bf16 %v1243_v57  ;;  %v1253_v57 = vld [vmem:[%s5392_s29 + $0x2d8] sm:$0xff] }
 0x207   : > { %3335 = vmatpush1.bf16.msra.mxu0 %v2078_v6  ;;  %2820 = vmatprep.subr.bf16.mxu1 %v1697_v7  ;;  %v2101_v6 = vunpack.c.h.s8.bf16 %v1435_v58  ;;  %v1245_v7 = vld [vmem:[%s5392_s29 + $0x298] sm:$0xff] }
 0x208   : > { %3336 = vmatprep.subr.bf16.mxu0 %v2081_v8  ;;  %v1437_v8 = vld [vmem:[%s5392_s29 + $0x898] sm:$0xff] }
 0x209   : > { %v1445_v58 = vld [vmem:[%s5392_s29 + $0x8d8] sm:$0xff] }
 0x20a   : > { %2821 = vmatpush1.bf16.msra.mxu1 %v1696_v11  ;;  %v1716_v11 = vunpack.c.h.s8.bf16 %v1242_v63  ;;  %v1252_v63 = vld [vmem:[%s5392_s29 + $0x2d0] sm:$0xff] }
 0x20b   : > { %3337 = vmatpush1.bf16.msra.mxu0 %v2080_v12  ;;  %2822 = vmatprep.subr.bf16.mxu1 %v1699_v13  ;;  %v2100_v12 = vunpack.c.h.s8.bf16 %v1434_v0  ;;  %v1719_v13 = vunpack.c.l.s8.bf16 %v1245_v7  ;;  %v1444_v0 = vld [vmem:[%s5392_s29 + $0x8d0] sm:$0xff] }
 0x20c   : > { %3338 = vmatprep.subr.bf16.mxu0 %v2083_v14  ;;  %v2103_v14 = vunpack.c.l.s8.bf16 %v1437_v8 }
 0x20e   : > { %2823 = vmatpush1.bf16.msra.mxu1 %v1698_v17  ;;  %v1718_v17 = vunpack.c.l.s8.bf16 %v1244_v15 }
 0x20f   : > { %3339 = vmatpush1.bf16.msra.mxu0 %v2082_v18  ;;  %2824 = vmatprep.subr.bf16.mxu1 %v1701_v19  ;;  %v2102_v18 = vunpack.c.l.s8.bf16 %v1436_v16  ;;  %v1721_v19 = vunpack.c.h.s8.bf16 %v1245_v7  ;;  %v1736_v7 = vunpack.c.h.s8.bf16 %v1252_v63 }
 0x210   : > { %3340 = vmatprep.subr.bf16.mxu0 %v2085_v20  ;;  %v2105_v20 = vunpack.c.h.s8.bf16 %v1437_v8  ;;  %v2120_v8 = vunpack.c.h.s8.bf16 %v1444_v0 }
 0x212   : > { %2825 = vmatpush1.bf16.msra.mxu1 %v1700_v23  ;;  %v1720_v23 = vunpack.c.h.s8.bf16 %v1244_v15 }
 0x213   : > { %3341 = vmatpush1.bf16.msra.mxu0 %v2084_v24  ;;  %2826 = vmatprep.subr.bf16.mxu1 %v1703_v25  ;;  %v2104_v24 = vunpack.c.h.s8.bf16 %v1436_v16  ;;  %v1723_v25 = vunpack.c.l.s8.bf16 %v1247_v21 }
 0x214   : > { %3342 = vmatprep.subr.bf16.mxu0 %v2087_v26  ;;  %v2107_v26 = vunpack.c.l.s8.bf16 %v1439_v22 }
 0x216   : > { %2827 = vmatpush1.bf16.msra.mxu1 %v1702_v29  ;;  %v1722_v29 = vunpack.c.l.s8.bf16 %v1246_v27 }
 0x217   : > { %3343 = vmatpush1.bf16.msra.mxu0 %v2086_v30  ;;  %2828 = vmatprep.subr.bf16.mxu1 %v1705_v31  ;;  %v2106_v30 = vunpack.c.l.s8.bf16 %v1438_v28  ;;  %v1725_v31 = vunpack.c.h.s8.bf16 %v1247_v21 }
 0x218   : > { %3344 = vmatprep.subr.bf16.mxu0 %v2089_v32  ;;  %v2109_v32 = vunpack.c.h.s8.bf16 %v1439_v22 }
 0x21a   : > { %2829 = vmatpush1.bf16.msra.mxu1 %v1704_v35  ;;  %v1724_v35 = vunpack.c.h.s8.bf16 %v1246_v27 }
 0x21b   : > { %3345 = vmatpush1.bf16.msra.mxu0 %v2088_v36  ;;  %2830 = vmatprep.subr.bf16.mxu1 %v1707_v37  ;;  %v2108_v36 = vunpack.c.h.s8.bf16 %v1438_v28  ;;  %v1727_v37 = vunpack.c.l.s8.bf16 %v1249_v33 }
 0x21c   : > { %3346 = vmatprep.subr.bf16.mxu0 %v2091_v38  ;;  %v2111_v38 = vunpack.c.l.s8.bf16 %v1441_v34 }
 0x21e   : > { %2831 = vmatpush1.bf16.msra.mxu1 %v1706_v41  ;;  %v1726_v41 = vunpack.c.l.s8.bf16 %v1248_v39 }
 0x21f   : > { %3347 = vmatpush1.bf16.msra.mxu0 %v2090_v42  ;;  %2832 = vmatprep.subr.bf16.mxu1 %v1709_v43  ;;  %v2110_v42 = vunpack.c.l.s8.bf16 %v1440_v40  ;;  %v1729_v43 = vunpack.c.h.s8.bf16 %v1249_v33 }
 0x220   : > { %3348 = vmatprep.subr.bf16.mxu0 %v2093_v44  ;;  %v2113_v44 = vunpack.c.h.s8.bf16 %v1441_v34 }
 0x222   : > { %2833 = vmatpush1.bf16.msra.mxu1 %v1708_v47  ;;  %v1728_v47 = vunpack.c.h.s8.bf16 %v1248_v39 }
 0x223   : > { %3349 = vmatpush1.bf16.msra.mxu0 %v2092_v48  ;;  %2834 = vmatprep.subr.bf16.mxu1 %v1711_v49  ;;  %v2112_v48 = vunpack.c.h.s8.bf16 %v1440_v40  ;;  %v1731_v49 = vunpack.c.l.s8.bf16 %v1251_v45 }
 0x224   : > { %3350 = vmatprep.subr.bf16.mxu0 %v2095_v50  ;;  %v2115_v50 = vunpack.c.l.s8.bf16 %v1443_v46 }
 0x226   : > { %2835 = vmatpush1.bf16.msra.mxu1 %v1710_v53  ;;  %v1730_v53 = vunpack.c.l.s8.bf16 %v1250_v51 }
 0x227   : > { %3351 = vmatpush1.bf16.msra.mxu0 %v2094_v54  ;;  %2836 = vmatprep.subr.bf16.mxu1 %v1713_v55  ;;  %v2114_v54 = vunpack.c.l.s8.bf16 %v1442_v52  ;;  %v1733_v55 = vunpack.c.h.s8.bf16 %v1251_v45  ;;  %v4386_v45 = vld [vmem:[%s6004_s0 + $0x34] ss:$196 sps:$4 sm:$0xff]  }
 0x228   : > { %3352 = vmatprep.subr.bf16.mxu0 %v2097_v56  ;;  %v2117_v56 = vunpack.c.h.s8.bf16 %v1443_v46  ;;  %v4389_v46 = vld [vmem:[%s6004_s0 + $0x94] ss:$196 sps:$4 sm:$0xff]  }
 0x22a   : > { %2837 = vmatpush1.bf16.msra.mxu1 %v1712_v59  ;;  %v1732_v59 = vunpack.c.h.s8.bf16 %v1250_v51  ;;  %v1260_v51 = vld [vmem:[%s5392_s29 + $0x310] sm:$0xff] }
 0x22b   : > { %3353 = vmatpush1.bf16.msra.mxu0 %v2096_v60  ;;  %2849 = vmatprep.subr.bf16.mxu1 %v1715_v61  ;;  %v2116_v60 = vunpack.c.h.s8.bf16 %v1442_v52  ;;  %v1735_v61 = vunpack.c.l.s8.bf16 %v1253_v57  ;;  %v1452_v52 = vld [vmem:[%s5392_s29 + $0x910] sm:$0xff] }
 0x22c   : > { %3365 = vmatprep.subr.bf16.mxu0 %v2099_v62  ;;  %v2119_v62 = vunpack.c.l.s8.bf16 %v1445_v58 }
 0x22d   : > { %2839 = vmatmul.mubr.bf16.vlgmr.msra.gmra.mrb[0].mxu1 %v4372_v1  ;;  %v1734_v1 = vunpack.c.l.s8.bf16 %v1252_v63  ;;  %v1262_v63 = vld [vmem:[%s5392_s29 + $0x320] sm:$0xff] }
 0x22e   : > { %3355 = vmatmul.mubr.bf16.vlgmr.msra.gmra.mrb[0].mxu0 %v4375_v2  ;;  %2850 = vmatpush1.bf16.msra.mxu1 %v1714_v3  ;;  %v2118_v2 = vunpack.c.l.s8.bf16 %v1444_v0  ;;  %v1737_v3 = vunpack.c.h.s8.bf16 %v1253_v57  ;;  %v1263_v57 = vld [vmem:[%s5392_s29 + $0x328] sm:$0xff]  ;;  %v1454_v0 = vld [vmem:[%s5392_s29 + $0x920] sm:$0xff] }
 0x22f   : > { %3366 = vmatpush1.bf16.msra.mxu0 %v2098_v4  ;;  %2851 = vmatprep.subr.bf16.mxu1 %v1717_v5  ;;  %v2121_v4 = vunpack.c.h.s8.bf16 %v1445_v58  ;;  %v1255_v5 = vld [vmem:[%s5392_s29 + $0x2e8] sm:$0xff] }
 0x230   : > { %3367 = vmatprep.subr.bf16.mxu0 %v2101_v6  ;;  %2881 = vmatprep.mubr.bf16.mxu1 %v4380_v9  ;;  %v1447_v6 = vld [vmem:[%s5392_s29 + $0x8e8] sm:$0xff]  ;;  %v1739_v9 = vunpack.c.l.s8.bf16 %v1255_v5  ;;  %v1741_v15 = vunpack.c.h.s8.bf16 %v1255_v5  ;;  %v1265_v5 = vld [vmem:[%s5392_s29 + $0x338] sm:$0xff] }
 0x231   : > { %3397 = vmatprep.mubr.bf16.mxu0 %v4383_v10  ;;  %v2123_v10 = vunpack.c.l.s8.bf16 %v1447_v6  ;;  %v2125_v16 = vunpack.c.h.s8.bf16 %v1447_v6  ;;  %v1455_v58 = vld [vmem:[%s5392_s29 + $0x928] sm:$0xff]  ;;  %v1457_v6 = vld [vmem:[%s5392_s29 + $0x938] sm:$0xff] }
 0x232   : > { %2852 = vmatpush1.bf16.msra.mxu1 %v1716_v11  ;;  %v1254_v11 = vld [vmem:[%s5392_s29 + $0x2e0] sm:$0xff] }
 0x233   : > { %3368 = vmatpush1.bf16.msra.mxu0 %v2100_v12  ;;  %2853 = vmatprep.subr.bf16.mxu1 %v1719_v13  ;;  %v1446_v12 = vld [vmem:[%s5392_s29 + $0x8e0] sm:$0xff]  ;;  %v1738_v13 = vunpack.c.l.s8.bf16 %v1254_v11 }
 0x234   : > { %3369 = vmatprep.subr.bf16.mxu0 %v2103_v14  ;;  %v2122_v14 = vunpack.c.l.s8.bf16 %v1446_v12 }
 0x236   : > { %2854 = vmatpush1.bf16.msra.mxu1 %v1718_v17  ;;  %v1257_v17 = vld [vmem:[%s5392_s29 + $0x2f8] sm:$0xff] }
 0x237   : > { %3370 = vmatpush1.bf16.msra.mxu0 %v2102_v18  ;;  %2855 = vmatprep.subr.bf16.mxu1 %v1721_v19  ;;  %v1449_v18 = vld [vmem:[%s5392_s29 + $0x8f8] sm:$0xff]  ;;  %v1740_v19 = vunpack.c.h.s8.bf16 %v1254_v11  ;;  %v1743_v21 = vunpack.c.l.s8.bf16 %v1257_v17  ;;  %v1745_v27 = vunpack.c.h.s8.bf16 %v1257_v17  ;;  %v1264_v11 = vld [vmem:[%s5392_s29 + $0x330] sm:$0xff]  ;;  %v1267_v17 = vld [vmem:[%s5392_s29 + $0x348] sm:$0xff] }
 0x238   : > { %3371 = vmatprep.subr.bf16.mxu0 %v2105_v20  ;;  %v2124_v20 = vunpack.c.h.s8.bf16 %v1446_v12  ;;  %v2127_v22 = vunpack.c.l.s8.bf16 %v1449_v18  ;;  %v2129_v28 = vunpack.c.h.s8.bf16 %v1449_v18  ;;  %v1456_v12 = vld [vmem:[%s5392_s29 + $0x930] sm:$0xff]  ;;  %v1459_v18 = vld [vmem:[%s5392_s29 + $0x948] sm:$0xff] }
 0x23a   : > { %2856 = vmatpush1.bf16.msra.mxu1 %v1720_v23  ;;  %v1256_v23 = vld [vmem:[%s5392_s29 + $0x2f0] sm:$0xff] }
 0x23b   : > { %3372 = vmatpush1.bf16.msra.mxu0 %v2104_v24  ;;  %2857 = vmatprep.subr.bf16.mxu1 %v1723_v25  ;;  %v1448_v24 = vld [vmem:[%s5392_s29 + $0x8f0] sm:$0xff]  ;;  %v1742_v25 = vunpack.c.l.s8.bf16 %v1256_v23 }
 0x23c   : > { %3373 = vmatprep.subr.bf16.mxu0 %v2107_v26  ;;  %v2126_v26 = vunpack.c.l.s8.bf16 %v1448_v24 }
 0x23e   : > { %2858 = vmatpush1.bf16.msra.mxu1 %v1722_v29  ;;  %v1259_v29 = vld [vmem:[%s5392_s29 + $0x308] sm:$0xff] }
 0x23f   : > { %3374 = vmatpush1.bf16.msra.mxu0 %v2106_v30  ;;  %2859 = vmatprep.subr.bf16.mxu1 %v1725_v31  ;;  %v1451_v30 = vld [vmem:[%s5392_s29 + $0x908] sm:$0xff]  ;;  %v1744_v31 = vunpack.c.h.s8.bf16 %v1256_v23  ;;  %v1747_v33 = vunpack.c.l.s8.bf16 %v1259_v29  ;;  %v1266_v23 = vld [vmem:[%s5392_s29 + $0x340] sm:$0xff] }
 0x240   : > { %3375 = vmatprep.subr.bf16.mxu0 %v2109_v32  ;;  %v2128_v32 = vunpack.c.h.s8.bf16 %v1448_v24  ;;  %v2131_v34 = vunpack.c.l.s8.bf16 %v1451_v30  ;;  %v1458_v24 = vld [vmem:[%s5392_s29 + $0x940] sm:$0xff] }
 0x242   : > { %2860 = vmatpush1.bf16.msra.mxu1 %v1724_v35  ;;  %v1258_v35 = vld [vmem:[%s5392_s29 + $0x300] sm:$0xff] }
 0x243   : > { %3376 = vmatpush1.bf16.msra.mxu0 %v2108_v36  ;;  %2861 = vmatprep.subr.bf16.mxu1 %v1727_v37  ;;  %v1450_v36 = vld [vmem:[%s5392_s29 + $0x900] sm:$0xff]  ;;  %v4378_v37 = vld [vmem:[%s6004_s0 + $0x28] ss:$196 sps:$4 sm:$0xff]   ;;  %v1746_v39 = vunpack.c.l.s8.bf16 %v1258_v35 }
 0x244   : > { %3377 = vmatprep.subr.bf16.mxu0 %v2111_v38  ;;  %v4381_v38 = vld [vmem:[%s6004_s0 + $0x88] ss:$196 sps:$4 sm:$0xff]   ;;  %v2130_v40 = vunpack.c.l.s8.bf16 %v1450_v36 }
 0x246   : > { %2862 = vmatpush1.bf16.msra.mxu1 %v1726_v41  ;;  %v1749_v41 = vunpack.c.h.s8.bf16 %v1259_v29  ;;  %v1269_v29 = vld [vmem:[%s5392_s29 + $0x358] sm:$0xff] }
 0x247   : > { %3378 = vmatpush1.bf16.msra.mxu0 %v2110_v42  ;;  %2863 = vmatprep.subr.bf16.mxu1 %v1729_v43  ;;  %v2133_v42 = vunpack.c.h.s8.bf16 %v1451_v30  ;;  %v1261_v43 = vld [vmem:[%s5392_s29 + $0x318] sm:$0xff] }
 0x248   : > { %3379 = vmatprep.subr.bf16.mxu0 %v2113_v44  ;;  %v1453_v44 = vld [vmem:[%s5392_s29 + $0x918] sm:$0xff] }
 0x249   : > { %v1461_v30 = vld [vmem:[%s5392_s29 + $0x958] sm:$0xff] }
 0x24a   : > { %2864 = vmatpush1.bf16.msra.mxu1 %v1728_v47  ;;  %v1748_v47 = vunpack.c.h.s8.bf16 %v1258_v35  ;;  %v1268_v35 = vld [vmem:[%s5392_s29 + $0x350] sm:$0xff] }
 0x24b   : > { %3380 = vmatpush1.bf16.msra.mxu0 %v2112_v48  ;;  %2865 = vmatprep.subr.bf16.mxu1 %v1731_v49  ;;  %v2132_v48 = vunpack.c.h.s8.bf16 %v1450_v36  ;;  %v1751_v49 = vunpack.c.l.s8.bf16 %v1261_v43  ;;  %v1460_v36 = vld [vmem:[%s5392_s29 + $0x950] sm:$0xff] }
 0x24c   : > { %3381 = vmatprep.subr.bf16.mxu0 %v2115_v50  ;;  %v2135_v50 = vunpack.c.l.s8.bf16 %v1453_v44 }
 0x24e   : > { %2866 = vmatpush1.bf16.msra.mxu1 %v1730_v53  ;;  %v1750_v53 = vunpack.c.l.s8.bf16 %v1260_v51 }
 0x24f   : > { %3382 = vmatpush1.bf16.msra.mxu0 %v2114_v54  ;;  %2867 = vmatprep.subr.bf16.mxu1 %v1733_v55  ;;  %v2134_v54 = vunpack.c.l.s8.bf16 %v1452_v52  ;;  %v1753_v55 = vunpack.c.h.s8.bf16 %v1261_v43  ;;  %v1768_v43 = vunpack.c.h.s8.bf16 %v1268_v35 }
 0x250   : > { %3383 = vmatprep.subr.bf16.mxu0 %v2117_v56  ;;  %v2137_v56 = vunpack.c.h.s8.bf16 %v1453_v44  ;;  %v2152_v44 = vunpack.c.h.s8.bf16 %v1460_v36 }
 0x252   : > { %2868 = vmatpush1.bf16.msra.mxu1 %v1732_v59  ;;  %v1752_v59 = vunpack.c.h.s8.bf16 %v1260_v51 }
 0x253   : > { %3384 = vmatpush1.bf16.msra.mxu0 %v2116_v60  ;;  %2869 = vmatprep.subr.bf16.mxu1 %v1735_v61  ;;  %v2136_v60 = vunpack.c.h.s8.bf16 %v1452_v52  ;;  %v1755_v61 = vunpack.c.l.s8.bf16 %v1263_v57 }
 0x254   : > { %3385 = vmatprep.subr.bf16.mxu0 %v2119_v62  ;;  %v2139_v62 = vunpack.c.l.s8.bf16 %v1455_v58 }
 0x256   : > { %2870 = vmatpush1.bf16.msra.mxu1 %v1734_v1  ;;  %v1754_v1 = vunpack.c.l.s8.bf16 %v1262_v63 }
 0x257   : > { %3386 = vmatpush1.bf16.msra.mxu0 %v2118_v2  ;;  %2871 = vmatprep.subr.bf16.mxu1 %v1737_v3  ;;  %v2138_v2 = vunpack.c.l.s8.bf16 %v1454_v0  ;;  %v1757_v3 = vunpack.c.h.s8.bf16 %v1263_v57 }
 0x258   : > { %3387 = vmatprep.subr.bf16.mxu0 %v2121_v4  ;;  %v2141_v4 = vunpack.c.h.s8.bf16 %v1455_v58 }
 0x25a   : > { %2872 = vmatpush1.bf16.msra.mxu1 %v1736_v7  ;;  %v1756_v7 = vunpack.c.h.s8.bf16 %v1262_v63 }
 0x25b   : > { %3388 = vmatpush1.bf16.msra.mxu0 %v2120_v8  ;;  %2873 = vmatprep.subr.bf16.mxu1 %v1739_v9  ;;  %v2140_v8 = vunpack.c.h.s8.bf16 %v1454_v0  ;;  %v1759_v9 = vunpack.c.l.s8.bf16 %v1265_v5 }
 0x25c   : > { %3389 = vmatprep.subr.bf16.mxu0 %v2123_v10  ;;  %v2143_v10 = vunpack.c.l.s8.bf16 %v1457_v6 }
 0x25e   : > { %2874 = vmatpush1.bf16.msra.mxu1 %v1738_v13  ;;  %v1758_v13 = vunpack.c.l.s8.bf16 %v1264_v11 }
 0x25f   : > { %3390 = vmatpush1.bf16.msra.mxu0 %v2122_v14  ;;  %2875 = vmatprep.subr.bf16.mxu1 %v1741_v15  ;;  %v2142_v14 = vunpack.c.l.s8.bf16 %v1456_v12  ;;  %v1761_v15 = vunpack.c.h.s8.bf16 %v1265_v5 }
 0x260   : > { %3391 = vmatprep.subr.bf16.mxu0 %v2125_v16  ;;  %v2145_v16 = vunpack.c.h.s8.bf16 %v1457_v6 }
 0x262   : > { %2876 = vmatpush1.bf16.msra.mxu1 %v1740_v19  ;;  %v1760_v19 = vunpack.c.h.s8.bf16 %v1264_v11 }
 0x263   : > { %3392 = vmatpush1.bf16.msra.mxu0 %v2124_v20  ;;  %2877 = vmatprep.subr.bf16.mxu1 %v1743_v21  ;;  %v2144_v20 = vunpack.c.h.s8.bf16 %v1456_v12  ;;  %v1763_v21 = vunpack.c.l.s8.bf16 %v1267_v17 }
 0x264   : > { %3393 = vmatprep.subr.bf16.mxu0 %v2127_v22  ;;  %v2147_v22 = vunpack.c.l.s8.bf16 %v1459_v18 }
 0x266   : > { %2878 = vmatpush1.bf16.msra.mxu1 %v1742_v25  ;;  %v1762_v25 = vunpack.c.l.s8.bf16 %v1266_v23 }
 0x267   : > { %3394 = vmatpush1.bf16.msra.mxu0 %v2126_v26  ;;  %2879 = vmatprep.subr.bf16.mxu1 %v1745_v27  ;;  %v2146_v26 = vunpack.c.l.s8.bf16 %v1458_v24  ;;  %v1765_v27 = vunpack.c.h.s8.bf16 %v1267_v17  ;;  %v4392_v17 = vld [vmem:[%s6004_s0 + $0x3c] ss:$196 sps:$4 sm:$0xff]  }
 0x268   : > { %3395 = vmatprep.subr.bf16.mxu0 %v2129_v28  ;;  %v2149_v28 = vunpack.c.h.s8.bf16 %v1459_v18  ;;  %v4395_v18 = vld [vmem:[%s6004_s0 + $0x9c] ss:$196 sps:$4 sm:$0xff]  }
 0x26a   : > { %2880 = vmatpush1.bf16.msra.mxu1 %v1744_v31  ;;  %v1764_v31 = vunpack.c.h.s8.bf16 %v1266_v23  ;;  %v1276_v23 = vld [vmem:[%s5392_s29 + $0x390] sm:$0xff] }
 0x26b   : > { %3396 = vmatpush1.bf16.msra.mxu0 %v2128_v32  ;;  %2892 = vmatprep.subr.bf16.mxu1 %v1747_v33  ;;  %v2148_v32 = vunpack.c.h.s8.bf16 %v1458_v24  ;;  %v1767_v33 = vunpack.c.l.s8.bf16 %v1269_v29  ;;  %v1468_v24 = vld [vmem:[%s5392_s29 + $0x990] sm:$0xff] }
 0x26c   : > { %3408 = vmatprep.subr.bf16.mxu0 %v2131_v34  ;;  %v2151_v34 = vunpack.c.l.s8.bf16 %v1461_v30 }
 0x26d   : > { %2882 = vmatmul.mubr.bf16.vlgmr.msra.gmra.mrb[0].mxu1 %v4378_v37  ;;  %v1766_v37 = vunpack.c.l.s8.bf16 %v1268_v35  ;;  %v1278_v35 = vld [vmem:[%s5392_s29 + $0x3a0] sm:$0xff] }
 0x26e   : > { %3398 = vmatmul.mubr.bf16.vlgmr.msra.gmra.mrb[0].mxu0 %v4381_v38  ;;  %2893 = vmatpush1.bf16.msra.mxu1 %v1746_v39  ;;  %v2150_v38 = vunpack.c.l.s8.bf16 %v1460_v36  ;;  %v1769_v39 = vunpack.c.h.s8.bf16 %v1269_v29  ;;  %v1279_v29 = vld [vmem:[%s5392_s29 + $0x3a8] sm:$0xff]  ;;  %v1470_v36 = vld [vmem:[%s5392_s29 + $0x9a0] sm:$0xff] }
 0x26f   : > { %3409 = vmatpush1.bf16.msra.mxu0 %v2130_v40  ;;  %2894 = vmatprep.subr.bf16.mxu1 %v1749_v41  ;;  %v2153_v40 = vunpack.c.h.s8.bf16 %v1461_v30  ;;  %v1271_v41 = vld [vmem:[%s5392_s29 + $0x368] sm:$0xff] }
 0x270   : > { %3410 = vmatprep.subr.bf16.mxu0 %v2133_v42  ;;  %2924 = vmatprep.mubr.bf16.mxu1 %v4386_v45  ;;  %v1463_v42 = vld [vmem:[%s5392_s29 + $0x968] sm:$0xff]  ;;  %v1771_v45 = vunpack.c.l.s8.bf16 %v1271_v41  ;;  %v1773_v51 = vunpack.c.h.s8.bf16 %v1271_v41  ;;  %v1281_v41 = vld [vmem:[%s5392_s29 + $0x3b8] sm:$0xff] }
 0x271   : > { %3440 = vmatprep.mubr.bf16.mxu0 %v4389_v46  ;;  %v2155_v46 = vunpack.c.l.s8.bf16 %v1463_v42  ;;  %v2157_v52 = vunpack.c.h.s8.bf16 %v1463_v42  ;;  %v1471_v30 = vld [vmem:[%s5392_s29 + $0x9a8] sm:$0xff]  ;;  %v1473_v42 = vld [vmem:[%s5392_s29 + $0x9b8] sm:$0xff] }
 0x272   : > { %2895 = vmatpush1.bf16.msra.mxu1 %v1748_v47  ;;  %v1270_v47 = vld [vmem:[%s5392_s29 + $0x360] sm:$0xff] }
 0x273   : > { %3411 = vmatpush1.bf16.msra.mxu0 %v2132_v48  ;;  %2896 = vmatprep.subr.bf16.mxu1 %v1751_v49  ;;  %v1462_v48 = vld [vmem:[%s5392_s29 + $0x960] sm:$0xff]  ;;  %v1770_v49 = vunpack.c.l.s8.bf16 %v1270_v47 }
 0x274   : > { %3412 = vmatprep.subr.bf16.mxu0 %v2135_v50  ;;  %v2154_v50 = vunpack.c.l.s8.bf16 %v1462_v48 }
 0x276   : > { %2897 = vmatpush1.bf16.msra.mxu1 %v1750_v53  ;;  %v1273_v53 = vld [vmem:[%s5392_s29 + $0x378] sm:$0xff] }
 0x277   : > { %3413 = vmatpush1.bf16.msra.mxu0 %v2134_v54  ;;  %2898 = vmatprep.subr.bf16.mxu1 %v1753_v55  ;;  %v1465_v54 = vld [vmem:[%s5392_s29 + $0x978] sm:$0xff]  ;;  %v1772_v55 = vunpack.c.h.s8.bf16 %v1270_v47  ;;  %v1775_v57 = vunpack.c.l.s8.bf16 %v1273_v53  ;;  %v1777_v63 = vunpack.c.h.s8.bf16 %v1273_v53  ;;  %v1280_v47 = vld [vmem:[%s5392_s29 + $0x3b0] sm:$0xff]  ;;  %v1283_v53 = vld [vmem:[%s5392_s29 + $0x3c8] sm:$0xff] }
 0x278   : > { %3414 = vmatprep.subr.bf16.mxu0 %v2137_v56  ;;  %v2156_v56 = vunpack.c.h.s8.bf16 %v1462_v48  ;;  %v2159_v58 = vunpack.c.l.s8.bf16 %v1465_v54  ;;  %v2161_v0 = vunpack.c.h.s8.bf16 %v1465_v54  ;;  %v1472_v48 = vld [vmem:[%s5392_s29 + $0x9b0] sm:$0xff]  ;;  %v1475_v54 = vld [vmem:[%s5392_s29 + $0x9c8] sm:$0xff] }
 0x27a   : > { %2899 = vmatpush1.bf16.msra.mxu1 %v1752_v59  ;;  %v1272_v59 = vld [vmem:[%s5392_s29 + $0x370] sm:$0xff] }
 0x27b   : > { %3415 = vmatpush1.bf16.msra.mxu0 %v2136_v60  ;;  %2900 = vmatprep.subr.bf16.mxu1 %v1755_v61  ;;  %v1464_v60 = vld [vmem:[%s5392_s29 + $0x970] sm:$0xff]  ;;  %v1774_v61 = vunpack.c.l.s8.bf16 %v1272_v59 }
 0x27c   : > { %3416 = vmatprep.subr.bf16.mxu0 %v2139_v62  ;;  %v2158_v62 = vunpack.c.l.s8.bf16 %v1464_v60 }
 0x27e   : > { %2901 = vmatpush1.bf16.msra.mxu1 %v1754_v1  ;;  %v1275_v1 = vld [vmem:[%s5392_s29 + $0x388] sm:$0xff] }
 0x27f   : > { %3417 = vmatpush1.bf16.msra.mxu0 %v2138_v2  ;;  %2902 = vmatprep.subr.bf16.mxu1 %v1757_v3  ;;  %v1467_v2 = vld [vmem:[%s5392_s29 + $0x988] sm:$0xff]  ;;  %v1776_v3 = vunpack.c.h.s8.bf16 %v1272_v59  ;;  %v1779_v5 = vunpack.c.l.s8.bf16 %v1275_v1  ;;  %v1282_v59 = vld [vmem:[%s5392_s29 + $0x3c0] sm:$0xff] }
 0x280   : > { %3418 = vmatprep.subr.bf16.mxu0 %v2141_v4  ;;  %v2160_v4 = vunpack.c.h.s8.bf16 %v1464_v60  ;;  %v2163_v6 = vunpack.c.l.s8.bf16 %v1467_v2  ;;  %v1474_v60 = vld [vmem:[%s5392_s29 + $0x9c0] sm:$0xff] }
 0x282   : > { %2903 = vmatpush1.bf16.msra.mxu1 %v1756_v7  ;;  %v1274_v7 = vld [vmem:[%s5392_s29 + $0x380] sm:$0xff] }
 0x283   : > { %3419 = vmatpush1.bf16.msra.mxu0 %v2140_v8  ;;  %2904 = vmatprep.subr.bf16.mxu1 %v1759_v9  ;;  %v1466_v8 = vld [vmem:[%s5392_s29 + $0x980] sm:$0xff]  ;;  %v4384_v9 = vld [vmem:[%s6004_s0 + $0x30] ss:$196 sps:$4 sm:$0xff]   ;;  %v1778_v11 = vunpack.c.l.s8.bf16 %v1274_v7 }
 0x284   : > { %3420 = vmatprep.subr.bf16.mxu0 %v2143_v10  ;;  %v4387_v10 = vld [vmem:[%s6004_s0 + $0x90] ss:$196 sps:$4 sm:$0xff]   ;;  %v2162_v12 = vunpack.c.l.s8.bf16 %v1466_v8 }
 0x286   : > { %2905 = vmatpush1.bf16.msra.mxu1 %v1758_v13  ;;  %v1781_v13 = vunpack.c.h.s8.bf16 %v1275_v1  ;;  %v1285_v1 = vld [vmem:[%s5392_s29 + $0x3d8] sm:$0xff] }
 0x287   : > { %3421 = vmatpush1.bf16.msra.mxu0 %v2142_v14  ;;  %2906 = vmatprep.subr.bf16.mxu1 %v1761_v15  ;;  %v2165_v14 = vunpack.c.h.s8.bf16 %v1467_v2  ;;  %v1277_v15 = vld [vmem:[%s5392_s29 + $0x398] sm:$0xff] }
 0x288   : > { %3422 = vmatprep.subr.bf16.mxu0 %v2145_v16  ;;  %v1469_v16 = vld [vmem:[%s5392_s29 + $0x998] sm:$0xff] }
 0x289   : > { %v1477_v2 = vld [vmem:[%s5392_s29 + $0x9d8] sm:$0xff] }
 0x28a   : > { %2907 = vmatpush1.bf16.msra.mxu1 %v1760_v19  ;;  %v1780_v19 = vunpack.c.h.s8.bf16 %v1274_v7  ;;  %v1284_v7 = vld [vmem:[%s5392_s29 + $0x3d0] sm:$0xff] }
 0x28b   : > { %3423 = vmatpush1.bf16.msra.mxu0 %v2144_v20  ;;  %2908 = vmatprep.subr.bf16.mxu1 %v1763_v21  ;;  %v2164_v20 = vunpack.c.h.s8.bf16 %v1466_v8  ;;  %v1783_v21 = vunpack.c.l.s8.bf16 %v1277_v15  ;;  %v1476_v8 = vld [vmem:[%s5392_s29 + $0x9d0] sm:$0xff] }
 0x28c   : > { %3424 = vmatprep.subr.bf16.mxu0 %v2147_v22  ;;  %v2167_v22 = vunpack.c.l.s8.bf16 %v1469_v16 }
 0x28e   : > { %2909 = vmatpush1.bf16.msra.mxu1 %v1762_v25  ;;  %v1782_v25 = vunpack.c.l.s8.bf16 %v1276_v23 }
 0x28f   : > { %3425 = vmatpush1.bf16.msra.mxu0 %v2146_v26  ;;  %2910 = vmatprep.subr.bf16.mxu1 %v1765_v27  ;;  %v2166_v26 = vunpack.c.l.s8.bf16 %v1468_v24  ;;  %v1785_v27 = vunpack.c.h.s8.bf16 %v1277_v15  ;;  %v1800_v15 = vunpack.c.h.s8.bf16 %v1284_v7 }
 0x290   : > { %3426 = vmatprep.subr.bf16.mxu0 %v2149_v28  ;;  %v2169_v28 = vunpack.c.h.s8.bf16 %v1469_v16  ;;  %v2184_v16 = vunpack.c.h.s8.bf16 %v1476_v8 }
 0x292   : > { %2911 = vmatpush1.bf16.msra.mxu1 %v1764_v31  ;;  %v1784_v31 = vunpack.c.h.s8.bf16 %v1276_v23 }
 0x293   : > { %3427 = vmatpush1.bf16.msra.mxu0 %v2148_v32  ;;  %2912 = vmatprep.subr.bf16.mxu1 %v1767_v33  ;;  %v2168_v32 = vunpack.c.h.s8.bf16 %v1468_v24  ;;  %v1787_v33 = vunpack.c.l.s8.bf16 %v1279_v29 }
 0x294   : > { %3428 = vmatprep.subr.bf16.mxu0 %v2151_v34  ;;  %v2171_v34 = vunpack.c.l.s8.bf16 %v1471_v30 }
 0x296   : > { %2913 = vmatpush1.bf16.msra.mxu1 %v1766_v37  ;;  %v1786_v37 = vunpack.c.l.s8.bf16 %v1278_v35 }
 0x297   : > { %3429 = vmatpush1.bf16.msra.mxu0 %v2150_v38  ;;  %2914 = vmatprep.subr.bf16.mxu1 %v1769_v39  ;;  %v2170_v38 = vunpack.c.l.s8.bf16 %v1470_v36  ;;  %v1789_v39 = vunpack.c.h.s8.bf16 %v1279_v29 }
 0x298   : > { %3430 = vmatprep.subr.bf16.mxu0 %v2153_v40  ;;  %v2173_v40 = vunpack.c.h.s8.bf16 %v1471_v30 }
 0x29a   : > { %2915 = vmatpush1.bf16.msra.mxu1 %v1768_v43  ;;  %v1788_v43 = vunpack.c.h.s8.bf16 %v1278_v35 }
 0x29b   : > { %3431 = vmatpush1.bf16.msra.mxu0 %v2152_v44  ;;  %2916 = vmatprep.subr.bf16.mxu1 %v1771_v45  ;;  %v2172_v44 = vunpack.c.h.s8.bf16 %v1470_v36  ;;  %v1791_v45 = vunpack.c.l.s8.bf16 %v1281_v41 }
 0x29c   : > { %3432 = vmatprep.subr.bf16.mxu0 %v2155_v46  ;;  %v2175_v46 = vunpack.c.l.s8.bf16 %v1473_v42 }
 0x29e   : > { %2917 = vmatpush1.bf16.msra.mxu1 %v1770_v49  ;;  %v1790_v49 = vunpack.c.l.s8.bf16 %v1280_v47 }
 0x29f   : > { %3433 = vmatpush1.bf16.msra.mxu0 %v2154_v50  ;;  %2918 = vmatprep.subr.bf16.mxu1 %v1773_v51  ;;  %v2174_v50 = vunpack.c.l.s8.bf16 %v1472_v48  ;;  %v1793_v51 = vunpack.c.h.s8.bf16 %v1281_v41 }
 0x2a0   : > { %3434 = vmatprep.subr.bf16.mxu0 %v2157_v52  ;;  %v2177_v52 = vunpack.c.h.s8.bf16 %v1473_v42 }
 0x2a2   : > { %2919 = vmatpush1.bf16.msra.mxu1 %v1772_v55  ;;  %v1792_v55 = vunpack.c.h.s8.bf16 %v1280_v47 }
 0x2a3   : > { %3435 = vmatpush1.bf16.msra.mxu0 %v2156_v56  ;;  %2920 = vmatprep.subr.bf16.mxu1 %v1775_v57  ;;  %v2176_v56 = vunpack.c.h.s8.bf16 %v1472_v48  ;;  %v1795_v57 = vunpack.c.l.s8.bf16 %v1283_v53 }
 0x2a4   : > { %3436 = vmatprep.subr.bf16.mxu0 %v2159_v58  ;;  %v2179_v58 = vunpack.c.l.s8.bf16 %v1475_v54 }
 0x2a6   : > { %2921 = vmatpush1.bf16.msra.mxu1 %v1774_v61  ;;  %v1794_v61 = vunpack.c.l.s8.bf16 %v1282_v59 }
 0x2a7   : > { %3437 = vmatpush1.bf16.msra.mxu0 %v2158_v62  ;;  %2922 = vmatprep.subr.bf16.mxu1 %v1777_v63  ;;  %v2178_v62 = vunpack.c.l.s8.bf16 %v1474_v60  ;;  %v1797_v63 = vunpack.c.h.s8.bf16 %v1283_v53  ;;  %v4398_v53 = vld [vmem:[%s6004_s0 + $0x44] ss:$196 sps:$4 sm:$0xff]  }
 0x2a8   : > { %3438 = vmatprep.subr.bf16.mxu0 %v2161_v0  ;;  %v2181_v0 = vunpack.c.h.s8.bf16 %v1475_v54  ;;  %v4401_v54 = vld [vmem:[%s6004_s0 + $0xa4] ss:$196 sps:$4 sm:$0xff]  }
 0x2aa   : > { %2923 = vmatpush1.bf16.msra.mxu1 %v1776_v3  ;;  %v1796_v3 = vunpack.c.h.s8.bf16 %v1282_v59  ;;  %v1292_v59 = vld [vmem:[%s5392_s29 + $0x410] sm:$0xff] }
 0x2ab   : > { %3439 = vmatpush1.bf16.msra.mxu0 %v2160_v4  ;;  %2935 = vmatprep.subr.bf16.mxu1 %v1779_v5  ;;  %v2180_v4 = vunpack.c.h.s8.bf16 %v1474_v60  ;;  %v1799_v5 = vunpack.c.l.s8.bf16 %v1285_v1  ;;  %v1484_v60 = vld [vmem:[%s5392_s29 + $0xa10] sm:$0xff] }
 0x2ac   : > { %3451 = vmatprep.subr.bf16.mxu0 %v2163_v6  ;;  %v2183_v6 = vunpack.c.l.s8.bf16 %v1477_v2 }
 0x2ad   : > { %2925 = vmatmul.mubr.bf16.vlgmr.msra.gmra.mrb[0].mxu1 %v4384_v9  ;;  %v1798_v9 = vunpack.c.l.s8.bf16 %v1284_v7  ;;  %v1294_v7 = vld [vmem:[%s5392_s29 + $0x420] sm:$0xff] }
 0x2ae   : > { %3441 = vmatmul.mubr.bf16.vlgmr.msra.gmra.mrb[0].mxu0 %v4387_v10  ;;  %2936 = vmatpush1.bf16.msra.mxu1 %v1778_v11  ;;  %v2182_v10 = vunpack.c.l.s8.bf16 %v1476_v8  ;;  %v1801_v11 = vunpack.c.h.s8.bf16 %v1285_v1  ;;  %v1295_v1 = vld [vmem:[%s5392_s29 + $0x428] sm:$0xff]  ;;  %v1486_v8 = vld [vmem:[%s5392_s29 + $0xa20] sm:$0xff] }
 0x2af   : > { %3452 = vmatpush1.bf16.msra.mxu0 %v2162_v12  ;;  %2937 = vmatprep.subr.bf16.mxu1 %v1781_v13  ;;  %v2185_v12 = vunpack.c.h.s8.bf16 %v1477_v2  ;;  %v1287_v13 = vld [vmem:[%s5392_s29 + $0x3e8] sm:$0xff] }
 0x2b0   : > { %3453 = vmatprep.subr.bf16.mxu0 %v2165_v14  ;;  %2967 = vmatprep.mubr.bf16.mxu1 %v4392_v17  ;;  %v1479_v14 = vld [vmem:[%s5392_s29 + $0x9e8] sm:$0xff]  ;;  %v1803_v17 = vunpack.c.l.s8.bf16 %v1287_v13  ;;  %v1805_v23 = vunpack.c.h.s8.bf16 %v1287_v13  ;;  %v1297_v13 = vld [vmem:[%s5392_s29 + $0x438] sm:$0xff] }
 0x2b1   : > { %3483 = vmatprep.mubr.bf16.mxu0 %v4395_v18  ;;  %v2187_v18 = vunpack.c.l.s8.bf16 %v1479_v14  ;;  %v2189_v24 = vunpack.c.h.s8.bf16 %v1479_v14  ;;  %v1487_v2 = vld [vmem:[%s5392_s29 + $0xa28] sm:$0xff]  ;;  %v1489_v14 = vld [vmem:[%s5392_s29 + $0xa38] sm:$0xff] }
 0x2b2   : > { %2938 = vmatpush1.bf16.msra.mxu1 %v1780_v19  ;;  %v1286_v19 = vld [vmem:[%s5392_s29 + $0x3e0] sm:$0xff] }
 0x2b3   : > { %3454 = vmatpush1.bf16.msra.mxu0 %v2164_v20  ;;  %2939 = vmatprep.subr.bf16.mxu1 %v1783_v21  ;;  %v1478_v20 = vld [vmem:[%s5392_s29 + $0x9e0] sm:$0xff]  ;;  %v1802_v21 = vunpack.c.l.s8.bf16 %v1286_v19 }
 0x2b4   : > { %3455 = vmatprep.subr.bf16.mxu0 %v2167_v22  ;;  %v2186_v22 = vunpack.c.l.s8.bf16 %v1478_v20 }
 0x2b6   : > { %2940 = vmatpush1.bf16.msra.mxu1 %v1782_v25  ;;  %v1289_v25 = vld [vmem:[%s5392_s29 + $0x3f8] sm:$0xff] }
 0x2b7   : > { %3456 = vmatpush1.bf16.msra.mxu0 %v2166_v26  ;;  %2941 = vmatprep.subr.bf16.mxu1 %v1785_v27  ;;  %v1481_v26 = vld [vmem:[%s5392_s29 + $0x9f8] sm:$0xff]  ;;  %v1804_v27 = vunpack.c.h.s8.bf16 %v1286_v19  ;;  %v1807_v29 = vunpack.c.l.s8.bf16 %v1289_v25  ;;  %v1809_v35 = vunpack.c.h.s8.bf16 %v1289_v25  ;;  %v1296_v19 = vld [vmem:[%s5392_s29 + $0x430] sm:$0xff]  ;;  %v1299_v25 = vld [vmem:[%s5392_s29 + $0x448] sm:$0xff] }
 0x2b8   : > { %3457 = vmatprep.subr.bf16.mxu0 %v2169_v28  ;;  %v2188_v28 = vunpack.c.h.s8.bf16 %v1478_v20  ;;  %v2191_v30 = vunpack.c.l.s8.bf16 %v1481_v26  ;;  %v2193_v36 = vunpack.c.h.s8.bf16 %v1481_v26  ;;  %v1488_v20 = vld [vmem:[%s5392_s29 + $0xa30] sm:$0xff]  ;;  %v1491_v26 = vld [vmem:[%s5392_s29 + $0xa48] sm:$0xff] }
 0x2ba   : > { %2942 = vmatpush1.bf16.msra.mxu1 %v1784_v31  ;;  %v1288_v31 = vld [vmem:[%s5392_s29 + $0x3f0] sm:$0xff] }
 0x2bb   : > { %3458 = vmatpush1.bf16.msra.mxu0 %v2168_v32  ;;  %2943 = vmatprep.subr.bf16.mxu1 %v1787_v33  ;;  %v1480_v32 = vld [vmem:[%s5392_s29 + $0x9f0] sm:$0xff]  ;;  %v1806_v33 = vunpack.c.l.s8.bf16 %v1288_v31 }
 0x2bc   : > { %3459 = vmatprep.subr.bf16.mxu0 %v2171_v34  ;;  %v2190_v34 = vunpack.c.l.s8.bf16 %v1480_v32 }
 0x2be   : > { %2944 = vmatpush1.bf16.msra.mxu1 %v1786_v37  ;;  %v1291_v37 = vld [vmem:[%s5392_s29 + $0x408] sm:$0xff] }
 0x2bf   : > { %3460 = vmatpush1.bf16.msra.mxu0 %v2170_v38  ;;  %2945 = vmatprep.subr.bf16.mxu1 %v1789_v39  ;;  %v1483_v38 = vld [vmem:[%s5392_s29 + $0xa08] sm:$0xff]  ;;  %v1808_v39 = vunpack.c.h.s8.bf16 %v1288_v31  ;;  %v1811_v41 = vunpack.c.l.s8.bf16 %v1291_v37  ;;  %v1298_v31 = vld [vmem:[%s5392_s29 + $0x440] sm:$0xff] }
 0x2c0   : > { %3461 = vmatprep.subr.bf16.mxu0 %v2173_v40  ;;  %v2192_v40 = vunpack.c.h.s8.bf16 %v1480_v32  ;;  %v2195_v42 = vunpack.c.l.s8.bf16 %v1483_v38  ;;  %v1490_v32 = vld [vmem:[%s5392_s29 + $0xa40] sm:$0xff] }
 0x2c2   : > { %2946 = vmatpush1.bf16.msra.mxu1 %v1788_v43  ;;  %v1290_v43 = vld [vmem:[%s5392_s29 + $0x400] sm:$0xff] }
 0x2c3   : > { %3462 = vmatpush1.bf16.msra.mxu0 %v2172_v44  ;;  %2947 = vmatprep.subr.bf16.mxu1 %v1791_v45  ;;  %v1482_v44 = vld [vmem:[%s5392_s29 + $0xa00] sm:$0xff]  ;;  %v4390_v45 = vld [vmem:[%s6004_s0 + $0x38] ss:$196 sps:$4 sm:$0xff]   ;;  %v1810_v47 = vunpack.c.l.s8.bf16 %v1290_v43 }
 0x2c4   : > { %3463 = vmatprep.subr.bf16.mxu0 %v2175_v46  ;;  %v4393_v46 = vld [vmem:[%s6004_s0 + $0x98] ss:$196 sps:$4 sm:$0xff]   ;;  %v2194_v48 = vunpack.c.l.s8.bf16 %v1482_v44 }
 0x2c6   : > { %2948 = vmatpush1.bf16.msra.mxu1 %v1790_v49  ;;  %v1813_v49 = vunpack.c.h.s8.bf16 %v1291_v37  ;;  %v1301_v37 = vld [vmem:[%s5392_s29 + $0x458] sm:$0xff] }
 0x2c7   : > { %3464 = vmatpush1.bf16.msra.mxu0 %v2174_v50  ;;  %2949 = vmatprep.subr.bf16.mxu1 %v1793_v51  ;;  %v2197_v50 = vunpack.c.h.s8.bf16 %v1483_v38  ;;  %v1293_v51 = vld [vmem:[%s5392_s29 + $0x418] sm:$0xff] }
 0x2c8   : > { %3465 = vmatprep.subr.bf16.mxu0 %v2177_v52  ;;  %v1485_v52 = vld [vmem:[%s5392_s29 + $0xa18] sm:$0xff] }
 0x2c9   : > { %v1493_v38 = vld [vmem:[%s5392_s29 + $0xa58] sm:$0xff] }
 0x2ca   : > { %2950 = vmatpush1.bf16.msra.mxu1 %v1792_v55  ;;  %v1812_v55 = vunpack.c.h.s8.bf16 %v1290_v43  ;;  %v1300_v43 = vld [vmem:[%s5392_s29 + $0x450] sm:$0xff] }
 0x2cb   : > { %3466 = vmatpush1.bf16.msra.mxu0 %v2176_v56  ;;  %2951 = vmatprep.subr.bf16.mxu1 %v1795_v57  ;;  %v2196_v56 = vunpack.c.h.s8.bf16 %v1482_v44  ;;  %v1815_v57 = vunpack.c.l.s8.bf16 %v1293_v51  ;;  %v1492_v44 = vld [vmem:[%s5392_s29 + $0xa50] sm:$0xff] }
 0x2cc   : > { %3467 = vmatprep.subr.bf16.mxu0 %v2179_v58  ;;  %v2199_v58 = vunpack.c.l.s8.bf16 %v1485_v52 }
 0x2ce   : > { %2952 = vmatpush1.bf16.msra.mxu1 %v1794_v61  ;;  %v1814_v61 = vunpack.c.l.s8.bf16 %v1292_v59 }
 0x2cf   : > { %3468 = vmatpush1.bf16.msra.mxu0 %v2178_v62  ;;  %2953 = vmatprep.subr.bf16.mxu1 %v1797_v63  ;;  %v2198_v62 = vunpack.c.l.s8.bf16 %v1484_v60  ;;  %v1817_v63 = vunpack.c.h.s8.bf16 %v1293_v51  ;;  %v1832_v51 = vunpack.c.h.s8.bf16 %v1300_v43 }
 0x2d0   : > { %3469 = vmatprep.subr.bf16.mxu0 %v2181_v0  ;;  %v2201_v0 = vunpack.c.h.s8.bf16 %v1485_v52  ;;  %v2216_v52 = vunpack.c.h.s8.bf16 %v1492_v44 }
 0x2d2   : > { %2954 = vmatpush1.bf16.msra.mxu1 %v1796_v3  ;;  %v1816_v3 = vunpack.c.h.s8.bf16 %v1292_v59 }
 0x2d3   : > { %3470 = vmatpush1.bf16.msra.mxu0 %v2180_v4  ;;  %2955 = vmatprep.subr.bf16.mxu1 %v1799_v5  ;;  %v2200_v4 = vunpack.c.h.s8.bf16 %v1484_v60  ;;  %v1819_v5 = vunpack.c.l.s8.bf16 %v1295_v1 }
 0x2d4   : > { %3471 = vmatprep.subr.bf16.mxu0 %v2183_v6  ;;  %v2203_v6 = vunpack.c.l.s8.bf16 %v1487_v2 }
 0x2d6   : > { %2956 = vmatpush1.bf16.msra.mxu1 %v1798_v9  ;;  %v1818_v9 = vunpack.c.l.s8.bf16 %v1294_v7 }
 0x2d7   : > { %3472 = vmatpush1.bf16.msra.mxu0 %v2182_v10  ;;  %2957 = vmatprep.subr.bf16.mxu1 %v1801_v11  ;;  %v2202_v10 = vunpack.c.l.s8.bf16 %v1486_v8  ;;  %v1821_v11 = vunpack.c.h.s8.bf16 %v1295_v1 }
 0x2d8   : > { %3473 = vmatprep.subr.bf16.mxu0 %v2185_v12  ;;  %v2205_v12 = vunpack.c.h.s8.bf16 %v1487_v2 }
 0x2da   : > { %2958 = vmatpush1.bf16.msra.mxu1 %v1800_v15  ;;  %v1820_v15 = vunpack.c.h.s8.bf16 %v1294_v7 }
 0x2db   : > { %3474 = vmatpush1.bf16.msra.mxu0 %v2184_v16  ;;  %2959 = vmatprep.subr.bf16.mxu1 %v1803_v17  ;;  %v2204_v16 = vunpack.c.h.s8.bf16 %v1486_v8  ;;  %v1823_v17 = vunpack.c.l.s8.bf16 %v1297_v13 }
 0x2dc   : > { %3475 = vmatprep.subr.bf16.mxu0 %v2187_v18  ;;  %v2207_v18 = vunpack.c.l.s8.bf16 %v1489_v14 }
 0x2de   : > { %2960 = vmatpush1.bf16.msra.mxu1 %v1802_v21  ;;  %v1822_v21 = vunpack.c.l.s8.bf16 %v1296_v19 }
 0x2df   : > { %3476 = vmatpush1.bf16.msra.mxu0 %v2186_v22  ;;  %2961 = vmatprep.subr.bf16.mxu1 %v1805_v23  ;;  %v2206_v22 = vunpack.c.l.s8.bf16 %v1488_v20  ;;  %v1825_v23 = vunpack.c.h.s8.bf16 %v1297_v13 }
 0x2e0   : > { %3477 = vmatprep.subr.bf16.mxu0 %v2189_v24  ;;  %v2209_v24 = vunpack.c.h.s8.bf16 %v1489_v14 }
 0x2e2   : > { %2962 = vmatpush1.bf16.msra.mxu1 %v1804_v27  ;;  %v1824_v27 = vunpack.c.h.s8.bf16 %v1296_v19 }
 0x2e3   : > { %3478 = vmatpush1.bf16.msra.mxu0 %v2188_v28  ;;  %2963 = vmatprep.subr.bf16.mxu1 %v1807_v29  ;;  %v2208_v28 = vunpack.c.h.s8.bf16 %v1488_v20  ;;  %v1827_v29 = vunpack.c.l.s8.bf16 %v1299_v25 }
 0x2e4   : > { %3479 = vmatprep.subr.bf16.mxu0 %v2191_v30  ;;  %v2211_v30 = vunpack.c.l.s8.bf16 %v1491_v26 }
 0x2e6   : > { %2964 = vmatpush1.bf16.msra.mxu1 %v1806_v33  ;;  %v1826_v33 = vunpack.c.l.s8.bf16 %v1298_v31 }
 0x2e7   : > { %3480 = vmatpush1.bf16.msra.mxu0 %v2190_v34  ;;  %2965 = vmatprep.subr.bf16.mxu1 %v1809_v35  ;;  %v2210_v34 = vunpack.c.l.s8.bf16 %v1490_v32  ;;  %v1829_v35 = vunpack.c.h.s8.bf16 %v1299_v25  ;;  %v4404_v25 = vld [vmem:[%s6004_s0 + $0x4c] ss:$196 sps:$4 sm:$0xff]  }
 0x2e8   : > { %3481 = vmatprep.subr.bf16.mxu0 %v2193_v36  ;;  %v2213_v36 = vunpack.c.h.s8.bf16 %v1491_v26  ;;  %v4407_v26 = vld [vmem:[%s6004_s0 + $0xac] ss:$196 sps:$4 sm:$0xff]  }
 0x2ea   : > { %2966 = vmatpush1.bf16.msra.mxu1 %v1808_v39  ;;  %v1828_v39 = vunpack.c.h.s8.bf16 %v1298_v31  ;;  %v1308_v31 = vld [vmem:[%s5392_s29 + $0x490] sm:$0xff] }
 0x2eb   : > { %3482 = vmatpush1.bf16.msra.mxu0 %v2192_v40  ;;  %2978 = vmatprep.subr.bf16.mxu1 %v1811_v41  ;;  %v2212_v40 = vunpack.c.h.s8.bf16 %v1490_v32  ;;  %v1831_v41 = vunpack.c.l.s8.bf16 %v1301_v37  ;;  %v1500_v32 = vld [vmem:[%s5392_s29 + $0xa90] sm:$0xff] }
 0x2ec   : > { %3494 = vmatprep.subr.bf16.mxu0 %v2195_v42  ;;  %v2215_v42 = vunpack.c.l.s8.bf16 %v1493_v38 }
 0x2ed   : > { %2968 = vmatmul.mubr.bf16.vlgmr.msra.gmra.mrb[0].mxu1 %v4390_v45  ;;  %v1830_v45 = vunpack.c.l.s8.bf16 %v1300_v43  ;;  %v1310_v43 = vld [vmem:[%s5392_s29 + $0x4a0] sm:$0xff] }
 0x2ee   : > { %3484 = vmatmul.mubr.bf16.vlgmr.msra.gmra.mrb[0].mxu0 %v4393_v46  ;;  %2979 = vmatpush1.bf16.msra.mxu1 %v1810_v47  ;;  %v2214_v46 = vunpack.c.l.s8.bf16 %v1492_v44  ;;  %v1833_v47 = vunpack.c.h.s8.bf16 %v1301_v37  ;;  %v1311_v37 = vld [vmem:[%s5392_s29 + $0x4a8] sm:$0xff]  ;;  %v1502_v44 = vld [vmem:[%s5392_s29 + $0xaa0] sm:$0xff] }
 0x2ef   : > { %3495 = vmatpush1.bf16.msra.mxu0 %v2194_v48  ;;  %2980 = vmatprep.subr.bf16.mxu1 %v1813_v49  ;;  %v2217_v48 = vunpack.c.h.s8.bf16 %v1493_v38  ;;  %v1303_v49 = vld [vmem:[%s5392_s29 + $0x468] sm:$0xff] }
 0x2f0   : > { %3496 = vmatprep.subr.bf16.mxu0 %v2197_v50  ;;  %3010 = vmatprep.mubr.bf16.mxu1 %v4398_v53  ;;  %v1495_v50 = vld [vmem:[%s5392_s29 + $0xa68] sm:$0xff]  ;;  %v1835_v53 = vunpack.c.l.s8.bf16 %v1303_v49  ;;  %v1837_v59 = vunpack.c.h.s8.bf16 %v1303_v49  ;;  %v1313_v49 = vld [vmem:[%s5392_s29 + $0x4b8] sm:$0xff] }
 0x2f1   : > { %3526 = vmatprep.mubr.bf16.mxu0 %v4401_v54  ;;  %v2219_v54 = vunpack.c.l.s8.bf16 %v1495_v50  ;;  %v2221_v60 = vunpack.c.h.s8.bf16 %v1495_v50  ;;  %v1503_v38 = vld [vmem:[%s5392_s29 + $0xaa8] sm:$0xff]  ;;  %v1505_v50 = vld [vmem:[%s5392_s29 + $0xab8] sm:$0xff] }
 0x2f2   : > { %2981 = vmatpush1.bf16.msra.mxu1 %v1812_v55  ;;  %v1302_v55 = vld [vmem:[%s5392_s29 + $0x460] sm:$0xff] }
 0x2f3   : > { %3497 = vmatpush1.bf16.msra.mxu0 %v2196_v56  ;;  %2982 = vmatprep.subr.bf16.mxu1 %v1815_v57  ;;  %v1494_v56 = vld [vmem:[%s5392_s29 + $0xa60] sm:$0xff]  ;;  %v1834_v57 = vunpack.c.l.s8.bf16 %v1302_v55 }
 0x2f4   : > { %3498 = vmatprep.subr.bf16.mxu0 %v2199_v58  ;;  %v2218_v58 = vunpack.c.l.s8.bf16 %v1494_v56 }
 0x2f6   : > { %2983 = vmatpush1.bf16.msra.mxu1 %v1814_v61  ;;  %v1305_v61 = vld [vmem:[%s5392_s29 + $0x478] sm:$0xff] }
 0x2f7   : > { %3499 = vmatpush1.bf16.msra.mxu0 %v2198_v62  ;;  %2984 = vmatprep.subr.bf16.mxu1 %v1817_v63  ;;  %v1497_v62 = vld [vmem:[%s5392_s29 + $0xa78] sm:$0xff]  ;;  %v1836_v63 = vunpack.c.h.s8.bf16 %v1302_v55  ;;  %v1839_v1 = vunpack.c.l.s8.bf16 %v1305_v61  ;;  %v1841_v7 = vunpack.c.h.s8.bf16 %v1305_v61  ;;  %v1312_v55 = vld [vmem:[%s5392_s29 + $0x4b0] sm:$0xff]  ;;  %v1315_v61 = vld [vmem:[%s5392_s29 + $0x4c8] sm:$0xff] }
 0x2f8   : > { %3500 = vmatprep.subr.bf16.mxu0 %v2201_v0  ;;  %v2220_v0 = vunpack.c.h.s8.bf16 %v1494_v56  ;;  %v2223_v2 = vunpack.c.l.s8.bf16 %v1497_v62  ;;  %v2225_v8 = vunpack.c.h.s8.bf16 %v1497_v62  ;;  %v1504_v56 = vld [vmem:[%s5392_s29 + $0xab0] sm:$0xff]  ;;  %v1507_v62 = vld [vmem:[%s5392_s29 + $0xac8] sm:$0xff] }
 0x2fa   : > { %2985 = vmatpush1.bf16.msra.mxu1 %v1816_v3  ;;  %v1304_v3 = vld [vmem:[%s5392_s29 + $0x470] sm:$0xff] }
 0x2fb   : > { %3501 = vmatpush1.bf16.msra.mxu0 %v2200_v4  ;;  %2986 = vmatprep.subr.bf16.mxu1 %v1819_v5  ;;  %v1496_v4 = vld [vmem:[%s5392_s29 + $0xa70] sm:$0xff]  ;;  %v1838_v5 = vunpack.c.l.s8.bf16 %v1304_v3 }
 0x2fc   : > { %3502 = vmatprep.subr.bf16.mxu0 %v2203_v6  ;;  %v2222_v6 = vunpack.c.l.s8.bf16 %v1496_v4 }
 0x2fe   : > { %2987 = vmatpush1.bf16.msra.mxu1 %v1818_v9  ;;  %v1307_v9 = vld [vmem:[%s5392_s29 + $0x488] sm:$0xff] }
 0x2ff   : > { %3503 = vmatpush1.bf16.msra.mxu0 %v2202_v10  ;;  %2988 = vmatprep.subr.bf16.mxu1 %v1821_v11  ;;  %v1499_v10 = vld [vmem:[%s5392_s29 + $0xa88] sm:$0xff]  ;;  %v1840_v11 = vunpack.c.h.s8.bf16 %v1304_v3  ;;  %v1843_v13 = vunpack.c.l.s8.bf16 %v1307_v9  ;;  %v1314_v3 = vld [vmem:[%s5392_s29 + $0x4c0] sm:$0xff] }
 0x300   : > { %3504 = vmatprep.subr.bf16.mxu0 %v2205_v12  ;;  %v2224_v12 = vunpack.c.h.s8.bf16 %v1496_v4  ;;  %v2227_v14 = vunpack.c.l.s8.bf16 %v1499_v10  ;;  %v1506_v4 = vld [vmem:[%s5392_s29 + $0xac0] sm:$0xff] }
 0x302   : > { %2989 = vmatpush1.bf16.msra.mxu1 %v1820_v15  ;;  %v1306_v15 = vld [vmem:[%s5392_s29 + $0x480] sm:$0xff] }
 0x303   : > { %3505 = vmatpush1.bf16.msra.mxu0 %v2204_v16  ;;  %2990 = vmatprep.subr.bf16.mxu1 %v1823_v17  ;;  %v1498_v16 = vld [vmem:[%s5392_s29 + $0xa80] sm:$0xff]  ;;  %v1842_v19 = vunpack.c.l.s8.bf16 %v1306_v15 }
 0x304   : > { %3506 = vmatprep.subr.bf16.mxu0 %v2207_v18  ;;  %v4396_v17 = vld [vmem:[%s6004_s0 + $0x40] ss:$196 sps:$4 sm:$0xff]   ;;  %v2226_v20 = vunpack.c.l.s8.bf16 %v1498_v16 }
 0x305   : > { %v4399_v18 = vld [vmem:[%s6004_s0 + $0xa0] ss:$196 sps:$4 sm:$0xff]  }
 0x306   : > { %2991 = vmatpush1.bf16.msra.mxu1 %v1822_v21  ;;  %v1845_v21 = vunpack.c.h.s8.bf16 %v1307_v9  ;;  %v1317_v9 = vld [vmem:[%s5392_s29 + $0x4d8] sm:$0xff] }
 0x307   : > { %3507 = vmatpush1.bf16.msra.mxu0 %v2206_v22  ;;  %2992 = vmatprep.subr.bf16.mxu1 %v1825_v23  ;;  %v2229_v22 = vunpack.c.h.s8.bf16 %v1499_v10  ;;  %v1309_v23 = vld [vmem:[%s5392_s29 + $0x498] sm:$0xff] }
 0x308   : > { %3508 = vmatprep.subr.bf16.mxu0 %v2209_v24  ;;  %v1501_v24 = vld [vmem:[%s5392_s29 + $0xa98] sm:$0xff] }
 0x309   : > { %v1509_v10 = vld [vmem:[%s5392_s29 + $0xad8] sm:$0xff] }
 0x30a   : > { %2993 = vmatpush1.bf16.msra.mxu1 %v1824_v27  ;;  %v1844_v27 = vunpack.c.h.s8.bf16 %v1306_v15  ;;  %v1316_v15 = vld [vmem:[%s5392_s29 + $0x4d0] sm:$0xff] }
 0x30b   : > { %3509 = vmatpush1.bf16.msra.mxu0 %v2208_v28  ;;  %2994 = vmatprep.subr.bf16.mxu1 %v1827_v29  ;;  %v2228_v28 = vunpack.c.h.s8.bf16 %v1498_v16  ;;  %v1847_v29 = vunpack.c.l.s8.bf16 %v1309_v23  ;;  %v1508_v16 = vld [vmem:[%s5392_s29 + $0xad0] sm:$0xff] }
 0x30c   : > { %3510 = vmatprep.subr.bf16.mxu0 %v2211_v30  ;;  %v2231_v30 = vunpack.c.l.s8.bf16 %v1501_v24 }
 0x30e   : > { %2995 = vmatpush1.bf16.msra.mxu1 %v1826_v33  ;;  %v1846_v33 = vunpack.c.l.s8.bf16 %v1308_v31 }
 0x30f   : > { %3511 = vmatpush1.bf16.msra.mxu0 %v2210_v34  ;;  %2996 = vmatprep.subr.bf16.mxu1 %v1829_v35  ;;  %v2230_v34 = vunpack.c.l.s8.bf16 %v1500_v32  ;;  %v1849_v35 = vunpack.c.h.s8.bf16 %v1309_v23  ;;  %v1864_v23 = vunpack.c.h.s8.bf16 %v1316_v15 }
 0x310   : > { %3512 = vmatprep.subr.bf16.mxu0 %v2213_v36  ;;  %v2233_v36 = vunpack.c.h.s8.bf16 %v1501_v24  ;;  %v2248_v24 = vunpack.c.h.s8.bf16 %v1508_v16 }
 0x312   : > { %2997 = vmatpush1.bf16.msra.mxu1 %v1828_v39  ;;  %v1848_v39 = vunpack.c.h.s8.bf16 %v1308_v31 }
 0x313   : > { %3513 = vmatpush1.bf16.msra.mxu0 %v2212_v40  ;;  %2998 = vmatprep.subr.bf16.mxu1 %v1831_v41  ;;  %v2232_v40 = vunpack.c.h.s8.bf16 %v1500_v32  ;;  %v1851_v41 = vunpack.c.l.s8.bf16 %v1311_v37 }
 0x314   : > { %3514 = vmatprep.subr.bf16.mxu0 %v2215_v42  ;;  %v2235_v42 = vunpack.c.l.s8.bf16 %v1503_v38 }
 0x316   : > { %2999 = vmatpush1.bf16.msra.mxu1 %v1830_v45  ;;  %v1850_v45 = vunpack.c.l.s8.bf16 %v1310_v43 }
 0x317   : > { %3515 = vmatpush1.bf16.msra.mxu0 %v2214_v46  ;;  %3000 = vmatprep.subr.bf16.mxu1 %v1833_v47  ;;  %v2234_v46 = vunpack.c.l.s8.bf16 %v1502_v44  ;;  %v1853_v47 = vunpack.c.h.s8.bf16 %v1311_v37 }
 0x318   : > { %3516 = vmatprep.subr.bf16.mxu0 %v2217_v48  ;;  %v2237_v48 = vunpack.c.h.s8.bf16 %v1503_v38 }
 0x31a   : > { %3001 = vmatpush1.bf16.msra.mxu1 %v1832_v51  ;;  %v1852_v51 = vunpack.c.h.s8.bf16 %v1310_v43 }
 0x31b   : > { %3517 = vmatpush1.bf16.msra.mxu0 %v2216_v52  ;;  %3002 = vmatprep.subr.bf16.mxu1 %v1835_v53  ;;  %v2236_v52 = vunpack.c.h.s8.bf16 %v1502_v44  ;;  %v1855_v53 = vunpack.c.l.s8.bf16 %v1313_v49 }
 0x31c   : > { %3518 = vmatprep.subr.bf16.mxu0 %v2219_v54  ;;  %v2239_v54 = vunpack.c.l.s8.bf16 %v1505_v50 }
 0x31e   : > { %3003 = vmatpush1.bf16.msra.mxu1 %v1834_v57  ;;  %v1854_v57 = vunpack.c.l.s8.bf16 %v1312_v55 }
 0x31f   : > { %3519 = vmatpush1.bf16.msra.mxu0 %v2218_v58  ;;  %3004 = vmatprep.subr.bf16.mxu1 %v1837_v59  ;;  %v2238_v58 = vunpack.c.l.s8.bf16 %v1504_v56  ;;  %v1857_v59 = vunpack.c.h.s8.bf16 %v1313_v49 }
 0x320   : > { %3520 = vmatprep.subr.bf16.mxu0 %v2221_v60  ;;  %v2241_v60 = vunpack.c.h.s8.bf16 %v1505_v50 }
 0x322   : > { %3005 = vmatpush1.bf16.msra.mxu1 %v1836_v63  ;;  %v1856_v63 = vunpack.c.h.s8.bf16 %v1312_v55 }
 0x323   : > { %3521 = vmatpush1.bf16.msra.mxu0 %v2220_v0  ;;  %3006 = vmatprep.subr.bf16.mxu1 %v1839_v1  ;;  %v2240_v0 = vunpack.c.h.s8.bf16 %v1504_v56  ;;  %v1859_v1 = vunpack.c.l.s8.bf16 %v1315_v61 }
 0x324   : > { %3522 = vmatprep.subr.bf16.mxu0 %v2223_v2  ;;  %v2243_v2 = vunpack.c.l.s8.bf16 %v1507_v62 }
 0x326   : > { %3007 = vmatpush1.bf16.msra.mxu1 %v1838_v5  ;;  %v1858_v5 = vunpack.c.l.s8.bf16 %v1314_v3 }
 0x327   : > { %3523 = vmatpush1.bf16.msra.mxu0 %v2222_v6  ;;  %3008 = vmatprep.subr.bf16.mxu1 %v1841_v7  ;;  %v2242_v6 = vunpack.c.l.s8.bf16 %v1506_v4  ;;  %v1861_v7 = vunpack.c.h.s8.bf16 %v1315_v61  ;;  %v4410_v61 = vld [vmem:[%s6004_s0 + $0x54] ss:$196 sps:$4 sm:$0xff]  }
 0x328   : > { %3524 = vmatprep.subr.bf16.mxu0 %v2225_v8  ;;  %v2245_v8 = vunpack.c.h.s8.bf16 %v1507_v62  ;;  %v4413_v62 = vld [vmem:[%s6004_s0 + $0xb4] ss:$196 sps:$4 sm:$0xff]  }
 0x32a   : > { %3009 = vmatpush1.bf16.msra.mxu1 %v1840_v11  ;;  %v1860_v11 = vunpack.c.h.s8.bf16 %v1314_v3  ;;  %v1324_v3 = vld [vmem:[%s5392_s29 + $0x510] sm:$0xff] }
 0x32b   : > { %3525 = vmatpush1.bf16.msra.mxu0 %v2224_v12  ;;  %3021 = vmatprep.subr.bf16.mxu1 %v1843_v13  ;;  %v2244_v12 = vunpack.c.h.s8.bf16 %v1506_v4  ;;  %v1863_v13 = vunpack.c.l.s8.bf16 %v1317_v9  ;;  %v1516_v4 = vld [vmem:[%s5392_s29 + $0xb10] sm:$0xff] }
 0x32c   : > { %3537 = vmatprep.subr.bf16.mxu0 %v2227_v14  ;;  %v2247_v14 = vunpack.c.l.s8.bf16 %v1509_v10 }
 0x32d   : > { %3011 = vmatmul.mubr.bf16.vlgmr.msra.gmra.mrb[0].mxu1 %v4396_v17  ;;  %v1862_v17 = vunpack.c.l.s8.bf16 %v1316_v15  ;;  %v1326_v15 = vld [vmem:[%s5392_s29 + $0x520] sm:$0xff] }
 0x32e   : > { %3527 = vmatmul.mubr.bf16.vlgmr.msra.gmra.mrb[0].mxu0 %v4399_v18  ;;  %3022 = vmatpush1.bf16.msra.mxu1 %v1842_v19  ;;  %v2246_v18 = vunpack.c.l.s8.bf16 %v1508_v16  ;;  %v1865_v19 = vunpack.c.h.s8.bf16 %v1317_v9  ;;  %v1327_v9 = vld [vmem:[%s5392_s29 + $0x528] sm:$0xff]  ;;  %v1518_v16 = vld [vmem:[%s5392_s29 + $0xb20] sm:$0xff] }
 0x32f   : > { %3538 = vmatpush1.bf16.msra.mxu0 %v2226_v20  ;;  %3023 = vmatprep.subr.bf16.mxu1 %v1845_v21  ;;  %v2249_v20 = vunpack.c.h.s8.bf16 %v1509_v10  ;;  %v1319_v21 = vld [vmem:[%s5392_s29 + $0x4e8] sm:$0xff] }
 0x330   : > { %3539 = vmatprep.subr.bf16.mxu0 %v2229_v22  ;;  %3053 = vmatprep.mubr.bf16.mxu1 %v4404_v25  ;;  %v1511_v22 = vld [vmem:[%s5392_s29 + $0xae8] sm:$0xff]  ;;  %v1867_v25 = vunpack.c.l.s8.bf16 %v1319_v21  ;;  %v1869_v31 = vunpack.c.h.s8.bf16 %v1319_v21  ;;  %v1329_v21 = vld [vmem:[%s5392_s29 + $0x538] sm:$0xff] }
 0x331   : > { %3569 = vmatprep.mubr.bf16.mxu0 %v4407_v26  ;;  %v2251_v26 = vunpack.c.l.s8.bf16 %v1511_v22  ;;  %v2253_v32 = vunpack.c.h.s8.bf16 %v1511_v22  ;;  %v1519_v10 = vld [vmem:[%s5392_s29 + $0xb28] sm:$0xff]  ;;  %v1521_v22 = vld [vmem:[%s5392_s29 + $0xb38] sm:$0xff] }
 0x332   : > { %3024 = vmatpush1.bf16.msra.mxu1 %v1844_v27  ;;  %v1318_v27 = vld [vmem:[%s5392_s29 + $0x4e0] sm:$0xff] }
 0x333   : > { %3540 = vmatpush1.bf16.msra.mxu0 %v2228_v28  ;;  %3025 = vmatprep.subr.bf16.mxu1 %v1847_v29  ;;  %v1510_v28 = vld [vmem:[%s5392_s29 + $0xae0] sm:$0xff]  ;;  %v1866_v29 = vunpack.c.l.s8.bf16 %v1318_v27 }
 0x334   : > { %3541 = vmatprep.subr.bf16.mxu0 %v2231_v30  ;;  %v2250_v30 = vunpack.c.l.s8.bf16 %v1510_v28 }
 0x336   : > { %3026 = vmatpush1.bf16.msra.mxu1 %v1846_v33  ;;  %v1321_v33 = vld [vmem:[%s5392_s29 + $0x4f8] sm:$0xff] }
 0x337   : > { %3542 = vmatpush1.bf16.msra.mxu0 %v2230_v34  ;;  %3027 = vmatprep.subr.bf16.mxu1 %v1849_v35  ;;  %v1513_v34 = vld [vmem:[%s5392_s29 + $0xaf8] sm:$0xff]  ;;  %v1868_v35 = vunpack.c.h.s8.bf16 %v1318_v27  ;;  %v1871_v37 = vunpack.c.l.s8.bf16 %v1321_v33  ;;  %v1873_v43 = vunpack.c.h.s8.bf16 %v1321_v33  ;;  %v1328_v27 = vld [vmem:[%s5392_s29 + $0x530] sm:$0xff]  ;;  %v1331_v33 = vld [vmem:[%s5392_s29 + $0x548] sm:$0xff] }
 0x338   : > { %3543 = vmatprep.subr.bf16.mxu0 %v2233_v36  ;;  %v2252_v36 = vunpack.c.h.s8.bf16 %v1510_v28  ;;  %v2255_v38 = vunpack.c.l.s8.bf16 %v1513_v34  ;;  %v2257_v44 = vunpack.c.h.s8.bf16 %v1513_v34  ;;  %v1520_v28 = vld [vmem:[%s5392_s29 + $0xb30] sm:$0xff]  ;;  %v1523_v34 = vld [vmem:[%s5392_s29 + $0xb48] sm:$0xff] }
 0x33a   : > { %3028 = vmatpush1.bf16.msra.mxu1 %v1848_v39  ;;  %v1320_v39 = vld [vmem:[%s5392_s29 + $0x4f0] sm:$0xff] }
 0x33b   : > { %3544 = vmatpush1.bf16.msra.mxu0 %v2232_v40  ;;  %3029 = vmatprep.subr.bf16.mxu1 %v1851_v41  ;;  %v1512_v40 = vld [vmem:[%s5392_s29 + $0xaf0] sm:$0xff]  ;;  %v1870_v41 = vunpack.c.l.s8.bf16 %v1320_v39 }
 0x33c   : > { %3545 = vmatprep.subr.bf16.mxu0 %v2235_v42  ;;  %v2254_v42 = vunpack.c.l.s8.bf16 %v1512_v40 }
 0x33e   : > { %3030 = vmatpush1.bf16.msra.mxu1 %v1850_v45  ;;  %v1323_v45 = vld [vmem:[%s5392_s29 + $0x508] sm:$0xff] }
 0x33f   : > { %3546 = vmatpush1.bf16.msra.mxu0 %v2234_v46  ;;  %3031 = vmatprep.subr.bf16.mxu1 %v1853_v47  ;;  %v1515_v46 = vld [vmem:[%s5392_s29 + $0xb08] sm:$0xff]  ;;  %v1872_v47 = vunpack.c.h.s8.bf16 %v1320_v39  ;;  %v1875_v49 = vunpack.c.l.s8.bf16 %v1323_v45  ;;  %v1330_v39 = vld [vmem:[%s5392_s29 + $0x540] sm:$0xff] }
 0x340   : > { %3547 = vmatprep.subr.bf16.mxu0 %v2237_v48  ;;  %v2256_v48 = vunpack.c.h.s8.bf16 %v1512_v40  ;;  %v2259_v50 = vunpack.c.l.s8.bf16 %v1515_v46  ;;  %v1522_v40 = vld [vmem:[%s5392_s29 + $0xb40] sm:$0xff] }
 0x342   : > { %3032 = vmatpush1.bf16.msra.mxu1 %v1852_v51  ;;  %v1322_v51 = vld [vmem:[%s5392_s29 + $0x500] sm:$0xff] }
 0x343   : > { %3548 = vmatpush1.bf16.msra.mxu0 %v2236_v52  ;;  %3033 = vmatprep.subr.bf16.mxu1 %v1855_v53  ;;  %v1514_v52 = vld [vmem:[%s5392_s29 + $0xb00] sm:$0xff]  ;;  %v4402_v53 = vld [vmem:[%s6004_s0 + $0x48] ss:$196 sps:$4 sm:$0xff]   ;;  %v1874_v55 = vunpack.c.l.s8.bf16 %v1322_v51 }
 0x344   : > { %3549 = vmatprep.subr.bf16.mxu0 %v2239_v54  ;;  %v4405_v54 = vld [vmem:[%s6004_s0 + $0xa8] ss:$196 sps:$4 sm:$0xff]   ;;  %v2258_v56 = vunpack.c.l.s8.bf16 %v1514_v52 }
 0x346   : > { %3034 = vmatpush1.bf16.msra.mxu1 %v1854_v57  ;;  %v1877_v57 = vunpack.c.h.s8.bf16 %v1323_v45  ;;  %v1333_v45 = vld [vmem:[%s5392_s29 + $0x558] sm:$0xff] }
 0x347   : > { %3550 = vmatpush1.bf16.msra.mxu0 %v2238_v58  ;;  %3035 = vmatprep.subr.bf16.mxu1 %v1857_v59  ;;  %v2261_v58 = vunpack.c.h.s8.bf16 %v1515_v46  ;;  %v1325_v59 = vld [vmem:[%s5392_s29 + $0x518] sm:$0xff] }
 0x348   : > { %3551 = vmatprep.subr.bf16.mxu0 %v2241_v60  ;;  %v1517_v60 = vld [vmem:[%s5392_s29 + $0xb18] sm:$0xff] }
 0x349   : > { %v1525_v46 = vld [vmem:[%s5392_s29 + $0xb58] sm:$0xff] }
 0x34a   : > { %3036 = vmatpush1.bf16.msra.mxu1 %v1856_v63  ;;  %v1876_v63 = vunpack.c.h.s8.bf16 %v1322_v51  ;;  %v1332_v51 = vld [vmem:[%s5392_s29 + $0x550] sm:$0xff] }
 0x34b   : > { %3552 = vmatpush1.bf16.msra.mxu0 %v2240_v0  ;;  %3037 = vmatprep.subr.bf16.mxu1 %v1859_v1  ;;  %v2260_v0 = vunpack.c.h.s8.bf16 %v1514_v52  ;;  %v1879_v1 = vunpack.c.l.s8.bf16 %v1325_v59  ;;  %v1524_v52 = vld [vmem:[%s5392_s29 + $0xb50] sm:$0xff] }
 0x34c   : > { %3553 = vmatprep.subr.bf16.mxu0 %v2243_v2  ;;  %v2263_v2 = vunpack.c.l.s8.bf16 %v1517_v60 }
 0x34e   : > { %3038 = vmatpush1.bf16.msra.mxu1 %v1858_v5  ;;  %v1878_v5 = vunpack.c.l.s8.bf16 %v1324_v3 }
 0x34f   : > { %3554 = vmatpush1.bf16.msra.mxu0 %v2242_v6  ;;  %3039 = vmatprep.subr.bf16.mxu1 %v1861_v7  ;;  %v2262_v6 = vunpack.c.l.s8.bf16 %v1516_v4  ;;  %v1881_v7 = vunpack.c.h.s8.bf16 %v1325_v59  ;;  %v1896_v59 = vunpack.c.h.s8.bf16 %v1332_v51 }
 0x350   : > { %3555 = vmatprep.subr.bf16.mxu0 %v2245_v8  ;;  %v2265_v8 = vunpack.c.h.s8.bf16 %v1517_v60  ;;  %v2280_v60 = vunpack.c.h.s8.bf16 %v1524_v52 }
 0x352   : > { %3040 = vmatpush1.bf16.msra.mxu1 %v1860_v11  ;;  %v1880_v11 = vunpack.c.h.s8.bf16 %v1324_v3 }
 0x353   : > { %3556 = vmatpush1.bf16.msra.mxu0 %v2244_v12  ;;  %3041 = vmatprep.subr.bf16.mxu1 %v1863_v13  ;;  %v2264_v12 = vunpack.c.h.s8.bf16 %v1516_v4  ;;  %v1883_v13 = vunpack.c.l.s8.bf16 %v1327_v9 }
 0x354   : > { %3557 = vmatprep.subr.bf16.mxu0 %v2247_v14  ;;  %v2267_v14 = vunpack.c.l.s8.bf16 %v1519_v10 }
 0x356   : > { %3042 = vmatpush1.bf16.msra.mxu1 %v1862_v17  ;;  %v1882_v17 = vunpack.c.l.s8.bf16 %v1326_v15 }
 0x357   : > { %3558 = vmatpush1.bf16.msra.mxu0 %v2246_v18  ;;  %3043 = vmatprep.subr.bf16.mxu1 %v1865_v19  ;;  %v2266_v18 = vunpack.c.l.s8.bf16 %v1518_v16  ;;  %v1885_v19 = vunpack.c.h.s8.bf16 %v1327_v9 }
 0x358   : > { %3559 = vmatprep.subr.bf16.mxu0 %v2249_v20  ;;  %v2269_v20 = vunpack.c.h.s8.bf16 %v1519_v10 }
 0x35a   : > { %3044 = vmatpush1.bf16.msra.mxu1 %v1864_v23  ;;  %v1884_v23 = vunpack.c.h.s8.bf16 %v1326_v15 }
 0x35b   : > { %3560 = vmatpush1.bf16.msra.mxu0 %v2248_v24  ;;  %3045 = vmatprep.subr.bf16.mxu1 %v1867_v25  ;;  %v2268_v24 = vunpack.c.h.s8.bf16 %v1518_v16  ;;  %v1887_v25 = vunpack.c.l.s8.bf16 %v1329_v21 }
 0x35c   : > { %3561 = vmatprep.subr.bf16.mxu0 %v2251_v26  ;;  %v2271_v26 = vunpack.c.l.s8.bf16 %v1521_v22 }
 0x35e   : > { %3046 = vmatpush1.bf16.msra.mxu1 %v1866_v29  ;;  %v1886_v29 = vunpack.c.l.s8.bf16 %v1328_v27 }
 0x35f   : > { %3562 = vmatpush1.bf16.msra.mxu0 %v2250_v30  ;;  %3047 = vmatprep.subr.bf16.mxu1 %v1869_v31  ;;  %v2270_v30 = vunpack.c.l.s8.bf16 %v1520_v28  ;;  %v1889_v31 = vunpack.c.h.s8.bf16 %v1329_v21 }
 0x360   : > { %3563 = vmatprep.subr.bf16.mxu0 %v2253_v32  ;;  %v2273_v32 = vunpack.c.h.s8.bf16 %v1521_v22 }
 0x362   : > { %3048 = vmatpush1.bf16.msra.mxu1 %v1868_v35  ;;  %v1888_v35 = vunpack.c.h.s8.bf16 %v1328_v27 }
 0x363   : > { %3564 = vmatpush1.bf16.msra.mxu0 %v2252_v36  ;;  %3049 = vmatprep.subr.bf16.mxu1 %v1871_v37  ;;  %v2272_v36 = vunpack.c.h.s8.bf16 %v1520_v28  ;;  %v1891_v37 = vunpack.c.l.s8.bf16 %v1331_v33 }
 0x364   : > { %3565 = vmatprep.subr.bf16.mxu0 %v2255_v38  ;;  %v2275_v38 = vunpack.c.l.s8.bf16 %v1523_v34 }
 0x366   : > { %3050 = vmatpush1.bf16.msra.mxu1 %v1870_v41  ;;  %v1890_v41 = vunpack.c.l.s8.bf16 %v1330_v39 }
 0x367   : > { %3566 = vmatpush1.bf16.msra.mxu0 %v2254_v42  ;;  %3051 = vmatprep.subr.bf16.mxu1 %v1873_v43  ;;  %v2274_v42 = vunpack.c.l.s8.bf16 %v1522_v40  ;;  %v1893_v43 = vunpack.c.h.s8.bf16 %v1331_v33  ;;  %v4416_v33 = vld [vmem:[%s6004_s0 + $0x5c] ss:$196 sps:$4 sm:$0xff]  }
 0x368   : > { %3567 = vmatprep.subr.bf16.mxu0 %v2257_v44  ;;  %v2277_v44 = vunpack.c.h.s8.bf16 %v1523_v34  ;;  %v4419_v34 = vld [vmem:[%s6004_s0 + $0xbc] ss:$196 sps:$4 sm:$0xff]  }
 0x36a   : > { %3052 = vmatpush1.bf16.msra.mxu1 %v1872_v47  ;;  %v1892_v47 = vunpack.c.h.s8.bf16 %v1330_v39  ;;  %v1340_v39 = vld [vmem:[%s5392_s29 + $0x590] sm:$0xff] }
 0x36b   : > { %3568 = vmatpush1.bf16.msra.mxu0 %v2256_v48  ;;  %3064 = vmatprep.subr.bf16.mxu1 %v1875_v49  ;;  %v2276_v48 = vunpack.c.h.s8.bf16 %v1522_v40  ;;  %v1895_v49 = vunpack.c.l.s8.bf16 %v1333_v45  ;;  %v1532_v40 = vld [vmem:[%s5392_s29 + $0xb90] sm:$0xff] }
 0x36c   : > { %3580 = vmatprep.subr.bf16.mxu0 %v2259_v50  ;;  %v2279_v50 = vunpack.c.l.s8.bf16 %v1525_v46 }
 0x36d   : > { %3054 = vmatmul.mubr.bf16.vlgmr.msra.gmra.mrb[0].mxu1 %v4402_v53  ;;  %v1894_v53 = vunpack.c.l.s8.bf16 %v1332_v51  ;;  %v1342_v51 = vld [vmem:[%s5392_s29 + $0x5a0] sm:$0xff] }
 0x36e   : > { %3570 = vmatmul.mubr.bf16.vlgmr.msra.gmra.mrb[0].mxu0 %v4405_v54  ;;  %3065 = vmatpush1.bf16.msra.mxu1 %v1874_v55  ;;  %v2278_v54 = vunpack.c.l.s8.bf16 %v1524_v52  ;;  %v1897_v55 = vunpack.c.h.s8.bf16 %v1333_v45  ;;  %v1343_v45 = vld [vmem:[%s5392_s29 + $0x5a8] sm:$0xff]  ;;  %v1534_v52 = vld [vmem:[%s5392_s29 + $0xba0] sm:$0xff] }
 0x36f   : > { %3581 = vmatpush1.bf16.msra.mxu0 %v2258_v56  ;;  %3066 = vmatprep.subr.bf16.mxu1 %v1877_v57  ;;  %v2281_v56 = vunpack.c.h.s8.bf16 %v1525_v46  ;;  %v1335_v57 = vld [vmem:[%s5392_s29 + $0x568] sm:$0xff] }
 0x370   : > { %3582 = vmatprep.subr.bf16.mxu0 %v2261_v58  ;;  %3096 = vmatprep.mubr.bf16.mxu1 %v4410_v61  ;;  %v1527_v58 = vld [vmem:[%s5392_s29 + $0xb68] sm:$0xff]  ;;  %v1899_v61 = vunpack.c.l.s8.bf16 %v1335_v57  ;;  %v1901_v3 = vunpack.c.h.s8.bf16 %v1335_v57  ;;  %v1345_v57 = vld [vmem:[%s5392_s29 + $0x5b8] sm:$0xff] }
 0x371   : > { %3612 = vmatprep.mubr.bf16.mxu0 %v4413_v62  ;;  %v2283_v62 = vunpack.c.l.s8.bf16 %v1527_v58  ;;  %v2285_v4 = vunpack.c.h.s8.bf16 %v1527_v58  ;;  %v1535_v46 = vld [vmem:[%s5392_s29 + $0xba8] sm:$0xff]  ;;  %v1537_v58 = vld [vmem:[%s5392_s29 + $0xbb8] sm:$0xff] }
 0x372   : > { %3067 = vmatpush1.bf16.msra.mxu1 %v1876_v63  ;;  %v1334_v63 = vld [vmem:[%s5392_s29 + $0x560] sm:$0xff] }
 0x373   : > { %3583 = vmatpush1.bf16.msra.mxu0 %v2260_v0  ;;  %3068 = vmatprep.subr.bf16.mxu1 %v1879_v1  ;;  %v1526_v0 = vld [vmem:[%s5392_s29 + $0xb60] sm:$0xff]  ;;  %v1898_v1 = vunpack.c.l.s8.bf16 %v1334_v63 }
 0x374   : > { %3584 = vmatprep.subr.bf16.mxu0 %v2263_v2  ;;  %v2282_v2 = vunpack.c.l.s8.bf16 %v1526_v0 }
 0x376   : > { %3069 = vmatpush1.bf16.msra.mxu1 %v1878_v5  ;;  %v1337_v5 = vld [vmem:[%s5392_s29 + $0x578] sm:$0xff] }
 0x377   : > { %3585 = vmatpush1.bf16.msra.mxu0 %v2262_v6  ;;  %3070 = vmatprep.subr.bf16.mxu1 %v1881_v7  ;;  %v1529_v6 = vld [vmem:[%s5392_s29 + $0xb78] sm:$0xff]  ;;  %v1900_v7 = vunpack.c.h.s8.bf16 %v1334_v63  ;;  %v1903_v9 = vunpack.c.l.s8.bf16 %v1337_v5  ;;  %v1905_v15 = vunpack.c.h.s8.bf16 %v1337_v5  ;;  %v1344_v63 = vld [vmem:[%s5392_s29 + $0x5b0] sm:$0xff]  ;;  %v1347_v5 = vld [vmem:[%s5392_s29 + $0x5c8] sm:$0xff] }
 0x378   : > { %3586 = vmatprep.subr.bf16.mxu0 %v2265_v8  ;;  %v2284_v8 = vunpack.c.h.s8.bf16 %v1526_v0  ;;  %v2287_v10 = vunpack.c.l.s8.bf16 %v1529_v6  ;;  %v2289_v16 = vunpack.c.h.s8.bf16 %v1529_v6  ;;  %v1536_v0 = vld [vmem:[%s5392_s29 + $0xbb0] sm:$0xff]  ;;  %v1539_v6 = vld [vmem:[%s5392_s29 + $0xbc8] sm:$0xff] }
 0x37a   : > { %3071 = vmatpush1.bf16.msra.mxu1 %v1880_v11  ;;  %v1336_v11 = vld [vmem:[%s5392_s29 + $0x570] sm:$0xff] }
 0x37b   : > { %3587 = vmatpush1.bf16.msra.mxu0 %v2264_v12  ;;  %3072 = vmatprep.subr.bf16.mxu1 %v1883_v13  ;;  %v1528_v12 = vld [vmem:[%s5392_s29 + $0xb70] sm:$0xff]  ;;  %v1902_v13 = vunpack.c.l.s8.bf16 %v1336_v11 }
 0x37c   : > { %3588 = vmatprep.subr.bf16.mxu0 %v2267_v14  ;;  %v2286_v14 = vunpack.c.l.s8.bf16 %v1528_v12 }
 0x37e   : > { %3073 = vmatpush1.bf16.msra.mxu1 %v1882_v17  ;;  %v1339_v17 = vld [vmem:[%s5392_s29 + $0x588] sm:$0xff] }
 0x37f   : > { %3589 = vmatpush1.bf16.msra.mxu0 %v2266_v18  ;;  %3074 = vmatprep.subr.bf16.mxu1 %v1885_v19  ;;  %v1531_v18 = vld [vmem:[%s5392_s29 + $0xb88] sm:$0xff]  ;;  %v1904_v19 = vunpack.c.h.s8.bf16 %v1336_v11  ;;  %v1907_v21 = vunpack.c.l.s8.bf16 %v1339_v17  ;;  %v1346_v11 = vld [vmem:[%s5392_s29 + $0x5c0] sm:$0xff] }
 0x380   : > { %3590 = vmatprep.subr.bf16.mxu0 %v2269_v20  ;;  %v2288_v20 = vunpack.c.h.s8.bf16 %v1528_v12  ;;  %v2291_v22 = vunpack.c.l.s8.bf16 %v1531_v18  ;;  %v1538_v12 = vld [vmem:[%s5392_s29 + $0xbc0] sm:$0xff] }
 0x382   : > { %3075 = vmatpush1.bf16.msra.mxu1 %v1884_v23  ;;  %v1338_v23 = vld [vmem:[%s5392_s29 + $0x580] sm:$0xff] }
 0x383   : > { %3591 = vmatpush1.bf16.msra.mxu0 %v2268_v24  ;;  %3076 = vmatprep.subr.bf16.mxu1 %v1887_v25  ;;  %v1530_v24 = vld [vmem:[%s5392_s29 + $0xb80] sm:$0xff]  ;;  %v4408_v25 = vld [vmem:[%s6004_s0 + $0x50] ss:$196 sps:$4 sm:$0xff]   ;;  %v1906_v27 = vunpack.c.l.s8.bf16 %v1338_v23 }
 0x384   : > { %3592 = vmatprep.subr.bf16.mxu0 %v2271_v26  ;;  %v4411_v26 = vld [vmem:[%s6004_s0 + $0xb0] ss:$196 sps:$4 sm:$0xff]   ;;  %v2290_v28 = vunpack.c.l.s8.bf16 %v1530_v24 }
 0x386   : > { %3077 = vmatpush1.bf16.msra.mxu1 %v1886_v29  ;;  %v1909_v29 = vunpack.c.h.s8.bf16 %v1339_v17  ;;  %v1349_v17 = vld [vmem:[%s5392_s29 + $0x5d8] sm:$0xff] }
 0x387   : > { %3593 = vmatpush1.bf16.msra.mxu0 %v2270_v30  ;;  %3078 = vmatprep.subr.bf16.mxu1 %v1889_v31  ;;  %v2293_v30 = vunpack.c.h.s8.bf16 %v1531_v18  ;;  %v1341_v31 = vld [vmem:[%s5392_s29 + $0x598] sm:$0xff] }
 0x388   : > { %3594 = vmatprep.subr.bf16.mxu0 %v2273_v32  ;;  %v1533_v32 = vld [vmem:[%s5392_s29 + $0xb98] sm:$0xff] }
 0x389   : > { %v1541_v18 = vld [vmem:[%s5392_s29 + $0xbd8] sm:$0xff] }
 0x38a   : > { %3079 = vmatpush1.bf16.msra.mxu1 %v1888_v35  ;;  %v1908_v35 = vunpack.c.h.s8.bf16 %v1338_v23  ;;  %v1348_v23 = vld [vmem:[%s5392_s29 + $0x5d0] sm:$0xff] }
 0x38b   : > { %3595 = vmatpush1.bf16.msra.mxu0 %v2272_v36  ;;  %3080 = vmatprep.subr.bf16.mxu1 %v1891_v37  ;;  %v2292_v36 = vunpack.c.h.s8.bf16 %v1530_v24  ;;  %v1911_v37 = vunpack.c.l.s8.bf16 %v1341_v31  ;;  %v1540_v24 = vld [vmem:[%s5392_s29 + $0xbd0] sm:$0xff] }
 0x38c   : > { %3596 = vmatprep.subr.bf16.mxu0 %v2275_v38  ;;  %v2295_v38 = vunpack.c.l.s8.bf16 %v1533_v32 }
 0x38e   : > { %3081 = vmatpush1.bf16.msra.mxu1 %v1890_v41  ;;  %v1910_v41 = vunpack.c.l.s8.bf16 %v1340_v39 }
 0x38f   : > { %3597 = vmatpush1.bf16.msra.mxu0 %v2274_v42  ;;  %3082 = vmatprep.subr.bf16.mxu1 %v1893_v43  ;;  %v2294_v42 = vunpack.c.l.s8.bf16 %v1532_v40  ;;  %v1913_v43 = vunpack.c.h.s8.bf16 %v1341_v31  ;;  %v1928_v31 = vunpack.c.h.s8.bf16 %v1348_v23 }
 0x390   : > { %3598 = vmatprep.subr.bf16.mxu0 %v2277_v44  ;;  %v2297_v44 = vunpack.c.h.s8.bf16 %v1533_v32  ;;  %v2312_v32 = vunpack.c.h.s8.bf16 %v1540_v24 }
 0x392   : > { %3083 = vmatpush1.bf16.msra.mxu1 %v1892_v47  ;;  %v1912_v47 = vunpack.c.h.s8.bf16 %v1340_v39 }
 0x393   : > { %3599 = vmatpush1.bf16.msra.mxu0 %v2276_v48  ;;  %3084 = vmatprep.subr.bf16.mxu1 %v1895_v49  ;;  %v2296_v48 = vunpack.c.h.s8.bf16 %v1532_v40  ;;  %v1915_v49 = vunpack.c.l.s8.bf16 %v1343_v45 }
 0x394   : > { %3600 = vmatprep.subr.bf16.mxu0 %v2279_v50  ;;  %v2299_v50 = vunpack.c.l.s8.bf16 %v1535_v46 }
 0x396   : > { %3085 = vmatpush1.bf16.msra.mxu1 %v1894_v53  ;;  %v1914_v53 = vunpack.c.l.s8.bf16 %v1342_v51 }
 0x397   : > { %3601 = vmatpush1.bf16.msra.mxu0 %v2278_v54  ;;  %3086 = vmatprep.subr.bf16.mxu1 %v1897_v55  ;;  %v2298_v54 = vunpack.c.l.s8.bf16 %v1534_v52  ;;  %v1917_v55 = vunpack.c.h.s8.bf16 %v1343_v45 }
 0x398   : > { %3602 = vmatprep.subr.bf16.mxu0 %v2281_v56  ;;  %v2301_v56 = vunpack.c.h.s8.bf16 %v1535_v46 }
 0x39a   : > { %3087 = vmatpush1.bf16.msra.mxu1 %v1896_v59  ;;  %v1916_v59 = vunpack.c.h.s8.bf16 %v1342_v51 }
 0x39b   : > { %3603 = vmatpush1.bf16.msra.mxu0 %v2280_v60  ;;  %3088 = vmatprep.subr.bf16.mxu1 %v1899_v61  ;;  %v2300_v60 = vunpack.c.h.s8.bf16 %v1534_v52  ;;  %v1919_v61 = vunpack.c.l.s8.bf16 %v1345_v57 }
 0x39c   : > { %3604 = vmatprep.subr.bf16.mxu0 %v2283_v62  ;;  %v2303_v62 = vunpack.c.l.s8.bf16 %v1537_v58 }
 0x39e   : > { %3089 = vmatpush1.bf16.msra.mxu1 %v1898_v1  ;;  %v1918_v1 = vunpack.c.l.s8.bf16 %v1344_v63 }
 0x39f   : > { %3605 = vmatpush1.bf16.msra.mxu0 %v2282_v2  ;;  %3090 = vmatprep.subr.bf16.mxu1 %v1901_v3  ;;  %v2302_v2 = vunpack.c.l.s8.bf16 %v1536_v0  ;;  %v1921_v3 = vunpack.c.h.s8.bf16 %v1345_v57  ;;  %v1546_v57 = vld [vmem:[%s5392_s29 + $0xc00] sm:$0xff] }
 0x3a0   : > { %3606 = vmatprep.subr.bf16.mxu0 %v2285_v4  ;;  %v2305_v4 = vunpack.c.h.s8.bf16 %v1537_v58  ;;  %v4423_v58 = vld [vmem:[%s5390_s28 + $0x4] ss:$8 sps:$4 sm:$0xff]  }
 0x3a2   : > { %3091 = vmatpush1.bf16.msra.mxu1 %v1900_v7  ;;  %v1920_v7 = vunpack.c.h.s8.bf16 %v1344_v63  ;;  %v4421_v63 = vld [vmem:[%s5390_s28] ss:$8 sps:$4 sm:$0xff]  }
 0x3a3   : > { %3607 = vmatpush1.bf16.msra.mxu0 %v2284_v8  ;;  %3092 = vmatprep.subr.bf16.mxu1 %v1903_v9  ;;  %v2304_v8 = vunpack.c.h.s8.bf16 %v1536_v0  ;;  %v1923_v9 = vunpack.c.l.s8.bf16 %v1347_v5  ;;  %v1549_v0 = vld [vmem:[%s5392_s29 + $0xc18] sm:$0xff] }
 0x3a4   : > { %3608 = vmatprep.subr.bf16.mxu0 %v2287_v10  ;;  %v2307_v10 = vunpack.c.l.s8.bf16 %v1539_v6 }
 0x3a6   : > { %3093 = vmatpush1.bf16.msra.mxu1 %v1902_v13  ;;  %v1922_v13 = vunpack.c.l.s8.bf16 %v1346_v11 }
 0x3a7   : > { %3609 = vmatpush1.bf16.msra.mxu0 %v2286_v14  ;;  %3094 = vmatprep.subr.bf16.mxu1 %v1905_v15  ;;  %v2306_v14 = vunpack.c.l.s8.bf16 %v1538_v12  ;;  %v1925_v15 = vunpack.c.h.s8.bf16 %v1347_v5  ;;  %v1548_v5 = vld [vmem:[%s5392_s29 + $0xc10] sm:$0xff] }
 0x3a8   : > { %3610 = vmatprep.subr.bf16.mxu0 %v2289_v16  ;;  %v2309_v16 = vunpack.c.h.s8.bf16 %v1539_v6  ;;  %v4424_v6 = vld [vmem:[%s5390_s28 + $0x10] ss:$8 sps:$4 sm:$0xff]  }
 0x3aa   : > { %3095 = vmatpush1.bf16.msra.mxu1 %v1904_v19  ;;  %v1924_v19 = vunpack.c.h.s8.bf16 %v1346_v11  ;;  %v1551_v11 = vld [vmem:[%s5392_s29 + $0xc28] sm:$0xff] }
 0x3ab   : > { %3611 = vmatpush1.bf16.msra.mxu0 %v2288_v20  ;;  %3107 = vmatprep.subr.bf16.mxu1 %v1907_v21  ;;  %v2308_v20 = vunpack.c.h.s8.bf16 %v1538_v12  ;;  %v1927_v21 = vunpack.c.l.s8.bf16 %v1349_v17  ;;  %v4432_v12 = vld [vmem:[%s5390_s28 + $0x34] ss:$8 sps:$4 sm:$0xff]  }
 0x3ac   : > { %3623 = vmatprep.subr.bf16.mxu0 %v2291_v22  ;;  %v2311_v22 = vunpack.c.l.s8.bf16 %v1541_v18 }
 0x3ad   : > { %3097 = vmatmul.mubr.bf16.vlgmr.msra.gmra.mrb[0].mxu1 %v4408_v25  ;;  %v1926_v25 = vunpack.c.l.s8.bf16 %v1348_v23 }
 0x3ae   : > { %3613 = vmatmul.mubr.bf16.vlgmr.msra.gmra.mrb[0].mxu0 %v4411_v26  ;;  %3108 = vmatpush1.bf16.msra.mxu1 %v1906_v27  ;;  %v2310_v26 = vunpack.c.l.s8.bf16 %v1540_v24  ;;  %v1929_v27 = vunpack.c.h.s8.bf16 %v1349_v17 }
 0x3af   : > { %3624 = vmatpush1.bf16.msra.mxu0 %v2290_v28  ;;  %3109 = vmatprep.subr.bf16.mxu1 %v1909_v29  ;;  %v2313_v28 = vunpack.c.h.s8.bf16 %v1541_v18  ;;  %v1351_v29 = vld [vmem:[%s5392_s29 + $0x5e8] sm:$0xff]  ;;  %v2333_v18 = vunpack.c.h.s8.bf16 %v1551_v11 }
 0x3b0   : > { %3625 = vmatprep.subr.bf16.mxu0 %v2293_v30  ;;  %3139 = vmatprep.mubr.bf16.mxu1 %v4416_v33  ;;  %v1543_v30 = vld [vmem:[%s5392_s29 + $0xbe8] sm:$0xff]  ;;  %v1931_v33 = vunpack.c.l.s8.bf16 %v1351_v29  ;;  %v1933_v39 = vunpack.c.h.s8.bf16 %v1351_v29  ;;  %v4436_v29 = vld [vmem:[%s5390_s28 + $0x50] ss:$8 sps:$4 sm:$0xff]  }
 0x3b1   : > { %3655 = vmatprep.mubr.bf16.mxu0 %v4419_v34  ;;  %v2315_v34 = vunpack.c.l.s8.bf16 %v1543_v30  ;;  %v2317_v40 = vunpack.c.h.s8.bf16 %v1543_v30  ;;  %v4438_v30 = vld [vmem:[%s5390_s28 + $0x54] ss:$8 sps:$4 sm:$0xff]  }
 0x3b2   : > { %3110 = vmatpush1.bf16.msra.mxu1 %v1908_v35  ;;  %v1350_v35 = vld [vmem:[%s5392_s29 + $0x5e0] sm:$0xff] }
 0x3b3   : > { %3626 = vmatpush1.bf16.msra.mxu0 %v2292_v36  ;;  %3111 = vmatprep.subr.bf16.mxu1 %v1911_v37  ;;  %v1542_v36 = vld [vmem:[%s5392_s29 + $0xbe0] sm:$0xff]  ;;  %v1930_v37 = vunpack.c.l.s8.bf16 %v1350_v35 }
 0x3b4   : > { %3627 = vmatprep.subr.bf16.mxu0 %v2295_v38  ;;  %v2314_v38 = vunpack.c.l.s8.bf16 %v1542_v36 }
 0x3b6   : > { %3112 = vmatpush1.bf16.msra.mxu1 %v1910_v41  ;;  %v1353_v41 = vld [vmem:[%s5392_s29 + $0x5f8] sm:$0xff] }
 0x3b7   : > { %3628 = vmatpush1.bf16.msra.mxu0 %v2294_v42  ;;  %3113 = vmatprep.subr.bf16.mxu1 %v1913_v43  ;;  %v1545_v42 = vld [vmem:[%s5392_s29 + $0xbf8] sm:$0xff]  ;;  %v1932_v43 = vunpack.c.h.s8.bf16 %v1350_v35  ;;  %v1935_v45 = vunpack.c.l.s8.bf16 %v1353_v41  ;;  %v1937_v51 = vunpack.c.h.s8.bf16 %v1353_v41  ;;  %v4447_v35 = vld [vmem:[%s5390_s28 + $0x84] ss:$8 sps:$4 sm:$0xff]  }
 0x3b8   : > { %3629 = vmatprep.subr.bf16.mxu0 %v2297_v44  ;;  %v2316_v44 = vunpack.c.h.s8.bf16 %v1542_v36  ;;  %v2319_v46 = vunpack.c.l.s8.bf16 %v1545_v42  ;;  %v2321_v52 = vunpack.c.h.s8.bf16 %v1545_v42  ;;  %v4445_v36 = vld [vmem:[%s5390_s28 + $0x80] ss:$8 sps:$4 sm:$0xff]   ;;  %v4456_v41 = vld [vmem:[%s5390_s28 + $0xb4] ss:$8 sps:$4 sm:$0xff]   ;;  %v4454_v42 = vld [vmem:[%s5390_s28 + $0xb0] ss:$8 sps:$4 sm:$0xff]  }
 0x3ba   : > { %3114 = vmatpush1.bf16.msra.mxu1 %v1912_v47  ;;  %v1352_v47 = vld [vmem:[%s5392_s29 + $0x5f0] sm:$0xff] }
 0x3bb   : > { %3630 = vmatpush1.bf16.msra.mxu0 %v2296_v48  ;;  %3115 = vmatprep.subr.bf16.mxu1 %v1915_v49  ;;  %v1544_v48 = vld [vmem:[%s5392_s29 + $0xbf0] sm:$0xff]  ;;  %v1934_v49 = vunpack.c.l.s8.bf16 %v1352_v47 }
 0x3bc   : > { %3631 = vmatprep.subr.bf16.mxu0 %v2299_v50  ;;  %v2318_v50 = vunpack.c.l.s8.bf16 %v1544_v48 }
 0x3be   : > { %3116 = vmatpush1.bf16.msra.mxu1 %v1914_v53  ;;  %v1547_v53 = vld [vmem:[%s5392_s29 + $0xc08] sm:$0xff] }
 0x3bf   : > { %3632 = vmatpush1.bf16.msra.mxu0 %v2298_v54  ;;  %3117 = vmatprep.subr.bf16.mxu1 %v1917_v55  ;;  %v1936_v54 = vunpack.c.h.s8.bf16 %v1352_v47  ;;  %v2320_v55 = vunpack.c.h.s8.bf16 %v1544_v48  ;;  %v4465_v47 = vld [vmem:[%s5390_s28 + $0xe4] ss:$8 sps:$4 sm:$0xff]   ;;  %v4463_v48 = vld [vmem:[%s5390_s28 + $0xe0] ss:$8 sps:$4 sm:$0xff]  }
 0x3c0   : > { %3633 = vmatprep.subr.bf16.mxu0 %v2301_v56  ;;  %v2323_v56 = vunpack.c.l.s8.bf16 %v1547_v53 }
 0x3c2   : > { %3118 = vmatpush1.bf16.msra.mxu1 %v1916_v59  ;;  %v4414_v59 = vld [vmem:[%s6004_s0 + $0x58] ss:$196 sps:$4 sm:$0xff]  }
 0x3c3   : > { %3634 = vmatpush1.bf16.msra.mxu0 %v2300_v60  ;;  %3119 = vmatprep.subr.bf16.mxu1 %v1919_v61  ;;  %v4417_v60 = vld [vmem:[%s6004_s0 + $0xb8] ss:$196 sps:$4 sm:$0xff]   ;;  %v2322_v61 = vunpack.c.l.s8.bf16 %v1546_v57 }
 0x3c4   : > { %3635 = vmatprep.subr.bf16.mxu0 %v2303_v62  ;;  %v2325_v62 = vunpack.c.h.s8.bf16 %v1547_v53 }
 0x3c6   : > { %3120 = vmatpush1.bf16.msra.mxu1 %v1918_v1  ;;  %v4426_v1 = vld [vmem:[%s5390_s28 + $0x14] ss:$8 sps:$4 sm:$0xff]  }
 0x3c7   : > { %3636 = vmatpush1.bf16.msra.mxu0 %v2302_v2  ;;  %3121 = vmatprep.subr.bf16.mxu1 %v1921_v3  ;;  %v2324_v2 = vunpack.c.h.s8.bf16 %v1546_v57  ;;  %v4510_v3 = vmov 0  }
 0x3c8   : > { %3637 = vmatprep.subr.bf16.mxu0 %v2305_v4  ;;  %v2327_v4 = vunpack.c.l.s8.bf16 %v1549_v0 }
 0x3ca   : > { %3122 = vmatpush1.bf16.msra.mxu1 %v1920_v7  ;;  %v4429_v7 = vld [vmem:[%s5390_s28 + $0x24] ss:$8 sps:$4 sm:$0xff]  }
 0x3cb   : > { %3638 = vmatpush1.bf16.msra.mxu0 %v2304_v8  ;;  %3123 = vmatprep.subr.bf16.mxu1 %v1923_v9  ;;  %v2326_v8 = vunpack.c.l.s8.bf16 %v1548_v5  ;;  %v2329_v9 = vunpack.c.h.s8.bf16 %v1549_v0 }
 0x3cc   : > { %3639 = vmatprep.subr.bf16.mxu0 %v2307_v10  ;;  %v4427_v10 = vld [vmem:[%s5390_s28 + $0x20] ss:$8 sps:$4 sm:$0xff]  }
 0x3ce   : > { %3124 = vmatpush1.bf16.msra.mxu1 %v1922_v13  ;;  %v2328_v13 = vunpack.c.h.s8.bf16 %v1548_v5 }
 0x3cf   : > { %3640 = vmatpush1.bf16.msra.mxu0 %v2306_v14  ;;  %3125 = vmatprep.subr.bf16.mxu1 %v1925_v15  ;;  %v2331_v14 = vunpack.c.l.s8.bf16 %v1551_v11  ;;  %v1550_v15 = vld [vmem:[%s5392_s29 + $0xc20] sm:$0xff] }
 0x3d0   : > { %3641 = vmatprep.subr.bf16.mxu0 %v2309_v16  ;;  %v4430_v16 = vld [vmem:[%s5390_s28 + $0x30] ss:$8 sps:$4 sm:$0xff]   ;;  %v2330_v17 = vunpack.c.l.s8.bf16 %v1550_v15 }
 0x3d2   : > { %3126 = vmatpush1.bf16.msra.mxu1 %v1924_v19  ;;  %v1553_v19 = vld [vmem:[%s5392_s29 + $0xc38] sm:$0xff] }
 0x3d3   : > { %3642 = vmatpush1.bf16.msra.mxu0 %v2308_v20  ;;  %3127 = vmatprep.subr.bf16.mxu1 %v1927_v21  ;;  %v2332_v20 = vunpack.c.h.s8.bf16 %v1550_v15  ;;  %v2335_v21 = vunpack.c.l.s8.bf16 %v1553_v19  ;;  %v2337_v24 = vunpack.c.h.s8.bf16 %v1553_v19 }
 0x3d4   : > { %3643 = vmatprep.subr.bf16.mxu0 %v2311_v22  ;;  %v1552_v22 = vld [vmem:[%s5392_s29 + $0xc30] sm:$0xff] }
 0x3d5   : > { %v2334_v23 = vunpack.c.l.s8.bf16 %v1552_v22 }
 0x3d6   : > { %3128 = vmatpush1.bf16.msra.mxu1 %v1926_v25  ;;  %v2336_v25 = vunpack.c.h.s8.bf16 %v1552_v22 }
 0x3d7   : > { %3644 = vmatpush1.bf16.msra.mxu0 %v2310_v26  ;;  %3129 = vmatprep.subr.bf16.mxu1 %v1929_v27  ;;  %v4420_v26 = vld [vmem:[%s6004_s0 + $0xc0] ss:$196 sps:$4 sm:$0xff]  }
 0x3d8   : > { %3645 = vmatprep.subr.bf16.mxu0 %v2313_v28  ;;  %v4435_v27 = vld [vmem:[%s5390_s28 + $0x44] ss:$8 sps:$4 sm:$0xff]   ;;  %v4433_v28 = vld [vmem:[%s5390_s28 + $0x40] ss:$8 sps:$4 sm:$0xff]  }
 0x3da   : > { %3130 = vmatpush1.bf16.msra.mxu1 %v1928_v31  ;;  %v4441_v31 = vld [vmem:[%s5390_s28 + $0x64] ss:$8 sps:$4 sm:$0xff]  }
 0x3db   : > { %3646 = vmatpush1.bf16.msra.mxu0 %v2312_v32  ;;  %3131 = vmatprep.subr.bf16.mxu1 %v1931_v33  ;;  %v4439_v32 = vld [vmem:[%s5390_s28 + $0x60] ss:$8 sps:$4 sm:$0xff]   ;;  %v4444_v33 = vld [vmem:[%s5390_s28 + $0x74] ss:$8 sps:$4 sm:$0xff]  }
 0x3dc   : > { %3647 = vmatprep.subr.bf16.mxu0 %v2315_v34  ;;  %v4442_v34 = vld [vmem:[%s5390_s28 + $0x70] ss:$8 sps:$4 sm:$0xff]  }
 0x3de   : > { %3132 = vmatpush1.bf16.msra.mxu1 %v1930_v37  ;;  %v4450_v37 = vld [vmem:[%s5390_s28 + $0x94] ss:$8 sps:$4 sm:$0xff]  }
 0x3df   : > { %3648 = vmatpush1.bf16.msra.mxu0 %v2314_v38  ;;  %3133 = vmatprep.subr.bf16.mxu1 %v1933_v39  ;;  %v4448_v38 = vld [vmem:[%s5390_s28 + $0x90] ss:$8 sps:$4 sm:$0xff]   ;;  %v4453_v39 = vld [vmem:[%s5390_s28 + $0xa4] ss:$8 sps:$4 sm:$0xff]  }
 0x3e0   : > { %3649 = vmatprep.subr.bf16.mxu0 %v2317_v40  ;;  %v4451_v40 = vld [vmem:[%s5390_s28 + $0xa0] ss:$8 sps:$4 sm:$0xff]  }
 0x3e2   : > { %3134 = vmatpush1.bf16.msra.mxu1 %v1932_v43  ;;  %v4459_v43 = vld [vmem:[%s5390_s28 + $0xc4] ss:$8 sps:$4 sm:$0xff]  }
 0x3e3   : > { %3650 = vmatpush1.bf16.msra.mxu0 %v2316_v44  ;;  %3135 = vmatprep.subr.bf16.mxu1 %v1935_v45  ;;  %v4457_v44 = vld [vmem:[%s5390_s28 + $0xc0] ss:$8 sps:$4 sm:$0xff]   ;;  %v4462_v45 = vld [vmem:[%s5390_s28 + $0xd4] ss:$8 sps:$4 sm:$0xff]  }
 0x3e4   : > { %3651 = vmatprep.subr.bf16.mxu0 %v2319_v46  ;;  %v4460_v46 = vld [vmem:[%s5390_s28 + $0xd0] ss:$8 sps:$4 sm:$0xff]  }
 0x3e6   : > { %3136 = vmatpush1.bf16.msra.mxu1 %v1934_v49  ;;  %v4466_v49 = vld [vmem:[%s5390_s28 + $0xf0] ss:$8 sps:$4 sm:$0xff]  }
 0x3e7   : > { %3652 = vmatpush1.bf16.msra.mxu0 %v2318_v50  ;;  %3137 = vmatprep.subr.bf16.mxu1 %v1937_v51  ;;  %v4468_v50 = vld [vmem:[%s5390_s28 + $0xf4] ss:$8 sps:$4 sm:$0xff]  }
 0x3e8   : > { %3653 = vmatprep.subr.bf16.mxu0 %v2321_v52 }
 0x3ea   : > { %3138 = vmatpush1.bf16.msra.mxu1 %v1936_v54 }
 0x3eb   : > { %3654 = vmatpush1.bf16.msra.mxu0 %v2320_v55  ;;  %3947 = vmatprep.subr.bf16.mxu1 %v4423_v58  ;;  %v3711_v55 = vlaneseq  ;;  %v3709_v58 = vld [vmem:[%s1124_s15] sm:$0x3] }
 0x3ec   : > { %3666 = vmatprep.subr.bf16.mxu0 %v2323_v56 }
 0x3ed   : > { %3140 = vmatmul.mubr.bf16.vlgmr.msra.gmra.mrb[0].mxu1 %v4414_v59  ;;  %v3712_v56 = vshrl.u32 %v3711_v55, 7 }
 0x3ee   : > { %3656 = vmatmul.mubr.bf16.vlgmr.msra.gmra.mrb[0].mxu0 %v4417_v60  ;;  %3948 = vmatpush1.bf16.msra.mxu1 %v4421_v63  ;;  %v3725_v60 = vld [vmem:[%s1133_s24] sm:$0x3] }
 0x3ef   : > { %3667 = vmatpush1.bf16.msra.mxu0 %v2322_v61  ;;  %3698 = vmatprep.mubr.bf16.mxu0 %v4510_v3  ;;  %v3713_v57 = vsub.s32 0, %v3712_v56  ;;  %v3717_v59 = vsub.s32 1, %v3712_v56 }
 0x3f0   : > { %3668 = vmatprep.subr.bf16.mxu0 %v2325_v62  ;;  %3949 = vmatprep.subr.bf16.mxu1 %v4426_v1 }
 0x3f1   : > { %v3714_v61 = vrot.slane %v3709_v58, %v3713_v57  ;;  %v3718_v63 = vrot.slane %v3709_v58, %v3717_v59  ;;  %v3730_v1 = vrot.slane %v3725_v60, %v3713_v57 }
 0x3f2   : > { %3950 = vmatpush1.bf16.msra.mxu1 %v4424_v6 }
 0x3f3   : > { %3669 = vmatpush1.bf16.msra.mxu0 %v2324_v2  ;;  %3951 = vmatprep.subr.bf16.mxu1 %v4429_v7 }
 0x3f4   : > { %3670 = vmatprep.subr.bf16.mxu0 %v2327_v4  ;;  %v3734_v4 = vrot.slane %v3725_v60, %v3717_v59 }
 0x3f6   : > { %3952 = vmatpush1.bf16.msra.mxu1 %v4427_v10 }
 0x3f7   : > { %3671 = vmatpush1.bf16.msra.mxu0 %v2326_v8  ;;  %3953 = vmatprep.subr.bf16.mxu1 %v4432_v12 }
 0x3f8   : > { %3672 = vmatprep.subr.bf16.mxu0 %v2329_v9 }
 0x3fa   : > { %3954 = vmatpush1.bf16.msra.mxu1 %v4430_v16 }
 0x3fb   : > { %3673 = vmatpush1.bf16.msra.mxu0 %v2328_v13  ;;  %3955 = vmatprep.subr.bf16.mxu1 %v4435_v27  ;;  %v3749_v27 = vld [vmem:[#allocation2] sm:$0xff] }
 0x3fc   : > { %3674 = vmatprep.subr.bf16.mxu0 %v2331_v14 }
 0x3fe   : > { %3956 = vmatpush1.bf16.msra.mxu1 %v4433_v28  ;;  %v3750_v28 = vld [vmem:[#allocation2 + $0x8] sm:$0xff] }
 0x3ff   : > { %3675 = vmatpush1.bf16.msra.mxu0 %v2330_v17  ;;  %3957 = vmatprep.subr.bf16.mxu1 %v4438_v30  ;;  %v3751_v30 = vld [vmem:[#allocation2 + $0x10] sm:$0xff] }
 0x400   : > { %3676 = vmatprep.subr.bf16.mxu0 %v2333_v18 }
 0x402   : > { %3958 = vmatpush1.bf16.msra.mxu1 %v4436_v29 }
 0x403   : > { %3677 = vmatpush1.bf16.msra.mxu0 %v2332_v20  ;;  %3959 = vmatprep.subr.bf16.mxu1 %v4441_v31 }
 0x404   : > { %3678 = vmatprep.subr.bf16.mxu0 %v2335_v21 }
 0x406   : > { %3960 = vmatpush1.bf16.msra.mxu1 %v4439_v32 }
 0x407   : > { %3679 = vmatpush1.bf16.msra.mxu0 %v2334_v23  ;;  %3961 = vmatprep.subr.bf16.mxu1 %v4444_v33  ;;  %v3752_v33 = vld [vmem:[#allocation2 + $0x18] sm:$0xff] }
 0x408   : > { %3680 = vmatprep.subr.bf16.mxu0 %v2337_v24 }
 0x40a   : > { %3962 = vmatpush1.bf16.msra.mxu1 %v4442_v34 }
 0x40b   : > { %3681 = vmatpush1.bf16.msra.mxu0 %v2336_v25  ;;  %3963 = vmatprep.subr.bf16.mxu1 %v4447_v35 }
 0x40e   : > { %3699 = vmatmul.mubr.bf16.vlgmr.msra.gmra.mrb[0].mxu0 %v4420_v26  ;;  %3964 = vmatpush1.bf16.msra.mxu1 %v4445_v36 }
 0x40f   : > { %3965 = vmatprep.subr.bf16.mxu1 %v4450_v37 }
 0x412   : > { %3966 = vmatpush1.bf16.msra.mxu1 %v4448_v38 }
 0x413   : > { %3967 = vmatprep.subr.bf16.mxu1 %v4453_v39 }
 0x416   : > { %3968 = vmatpush1.bf16.msra.mxu1 %v4451_v40 }
 0x417   : > { %3969 = vmatprep.subr.bf16.mxu1 %v4456_v41 }
 0x41a   : > { %3970 = vmatpush1.bf16.msra.mxu1 %v4454_v42 }
 0x41b   : > { %3971 = vmatprep.subr.bf16.mxu1 %v4459_v43 }
 0x41e   : > { %3972 = vmatpush1.bf16.msra.mxu1 %v4457_v44 }
 0x41f   : > { %3973 = vmatprep.subr.bf16.mxu1 %v4462_v45 }
 0x422   : > { %3974 = vmatpush1.bf16.msra.mxu1 %v4460_v46 }
 0x423   : > { %3975 = vmatprep.subr.bf16.mxu1 %v4465_v47 }
 0x426   : > { %3976 = vmatpush1.bf16.msra.mxu1 %v4463_v48 }
 0x427   : > { %3977 = vmatprep.subr.bf16.mxu1 %v4468_v50 }
 0x42a   : > { %3978 = vmatpush1.bf16.msra.mxu1 %v4466_v49 }
 0x4c0   : > { %v3141_v51 = vpop.f32.mrb[0].mxu1 }
 0x4c1   : > { %v3143_v52 = vpop.f32.mrb[1].mxu1 }
 0x4c2   : > { %v3145_v53 = vpop.f32.mrb[2].mxu1 }
 0x4c3   : > { %v3147_v54 = vpop.f32.mrb[3].mxu1 }
 0x4e1   : > { %v3700_v62 = vpop.f32.mrb[0].mxu0 }
 0x4e2   : > { %v4208_v0 = vadd.f32 %v3700_v62, %v3141_v51  ;;  %v3702_v2 = vpop.f32.mrb[1].mxu0 }
 0x4e3   : > { %v4209_v3 = vadd.f32 %v3702_v2, %v3143_v52  ;;  %v3704_v5 = vpop.f32.mrb[2].mxu0 }
 0x4e4   : > { %v3721_v6 = vmul.f32 %v4208_v0, %v3714_v61  ;;  %v4210_v7 = vadd.f32 %v3704_v5, %v3145_v53  ;;  %v3706_v8 = vpop.f32.mrb[3].mxu0 }
 0x4e5   : > { %v3722_v9 = vmul.f32 %v4209_v3, %v3718_v63  ;;  %v4211_v10 = vadd.f32 %v3706_v8, %v3147_v54 }
 0x4e6   : > { %v3737_v11 = vadd.f32 %v3730_v1, %v3721_v6  ;;  %v3723_v12 = vmul.f32 %v4210_v7, %v3714_v61 }
 0x4e7   : > { %v3738_v13 = vadd.f32 %v3734_v4, %v3722_v9  ;;  %v3724_v14 = vmul.f32 %v4211_v10, %v3718_v63 }
 0x4e8   : > { %v3741_v15 = vmul.f32 0.1, %v3737_v11  ;;  %v3739_v16 = vadd.f32 %v3730_v1, %v3723_v12 }
 0x4e9   : > { %v3742_v17 = vmul.f32 0.1, %v3738_v13  ;;  %v3740_v18 = vadd.f32 %v3734_v4, %v3724_v14 }
 0x4ea   : > { %v3743_v19 = vmul.f32 0.1, %v3739_v16  ;;  %v3745_v21 = vmax.f32 %v3737_v11, %v3741_v15 }
 0x4eb   : > { %v3744_v20 = vmul.f32 0.1, %v3740_v18  ;;  %v3746_v23 = vmax.f32 %v3738_v13, %v3742_v17 }
 0x4ec   : > { %v3747_v22 = vmax.f32 %v3739_v16, %v3743_v19 }
 0x4ed   : > { %v3748_v24 = vmax.f32 %v3740_v18, %v3744_v20 }
 0x4ee   : > { %v3753_v25 = vpack.c.bf16 %v3747_v22, %v3745_v21 }
 0x4ef   : > { %v3754_v26 = vpack.c.bf16 %v3748_v24, %v3746_v23 }
 0x4f1   : > { %3979 = vmatprep.mubr.bf16.mxu1 %v3754_v26 }
 0x4f2   : > { %3980 = vmatmul.mubr.bf16.vlgmr.msra.gmra.mrb[4].mxu1 %v3753_v25 }
 0x5c5   : > { %v3981_v29 = vpop.f32.mrb[4].mxu1  ;;  %4001 = sbr.rel (%p4202_p12) target bundleno = 1492 (0x5d4), region = 71 }
 0x5c6   : > { %v3990_v31 = vadd.f32 %v3981_v29, %v3749_v27  ;;  %v3983_v32 = vpop.f32.mrb[5].mxu1 }
 0x5c7   : > { %v3991_v34 = vadd.f32 %v3983_v32, %v3750_v28  ;;  %v3985_v35 = vpop.f32.mrb[6].mxu1 }
 0x5c8   : > { %3994 = vst [vmem:[#allocation2] sm:$0xff] %v3990_v31  ;;  %v3992_v36 = vadd.f32 %v3985_v35, %v3751_v30  ;;  %v3987_v37 = vpop.f32.mrb[7].mxu1 }
 0x5c9   : > { %3995 = vst [vmem:[#allocation2 + $0x8] sm:$0xff] %v3991_v34  ;;  %v3993_v38 = vadd.f32 %v3987_v37, %v3752_v33 }
 0x5ca   : > { %3996 = vst [vmem:[#allocation2 + $0x10] sm:$0xff] %v3992_v36 }
 0x5cb   : > { %3997 = vst [vmem:[#allocation2 + $0x18] sm:$0xff] %v3993_v38 }
 0x5cf   : > { %v4002_v39 = vld [vmem:[#allocation2] sm:$0xff] }
 0x5d0   : > { %v4003_v40 = vld [vmem:[#allocation2 + $0x8] sm:$0xff]  ;;  %4006 = vst [vmem:[%s6009_s5] sm:$0xff] %v4002_v39 }
 0x5d1   : > { %v4004_v41 = vld [vmem:[#allocation2 + $0x10] sm:$0xff]  ;;  %4007 = vst [vmem:[%s6009_s5 + $0x8] sm:$0xff] %v4003_v40 }
 0x5d2   : > { %4008 = vst [vmem:[%s6009_s5 + $0x10] sm:$0xff] %v4004_v41  ;;  %v4005_v42 = vld [vmem:[#allocation2 + $0x18] sm:$0xff] }
 0x5d3   : > { %4009 = vst [vmem:[%s6009_s5 + $0x18] sm:$0xff] %v4005_v42 }
 0x5d4 PF: > { %s15_s22 = sadd.s32 1, %s4507_s22   ;;  %s6010_s18 = smov %s4495_s19 }
 0x5d5   : > { %p12_p13 = scmp.ge.s32.totalorder %s15_s22, 6   ;;  %s6011_s19 = smov %s4576_s26 }
 0x5d6   : > { %s6012_s20 = smov %s4503_s21  ;;  %s6013_s21 = smov %s6015_s23 }
 0x5d7   :  { %14 = sbr.rel (!%p12_p13) target bundleno = 3 (0x3), region = 115 }

</bundles_post_ra>
